<compile_context>
chip_gen: v5e
topology: v5e:2x2
jax: 0.10.0
libtpu: 0.0.40
codegen_flags: <defaults>
</compile_context>

<pallas_src>
import functools
import math

import numpy as np
import jax
import jax.numpy as jnp
from jax.experimental import pallas as pl
from jax.experimental.pallas import tpu as pltpu


# ----------------------------------------------------------------------------- kernels
def conv_gemm_kernel(w_ref, x_ref, b_ref, o_ref, *, act, pool_w):
    """o = [maxpool-epilogue] act(w @ x + b).

    w: (Cout, Kp) bf16, x: (Kp, Mt) bf16, b: (Cout, 1) f32, o: (Cout, Mt).
    Mt is a tile of the flattened (n, h, w) axis -> lane-dense output.
    When pool_w (= spatial W) is set, the epilogue replaces each position with the
    max of its 2x2 window (neighbours at lane offsets +1 and +pool_w); the wrapper
    then keeps only the stride-s window starts, fusing MaxPool2d into the conv.
    """
    acc = jnp.dot(w_ref[...], x_ref[...], preferred_element_type=jnp.float32)
    acc = acc + b_ref[...]                       # (Cout, 1) broadcast over lanes
    if act == "relu":
        acc = jnp.maximum(acc, 0.0)
    elif act == "sigmoid":
        acc = jax.nn.sigmoid(acc)
    if pool_w is not None:
        # max over (w, w+1), then over (h, h+1).  Wrap-around / cross-row garbage only
        # lands at positions that are never valid window starts (odd h or w, last
        # row/col), which the wrapper's strided slice discards.
        acc = jnp.maximum(acc, jnp.roll(acc, -1, axis=1))
        acc = jnp.maximum(acc, jnp.roll(acc, -pool_w, axis=1))
    o_ref[...] = acc.astype(o_ref.dtype)


def upsample_bilinear_kernel(x_ref, aw_ref, ah_ref, o_ref):
    """Fused separable bilinear upsample.

    x: (B, H, W), aw: (Q, W), ah: (P, H)
    o[b, p, q] = sum_{h, w} ah[p, h] * aw[q, w] * x[b, h, w]
    """
    x = x_ref[...]
    b = x.shape[0]
    awb = jnp.broadcast_to(aw_ref[...], (b,) + aw_ref.shape)
    ahb = jnp.broadcast_to(ah_ref[...], (b,) + ah_ref.shape)
    t = jnp.einsum("bhw,bqw->bhq", x, awb,
                   preferred_element_type=jnp.float32).astype(x.dtype)
    o = jnp.einsum("bph,bhq->bpq", ahb, t, preferred_element_type=jnp.float32)
    o_ref[...] = o.astype(o_ref.dtype)


# ----------------------------------------------------------------------------- wrappers
def _choose_m_tile(m, pool_w):
    """Lane (M) tile: full array when small; otherwise a 128-multiple tile that, for
    pooled layers, is also a multiple of 2*W so 2x2 windows never cross tiles."""
    if m <= 2048:
        return m
    if pool_w is None:
        return 1792                     # 14 * 128
    row = 2 * pool_w
    align = row * 128 // math.gcd(row, 128)   # lcm(2W, 128)
    if align >= m:
        return m
    return align * max(1, 2048 // align)


def _pallas_conv_gemm(wmat, patches, bias, act, pool_w, out_dtype):
    cout, kp = wmat.shape
    _, m = patches.shape
    m_tile = _choose_m_tile(m, pool_w)
    grid = (pl.cdiv(m, m_tile),)
    kernel = functools.partial(conv_gemm_kernel, act=act, pool_w=pool_w)
    return pl.pallas_call(
        kernel,
        out_shape=jax.ShapeDtypeStruct((cout, m), out_dtype),
        grid=grid,
        in_specs=[
            pl.BlockSpec((cout, kp), lambda i: (0, 0)),
            pl.BlockSpec((kp, m_tile), lambda i: (0, i)),
            pl.BlockSpec((cout, 1), lambda i: (0, 0)),
        ],
        out_specs=pl.BlockSpec((cout, m_tile), lambda i: (0, i)),
        compiler_params=pltpu.CompilerParams(dimension_semantics=("parallel",)),
    )(wmat, patches, bias)


def conv3x3(x, w, b, act, pool_stride=None, out_dtype=jnp.bfloat16):
    """x: (Cin, N, H, W); w: (Cout, Cin, 3, 3) torch layout; b: (Cout,).

    Returns act(conv3x3_same(x)), optionally followed by MaxPool2d(2, pool_stride)
    (fused into the kernel epilogue), in (Cout, N, H', W') layout.
    """
    cin, n, h, wd = x.shape
    cout = w.shape[0]
    k = 9 * cin
    kp = -(-k // 8) * 8                                  # pad K to a sublane multiple

    # im2col (channels-first): patches[(kh*3+kw)*Cin + ci, (n*H + h)*W + w]
    xp = jnp.pad(x.astype(jnp.bfloat16), ((0, 0), (0, 0), (1, 1), (1, 1)))
    taps = [xp[:, :, kh:kh + h, kw:kw + wd] for kh in range(3) for kw in range(3)]
    patches = jnp.stack(taps, axis=0).reshape(k, n * h * wd)
    if kp > k:
        patches = jnp.concatenate(
            [patches, jnp.zeros((kp - k, n * h * wd), patches.dtype)], axis=0)

    # weight rows must match the (kh, kw, ci) patch-row order
    wmat = jnp.transpose(w, (0, 2, 3, 1)).reshape(cout, k)
    if kp > k:
        wmat = jnp.concatenate([wmat, jnp.zeros((cout, kp - k), wmat.dtype)], axis=1)
    wmat = wmat.astype(jnp.bfloat16)
    bias = b.reshape(cout, 1).astype(jnp.float32)

    pool_w = wd if pool_stride is not None else None
    out = _pallas_conv_gemm(wmat, patches, bias, act, pool_w, out_dtype)
    out = out.reshape(cout, n, h, wd)
    if pool_stride is None:
        return out
    s = pool_stride
    ho = (h - 2) // s + 1
    wo = (wd - 2) // s + 1
    # keep only the valid stride-s window starts (kernel wrote every window's max)
    return out[:, :, ::s, ::s][:, :, :ho, :wo]


def _bilinear_matrix(in_size, out_size):
    """PyTorch bilinear interpolation weights, align_corners=False."""
    scale = in_size / out_size
    a = np.zeros((out_size, in_size), dtype=np.float32)
    for o in range(out_size):
        src = (o + 0.5) * scale - 0.5
        src = max(src, 0.0)
        i0 = min(int(np.floor(src)), in_size - 1)
        frac = src - i0
        i1 = min(i0 + 1, in_size - 1)
        a[o, i0] += 1.0 - frac
        a[o, i1] += frac
    return a


def bilinear_upsample(x, scale, out_dtype=jnp.bfloat16):
    """nn.Upsample(scale_factor=scale, mode='bilinear', align_corners=False).
    x: (C, N, H, W) -> (C, N, H*scale, W*scale)."""
    c, n, h, w = x.shape
    p, q = h * scale, w * scale
    ah = jnp.asarray(_bilinear_matrix(h, p), dtype=jnp.bfloat16)  # (P, H)
    aw = jnp.asarray(_bilinear_matrix(w, q), dtype=jnp.bfloat16)  # (Q, W)
    xb = x.reshape(c * n, h, w).astype(jnp.bfloat16)
    out = pl.pallas_call(
        upsample_bilinear_kernel,
        out_shape=jax.ShapeDtypeStruct((c * n, p, q), out_dtype),
        grid=(1,),
        in_specs=[
            pl.BlockSpec((c * n, h, w), lambda i: (0, 0, 0)),
            pl.BlockSpec((q, w), lambda i: (0, 0)),
            pl.BlockSpec((p, h), lambda i: (0, 0)),
        ],
        out_specs=pl.BlockSpec((c * n, p, q), lambda i: (0, 0, 0)),
        compiler_params=pltpu.CompilerParams(dimension_semantics=("arbitrary",)),
    )(xb, aw, ah)
    return out.reshape(c, n, p, q)


# ----------------------------------------------------------------------------- model
def init_params(key):
    # (Cout, Cin) per conv layer, same topology as the PyTorch module.
    specs = {
        "e1": (16, 3), "e2": (8, 16), "e3": (4, 8),
        "d1": (8, 4), "d2": (16, 8), "d3": (3, 16), "d4": (3, 3),
    }
    params = {}
    for i, (name, (cout, cin)) in enumerate(specs.items()):
        kw, kb = jax.random.split(jax.random.fold_in(key, i))
        limit = 1.0 / np.sqrt(cin * 9)
        params[name + "_w"] = jax.random.uniform(
            kw, (cout, cin, 3, 3), jnp.float32, -limit, limit)
        params[name + "_b"] = jax.random.uniform(
            kb, (cout,), jnp.float32, -limit, limit)
    return params


@jax.jit
def autoencoder_forward(params, x_nchw):
    # NCHW at the interface (PyTorch convention), channels-major (C, N, H, W) inside
    # so the flattened spatial axis is the lane/output-N dim of every GEMM.
    x = jnp.transpose(x_nchw, (1, 0, 2, 3)).astype(jnp.bfloat16)
    # encoder: Conv+ReLU with MaxPool fused into the kernel epilogue
    x = conv3x3(x, params["e1_w"], params["e1_b"], act="relu", pool_stride=2)
    x = conv3x3(x, params["e2_w"], params["e2_b"], act="relu", pool_stride=2)
    x = conv3x3(x, params["e3_w"], params["e3_b"], act="relu", pool_stride=7)
    # decoder
    x = conv3x3(x, params["d1_w"], params["d1_b"], act="relu")
    x = bilinear_upsample(x, 7)
    x = conv3x3(x, params["d2_w"], params["d2_b"], act="relu")
    x = bilinear_upsample(x, 2)
    x = conv3x3(x, params["d3_w"], params["d3_b"], act="relu")
    x = bilinear_upsample(x, 2)
    x = conv3x3(x, params["d4_w"], params["d4_b"], act="sigmoid",
                out_dtype=jnp.float32)
    return jnp.transpose(x, (1, 0, 2, 3))


if __name__ == "__main__":
    key = jax.random.PRNGKey(0)
    kx, kp = jax.random.split(key)
    # 56x56 input -> encoder bottleneck (N,4,2,2) -> decoder reconstructs 56x56.
    x = jax.random.uniform(kx, (2, 3, 56, 56), dtype=jnp.float32)
    params = init_params(kp)
    y = autoencoder_forward(params, x)
    y = jax.block_until_ready(y)
    assert y.shape == (2, 3, 56, 56), y.shape
    assert bool(jnp.all(jnp.isfinite(y)))
    assert bool(jnp.all((y >= 0.0) & (y <= 1.0)))  # sigmoid output range
    print("KERNEL_OK")
</pallas_src>

<mosaic_0001>
module attributes {stable_mosaic.version = 11 : i64} {
  func.func @conv_gemm_kernel(%arg0: i32, %arg1: memref<16x32xbf16, #tpu.memory_space<vmem>>, %arg2: memref<32x1792xbf16, #tpu.memory_space<vmem>>, %arg3: memref<16x1xf32, #tpu.memory_space<vmem>>, %arg4: memref<16x1792xbf16, #tpu.memory_space<vmem>>) attributes {dimension_semantics = [#tpu.dimension_semantics<parallel>], iteration_bounds = array<i64: 4>, scalar_prefetch = 0 : i64, scratch_operands = 0 : i64, tpu.core_type = #tpu.core_type<tc>, window_params = [{pipeline_mode = #tpu.pipeline_mode<synchronous>, transform_indices = @transform_0, window_bounds = array<i64: 16, 32>}, {transform_indices = @transform_1, window_bounds = array<i64: 32, 1792>}, {pipeline_mode = #tpu.pipeline_mode<synchronous>, transform_indices = @transform_2, window_bounds = array<i64: 16, 1>}, {transform_indices = @transform_3, window_bounds = array<i64: 16, 1792>}]} {
    %c0 = arith.constant 0 : index
    %c0_0 = arith.constant 0 : index
    %0 = vector.load %arg1[%c0, %c0_0] : memref<16x32xbf16, #tpu.memory_space<vmem>>, vector<16x32xbf16>
    %c0_1 = arith.constant 0 : index
    %c0_2 = arith.constant 0 : index
    %1 = vector.load %arg2[%c0_1, %c0_2] : memref<32x1792xbf16, #tpu.memory_space<vmem>>, vector<32x1792xbf16>
    %cst = arith.constant dense<0.000000e+00> : vector<16x1792xf32>
    %2 = tpu.matmul %0, %1, %cst {dimension_numbers = #tpu.dot_dimension_numbers<[1], [0], [0], [1], [0, 0, 1, 1], [], []>} : vector<16x32xbf16>, vector<32x1792xbf16>, vector<16x1792xf32> -> vector<16x1792xf32>
    %c0_3 = arith.constant 0 : index
    %c0_4 = arith.constant 0 : index
    %3 = vector.load %arg3[%c0_3, %c0_4] : memref<16x1xf32, #tpu.memory_space<vmem>>, vector<16x1xf32>
    %4 = vector.broadcast %3 : vector<16x1xf32> to vector<16x1792xf32>
    %5 = arith.addf %2, %4 : vector<16x1792xf32>
    %cst_5 = arith.constant 0.000000e+00 : f32
    %6 = vector.broadcast %cst_5 : f32 to vector<16x1792xf32>
    %7 = arith.maximumf %5, %6 : vector<16x1792xf32>
    %8 = vector.extract_strided_slice %7 {offsets = [0, 1], sizes = [16, 1791], strides = [1, 1]} : vector<16x1792xf32> to vector<16x1791xf32>
    %9 = vector.extract_strided_slice %7 {offsets = [0, 0], sizes = [16, 1], strides = [1, 1]} : vector<16x1792xf32> to vector<16x1xf32>
    %10 = tpu.concatenate %8, %9 in 1 : vector<16x1791xf32>, vector<16x1xf32> -> vector<16x1792xf32>
    %11 = arith.maximumf %7, %10 : vector<16x1792xf32>
    %12 = vector.extract_strided_slice %11 {offsets = [0, 56], sizes = [16, 1736], strides = [1, 1]} : vector<16x1792xf32> to vector<16x1736xf32>
    %13 = vector.extract_strided_slice %11 {offsets = [0, 0], sizes = [16, 56], strides = [1, 1]} : vector<16x1792xf32> to vector<16x56xf32>
    %14 = tpu.concatenate %12, %13 in 1 : vector<16x1736xf32>, vector<16x56xf32> -> vector<16x1792xf32>
    %15 = arith.maximumf %11, %14 : vector<16x1792xf32>
    %16 = arith.truncf %15 : vector<16x1792xf32> to vector<16x1792xbf16>
    %c0_6 = arith.constant 0 : index
    %c0_7 = arith.constant 0 : index
    %17 = vector.load %arg4[%c0_6, %c0_7] : memref<16x1792xbf16, #tpu.memory_space<vmem>>, vector<16x1792xbf16>
    tpu.vector_store %arg4[%c0_6, %c0_7], %16 {strides = array<i32>} : memref<16x1792xbf16, #tpu.memory_space<vmem>>, vector<16x1792xbf16>,
    return
  }
  func.func @transform_0(%arg0: i32) -> (i32, i32) {
    %c0_i32 = arith.constant 0 : i32
    %c0_i32_0 = arith.constant 0 : i32
    %c0_i32_1 = arith.constant 0 : i32
    return %c0_i32, %c0_i32_0 : i32, i32
  }
  func.func @transform_1(%arg0: i32) -> (i32, i32) {
    %c0_i32 = arith.constant 0 : i32
    %c0_i32_0 = arith.constant 0 : i32
    return %c0_i32, %arg0 : i32, i32
  }
  func.func @transform_2(%arg0: i32) -> (i32, i32) {
    %c0_i32 = arith.constant 0 : i32
    %c0_i32_0 = arith.constant 0 : i32
    %c0_i32_1 = arith.constant 0 : i32
    return %c0_i32, %c0_i32_0 : i32, i32
  }
  func.func @transform_3(%arg0: i32) -> (i32, i32) {
    %c0_i32 = arith.constant 0 : i32
    %c0_i32_0 = arith.constant 0 : i32
    return %c0_i32, %arg0 : i32, i32
  }
}

module attributes {stable_mosaic.version = 11 : i64} {
  func.func @conv_gemm_kernel(%arg0: i32, %arg1: memref<8x144xbf16, #tpu.memory_space<vmem>>, %arg2: memref<144x1568xbf16, #tpu.memory_space<vmem>>, %arg3: memref<8x1xf32, #tpu.memory_space<vmem>>, %arg4: memref<8x1568xbf16, #tpu.memory_space<vmem>>) attributes {dimension_semantics = [#tpu.dimension_semantics<parallel>], iteration_bounds = array<i64: 1>, scalar_prefetch = 0 : i64, scratch_operands = 0 : i64, tpu.core_type = #tpu.core_type<tc>, window_params = [{pipeline_mode = #tpu.pipeline_mode<synchronous>, transform_indices = @transform_0, window_bounds = array<i64: 8, 144>}, {transform_indices = @transform_1, window_bounds = array<i64: 144, 1568>}, {pipeline_mode = #tpu.pipeline_mode<synchronous>, transform_indices = @transform_2, window_bounds = array<i64: 8, 1>}, {transform_indices = @transform_3, window_bounds = array<i64: 8, 1568>}]} {
    %c0 = arith.constant 0 : index
    %c0_0 = arith.constant 0 : index
    %0 = vector.load %arg1[%c0, %c0_0] : memref<8x144xbf16, #tpu.memory_space<vmem>>, vector<8x144xbf16>
    %c0_1 = arith.constant 0 : index
    %c0_2 = arith.constant 0 : index
    %1 = vector.load %arg2[%c0_1, %c0_2] : memref<144x1568xbf16, #tpu.memory_space<vmem>>, vector<144x1568xbf16>
    %cst = arith.constant dense<0.000000e+00> : vector<8x1568xf32>
    %2 = tpu.matmul %0, %1, %cst {dimension_numbers = #tpu.dot_dimension_numbers<[1], [0], [0], [1], [0, 0, 1, 1], [], []>} : vector<8x144xbf16>, vector<144x1568xbf16>, vector<8x1568xf32> -> vector<8x1568xf32>
    %c0_3 = arith.constant 0 : index
    %c0_4 = arith.constant 0 : index
    %3 = vector.load %arg3[%c0_3, %c0_4] : memref<8x1xf32, #tpu.memory_space<vmem>>, vector<8x1xf32>
    %4 = vector.broadcast %3 : vector<8x1xf32> to vector<8x1568xf32>
    %5 = arith.addf %2, %4 : vector<8x1568xf32>
    %cst_5 = arith.constant 0.000000e+00 : f32
    %6 = vector.broadcast %cst_5 : f32 to vector<8x1568xf32>
    %7 = arith.maximumf %5, %6 : vector<8x1568xf32>
    %8 = vector.extract_strided_slice %7 {offsets = [0, 1], sizes = [8, 1567], strides = [1, 1]} : vector<8x1568xf32> to vector<8x1567xf32>
    %9 = vector.extract_strided_slice %7 {offsets = [0, 0], sizes = [8, 1], strides = [1, 1]} : vector<8x1568xf32> to vector<8x1xf32>
    %10 = tpu.concatenate %8, %9 in 1 : vector<8x1567xf32>, vector<8x1xf32> -> vector<8x1568xf32>
    %11 = arith.maximumf %7, %10 : vector<8x1568xf32>
    %12 = vector.extract_strided_slice %11 {offsets = [0, 28], sizes = [8, 1540], strides = [1, 1]} : vector<8x1568xf32> to vector<8x1540xf32>
    %13 = vector.extract_strided_slice %11 {offsets = [0, 0], sizes = [8, 28], strides = [1, 1]} : vector<8x1568xf32> to vector<8x28xf32>
    %14 = tpu.concatenate %12, %13 in 1 : vector<8x1540xf32>, vector<8x28xf32> -> vector<8x1568xf32>
    %15 = arith.maximumf %11, %14 : vector<8x1568xf32>
    %16 = arith.truncf %15 : vector<8x1568xf32> to vector<8x1568xbf16>
    %c0_6 = arith.constant 0 : index
    %c0_7 = arith.constant 0 : index
    %17 = vector.load %arg4[%c0_6, %c0_7] : memref<8x1568xbf16, #tpu.memory_space<vmem>>, vector<8x1568xbf16>
    tpu.vector_store %arg4[%c0_6, %c0_7], %16 {strides = array<i32>} : memref<8x1568xbf16, #tpu.memory_space<vmem>>, vector<8x1568xbf16>,
    return
  }
  func.func @transform_0(%arg0: i32) -> (i32, i32) {
    %c0_i32 = arith.constant 0 : i32
    %c0_i32_0 = arith.constant 0 : i32
    %c0_i32_1 = arith.constant 0 : i32
    return %c0_i32, %c0_i32_0 : i32, i32
  }
  func.func @transform_1(%arg0: i32) -> (i32, i32) {
    %c0_i32 = arith.constant 0 : i32
    %c0_i32_0 = arith.constant 0 : i32
    return %c0_i32, %arg0 : i32, i32
  }
  func.func @transform_2(%arg0: i32) -> (i32, i32) {
    %c0_i32 = arith.constant 0 : i32
    %c0_i32_0 = arith.constant 0 : i32
    %c0_i32_1 = arith.constant 0 : i32
    return %c0_i32, %c0_i32_0 : i32, i32
  }
  func.func @transform_3(%arg0: i32) -> (i32, i32) {
    %c0_i32 = arith.constant 0 : i32
    %c0_i32_0 = arith.constant 0 : i32
    return %c0_i32, %arg0 : i32, i32
  }
}

module attributes {stable_mosaic.version = 11 : i64} {
  func.func @conv_gemm_kernel(%arg0: i32, %arg1: memref<4x72xbf16, #tpu.memory_space<vmem>>, %arg2: memref<72x392xbf16, #tpu.memory_space<vmem>>, %arg3: memref<4x1xf32, #tpu.memory_space<vmem>>, %arg4: memref<4x392xbf16, #tpu.memory_space<vmem>>) attributes {dimension_semantics = [#tpu.dimension_semantics<parallel>], iteration_bounds = array<i64: 1>, scalar_prefetch = 0 : i64, scratch_operands = 0 : i64, tpu.core_type = #tpu.core_type<tc>, window_params = [{pipeline_mode = #tpu.pipeline_mode<synchronous>, transform_indices = @transform_0, window_bounds = array<i64: 4, 72>}, {transform_indices = @transform_1, window_bounds = array<i64: 72, 392>}, {pipeline_mode = #tpu.pipeline_mode<synchronous>, transform_indices = @transform_2, window_bounds = array<i64: 4, 1>}, {transform_indices = @transform_3, window_bounds = array<i64: 4, 392>}]} {
    %c0 = arith.constant 0 : index
    %c0_0 = arith.constant 0 : index
    %0 = vector.load %arg1[%c0, %c0_0] : memref<4x72xbf16, #tpu.memory_space<vmem>>, vector<4x72xbf16>
    %c0_1 = arith.constant 0 : index
    %c0_2 = arith.constant 0 : index
    %1 = vector.load %arg2[%c0_1, %c0_2] : memref<72x392xbf16, #tpu.memory_space<vmem>>, vector<72x392xbf16>
    %cst = arith.constant dense<0.000000e+00> : vector<4x392xf32>
    %2 = tpu.matmul %0, %1, %cst {dimension_numbers = #tpu.dot_dimension_numbers<[1], [0], [0], [1], [0, 0, 1, 1], [], []>} : vector<4x72xbf16>, vector<72x392xbf16>, vector<4x392xf32> -> vector<4x392xf32>
    %c0_3 = arith.constant 0 : index
    %c0_4 = arith.constant 0 : index
    %3 = vector.load %arg3[%c0_3, %c0_4] : memref<4x1xf32, #tpu.memory_space<vmem>>, vector<4x1xf32>
    %4 = vector.broadcast %3 : vector<4x1xf32> to vector<4x392xf32>
    %5 = arith.addf %2, %4 : vector<4x392xf32>
    %cst_5 = arith.constant 0.000000e+00 : f32
    %6 = vector.broadcast %cst_5 : f32 to vector<4x392xf32>
    %7 = arith.maximumf %5, %6 : vector<4x392xf32>
    %8 = vector.extract_strided_slice %7 {offsets = [0, 1], sizes = [4, 391], strides = [1, 1]} : vector<4x392xf32> to vector<4x391xf32>
    %9 = vector.extract_strided_slice %7 {offsets = [0, 0], sizes = [4, 1], strides = [1, 1]} : vector<4x392xf32> to vector<4x1xf32>
    %10 = tpu.concatenate %8, %9 in 1 : vector<4x391xf32>, vector<4x1xf32> -> vector<4x392xf32>
    %11 = arith.maximumf %7, %10 : vector<4x392xf32>
    %12 = vector.extract_strided_slice %11 {offsets = [0, 14], sizes = [4, 378], strides = [1, 1]} : vector<4x392xf32> to vector<4x378xf32>
    %13 = vector.extract_strided_slice %11 {offsets = [0, 0], sizes = [4, 14], strides = [1, 1]} : vector<4x392xf32> to vector<4x14xf32>
    %14 = tpu.concatenate %12, %13 in 1 : vector<4x378xf32>, vector<4x14xf32> -> vector<4x392xf32>
    %15 = arith.maximumf %11, %14 : vector<4x392xf32>
    %16 = arith.truncf %15 : vector<4x392xf32> to vector<4x392xbf16>
    %c0_6 = arith.constant 0 : index
    %c0_7 = arith.constant 0 : index
    %17 = vector.load %arg4[%c0_6, %c0_7] : memref<4x392xbf16, #tpu.memory_space<vmem>>, vector<4x392xbf16>
    tpu.vector_store %arg4[%c0_6, %c0_7], %16 {strides = array<i32>} : memref<4x392xbf16, #tpu.memory_space<vmem>>, vector<4x392xbf16>,
    return
  }
  func.func @transform_0(%arg0: i32) -> (i32, i32) {
    %c0_i32 = arith.constant 0 : i32
    %c0_i32_0 = arith.constant 0 : i32
    %c0_i32_1 = arith.constant 0 : i32
    return %c0_i32, %c0_i32_0 : i32, i32
  }
  func.func @transform_1(%arg0: i32) -> (i32, i32) {
    %c0_i32 = arith.constant 0 : i32
    %c0_i32_0 = arith.constant 0 : i32
    return %c0_i32, %arg0 : i32, i32
  }
  func.func @transform_2(%arg0: i32) -> (i32, i32) {
    %c0_i32 = arith.constant 0 : i32
    %c0_i32_0 = arith.constant 0 : i32
    %c0_i32_1 = arith.constant 0 : i32
    return %c0_i32, %c0_i32_0 : i32, i32
  }
  func.func @transform_3(%arg0: i32) -> (i32, i32) {
    %c0_i32 = arith.constant 0 : i32
    %c0_i32_0 = arith.constant 0 : i32
    return %c0_i32, %arg0 : i32, i32
  }
}

module attributes {stable_mosaic.version = 11 : i64} {
  func.func @conv_gemm_kernel(%arg0: i32, %arg1: memref<8x40xbf16, #tpu.memory_space<vmem>>, %arg2: memref<40x8xbf16, #tpu.memory_space<vmem>>, %arg3: memref<8x1xf32, #tpu.memory_space<vmem>>, %arg4: memref<8x8xbf16, #tpu.memory_space<vmem>>) attributes {dimension_semantics = [#tpu.dimension_semantics<parallel>], iteration_bounds = array<i64: 1>, scalar_prefetch = 0 : i64, scratch_operands = 0 : i64, tpu.core_type = #tpu.core_type<tc>, window_params = [{pipeline_mode = #tpu.pipeline_mode<synchronous>, transform_indices = @transform_0, window_bounds = array<i64: 8, 40>}, {transform_indices = @transform_1, window_bounds = array<i64: 40, 8>}, {pipeline_mode = #tpu.pipeline_mode<synchronous>, transform_indices = @transform_2, window_bounds = array<i64: 8, 1>}, {transform_indices = @transform_3, window_bounds = array<i64: 8, 8>}]} {
    %c0 = arith.constant 0 : index
    %c0_0 = arith.constant 0 : index
    %0 = vector.load %arg1[%c0, %c0_0] : memref<8x40xbf16, #tpu.memory_space<vmem>>, vector<8x40xbf16>
    %c0_1 = arith.constant 0 : index
    %c0_2 = arith.constant 0 : index
    %1 = vector.load %arg2[%c0_1, %c0_2] : memref<40x8xbf16, #tpu.memory_space<vmem>>, vector<40x8xbf16>
    %cst = arith.constant dense<0.000000e+00> : vector<8x8xf32>
    %2 = tpu.matmul %0, %1, %cst {dimension_numbers = #tpu.dot_dimension_numbers<[1], [0], [0], [1], [0, 0, 1, 1], [], []>} : vector<8x40xbf16>, vector<40x8xbf16>, vector<8x8xf32> -> vector<8x8xf32>
    %c0_3 = arith.constant 0 : index
    %c0_4 = arith.constant 0 : index
    %3 = vector.load %arg3[%c0_3, %c0_4] : memref<8x1xf32, #tpu.memory_space<vmem>>, vector<8x1xf32>
    %4 = vector.broadcast %3 : vector<8x1xf32> to vector<8x8xf32>
    %5 = arith.addf %2, %4 : vector<8x8xf32>
    %cst_5 = arith.constant 0.000000e+00 : f32
    %6 = vector.broadcast %cst_5 : f32 to vector<8x8xf32>
    %7 = arith.maximumf %5, %6 : vector<8x8xf32>
    %8 = arith.truncf %7 : vector<8x8xf32> to vector<8x8xbf16>
    %c0_6 = arith.constant 0 : index
    %c0_7 = arith.constant 0 : index
    %9 = vector.load %arg4[%c0_6, %c0_7] : memref<8x8xbf16, #tpu.memory_space<vmem>>, vector<8x8xbf16>
    tpu.vector_store %arg4[%c0_6, %c0_7], %8 {strides = array<i32>} : memref<8x8xbf16, #tpu.memory_space<vmem>>, vector<8x8xbf16>,
    return
  }
  func.func @transform_0(%arg0: i32) -> (i32, i32) {
    %c0_i32 = arith.constant 0 : i32
    %c0_i32_0 = arith.constant 0 : i32
    %c0_i32_1 = arith.constant 0 : i32
    return %c0_i32, %c0_i32_0 : i32, i32
  }
  func.func @transform_1(%arg0: i32) -> (i32, i32) {
    %c0_i32 = arith.constant 0 : i32
    %c0_i32_0 = arith.constant 0 : i32
    return %c0_i32, %arg0 : i32, i32
  }
  func.func @transform_2(%arg0: i32) -> (i32, i32) {
    %c0_i32 = arith.constant 0 : i32
    %c0_i32_0 = arith.constant 0 : i32
    %c0_i32_1 = arith.constant 0 : i32
    return %c0_i32, %c0_i32_0 : i32, i32
  }
  func.func @transform_3(%arg0: i32) -> (i32, i32) {
    %c0_i32 = arith.constant 0 : i32
    %c0_i32_0 = arith.constant 0 : i32
    return %c0_i32, %arg0 : i32, i32
  }
}

module attributes {stable_mosaic.version = 11 : i64} {
  func.func @upsample_bilinear_kernel(%arg0: i32, %arg1: memref<16x2x2xbf16, #tpu.memory_space<vmem>>, %arg2: memref<14x2xbf16, #tpu.memory_space<vmem>>, %arg3: memref<14x2xbf16, #tpu.memory_space<vmem>>, %arg4: memref<16x14x14xbf16, #tpu.memory_space<vmem>>) attributes {dimension_semantics = [#tpu.dimension_semantics<arbitrary>], iteration_bounds = array<i64: 1>, scalar_prefetch = 0 : i64, scratch_operands = 0 : i64, tpu.core_type = #tpu.core_type<tc>, window_params = [{pipeline_mode = #tpu.pipeline_mode<synchronous>, transform_indices = @transform_0, window_bounds = array<i64: 16, 2, 2>}, {pipeline_mode = #tpu.pipeline_mode<synchronous>, transform_indices = @transform_1, window_bounds = array<i64: 14, 2>}, {pipeline_mode = #tpu.pipeline_mode<synchronous>, transform_indices = @transform_2, window_bounds = array<i64: 14, 2>}, {pipeline_mode = #tpu.pipeline_mode<synchronous>, transform_indices = @transform_3, window_bounds = array<i64: 16, 14, 14>}]} {
    %c0 = arith.constant 0 : index
    %c0_0 = arith.constant 0 : index
    %c0_1 = arith.constant 0 : index
    %0 = vector.load %arg1[%c0, %c0_0, %c0_1] : memref<16x2x2xbf16, #tpu.memory_space<vmem>>, vector<16x2x2xbf16>
    %c0_2 = arith.constant 0 : index
    %c0_3 = arith.constant 0 : index
    %1 = vector.load %arg2[%c0_2, %c0_3] : memref<14x2xbf16, #tpu.memory_space<vmem>>, vector<14x2xbf16>
    %2 = vector.shape_cast %1 : vector<14x2xbf16> to vector<1x14x2xbf16>
    %3 = vector.broadcast %2 : vector<1x14x2xbf16> to vector<16x14x2xbf16>
    %c0_4 = arith.constant 0 : index
    %c0_5 = arith.constant 0 : index
    %4 = vector.load %arg3[%c0_4, %c0_5] : memref<14x2xbf16, #tpu.memory_space<vmem>>, vector<14x2xbf16>
    %5 = vector.shape_cast %4 : vector<14x2xbf16> to vector<1x14x2xbf16>
    %6 = vector.broadcast %5 : vector<1x14x2xbf16> to vector<16x14x2xbf16>
    "tpu.trace_start"() <{level = 10 : i32, message = "bhw,bqw->bhq"}> : () -> ()
    %cst = arith.constant dense<0.000000e+00> : vector<16x2x14xf32>
    %7 = tpu.matmul %0, %3, %cst {dimension_numbers = #tpu.dot_dimension_numbers<[2], [2], [1], [1], [0, 0, 0, 1, 1, 1], [0], [0]>} : vector<16x2x2xbf16>, vector<16x14x2xbf16>, vector<16x2x14xf32> -> vector<16x2x14xf32>
    "tpu.trace_stop"() : () -> ()
    %8 = arith.truncf %7 : vector<16x2x14xf32> to vector<16x2x14xbf16>
    "tpu.trace_start"() <{level = 10 : i32, message = "bph,bhq->bpq"}> : () -> ()
    %cst_6 = arith.constant dense<0.000000e+00> : vector<16x14x14xf32>
    %9 = tpu.matmul %6, %8, %cst_6 {dimension_numbers = #tpu.dot_dimension_numbers<[2], [1], [1], [2], [0, 0, 0, 1, 1, 2], [0], [0]>} : vector<16x14x2xbf16>, vector<16x2x14xbf16>, vector<16x14x14xf32> -> vector<16x14x14xf32>
    "tpu.trace_stop"() : () -> ()
    %10 = arith.truncf %9 : vector<16x14x14xf32> to vector<16x14x14xbf16>
    %c0_7 = arith.constant 0 : index
    %c0_8 = arith.constant 0 : index
    %c0_9 = arith.constant 0 : index
    %11 = vector.load %arg4[%c0_7, %c0_8, %c0_9] : memref<16x14x14xbf16, #tpu.memory_space<vmem>>, vector<16x14x14xbf16>
    tpu.vector_store %arg4[%c0_7, %c0_8, %c0_9], %10 {strides = array<i32>} : memref<16x14x14xbf16, #tpu.memory_space<vmem>>, vector<16x14x14xbf16>,
    return
  }
  func.func @transform_0(%arg0: i32) -> (i32, i32, i32) {
    %c0_i32 = arith.constant 0 : i32
    %c0_i32_0 = arith.constant 0 : i32
    %c0_i32_1 = arith.constant 0 : i32
    %c0_i32_2 = arith.constant 0 : i32
    return %c0_i32, %c0_i32_0, %c0_i32_1 : i32, i32, i32
  }
  func.func @transform_1(%arg0: i32) -> (i32, i32) {
    %c0_i32 = arith.constant 0 : i32
    %c0_i32_0 = arith.constant 0 : i32
    %c0_i32_1 = arith.constant 0 : i32
    return %c0_i32, %c0_i32_0 : i32, i32
  }
  func.func @transform_2(%arg0: i32) -> (i32, i32) {
    %c0_i32 = arith.constant 0 : i32
    %c0_i32_0 = arith.constant 0 : i32
    %c0_i32_1 = arith.constant 0 : i32
    return %c0_i32, %c0_i32_0 : i32, i32
  }
  func.func @transform_3(%arg0: i32) -> (i32, i32, i32) {
    %c0_i32 = arith.constant 0 : i32
    %c0_i32_0 = arith.constant 0 : i32
    %c0_i32_1 = arith.constant 0 : i32
    %c0_i32_2 = arith.constant 0 : i32
    return %c0_i32, %c0_i32_0, %c0_i32_1 : i32, i32, i32
  }
}

module attributes {stable_mosaic.version = 11 : i64} {
  func.func @conv_gemm_kernel(%arg0: i32, %arg1: memref<16x72xbf16, #tpu.memory_space<vmem>>, %arg2: memref<72x392xbf16, #tpu.memory_space<vmem>>, %arg3: memref<16x1xf32, #tpu.memory_space<vmem>>, %arg4: memref<16x392xbf16, #tpu.memory_space<vmem>>) attributes {dimension_semantics = [#tpu.dimension_semantics<parallel>], iteration_bounds = array<i64: 1>, scalar_prefetch = 0 : i64, scratch_operands = 0 : i64, tpu.core_type = #tpu.core_type<tc>, window_params = [{pipeline_mode = #tpu.pipeline_mode<synchronous>, transform_indices = @transform_0, window_bounds = array<i64: 16, 72>}, {transform_indices = @transform_1, window_bounds = array<i64: 72, 392>}, {pipeline_mode = #tpu.pipeline_mode<synchronous>, transform_indices = @transform_2, window_bounds = array<i64: 16, 1>}, {transform_indices = @transform_3, window_bounds = array<i64: 16, 392>}]} {
    %c0 = arith.constant 0 : index
    %c0_0 = arith.constant 0 : index
    %0 = vector.load %arg1[%c0, %c0_0] : memref<16x72xbf16, #tpu.memory_space<vmem>>, vector<16x72xbf16>
    %c0_1 = arith.constant 0 : index
    %c0_2 = arith.constant 0 : index
    %1 = vector.load %arg2[%c0_1, %c0_2] : memref<72x392xbf16, #tpu.memory_space<vmem>>, vector<72x392xbf16>
    %cst = arith.constant dense<0.000000e+00> : vector<16x392xf32>
    %2 = tpu.matmul %0, %1, %cst {dimension_numbers = #tpu.dot_dimension_numbers<[1], [0], [0], [1], [0, 0, 1, 1], [], []>} : vector<16x72xbf16>, vector<72x392xbf16>, vector<16x392xf32> -> vector<16x392xf32>
    %c0_3 = arith.constant 0 : index
    %c0_4 = arith.constant 0 : index
    %3 = vector.load %arg3[%c0_3, %c0_4] : memref<16x1xf32, #tpu.memory_space<vmem>>, vector<16x1xf32>
    %4 = vector.broadcast %3 : vector<16x1xf32> to vector<16x392xf32>
    %5 = arith.addf %2, %4 : vector<16x392xf32>
    %cst_5 = arith.constant 0.000000e+00 : f32
    %6 = vector.broadcast %cst_5 : f32 to vector<16x392xf32>
    %7 = arith.maximumf %5, %6 : vector<16x392xf32>
    %8 = arith.truncf %7 : vector<16x392xf32> to vector<16x392xbf16>
    %c0_6 = arith.constant 0 : index
    %c0_7 = arith.constant 0 : index
    %9 = vector.load %arg4[%c0_6, %c0_7] : memref<16x392xbf16, #tpu.memory_space<vmem>>, vector<16x392xbf16>
    tpu.vector_store %arg4[%c0_6, %c0_7], %8 {strides = array<i32>} : memref<16x392xbf16, #tpu.memory_space<vmem>>, vector<16x392xbf16>,
    return
  }
  func.func @transform_0(%arg0: i32) -> (i32, i32) {
    %c0_i32 = arith.constant 0 : i32
    %c0_i32_0 = arith.constant 0 : i32
    %c0_i32_1 = arith.constant 0 : i32
    return %c0_i32, %c0_i32_0 : i32, i32
  }
  func.func @transform_1(%arg0: i32) -> (i32, i32) {
    %c0_i32 = arith.constant 0 : i32
    %c0_i32_0 = arith.constant 0 : i32
    return %c0_i32, %arg0 : i32, i32
  }
  func.func @transform_2(%arg0: i32) -> (i32, i32) {
    %c0_i32 = arith.constant 0 : i32
    %c0_i32_0 = arith.constant 0 : i32
    %c0_i32_1 = arith.constant 0 : i32
    return %c0_i32, %c0_i32_0 : i32, i32
  }
  func.func @transform_3(%arg0: i32) -> (i32, i32) {
    %c0_i32 = arith.constant 0 : i32
    %c0_i32_0 = arith.constant 0 : i32
    return %c0_i32, %arg0 : i32, i32
  }
}

module attributes {stable_mosaic.version = 11 : i64} {
  func.func @upsample_bilinear_kernel(%arg0: i32, %arg1: memref<32x14x14xbf16, #tpu.memory_space<vmem>>, %arg2: memref<28x14xbf16, #tpu.memory_space<vmem>>, %arg3: memref<28x14xbf16, #tpu.memory_space<vmem>>, %arg4: memref<32x28x28xbf16, #tpu.memory_space<vmem>>) attributes {dimension_semantics = [#tpu.dimension_semantics<arbitrary>], iteration_bounds = array<i64: 1>, scalar_prefetch = 0 : i64, scratch_operands = 0 : i64, tpu.core_type = #tpu.core_type<tc>, window_params = [{pipeline_mode = #tpu.pipeline_mode<synchronous>, transform_indices = @transform_0, window_bounds = array<i64: 32, 14, 14>}, {pipeline_mode = #tpu.pipeline_mode<synchronous>, transform_indices = @transform_1, window_bounds = array<i64: 28, 14>}, {pipeline_mode = #tpu.pipeline_mode<synchronous>, transform_indices = @transform_2, window_bounds = array<i64: 28, 14>}, {pipeline_mode = #tpu.pipeline_mode<synchronous>, transform_indices = @transform_3, window_bounds = array<i64: 32, 28, 28>}]} {
    %c0 = arith.constant 0 : index
    %c0_0 = arith.constant 0 : index
    %c0_1 = arith.constant 0 : index
    %0 = vector.load %arg1[%c0, %c0_0, %c0_1] : memref<32x14x14xbf16, #tpu.memory_space<vmem>>, vector<32x14x14xbf16>
    %c0_2 = arith.constant 0 : index
    %c0_3 = arith.constant 0 : index
    %1 = vector.load %arg2[%c0_2, %c0_3] : memref<28x14xbf16, #tpu.memory_space<vmem>>, vector<28x14xbf16>
    %2 = vector.shape_cast %1 : vector<28x14xbf16> to vector<1x28x14xbf16>
    %3 = vector.broadcast %2 : vector<1x28x14xbf16> to vector<32x28x14xbf16>
    %c0_4 = arith.constant 0 : index
    %c0_5 = arith.constant 0 : index
    %4 = vector.load %arg3[%c0_4, %c0_5] : memref<28x14xbf16, #tpu.memory_space<vmem>>, vector<28x14xbf16>
    %5 = vector.shape_cast %4 : vector<28x14xbf16> to vector<1x28x14xbf16>
    %6 = vector.broadcast %5 : vector<1x28x14xbf16> to vector<32x28x14xbf16>
    "tpu.trace_start"() <{level = 10 : i32, message = "bhw,bqw->bhq"}> : () -> ()
    %cst = arith.constant dense<0.000000e+00> : vector<32x14x28xf32>
    %7 = tpu.matmul %0, %3, %cst {dimension_numbers = #tpu.dot_dimension_numbers<[2], [2], [1], [1], [0, 0, 0, 1, 1, 1], [0], [0]>} : vector<32x14x14xbf16>, vector<32x28x14xbf16>, vector<32x14x28xf32> -> vector<32x14x28xf32>
    "tpu.trace_stop"() : () -> ()
    %8 = arith.truncf %7 : vector<32x14x28xf32> to vector<32x14x28xbf16>
    "tpu.trace_start"() <{level = 10 : i32, message = "bph,bhq->bpq"}> : () -> ()
    %cst_6 = arith.constant dense<0.000000e+00> : vector<32x28x28xf32>
    %9 = tpu.matmul %6, %8, %cst_6 {dimension_numbers = #tpu.dot_dimension_numbers<[2], [1], [1], [2], [0, 0, 0, 1, 1, 2], [0], [0]>} : vector<32x28x14xbf16>, vector<32x14x28xbf16>, vector<32x28x28xf32> -> vector<32x28x28xf32>
    "tpu.trace_stop"() : () -> ()
    %10 = arith.truncf %9 : vector<32x28x28xf32> to vector<32x28x28xbf16>
    %c0_7 = arith.constant 0 : index
    %c0_8 = arith.constant 0 : index
    %c0_9 = arith.constant 0 : index
    %11 = vector.load %arg4[%c0_7, %c0_8, %c0_9] : memref<32x28x28xbf16, #tpu.memory_space<vmem>>, vector<32x28x28xbf16>
    tpu.vector_store %arg4[%c0_7, %c0_8, %c0_9], %10 {strides = array<i32>} : memref<32x28x28xbf16, #tpu.memory_space<vmem>>, vector<32x28x28xbf16>,
    return
  }
  func.func @transform_0(%arg0: i32) -> (i32, i32, i32) {
    %c0_i32 = arith.constant 0 : i32
    %c0_i32_0 = arith.constant 0 : i32
    %c0_i32_1 = arith.constant 0 : i32
    %c0_i32_2 = arith.constant 0 : i32
    return %c0_i32, %c0_i32_0, %c0_i32_1 : i32, i32, i32
  }
  func.func @transform_1(%arg0: i32) -> (i32, i32) {
    %c0_i32 = arith.constant 0 : i32
    %c0_i32_0 = arith.constant 0 : i32
    %c0_i32_1 = arith.constant 0 : i32
    return %c0_i32, %c0_i32_0 : i32, i32
  }
  func.func @transform_2(%arg0: i32) -> (i32, i32) {
    %c0_i32 = arith.constant 0 : i32
    %c0_i32_0 = arith.constant 0 : i32
    %c0_i32_1 = arith.constant 0 : i32
    return %c0_i32, %c0_i32_0 : i32, i32
  }
  func.func @transform_3(%arg0: i32) -> (i32, i32, i32) {
    %c0_i32 = arith.constant 0 : i32
    %c0_i32_0 = arith.constant 0 : i32
    %c0_i32_1 = arith.constant 0 : i32
    %c0_i32_2 = arith.constant 0 : i32
    return %c0_i32, %c0_i32_0, %c0_i32_1 : i32, i32, i32
  }
}

module attributes {stable_mosaic.version = 11 : i64} {
  func.func @conv_gemm_kernel(%arg0: i32, %arg1: memref<3x144xbf16, #tpu.memory_space<vmem>>, %arg2: memref<144x1568xbf16, #tpu.memory_space<vmem>>, %arg3: memref<3x1xf32, #tpu.memory_space<vmem>>, %arg4: memref<3x1568xbf16, #tpu.memory_space<vmem>>) attributes {dimension_semantics = [#tpu.dimension_semantics<parallel>], iteration_bounds = array<i64: 1>, scalar_prefetch = 0 : i64, scratch_operands = 0 : i64, tpu.core_type = #tpu.core_type<tc>, window_params = [{pipeline_mode = #tpu.pipeline_mode<synchronous>, transform_indices = @transform_0, window_bounds = array<i64: 3, 144>}, {transform_indices = @transform_1, window_bounds = array<i64: 144, 1568>}, {pipeline_mode = #tpu.pipeline_mode<synchronous>, transform_indices = @transform_2, window_bounds = array<i64: 3, 1>}, {transform_indices = @transform_3, window_bounds = array<i64: 3, 1568>}]} {
    %c0 = arith.constant 0 : index
    %c0_0 = arith.constant 0 : index
    %0 = vector.load %arg1[%c0, %c0_0] : memref<3x144xbf16, #tpu.memory_space<vmem>>, vector<3x144xbf16>
    %c0_1 = arith.constant 0 : index
    %c0_2 = arith.constant 0 : index
    %1 = vector.load %arg2[%c0_1, %c0_2] : memref<144x1568xbf16, #tpu.memory_space<vmem>>, vector<144x1568xbf16>
    %cst = arith.constant dense<0.000000e+00> : vector<3x1568xf32>
    %2 = tpu.matmul %0, %1, %cst {dimension_numbers = #tpu.dot_dimension_numbers<[1], [0], [0], [1], [0, 0, 1, 1], [], []>} : vector<3x144xbf16>, vector<144x1568xbf16>, vector<3x1568xf32> -> vector<3x1568xf32>
    %c0_3 = arith.constant 0 : index
    %c0_4 = arith.constant 0 : index
    %3 = vector.load %arg3[%c0_3, %c0_4] : memref<3x1xf32, #tpu.memory_space<vmem>>, vector<3x1xf32>
    %4 = vector.broadcast %3 : vector<3x1xf32> to vector<3x1568xf32>
    %5 = arith.addf %2, %4 : vector<3x1568xf32>
    %cst_5 = arith.constant 0.000000e+00 : f32
    %6 = vector.broadcast %cst_5 : f32 to vector<3x1568xf32>
    %7 = arith.maximumf %5, %6 : vector<3x1568xf32>
    %8 = arith.truncf %7 : vector<3x1568xf32> to vector<3x1568xbf16>
    %c0_6 = arith.constant 0 : index
    %c0_7 = arith.constant 0 : index
    %9 = vector.load %arg4[%c0_6, %c0_7] : memref<3x1568xbf16, #tpu.memory_space<vmem>>, vector<3x1568xbf16>
    tpu.vector_store %arg4[%c0_6, %c0_7], %8 {strides = array<i32>} : memref<3x1568xbf16, #tpu.memory_space<vmem>>, vector<3x1568xbf16>,
    return
  }
  func.func @transform_0(%arg0: i32) -> (i32, i32) {
    %c0_i32 = arith.constant 0 : i32
    %c0_i32_0 = arith.constant 0 : i32
    %c0_i32_1 = arith.constant 0 : i32
    return %c0_i32, %c0_i32_0 : i32, i32
  }
  func.func @transform_1(%arg0: i32) -> (i32, i32) {
    %c0_i32 = arith.constant 0 : i32
    %c0_i32_0 = arith.constant 0 : i32
    return %c0_i32, %arg0 : i32, i32
  }
  func.func @transform_2(%arg0: i32) -> (i32, i32) {
    %c0_i32 = arith.constant 0 : i32
    %c0_i32_0 = arith.constant 0 : i32
    %c0_i32_1 = arith.constant 0 : i32
    return %c0_i32, %c0_i32_0 : i32, i32
  }
  func.func @transform_3(%arg0: i32) -> (i32, i32) {
    %c0_i32 = arith.constant 0 : i32
    %c0_i32_0 = arith.constant 0 : i32
    return %c0_i32, %arg0 : i32, i32
  }
}

module attributes {stable_mosaic.version = 11 : i64} {
  func.func @upsample_bilinear_kernel(%arg0: i32, %arg1: memref<6x28x28xbf16, #tpu.memory_space<vmem>>, %arg2: memref<56x28xbf16, #tpu.memory_space<vmem>>, %arg3: memref<56x28xbf16, #tpu.memory_space<vmem>>, %arg4: memref<6x56x56xbf16, #tpu.memory_space<vmem>>) attributes {dimension_semantics = [#tpu.dimension_semantics<arbitrary>], iteration_bounds = array<i64: 1>, scalar_prefetch = 0 : i64, scratch_operands = 0 : i64, tpu.core_type = #tpu.core_type<tc>, window_params = [{pipeline_mode = #tpu.pipeline_mode<synchronous>, transform_indices = @transform_0, window_bounds = array<i64: 6, 28, 28>}, {pipeline_mode = #tpu.pipeline_mode<synchronous>, transform_indices = @transform_1, window_bounds = array<i64: 56, 28>}, {pipeline_mode = #tpu.pipeline_mode<synchronous>, transform_indices = @transform_2, window_bounds = array<i64: 56, 28>}, {pipeline_mode = #tpu.pipeline_mode<synchronous>, transform_indices = @transform_3, window_bounds = array<i64: 6, 56, 56>}]} {
    %c0 = arith.constant 0 : index
    %c0_0 = arith.constant 0 : index
    %c0_1 = arith.constant 0 : index
    %0 = vector.load %arg1[%c0, %c0_0, %c0_1] : memref<6x28x28xbf16, #tpu.memory_space<vmem>>, vector<6x28x28xbf16>
    %c0_2 = arith.constant 0 : index
    %c0_3 = arith.constant 0 : index
    %1 = vector.load %arg2[%c0_2, %c0_3] : memref<56x28xbf16, #tpu.memory_space<vmem>>, vector<56x28xbf16>
    %2 = vector.shape_cast %1 : vector<56x28xbf16> to vector<1x56x28xbf16>
    %3 = vector.broadcast %2 : vector<1x56x28xbf16> to vector<6x56x28xbf16>
    %c0_4 = arith.constant 0 : index
    %c0_5 = arith.constant 0 : index
    %4 = vector.load %arg3[%c0_4, %c0_5] : memref<56x28xbf16, #tpu.memory_space<vmem>>, vector<56x28xbf16>
    %5 = vector.shape_cast %4 : vector<56x28xbf16> to vector<1x56x28xbf16>
    %6 = vector.broadcast %5 : vector<1x56x28xbf16> to vector<6x56x28xbf16>
    "tpu.trace_start"() <{level = 10 : i32, message = "bhw,bqw->bhq"}> : () -> ()
    %cst = arith.constant dense<0.000000e+00> : vector<6x28x56xf32>
    %7 = tpu.matmul %0, %3, %cst {dimension_numbers = #tpu.dot_dimension_numbers<[2], [2], [1], [1], [0, 0, 0, 1, 1, 1], [0], [0]>} : vector<6x28x28xbf16>, vector<6x56x28xbf16>, vector<6x28x56xf32> -> vector<6x28x56xf32>
    "tpu.trace_stop"() : () -> ()
    %8 = arith.truncf %7 : vector<6x28x56xf32> to vector<6x28x56xbf16>
    "tpu.trace_start"() <{level = 10 : i32, message = "bph,bhq->bpq"}> : () -> ()
    %cst_6 = arith.constant dense<0.000000e+00> : vector<6x56x56xf32>
    %9 = tpu.matmul %6, %8, %cst_6 {dimension_numbers = #tpu.dot_dimension_numbers<[2], [1], [1], [2], [0, 0, 0, 1, 1, 2], [0], [0]>} : vector<6x56x28xbf16>, vector<6x28x56xbf16>, vector<6x56x56xf32> -> vector<6x56x56xf32>
    "tpu.trace_stop"() : () -> ()
    %10 = arith.truncf %9 : vector<6x56x56xf32> to vector<6x56x56xbf16>
    %c0_7 = arith.constant 0 : index
    %c0_8 = arith.constant 0 : index
    %c0_9 = arith.constant 0 : index
    %11 = vector.load %arg4[%c0_7, %c0_8, %c0_9] : memref<6x56x56xbf16, #tpu.memory_space<vmem>>, vector<6x56x56xbf16>
    tpu.vector_store %arg4[%c0_7, %c0_8, %c0_9], %10 {strides = array<i32>} : memref<6x56x56xbf16, #tpu.memory_space<vmem>>, vector<6x56x56xbf16>,
    return
  }
  func.func @transform_0(%arg0: i32) -> (i32, i32, i32) {
    %c0_i32 = arith.constant 0 : i32
    %c0_i32_0 = arith.constant 0 : i32
    %c0_i32_1 = arith.constant 0 : i32
    %c0_i32_2 = arith.constant 0 : i32
    return %c0_i32, %c0_i32_0, %c0_i32_1 : i32, i32, i32
  }
  func.func @transform_1(%arg0: i32) -> (i32, i32) {
    %c0_i32 = arith.constant 0 : i32
    %c0_i32_0 = arith.constant 0 : i32
    %c0_i32_1 = arith.constant 0 : i32
    return %c0_i32, %c0_i32_0 : i32, i32
  }
  func.func @transform_2(%arg0: i32) -> (i32, i32) {
    %c0_i32 = arith.constant 0 : i32
    %c0_i32_0 = arith.constant 0 : i32
    %c0_i32_1 = arith.constant 0 : i32
    return %c0_i32, %c0_i32_0 : i32, i32
  }
  func.func @transform_3(%arg0: i32) -> (i32, i32, i32) {
    %c0_i32 = arith.constant 0 : i32
    %c0_i32_0 = arith.constant 0 : i32
    %c0_i32_1 = arith.constant 0 : i32
    %c0_i32_2 = arith.constant 0 : i32
    return %c0_i32, %c0_i32_0, %c0_i32_1 : i32, i32, i32
  }
}

module attributes {stable_mosaic.version = 11 : i64} {
  func.func @conv_gemm_kernel(%arg0: i32, %arg1: memref<3x32xbf16, #tpu.memory_space<vmem>>, %arg2: memref<32x1792xbf16, #tpu.memory_space<vmem>>, %arg3: memref<3x1xf32, #tpu.memory_space<vmem>>, %arg4: memref<3x1792xf32, #tpu.memory_space<vmem>>) attributes {dimension_semantics = [#tpu.dimension_semantics<parallel>], iteration_bounds = array<i64: 4>, scalar_prefetch = 0 : i64, scratch_operands = 0 : i64, tpu.core_type = #tpu.core_type<tc>, window_params = [{pipeline_mode = #tpu.pipeline_mode<synchronous>, transform_indices = @transform_0, window_bounds = array<i64: 3, 32>}, {transform_indices = @transform_1, window_bounds = array<i64: 32, 1792>}, {pipeline_mode = #tpu.pipeline_mode<synchronous>, transform_indices = @transform_2, window_bounds = array<i64: 3, 1>}, {transform_indices = @transform_3, window_bounds = array<i64: 3, 1792>}]} {
    %c0 = arith.constant 0 : index
    %c0_0 = arith.constant 0 : index
    %0 = vector.load %arg1[%c0, %c0_0] : memref<3x32xbf16, #tpu.memory_space<vmem>>, vector<3x32xbf16>
    %c0_1 = arith.constant 0 : index
    %c0_2 = arith.constant 0 : index
    %1 = vector.load %arg2[%c0_1, %c0_2] : memref<32x1792xbf16, #tpu.memory_space<vmem>>, vector<32x1792xbf16>
    %cst = arith.constant dense<0.000000e+00> : vector<3x1792xf32>
    %2 = tpu.matmul %0, %1, %cst {dimension_numbers = #tpu.dot_dimension_numbers<[1], [0], [0], [1], [0, 0, 1, 1], [], []>} : vector<3x32xbf16>, vector<32x1792xbf16>, vector<3x1792xf32> -> vector<3x1792xf32>
    %c0_3 = arith.constant 0 : index
    %c0_4 = arith.constant 0 : index
    %3 = vector.load %arg3[%c0_3, %c0_4] : memref<3x1xf32, #tpu.memory_space<vmem>>, vector<3x1xf32>
    %4 = vector.broadcast %3 : vector<3x1xf32> to vector<3x1792xf32>
    %5 = arith.addf %2, %4 : vector<3x1792xf32>
    %6 = arith.negf %5 : vector<3x1792xf32>
    %7 = math.exp %6 : vector<3x1792xf32>
    %cst_5 = arith.constant 1.000000e+00 : f32
    %8 = vector.broadcast %cst_5 : f32 to vector<3x1792xf32>
    %9 = arith.addf %8, %7 : vector<3x1792xf32>
    %10 = arith.divf %8, %9 : vector<3x1792xf32>
    %c0_6 = arith.constant 0 : index
    %c0_7 = arith.constant 0 : index
    %11 = vector.load %arg4[%c0_6, %c0_7] : memref<3x1792xf32, #tpu.memory_space<vmem>>, vector<3x1792xf32>
    tpu.vector_store %arg4[%c0_6, %c0_7], %10 {strides = array<i32>} : memref<3x1792xf32, #tpu.memory_space<vmem>>, vector<3x1792xf32>,
    return
  }
  func.func @transform_0(%arg0: i32) -> (i32, i32) {
    %c0_i32 = arith.constant 0 : i32
    %c0_i32_0 = arith.constant 0 : i32
    %c0_i32_1 = arith.constant 0 : i32
    return %c0_i32, %c0_i32_0 : i32, i32
  }
  func.func @transform_1(%arg0: i32) -> (i32, i32) {
    %c0_i32 = arith.constant 0 : i32
    %c0_i32_0 = arith.constant 0 : i32
    return %c0_i32, %arg0 : i32, i32
  }
  func.func @transform_2(%arg0: i32) -> (i32, i32) {
    %c0_i32 = arith.constant 0 : i32
    %c0_i32_0 = arith.constant 0 : i32
    %c0_i32_1 = arith.constant 0 : i32
    return %c0_i32, %c0_i32_0 : i32, i32
  }
  func.func @transform_3(%arg0: i32) -> (i32, i32) {
    %c0_i32 = arith.constant 0 : i32
    %c0_i32_0 = arith.constant 0 : i32
    return %c0_i32, %arg0 : i32, i32
  }
}

</mosaic_0001>

<bundles_post_ra>
// kernel: autoencoder_forward.10
= control target key start
LH: loop header
LB: loop body
LE: loop exit
PB: predicated region body
PF: predicated region fallthrough
CT: control target
= control target key end

     0   :  { %s2738_s12 = smov 0   ;;  %s2740_s13 = smov 0   ;;  %s3976_s0 = inlined_call_operand.vmem [shape: bf16[16,32], index: 0, kind: input, shape index: {}]   ;;  %s3977_s1 = inlined_call_operand.vmem [shape: bf16[32,6272], index: 1, kind: input, shape index: {}]   ;;  %s3978_s2 = inlined_call_operand.vmem [shape: f32[16,1], index: 2, kind: input, shape index: {}]   ;;  %s3979_s3 = inlined_call_operand.vmem [shape: bf16[16,6272], index: 3, kind: output, shape index: {}]  }
   0x1   :  { %s2742_s14 = smov 0  }
   0x2 LB: > { %s2754_s15 = sadd.s32 4294967295, %s2581_s14   ;;  %s2757_s16 = sadd.s32 1, %s2581_s14   ;;  %s2581_s14 = sphi %s2742_s14, %s4030_s14   ;;  %s2577_s13 = sphi %s2740_s13, %s4029_s13   ;;  %s2573_s12 = sphi %s2738_s12, %s4028_s12  }
   0x3   : > { %s38_s17 = ssub.s32 %s2581_s14, %s2757_s16  ;;  %s41_s18 = sadd.s32 1, %s2577_s13 }
   0x4   : > { %p39_p0 = scmp.eq.s32.totalorder %s38_s17, 0  ;;  %p48_p1 = scmp.ne.s32.totalorder %s2577_s13, %s2573_s12 }
   0x5   : > { %p49_p2 = scmp.eq.s32.totalorder %s2581_s14, 0  ;;  %p99_p3 = scmp.eq.s32.totalorder %s2754_s15, 3 }
   0x6   : > { %s2767_s19 = scalar_select %p39_p0, %s2577_s13, %s41_s18  }
   0x7   : > { %p50_p4 = por %p49_p2, %p48_p1  ;;  %p2769_p5 = por %p99_p3, %p48_p1 }
   0x8   : > { %p1773_p6 = scmp.ge.s32.totalorder %s2581_s14, 4 }
   0xa   : > { %127 = sbr.rel (%p1773_p6) target bundleno = 169 (0xa9), region = 24 }
   0xf   : > { %130 = sbr.rel (!%p50_p4) target bundleno = 169 (0xa9), region = 28  ;;  %s132_s21 = sand.u32 (%p50_p4), 1, %s2577_s13  }
  0x10   : > { %s135_s22 = smul.u32 (%p50_p4), 14, %s2581_s14 }
  0x11   : > { %s2000_s23 = smul.u32 (%p50_p4), 224, %s132_s21 }
  0x12   : > { %s136_s24 = ssub.s32 (%p50_p4), 49, %s135_s22  ;;  %s1961_s25 = smul.u32 (%p50_p4), 56, %s2581_s14 }
  0x13   : > { %p137_p7 = scmp.lt.s32.totalorder (%p50_p4), %s136_s24, 14  ;;  %s2784_s4 = scalar_lea.vmem (%p50_p4), [#allocation2], %s2000_s23  }
  0x14   : > { %s2780_s28 = scalar_lea.vmem %s3977_s1, %s1961_s25  }
  0x15   : > { %s4032_s24 = smov (!%p137_p7, %s136_s24), 14 }
  0x16   : > { %s1774_s29 = sshll.u32 %s4032_s24, 4  ;;  %s2782_s30 = sshll.u32 %s4032_s24, 2 }
  0x17   : > { %p1778_p8 = scmp.eq.s32.totalorder %s1774_s29, 0 }
  0x18   : > { %p147_p9 = scmp.lt.u32.totalorder (!%p1778_p8), %s2782_s30, 8 }
  0x19   : > { %146 = sbr.rel (%p1778_p8) target bundleno = 169 (0xa9), region = 32 }
  0x1e   : > { %150 = sbr.rel (%p147_p9) target bundleno = 157 (0x9d), region = 36  ;;  %s2788_s5 = sand.u32 (!%p147_p9), 7, %s2782_s30  }
  0x1f   : > { %p173_p10 = scmp.eq.s32.totalorder (!%p147_p9), %s2788_s5, 0  ;;  %p1779_p11 = scmp.ne.s32.totalorder (!%p147_p9), %s2788_s5, 0 }
  0x23   : > { %176 = sbr.rel (%p1779_p11) target bundleno = 92 (0x5c), region = 51  ;;  %s177_s6 = sshrl.u32 (!%p1779_p11), %s2782_s30, 3 }
  0x24   : > { %s2795_s7 = sshrl.u32 (!%p1779_p11), %s177_s6, 3 }
  0x25   : > { %p1780_p12 = scmp.le.s32.totalorder (!%p1779_p11), %s2795_s7, 0 }
  0x28   : > { %1643 = sbr.rel (%p1780_p12) target bundleno = 75 (0x4b), region = 229  ;;  %s3992_s8 = smov (!%p1780_p12), %s2784_s4 }
  0x29   : > { %s3993_s9 = smov (!%p1780_p12), %s2780_s28  ;;  %s2804_s10 = smov (!%p1780_p12), 0  }
  0x2a   : > { %s2806_s11 = smov (!%p1780_p12), 0  }
  0x2d LB: >> { %v188_v0 = vld [vmem:[%s2589_s9] sm:$0xff]  ;;  %v190_v1 = vld [vmem:[%s2589_s9 + $0x8] sm:$0xff]  ;;  %v192_v2 = vld [vmem:[%s2589_s9 + $0x10] sm:$0xff]  ;;  %s252_s17 = sadd.s32 1, %s2593_s10  ;;  %s182_s11 = sadd.s32 1, %s2597_s11   ;;  %s2597_s11 = sphi %s2806_s11, %s182_s11   ;;  %s2593_s10 = sphi %s2804_s10, %s3996_s10   ;;  %s2589_s9 = sphi %s3993_s9, %s3995_s9   ;;  %s2585_s8 = sphi %s3992_s8, %s3994_s8  }
  0x2e   : >> { %189 = vst [vmem:[%s2585_s8] sm:$0xff] %v188_v0  ;;  %v194_v3 = vld [vmem:[%s2589_s9 + $0x18] sm:$0xff]  ;;  %v196_v4 = vld [vmem:[%s2589_s9 + $0x20] sm:$0xff]  ;;  %v198_v5 = vld [vmem:[%s2589_s9 + $0x28] sm:$0xff]  ;;  %p253_p13 = scmp.ge.s32.totalorder %s252_s17, %s2795_s7  ;;  %p181_p0 = scmp.ge.s32.totalorder %s182_s11, %s2795_s7 }
  0x2f   : >> { %191 = vst [vmem:[%s2585_s8 + $0x8] sm:$0xff] %v190_v1  ;;  %v200_v6 = vld [vmem:[%s2589_s9 + $0x30] sm:$0xff]  ;;  %v204_v7 = vld [vmem:[%s2589_s9 + $0xc4] sm:$0xff]  ;;  %v210_v10 = vld [vmem:[%s2589_s9 + $0xdc] sm:$0xff] }
  0x30   : >> { %193 = vst [vmem:[%s2585_s8 + $0x10] sm:$0xff] %v192_v2  ;;  %s4034_s17 = smov (%p253_p13, %s252_s17), 0  ;;  %v206_v8 = vld [vmem:[%s2589_s9 + $0xcc] sm:$0xff]  ;;  %v208_v9 = vld [vmem:[%s2589_s9 + $0xd4] sm:$0xff]  ;;  %v212_v11 = vld [vmem:[%s2589_s9 + $0xe4] sm:$0xff] }
  0x31   : >> { %195 = vst [vmem:[%s2585_s8 + $0x18] sm:$0xff] %v194_v3  ;;  %s1781_s18 = sshll.u32 %s4034_s17, 6  ;;  %v214_v12 = vld [vmem:[%s2589_s9 + $0xec] sm:$0xff]  ;;  %v216_v13 = vld [vmem:[%s2589_s9 + $0xf4] sm:$0xff]  ;;  %v226_v17 = vld [vmem:[%s2589_s9 + $0x1a0] sm:$0xff]  ;;  %s3996_s10 = smov %s4034_s17 }
  0x32   : >> { %197 = vst [vmem:[%s2585_s8 + $0x20] sm:$0xff] %v196_v4  ;;  %s2842_s21 = scalar_lea.vmem %s2780_s28, %s1781_s18   ;;  %s2845_s22 = scalar_lea.vmem %s2784_s4, %s1781_s18 [#allocation2]   ;;  %v220_v14 = vld [vmem:[%s2589_s9 + $0x188] sm:$0xff]  ;;  %v222_v15 = vld [vmem:[%s2589_s9 + $0x190] sm:$0xff]  ;;  %v224_v16 = vld [vmem:[%s2589_s9 + $0x198] sm:$0xff] }
  0x33   : >> { %199 = vst [vmem:[%s2585_s8 + $0x28] sm:$0xff] %v198_v5  ;;  %v228_v18 = vld [vmem:[%s2589_s9 + $0x1a8] sm:$0xff]  ;;  %v230_v19 = vld [vmem:[%s2589_s9 + $0x1b0] sm:$0xff]  ;;  %v232_v20 = vld [vmem:[%s2589_s9 + $0x1b8] sm:$0xff] }
  0x34   : >> { %201 = vst [vmem:[%s2585_s8 + $0x30] sm:$0xff] %v200_v6  ;;  %v236_v21 = vld [vmem:[%s2589_s9 + $0x24c] sm:$0xff]  ;;  %v238_v22 = vld [vmem:[%s2589_s9 + $0x254] sm:$0xff]  ;;  %v240_v23 = vld [vmem:[%s2589_s9 + $0x25c] sm:$0xff] }
  0x35   : >> { %205 = vst [vmem:[%s2585_s8 + $0x38] sm:$0xff] %v204_v7  ;;  %v242_v24 = vld [vmem:[%s2589_s9 + $0x264] sm:$0xff]  ;;  %v244_v25 = vld [vmem:[%s2589_s9 + $0x26c] sm:$0xff]  ;;  %v246_v26 = vld [vmem:[%s2589_s9 + $0x274] sm:$0xff] }
  0x36   : >> { %207 = vst [vmem:[%s2585_s8 + $0x40] sm:$0xff] %v206_v8  ;;  %v248_v27 = vld [vmem:[%s2589_s9 + $0x27c] sm:$0xff]  ;;  %v250_v28 = vld [vmem:[%s2589_s9 + $0x284] sm:$0xff]  ;;  %s3995_s9 = smov %s2842_s21 }
  0x37   : >> { %209 = vst [vmem:[%s2585_s8 + $0x48] sm:$0xff] %v208_v9 }
  0x38   : >> { %211 = vst [vmem:[%s2585_s8 + $0x50] sm:$0xff] %v210_v10 }
  0x39   : >> { %213 = vst [vmem:[%s2585_s8 + $0x58] sm:$0xff] %v212_v11 }
  0x3a   : >> { %215 = vst [vmem:[%s2585_s8 + $0x60] sm:$0xff] %v214_v12 }
  0x3b   : >> { %217 = vst [vmem:[%s2585_s8 + $0x68] sm:$0xff] %v216_v13 }
  0x3c   : >> { %221 = vst [vmem:[%s2585_s8 + $0x70] sm:$0xff] %v220_v14 }
  0x3d   : >> { %223 = vst [vmem:[%s2585_s8 + $0x78] sm:$0xff] %v222_v15 }
  0x3e   : >> { %225 = vst [vmem:[%s2585_s8 + $0x80] sm:$0xff] %v224_v16 }
  0x3f   : >> { %227 = vst [vmem:[%s2585_s8 + $0x88] sm:$0xff] %v226_v17 }
  0x40   : >> { %229 = vst [vmem:[%s2585_s8 + $0x90] sm:$0xff] %v228_v18 }
  0x41   : >> { %231 = vst [vmem:[%s2585_s8 + $0x98] sm:$0xff] %v230_v19 }
  0x42   : >> { %233 = vst [vmem:[%s2585_s8 + $0xa0] sm:$0xff] %v232_v20 }
  0x43   : >> { %237 = vst [vmem:[%s2585_s8 + $0xa8] sm:$0xff] %v236_v21 }
  0x44   : >> { %239 = vst [vmem:[%s2585_s8 + $0xb0] sm:$0xff] %v238_v22 }
  0x45   : >> { %241 = vst [vmem:[%s2585_s8 + $0xb8] sm:$0xff] %v240_v23 }
  0x46   : >> { %243 = vst [vmem:[%s2585_s8 + $0xc0] sm:$0xff] %v242_v24  ;;  %184 = sbr.rel (!%p181_p0) target bundleno = 45 (0x2d), region = 235 }
  0x47   : >> { %245 = vst [vmem:[%s2585_s8 + $0xc8] sm:$0xff] %v244_v25 }
  0x48   : >> { %247 = vst [vmem:[%s2585_s8 + $0xd0] sm:$0xff] %v246_v26 }
  0x49   : >> { %249 = vst [vmem:[%s2585_s8 + $0xd8] sm:$0xff] %v248_v27 }
  0x4a   : >> { %251 = vst [vmem:[%s2585_s8 + $0xe0] sm:$0xff] %v250_v28  ;;  %s3994_s8 = smov %s2845_s22 }
  0x4b PF: > { %s2901_s23 = sand.u32 7, %s177_s6   ;;  %s1962_s24 = sshll.u32 %s2795_s7, 6 }
  0x4c   : > { %s2905_s25 = scalar_lea.vmem %s2780_s28, %s1962_s24   ;;  %s2908_s26 = scalar_lea.vmem %s2784_s4, %s1962_s24 [#allocation2]  }
  0x4d   : > { %p1786_p1 = scmp.le.s32.totalorder %s2901_s23, 0 }
  0x4e   : > { %s3997_s27 = smov (!%p1786_p1), %s2908_s26  ;;  %s3998_s29 = smov (!%p1786_p1), %s2905_s25 }
  0x4f   : > { %1657 = sbr.rel (%p1786_p1) target bundleno = 92 (0x5c), region = 240  ;;  %s2917_s8 = smov (!%p1786_p1), 0  }
  0x50   : > { %s2611_s9 = smov (!%p1786_p1), 0  }
  0x54 LB: >> { %v275_v29 = vld [vmem:[%s2605_s29] sm:$0xff]  ;;  %v279_v31 = vld [vmem:[%s2605_s29 + $0x188] sm:$0xff]  ;;  %s283_s6 = sadd.s32 1, %s2609_s8  ;;  %s269_s9 = sadd.s32 1, %s2613_s9   ;;  %s2613_s9 = sphi %s2611_s9, %s269_s9   ;;  %s2609_s8 = sphi %s2917_s8, %s3999_s8   ;;  %s2605_s29 = sphi %s3998_s29, %s288_s29   ;;  %s2601_s27 = sphi %s3997_s27, %s289_s27  }
  0x55   : >> { %v277_v30 = vld [vmem:[%s2605_s29 + $0xc4] sm:$0xff]  ;;  %276 = vst [vmem:[%s2601_s27] sm:$0xff] %v275_v29  ;;  %v281_v32 = vld [vmem:[%s2605_s29 + $0x24c] sm:$0xff]  ;;  %p284_p2 = scmp.ge.s32.totalorder %s283_s6, %s2901_s23  ;;  %p268_p3 = scmp.ge.s32.totalorder %s269_s9, %s2901_s23 }
  0x56   : >> { %278 = vst [vmem:[%s2601_s27 + $0x38] sm:$0xff] %v277_v30 }
  0x57   : >> { %280 = vst [vmem:[%s2601_s27 + $0x70] sm:$0xff] %v279_v31  ;;  %s4036_s6 = smov (%p284_p2, %s283_s6), 0  ;;  %271 = sbr.rel (!%p268_p3) target bundleno = 84 (0x54), region = 246 }
  0x58   : >> { %282 = vst [vmem:[%s2601_s27 + $0xa8] sm:$0xff] %v281_v32  ;;  %s1787_s7 = sshll.u32 %s4036_s6, 3  ;;  %s3999_s8 = smov %s4036_s6 }
  0x59   : >> { %s288_s29 = scalar_lea.vmem %s2905_s25, %s1787_s7   ;;  %s289_s27 = scalar_lea.vmem %s2908_s26, %s1787_s7 [#allocation2]  }
  0x5c PF: > { %292 = sbr.rel (%p173_p10) target bundleno = 157 (0x9d), region = 69  ;;  %s294_s10 = ssub.s32 (!%p173_p10), %s2782_s30, %s2788_s5 }
  0x5d   : > { %s298_s11 = sshrl.u32 (!%p173_p10), %s2782_s30, 3  ;;  %s2938_s17 = scalar_lea.vmem (!%p173_p10), %s2780_s28, %s294_s10 }
  0x5e   : > { %s2941_s18 = scalar_lea.vmem (!%p173_p10), %s2784_s4, %s294_s10 [#allocation2]  ;;  %s2945_s21 = sshrl.u32 (!%p173_p10), %s298_s11, 3 }
  0x5f   : > { %p1789_p4 = scmp.le.s32.totalorder (!%p173_p10), %s2945_s21, 0 }
  0x61   : > { %1671 = sbr.rel (%p1789_p4) target bundleno = 132 (0x84), region = 251  ;;  %s4000_s22 = smov (!%p1789_p4), %s2784_s4 }
  0x62   : > { %s4001_s23 = smov (!%p1789_p4), %s2780_s28  ;;  %s2954_s24 = smov (!%p1789_p4), 0  }
  0x63   : > { %s2956_s25 = smov (!%p1789_p4), 0  }
  0x66 LB: >> { %v309_v33 = vld [vmem:[%s2621_s23] sm:$0xff]  ;;  %v311_v34 = vld [vmem:[%s2621_s23 + $0x8] sm:$0xff]  ;;  %v313_v35 = vld [vmem:[%s2621_s23 + $0x10] sm:$0xff]  ;;  %s373_s26 = sadd.s32 1, %s2625_s24  ;;  %s303_s25 = sadd.s32 1, %s2629_s25   ;;  %s2629_s25 = sphi %s2956_s25, %s303_s25   ;;  %s2625_s24 = sphi %s2954_s24, %s4004_s24   ;;  %s2621_s23 = sphi %s4001_s23, %s4003_s23   ;;  %s2617_s22 = sphi %s4000_s22, %s4002_s22  }
  0x67   : >> { %310 = vst [vmem:[%s2617_s22] sm:$0xff] %v309_v33  ;;  %v315_v36 = vld [vmem:[%s2621_s23 + $0x18] sm:$0xff]  ;;  %v317_v37 = vld [vmem:[%s2621_s23 + $0x20] sm:$0xff]  ;;  %v319_v38 = vld [vmem:[%s2621_s23 + $0x28] sm:$0xff]  ;;  %p374_p6 = scmp.ge.s32.totalorder %s373_s26, %s2945_s21  ;;  %p302_p7 = scmp.ge.s32.totalorder %s303_s25, %s2945_s21 }
  0x68   : >> { %312 = vst [vmem:[%s2617_s22 + $0x8] sm:$0xff] %v311_v34  ;;  %v321_v39 = vld [vmem:[%s2621_s23 + $0x30] sm:$0xff]  ;;  %v325_v40 = vld [vmem:[%s2621_s23 + $0xc4] sm:$0xff]  ;;  %v331_v43 = vld [vmem:[%s2621_s23 + $0xdc] sm:$0xff] }
  0x69   : >> { %314 = vst [vmem:[%s2617_s22 + $0x10] sm:$0xff] %v313_v35  ;;  %s4038_s26 = smov (%p374_p6, %s373_s26), 0  ;;  %v327_v41 = vld [vmem:[%s2621_s23 + $0xcc] sm:$0xff]  ;;  %v329_v42 = vld [vmem:[%s2621_s23 + $0xd4] sm:$0xff]  ;;  %v333_v44 = vld [vmem:[%s2621_s23 + $0xe4] sm:$0xff] }
  0x6a   : >> { %316 = vst [vmem:[%s2617_s22 + $0x18] sm:$0xff] %v315_v36  ;;  %s1790_s27 = sshll.u32 %s4038_s26, 6  ;;  %v335_v45 = vld [vmem:[%s2621_s23 + $0xec] sm:$0xff]  ;;  %v337_v46 = vld [vmem:[%s2621_s23 + $0xf4] sm:$0xff]  ;;  %v347_v50 = vld [vmem:[%s2621_s23 + $0x1a0] sm:$0xff]  ;;  %s4004_s24 = smov %s4038_s26 }
  0x6b   : >> { %318 = vst [vmem:[%s2617_s22 + $0x20] sm:$0xff] %v317_v37  ;;  %s2992_s29 = scalar_lea.vmem %s2780_s28, %s1790_s27   ;;  %s2995_s8 = scalar_lea.vmem %s2784_s4, %s1790_s27 [#allocation2]   ;;  %v341_v47 = vld [vmem:[%s2621_s23 + $0x188] sm:$0xff]  ;;  %v343_v48 = vld [vmem:[%s2621_s23 + $0x190] sm:$0xff]  ;;  %v345_v49 = vld [vmem:[%s2621_s23 + $0x198] sm:$0xff] }
  0x6c   : >> { %320 = vst [vmem:[%s2617_s22 + $0x28] sm:$0xff] %v319_v38  ;;  %v349_v51 = vld [vmem:[%s2621_s23 + $0x1a8] sm:$0xff]  ;;  %v351_v52 = vld [vmem:[%s2621_s23 + $0x1b0] sm:$0xff]  ;;  %v353_v53 = vld [vmem:[%s2621_s23 + $0x1b8] sm:$0xff] }
  0x6d   : >> { %322 = vst [vmem:[%s2617_s22 + $0x30] sm:$0xff] %v321_v39  ;;  %v357_v54 = vld [vmem:[%s2621_s23 + $0x24c] sm:$0xff]  ;;  %v359_v55 = vld [vmem:[%s2621_s23 + $0x254] sm:$0xff]  ;;  %v361_v56 = vld [vmem:[%s2621_s23 + $0x25c] sm:$0xff] }
  0x6e   : >> { %326 = vst [vmem:[%s2617_s22 + $0x38] sm:$0xff] %v325_v40  ;;  %v363_v57 = vld [vmem:[%s2621_s23 + $0x264] sm:$0xff]  ;;  %v365_v58 = vld [vmem:[%s2621_s23 + $0x26c] sm:$0xff]  ;;  %v367_v59 = vld [vmem:[%s2621_s23 + $0x274] sm:$0xff] }
  0x6f   : >> { %328 = vst [vmem:[%s2617_s22 + $0x40] sm:$0xff] %v327_v41  ;;  %v369_v60 = vld [vmem:[%s2621_s23 + $0x27c] sm:$0xff]  ;;  %v371_v61 = vld [vmem:[%s2621_s23 + $0x284] sm:$0xff]  ;;  %s4003_s23 = smov %s2992_s29 }
  0x70   : >> { %330 = vst [vmem:[%s2617_s22 + $0x48] sm:$0xff] %v329_v42 }
  0x71   : >> { %332 = vst [vmem:[%s2617_s22 + $0x50] sm:$0xff] %v331_v43 }
  0x72   : >> { %334 = vst [vmem:[%s2617_s22 + $0x58] sm:$0xff] %v333_v44 }
  0x73   : >> { %336 = vst [vmem:[%s2617_s22 + $0x60] sm:$0xff] %v335_v45 }
  0x74   : >> { %338 = vst [vmem:[%s2617_s22 + $0x68] sm:$0xff] %v337_v46 }
  0x75   : >> { %342 = vst [vmem:[%s2617_s22 + $0x70] sm:$0xff] %v341_v47 }
  0x76   : >> { %344 = vst [vmem:[%s2617_s22 + $0x78] sm:$0xff] %v343_v48 }
  0x77   : >> { %346 = vst [vmem:[%s2617_s22 + $0x80] sm:$0xff] %v345_v49 }
  0x78   : >> { %348 = vst [vmem:[%s2617_s22 + $0x88] sm:$0xff] %v347_v50 }
  0x79   : >> { %350 = vst [vmem:[%s2617_s22 + $0x90] sm:$0xff] %v349_v51 }
  0x7a   : >> { %352 = vst [vmem:[%s2617_s22 + $0x98] sm:$0xff] %v351_v52 }
  0x7b   : >> { %354 = vst [vmem:[%s2617_s22 + $0xa0] sm:$0xff] %v353_v53 }
  0x7c   : >> { %358 = vst [vmem:[%s2617_s22 + $0xa8] sm:$0xff] %v357_v54 }
  0x7d   : >> { %360 = vst [vmem:[%s2617_s22 + $0xb0] sm:$0xff] %v359_v55 }
  0x7e   : >> { %362 = vst [vmem:[%s2617_s22 + $0xb8] sm:$0xff] %v361_v56 }
  0x7f   : >> { %364 = vst [vmem:[%s2617_s22 + $0xc0] sm:$0xff] %v363_v57  ;;  %305 = sbr.rel (!%p302_p7) target bundleno = 102 (0x66), region = 257 }
  0x80   : >> { %366 = vst [vmem:[%s2617_s22 + $0xc8] sm:$0xff] %v365_v58 }
  0x81   : >> { %368 = vst [vmem:[%s2617_s22 + $0xd0] sm:$0xff] %v367_v59 }
  0x82   : >> { %370 = vst [vmem:[%s2617_s22 + $0xd8] sm:$0xff] %v369_v60 }
  0x83   : >> { %372 = vst [vmem:[%s2617_s22 + $0xe0] sm:$0xff] %v371_v61  ;;  %s4002_s22 = smov %s2995_s8 }
  0x84 PF: > { %s3051_s9 = sand.u32 7, %s298_s11   ;;  %s1964_s6 = sshll.u32 %s2945_s21, 6 }
  0x85   : > { %s3055_s7 = scalar_lea.vmem %s2780_s28, %s1964_s6   ;;  %s3058_s10 = scalar_lea.vmem %s2784_s4, %s1964_s6 [#allocation2]  }
  0x86   : > { %p1795_p8 = scmp.le.s32.totalorder %s3051_s9, 0 }
  0x87   : > { %s4005_s25 = smov (!%p1795_p8), %s3058_s10  ;;  %s4006_s22 = smov (!%p1795_p8), %s3055_s7 }
  0x88   : > { %1685 = sbr.rel (%p1795_p8) target bundleno = 149 (0x95), region = 262  ;;  %s2639_s23 = smov (!%p1795_p8), 0  }
  0x89   : > { %s2643_s24 = smov (!%p1795_p8), 0  }
  0x8d LB: >> { %v396_v62 = vld [vmem:[%s2637_s22] sm:$0xff]  ;;  %v400_v0 = vld [vmem:[%s2637_s22 + $0x188] sm:$0xff]  ;;  %s404_s11 = sadd.s32 1, %s2641_s23  ;;  %s390_s24 = sadd.s32 1, %s2645_s24   ;;  %s2645_s24 = sphi %s2643_s24, %s390_s24   ;;  %s2641_s23 = sphi %s2639_s23, %s2640_s23   ;;  %s2637_s22 = sphi %s4006_s22, %s409_s22   ;;  %s2633_s25 = sphi %s4005_s25, %s410_s25  }
  0x8e   : >> { %v398_v63 = vld [vmem:[%s2637_s22 + $0xc4] sm:$0xff]  ;;  %397 = vst [vmem:[%s2633_s25] sm:$0xff] %v396_v62  ;;  %v402_v1 = vld [vmem:[%s2637_s22 + $0x24c] sm:$0xff]  ;;  %p405_p9 = scmp.ge.s32.totalorder %s404_s11, %s3051_s9  ;;  %p389_p10 = scmp.ge.s32.totalorder %s390_s24, %s3051_s9 }
  0x8f   : >> { %399 = vst [vmem:[%s2633_s25 + $0x38] sm:$0xff] %v398_v63 }
  0x90   : >> { %401 = vst [vmem:[%s2633_s25 + $0x70] sm:$0xff] %v400_v0  ;;  %s4040_s11 = smov (%p405_p9, %s404_s11), 0  ;;  %392 = sbr.rel (!%p389_p10) target bundleno = 141 (0x8d), region = 268 }
  0x91   : >> { %403 = vst [vmem:[%s2633_s25 + $0xa8] sm:$0xff] %v402_v1  ;;  %s1796_s21 = sshll.u32 %s4040_s11, 3  ;;  %s2640_s23 = smov %s4040_s11  }
  0x92   : >> { %s409_s22 = scalar_lea.vmem %s3055_s7, %s1796_s21   ;;  %s410_s25 = scalar_lea.vmem %s3058_s10, %s1796_s21 [#allocation2]  }
  0x95 PF: > { %s2711_s26 = smov 1  }
  0x96   : > { %s411_s27 = sshll.u32 %s2711_s26, %s2788_s5 }
  0x97   : > { %s1798_s29 = sadd.s32 4294967295, %s411_s27 }
  0x98   : > { %v421_v2 = vld [vmem:[%s2938_s17] sm:%s1798_s29]  ;;  %v425_v4 = vld [vmem:[%s2938_s17 + $0x188] sm:%s1798_s29] }
  0x99   : > { %v423_v3 = vld [vmem:[%s2938_s17 + $0xc4] sm:%s1798_s29]  ;;  %422 = vst [vmem:[%s2941_s18] sm:%s1798_s29] %v421_v2 }
  0x9a   : > { %424 = vst [vmem:[%s2941_s18 + $0x38] sm:%s1798_s29] %v423_v3  ;;  %v427_v5 = vld [vmem:[%s2938_s17 + $0x24c] sm:%s1798_s29] }
  0x9b   : > { %426 = vst [vmem:[%s2941_s18 + $0x70] sm:%s1798_s29] %v425_v4 }
  0x9c   : > { %428 = vst [vmem:[%s2941_s18 + $0xa8] sm:%s1798_s29] %v427_v5 }
  0x9d PF: > { %p1799_p11 = scmp.ge.u32.totalorder %s2782_s30, 8 }
  0x9e   : > { %s2712_s8 = smov (!%p1799_p11), 1  }
  0x9f   : > { %153 = sbr.rel (%p1799_p11) target bundleno = 169 (0xa9), region = 40  ;;  %s154_s5 = sshll.u32 (!%p1799_p11), %s2712_s8, %s2782_s30 }
  0xa0   : > { %s1800_s9 = sadd.s32 (!%p1799_p11), 4294967295, %s154_s5 }
  0xa4   : > { %v164_v6 = vld [vmem:[%s2780_s28] sm:%s1800_s9]  ;;  %v168_v8 = vld [vmem:[%s2780_s28 + $0x188] sm:%s1800_s9] }
  0xa5   : > { %v166_v7 = vld [vmem:[%s2780_s28 + $0xc4] sm:%s1800_s9]  ;;  %165 = vst [vmem:[%s2784_s4] sm:%s1800_s9] %v164_v6 }
  0xa6   : > { %167 = vst [vmem:[%s2784_s4 + $0x38] sm:%s1800_s9] %v166_v7  ;;  %v170_v9 = vld [vmem:[%s2780_s28 + $0x24c] sm:%s1800_s9] }
  0xa7   : > { %169 = vst [vmem:[%s2784_s4 + $0x70] sm:%s1800_s9] %v168_v8 }
  0xa8   : > { %171 = vst [vmem:[%s2784_s4 + $0xa8] sm:%s1800_s9] %v170_v9 }
  0xa9 PF: > { %p1801_p12 = scmp.ge.s32.totalorder %s2581_s14, 1  ;;  %p431_p13 = scmp.lt.s32.totalorder %s2581_s14, 5 }
  0xab   : > { %p432_p0 = pnand %p1801_p12, %p431_p13 }
  0xac   : > { %s438_s30 = sand.u32 (!%p432_p0), 1, %s2573_s12   ;;  %s2714_s25 = smov (!%p432_p0), 127  }
  0xad   : > { %435 = sbr.rel (%p432_p0) target bundleno = 774 (0x306), region = 94  ;;  %s2715_s22 = smov (!%p432_p0), 72  }
  0xae   : > { %s2001_s28 = smul.u32 (!%p432_p0), 224, %s438_s30 }
  0xaf   : > { %s2002_s23 = smul.u32 (!%p432_p0), 112, %s438_s30 }
  0xb0   : > { %s3104_s4 = scalar_lea.vmem (!%p432_p0), [#allocation2], %s2001_s28 }
  0xb1   : > { %s3601_s24 = scalar_lea.vmem (!%p432_p0), [#allocation3], %s2002_s23  }
  0xb2   : > { %v501_v10 = vld [vmem:[%s3978_s2] sm:$0xff]  ;;  %v2713_v11 = vmov 0   ;;  %vm658_vm0 = vcmask 261120   ;;  %v1864_v12 = vld [vmem:[%s3104_s4 + $0x70] sm:$0xf]  ;;  %v502_v19 = vld [vmem:[%s3978_s2 + $0x8] sm:$0xff] }
  0xb3   : > { %2290 = vset.pattern.permute.xlu0 %v2713_v11  ;;  %v1988_v13 = vld [vmem:[%s3104_s4 + $0xa4] sm:$0xf0]  ;;  %v1981_v14 = vld [vmem:[%s3104_s4 + $0x74] sm:$0xf]  ;;  %v1866_v16 = vld [vmem:[%s3104_s4 + $0xa8] sm:$0xf0] }
  0xb4   : > { %505 = vperm.xlu0 %2290, %v501_v10   ;;  %v1865_v15 = vor.u32 %v1988_v13, %v1864_v12  ;;  %v1872_v17 = vld [vmem:[%s3104_s4 + $0x78] sm:$0xf]  ;;  %v1989_v18 = vld [vmem:[%s3104_s4 + $0xac] sm:$0xf0]  ;;  %v1869_v20 = vor.u32 %v1981_v14, %v1866_v16  ;;  %v1982_v22 = vld [vmem:[%s3104_s4 + $0x7c] sm:$0xf] }
  0xb5   : > { %v1873_v21 = vor.u32 %v1989_v18, %v1872_v17  ;;  %v1874_v23 = vld [vmem:[%s3104_s4 + $0xb0] sm:$0xf0]  ;;  %v1808_v24 = vld [vmem:[%s3104_s4] sm:$0xf]  ;;  %v1974_v26 = vld [vmem:[%s3104_s4 + $0x34] sm:$0xf0] }
  0xb6   : > { %668 = vmatpush.bf16.msra.mxu0 %v1865_v15  ;;  %v1877_v25 = vor.u32 %v1982_v22, %v1874_v23  ;;  %v1967_v27 = vld [vmem:[%s3104_s4 + $0x4] sm:$0xf]  ;;  %v1810_v28 = vld [vmem:[%s3104_s4 + $0x38] sm:$0xf0]  ;;  %682 = vmatpush.bf16.msra.mxu1 %v1869_v20  ;;  %v1809_v29 = vor.u32 %v1974_v26, %v1808_v24  ;;  %v1816_v31 = vld [vmem:[%s3104_s4 + $0x8] sm:$0xf] }
  0xb7   : > { %696 = vmatpush.bf16.msra.mxu2 %v1873_v21  ;;  %v1813_v30 = vor.u32 %v1967_v27, %v1810_v28  ;;  %v1975_v32 = vld [vmem:[%s3104_s4 + $0x3c] sm:$0xf0]  ;;  %v1968_v33 = vld [vmem:[%s3104_s4 + $0xc] sm:$0xf]  ;;  %v1818_v36 = vld [vmem:[%s3104_s4 + $0x40] sm:$0xf0] }
  0xb8   : > { %v3127_v34 = vld [vmem:[%s3976_s0] sm:$0xff]  ;;  %710 = vmatpush.bf16.msra.mxu3 %v1877_v25  ;;  %v1817_v35 = vor.u32 %v1975_v32, %v1816_v31  ;;  %v1990_v38 = vld [vmem:[%s3104_s4 + $0xb4] sm:$0xf0]  ;;  %v1821_v39 = vor.u32 %v1968_v33, %v1818_v36  ;;  %v1882_v42 = vld [vmem:[%s3104_s4 + $0xb8] sm:$0xf0]  ;;  %vm970_vm1 = vcmask 1039360  }
  0xb9   : > { %v1880_v37 = vld [vmem:[%s3104_s4 + $0x80] sm:$0xf]  ;;  %v1983_v41 = vld [vmem:[%s3104_s4 + $0x84] sm:$0xf]  ;;  %v1888_v43 = vld [vmem:[%s3104_s4 + $0x88] sm:$0xf] }
  0xba   : > { %v1881_v40 = vor.u32 %v1990_v38, %v1880_v37  ;;  %669 = vmatpush.bf16.msra.mxu0 %v1809_v29  ;;  %v1885_v44 = vor.u32 %v1983_v41, %v1882_v42  ;;  %v1991_v45 = vld [vmem:[%s3104_s4 + $0xbc] sm:$0xf0]  ;;  %v1984_v46 = vld [vmem:[%s3104_s4 + $0x8c] sm:$0xf]  ;;  %v1890_v47 = vld [vmem:[%s3104_s4 + $0xc0] sm:$0xf0]  ;;  %683 = vmatpush.bf16.msra.mxu1 %v1813_v30 }
  0xbb   : > { %697 = vmatpush.bf16.msra.mxu2 %v1817_v35  ;;  %v1889_v48 = vor.u32 %v1991_v45, %v1888_v43  ;;  %v1824_v49 = vld [vmem:[%s3104_s4 + $0x10] sm:$0xf]  ;;  %v1976_v50 = vld [vmem:[%s3104_s4 + $0x44] sm:$0xf0]  ;;  %v1969_v51 = vld [vmem:[%s3104_s4 + $0x14] sm:$0xf]  ;;  %v1893_v52 = vor.u32 %v1984_v46, %v1890_v47 }
  0xbc   : > { %510 = vperm.xlu0 %2290, %v502_v19   ;;  %711 = vmatpush.bf16.msra.mxu3 %v1821_v39  ;;  %v1825_v53 = vor.u32 %v1976_v50, %v1824_v49  ;;  %v1826_v54 = vld [vmem:[%s3104_s4 + $0x48] sm:$0xf0]  ;;  %v1832_v55 = vld [vmem:[%s3104_s4 + $0x18] sm:$0xf]  ;;  %v1977_v56 = vld [vmem:[%s3104_s4 + $0x4c] sm:$0xf0] }
  0xbd   : > { %1918 = vmatmul.msk.bf16.vlgmr.msra.gmra.mxu0 %vm658_vm0, %v3127_v34  ;;  %v1829_v57 = vor.u32 %v1969_v51, %v1826_v54  ;;  %v1970_v58 = vld [vmem:[%s3104_s4 + $0x1c] sm:$0xf]  ;;  %v1834_v59 = vld [vmem:[%s3104_s4 + $0x50] sm:$0xf0]  ;;  %v1896_v60 = vld [vmem:[%s3104_s4 + $0x90] sm:$0xf]  ;;  %1919 = vmatmul.msk.bf16.vlgmr.msra.gmra.mxu1 %vm658_vm0, %v3127_v34  ;;  %v1833_v0 = vor.u32 %v1977_v56, %v1832_v55 }
  0xbe   : > { %724 = vmatpush.bf16.msrb.mxu0 %v1881_v40  ;;  %738 = vmatpush.bf16.msrb.mxu1 %v1885_v44  ;;  %v1992_v61 = vld [vmem:[%s3104_s4 + $0xc4] sm:$0xf0]  ;;  %v1985_v62 = vld [vmem:[%s3104_s4 + $0x94] sm:$0xf]  ;;  %v1898_v63 = vld [vmem:[%s3104_s4 + $0xc8] sm:$0xf0]  ;;  %v1837_v6 = vor.u32 %v1970_v58, %v1834_v59 }
  0xbf   : > { %1920 = vmatmul.msk.bf16.vlgmr.msra.gmra.mxu2 %vm658_vm0, %v3127_v34  ;;  %1921 = vmatmul.msk.bf16.vlgmr.msra.gmra.mxu3 %vm658_vm0, %v3127_v34  ;;  %v1897_v1 = vor.u32 %v1992_v61, %v1896_v60  ;;  %v1901_v2 = vor.u32 %v1985_v62, %v1898_v63  ;;  %v1840_v3 = vld [vmem:[%s3104_s4 + $0x20] sm:$0xf]  ;;  %v1978_v4 = vld [vmem:[%s3104_s4 + $0x54] sm:$0xf0]  ;;  %v1971_v5 = vld [vmem:[%s3104_s4 + $0x24] sm:$0xf] }
  0xc0   : > { %752 = vmatpush.bf16.msrb.mxu2 %v1889_v48  ;;  %766 = vmatpush.bf16.msrb.mxu3 %v1893_v52  ;;  %v1842_v7 = vld [vmem:[%s3104_s4 + $0x58] sm:$0xf0]  ;;  %v1904_v8 = vld [vmem:[%s3104_s4 + $0x98] sm:$0xf]  ;;  %v1993_v9 = vld [vmem:[%s3104_s4 + $0xcc] sm:$0xf0]  ;;  %v1841_v10 = vor.u32 %v1978_v4, %v1840_v3 }
  0xc1   : > { %v1905_v11 = vor.u32 %v1993_v9, %v1904_v8  ;;  %v1986_v12 = vld [vmem:[%s3104_s4 + $0x9c] sm:$0xf]  ;;  %v1906_v13 = vld [vmem:[%s3104_s4 + $0xd0] sm:$0xf0]  ;;  %v1848_v14 = vld [vmem:[%s3104_s4 + $0x28] sm:$0xf]  ;;  %v1845_v15 = vor.u32 %v1971_v5, %v1842_v7 }
  0xc2   : > { %725 = vmatpush.bf16.msrb.mxu0 %v1825_v53  ;;  %739 = vmatpush.bf16.msrb.mxu1 %v1829_v57  ;;  %v1909_v16 = vor.u32 %v1986_v12, %v1906_v13  ;;  %v1979_v17 = vld [vmem:[%s3104_s4 + $0x5c] sm:$0xf0]  ;;  %v1972_v18 = vld [vmem:[%s3104_s4 + $0x2c] sm:$0xf]  ;;  %v1850_v19 = vld [vmem:[%s3104_s4 + $0x60] sm:$0xf0] }
  0xc3   : > { %v1849_v20 = vor.u32 %v1979_v17, %v1848_v14  ;;  %v1853_v21 = vor.u32 %v1972_v18, %v1850_v19  ;;  %v1912_v22 = vld [vmem:[%s3104_s4 + $0xa0] sm:$0xf]  ;;  %v1994_v23 = vld [vmem:[%s3104_s4 + $0xd4] sm:$0xf0]  ;;  %v1987_v24 = vld [vmem:[%s3104_s4 + $0xa4] sm:$0xf] }
  0xc4   : > { %753 = vmatpush.bf16.msrb.mxu2 %v1833_v0  ;;  %767 = vmatpush.bf16.msrb.mxu3 %v1837_v6  ;;  %v1914_v25 = vld [vmem:[%s3104_s4 + $0xd8] sm:$0xf0]  ;;  %v1913_v26 = vor.u32 %v1994_v23, %v1912_v22  ;;  %v1856_v28 = vld [vmem:[%s3104_s4 + $0x30] sm:$0xf]  ;;  %v1980_v29 = vld [vmem:[%s3104_s4 + $0x64] sm:$0xf0] }
  0xc5   : > { %v1917_v27 = vor.u32 %v1987_v24, %v1914_v25  ;;  %v1973_v30 = vld [vmem:[%s3104_s4 + $0x34] sm:$0xf]  ;;  %v1858_v31 = vld [vmem:[%s3104_s4 + $0x68] sm:$0xf0]  ;;  %v1857_v32 = vor.u32 %v1980_v29, %v1856_v28  ;;  %vm1141_vm2 = vcmask 588800   ;;  %s1263_s12 = smul.u32 (%p2769_p5), 14, %s2754_s15 }
  0xc6   : > { %780 = vmatpush.bf16.msra.mxu0 %v1897_v1  ;;  %794 = vmatpush.bf16.msra.mxu1 %v1901_v2  ;;  %v1861_v33 = vor.u32 %v1973_v30, %v1858_v31  ;;  %s1995_s11 = smul.u32 (%p2769_p5), 56, %s2754_s15 }
  0xc7   : > { %s1264_s21 = ssub.s32 (%p2769_p5), 49, %s1263_s12 }
  0xc8   : > { %808 = vmatpush.bf16.msra.mxu2 %v1905_v11  ;;  %822 = vmatpush.bf16.msra.mxu3 %v1909_v16  ;;  %p1265_p1 = scmp.lt.s32.totalorder (%p2769_p5), %s1264_s21, 14  ;;  %s3699_s29 = scalar_lea.vmem (%p2769_p5), %s3979_s3, %s1995_s11  }
  0xca   : > { %781 = vmatpush.bf16.msra.mxu0 %v1841_v10  ;;  %795 = vmatpush.bf16.msra.mxu1 %v1845_v15 }
  0xcc   : > { %809 = vmatpush.bf16.msra.mxu2 %v1849_v20  ;;  %823 = vmatpush.bf16.msra.mxu3 %v1853_v21 }
  0xcd   : > { %1922 = vmatmul.msk.bf16.vlgmr.msrb.gmra.mxu0 %vm658_vm0, %v3127_v34  ;;  %1923 = vmatmul.msk.bf16.vlgmr.msrb.gmra.mxu1 %vm658_vm0, %v3127_v34 }
  0xce   : > { %836 = vmatpush.bf16.msrb.mxu0 %v1913_v26  ;;  %850 = vmatpush.bf16.msrb.mxu1 %v1917_v27 }
  0xcf   : > { %1924 = vmatmul.msk.bf16.vlgmr.msrb.gmra.mxu2 %vm658_vm0, %v3127_v34  ;;  %1925 = vmatmul.msk.bf16.vlgmr.msrb.gmra.mxu3 %vm658_vm0, %v3127_v34 }
  0xd2   : > { %837 = vmatpush.bf16.msrb.mxu0 %v1857_v32  ;;  %851 = vmatpush.bf16.msrb.mxu1 %v1861_v33 }
  0xdd   : > { %1926 = vmatmul.msk.bf16.vlgmr.msra.gmra.mxu0 %vm658_vm0, %v3127_v34  ;;  %1927 = vmatmul.msk.bf16.vlgmr.msra.gmra.mxu1 %vm658_vm0, %v3127_v34 }
  0xdf   : > { %1928 = vmatmul.msk.bf16.vlgmr.msra.gmra.mxu2 %vm658_vm0, %v3127_v34  ;;  %1929 = vmatmul.msk.bf16.vlgmr.msra.gmra.mxu3 %vm658_vm0, %v3127_v34 }
  0xed   : > { %1930 = vmatmul.msk.bf16.vlgmr.msrb.gmra.mxu0 %vm658_vm0, %v3127_v34  ;;  %1931 = vmatmul.msk.bf16.vlgmr.msrb.gmra.mxu1 %vm658_vm0, %v3127_v34 }
 0x126   : > { %v3198_v35 = vpop.permute.xlu0 %505 }
 0x12e   : > { %v3212_v34 = vpop.permute.xlu0 %510 }
 0x13a   : > { %v671_v36 = vpop.f32.mrf.mxu0  ;;  %v685_v38 = vpop.f32.mrf.mxu1 }
 0x13b   : > { %v3201_v37 = vadd.f32 %v671_v36, %v3198_v35  ;;  %v3204_v39 = vadd.f32 %v685_v38, %v3198_v35 }
 0x13d   : > { %v858_v40 = vmax.f32 %v3201_v37, 0.0  ;;  %v859_v41 = vmax.f32 %v3204_v39, 0.0 }
 0x13f   : > { %v2291_v42 = vpack.i.bf16 %v859_v41, %v858_v40 }
 0x141   : > { %2292 = vrot.lane.b32.xlu1 %v2291_v42, %s2714_s25 }
 0x142   : > { %v699_v43 = vpop.f32.mrf.mxu2  ;;  %v713_v45 = vpop.f32.mrf.mxu3 }
 0x143   : > { %v3215_v44 = vadd.f32 %v699_v43, %v3198_v35  ;;  %v673_v46 = vpop.f32.mrf.mxu0  ;;  %v3219_v47 = vadd.f32 %v713_v45, %v3198_v35  ;;  %v687_v49 = vpop.f32.mrf.mxu1 }
 0x144   : > { %v3222_v48 = vadd.f32 %v673_v46, %v3212_v34  ;;  %v3226_v51 = vadd.f32 %v687_v49, %v3212_v34 }
 0x145   : > { %v860_v50 = vmax.f32 %v3215_v44, 0.0  ;;  %v861_v52 = vmax.f32 %v3219_v47, 0.0 }
 0x146   : > { %v872_v53 = vmax.f32 %v3222_v48, 0.0  ;;  %v873_v54 = vmax.f32 %v3226_v51, 0.0 }
 0x147   : > { %v2296_v55 = vpack.i.bf16 %v861_v52, %v860_v50 }
 0x148   : > { %v2301_v56 = vpack.i.bf16 %v873_v54, %v872_v53 }
 0x149   : > { %2297 = vrot.lane.b32.xlu1 %v2296_v55, %s2714_s25 }
 0x14a   : > { %v701_v57 = vpop.f32.mrf.mxu2  ;;  %v715_v59 = vpop.f32.mrf.mxu3  ;;  %2302 = vrot.lane.b32.xlu0 %v2301_v56, %s2714_s25 }
 0x14b   : > { %v3240_v58 = vadd.f32 %v701_v57, %v3212_v34  ;;  %v727_v60 = vpop.f32.mrf.mxu0  ;;  %v3245_v61 = vadd.f32 %v715_v59, %v3212_v34  ;;  %v741_v63 = vpop.f32.mrf.mxu1 }
 0x14c   : > { %v3248_v62 = vadd.f32 %v727_v60, %v3198_v35  ;;  %v3252_v1 = vadd.f32 %v741_v63, %v3198_v35 }
 0x14d   : > { %v874_v0 = vmax.f32 %v3240_v58, 0.0  ;;  %v875_v2 = vmax.f32 %v3245_v61, 0.0 }
 0x14e   : > { %v862_v3 = vmax.f32 %v3248_v62, 0.0  ;;  %v863_v4 = vmax.f32 %v3252_v1, 0.0 }
 0x14f   : > { %v2306_v5 = vpack.i.bf16 %v875_v2, %v874_v0 }
 0x150   : > { %v2311_v6 = vpack.i.bf16 %v863_v4, %v862_v3 }
 0x151   : > { %2307 = vrot.lane.b32.xlu1 %v2306_v5, %s2714_s25 }
 0x152   : > { %v755_v7 = vpop.f32.mrf.mxu2  ;;  %v769_v9 = vpop.f32.mrf.mxu3  ;;  %2312 = vrot.lane.b32.xlu2 %v2311_v6, %s2714_s25 }
 0x153   : > { %v3266_v8 = vadd.f32 %v755_v7, %v3198_v35  ;;  %v729_v10 = vpop.f32.mrf.mxu0  ;;  %v3271_v11 = vadd.f32 %v769_v9, %v3198_v35  ;;  %v743_v12 = vpop.f32.mrf.mxu1 }
 0x154   : > { %v3280_v16 = vadd.f32 %v729_v10, %v3212_v34  ;;  %v3283_v17 = vadd.f32 %v743_v12, %v3212_v34 }
 0x155   : > { %v864_v13 = vmax.f32 %v3266_v8, 0.0  ;;  %v865_v14 = vmax.f32 %v3271_v11, 0.0 }
 0x156   : > { %v876_v24 = vmax.f32 %v3280_v16, 0.0  ;;  %v877_v25 = vmax.f32 %v3283_v17, 0.0 }
 0x157   : > { %v2316_v15 = vpack.i.bf16 %v865_v14, %v864_v13 }
 0x158   : > { %v2321_v31 = vpack.i.bf16 %v877_v25, %v876_v24 }
 0x15a   : > { %v757_v18 = vpop.f32.mrf.mxu2  ;;  %v771_v20 = vpop.f32.mrf.mxu3  ;;  %2317 = vrot.lane.b32.xlu2 %v2316_v15, %s2714_s25 }
 0x15b   : > { %v3286_v19 = vadd.f32 %v757_v18, %v3212_v34  ;;  %v783_v21 = vpop.f32.mrf.mxu0  ;;  %v3290_v22 = vadd.f32 %v771_v20, %v3212_v34  ;;  %v797_v23 = vpop.f32.mrf.mxu1 }
 0x15c   : > { %v3301_v29 = vadd.f32 %v783_v21, %v3198_v35  ;;  %v3304_v30 = vadd.f32 %v797_v23, %v3198_v35 }
 0x15d   : > { %v3985_v26 = vmax.f32 %v3286_v19, 0.0  ;;  %v3984_v27 = vmax.f32 %v3290_v22, 0.0 }
 0x15e   : > { %v866_v42 = vmax.f32 %v3301_v29, 0.0  ;;  %v867_v43 = vmax.f32 %v3304_v30, 0.0 }
 0x15f   : > { %v2326_v28 = vpack.i.bf16 %v3984_v27, %v3985_v26 }
 0x160   : > { %v2331_v56 = vpack.i.bf16 %v867_v43, %v866_v42 }
 0x161   : > { %2327 = vrot.lane.b32.xlu0 %v2326_v28, %s2714_s25 }
 0x162   : > { %v811_v32 = vpop.f32.mrf.mxu2  ;;  %v825_v36 = vpop.f32.mrf.mxu3  ;;  %2322 = vrot.lane.b32.xlu2 %v2321_v31, %s2714_s25 }
 0x163   : > { %v3312_v33 = vadd.f32 %v811_v32, %v3198_v35  ;;  %v785_v38 = vpop.f32.mrf.mxu0  ;;  %v3318_v45 = vadd.f32 %v825_v36, %v3198_v35  ;;  %v799_v46 = vpop.f32.mrf.mxu1 }
 0x164   : > { %v3331_v59 = vadd.f32 %v785_v38, %v3212_v34  ;;  %v3334_v60 = vadd.f32 %v799_v46, %v3212_v34 }
 0x165   : > { %v868_v49 = vmax.f32 %v3312_v33, 0.0  ;;  %v869_v55 = vmax.f32 %v3318_v45, 0.0 }
 0x166   : > { %v3987_v5 = vmax.f32 %v3331_v59, 0.0  ;;  %v3986_v6 = vmax.f32 %v3334_v60, 0.0 }
 0x167   : > { %v2336_v57 = vpack.i.bf16 %v869_v55, %v868_v49 }
 0x168   : > { %v2341_v21 = vpack.i.bf16 %v3986_v6, %v3987_v5 }
 0x169   : > { %2332 = vrot.lane.b32.xlu0 %v2331_v56, %s2714_s25  ;;  %2337 = vrot.lane.b32.xlu1 %v2336_v57, %s2714_s25 }
 0x16a   : > { %v813_v12 = vpop.f32.mrf.mxu2  ;;  %v827_v15 = vpop.f32.mrf.mxu3 }
 0x16b   : > { %v839_v63 = vpop.f32.mrf.mxu0  ;;  %v853_v9 = vpop.f32.mrf.mxu1  ;;  %v3353_v23 = vadd.f32 %v813_v12, %v3212_v34  ;;  %v3356_v28 = vadd.f32 %v827_v15, %v3212_v34 }
 0x16c   : > { %v3341_v7 = vadd.f32 %v839_v63, %v3198_v35  ;;  %v3344_v10 = vadd.f32 %v853_v9, %v3198_v35 }
 0x16d   : > { %v3981_v38 = vmax.f32 %v3353_v23, 0.0  ;;  %v3980_v46 = vmax.f32 %v3356_v28, 0.0 }
 0x16e   : > { %v3989_v18 = vmax.f32 %v3341_v7, 0.0  ;;  %v3988_v20 = vmax.f32 %v3344_v10, 0.0 }
 0x16f   : > { %v2351_v9 = vpack.i.bf16 %v3980_v46, %v3981_v38 }
 0x170   : > { %v2346_v35 = vpack.i.bf16 %v3988_v20, %v3989_v18 }
 0x171   : > { %2342 = vrot.lane.b32.xlu1 %v2341_v21, %s2714_s25 }
 0x172   : > { %2347 = vrot.lane.b32.xlu2 %v2346_v35, %s2714_s25 }
 0x173   : > { %v841_v31 = vpop.f32.mrf.mxu0  ;;  %v855_v36 = vpop.f32.mrf.mxu1 }
 0x174   : > { %v3365_v32 = vadd.f32 %v841_v31, %v3212_v34  ;;  %v3370_v56 = vadd.f32 %v855_v36, %v3212_v34 }
 0x176   : > { %v3983_v57 = vmax.f32 %v3365_v32, 0.0  ;;  %v3982_v63 = vmax.f32 %v3370_v56, 0.0 }
 0x178   : > { %v2356_v12 = vpack.i.bf16 %v3982_v63, %v3983_v57 }
 0x17a   : > { %2352 = vrot.lane.b32.xlu2 %v2351_v9, %s2714_s25  ;;  %2357 = vrot.lane.b32.xlu0 %v2356_v12, %s2714_s25 }
 0x1ac   : > { %v2313_v34 = vpop.permute.xlu2 %2312 }
 0x1ad   : > { %v2315_v15 = vunpack.i.h.bf16 %v2313_v34  ;;  %v2314_v21 = vunpack.i.l.bf16 %v2313_v34 }
 0x1af   : > { %v975_v36 = vsel %vm970_vm1, %v2314_v21, %v2315_v15 }
 0x1b0   : > { %v3395_v9 = vmax.f32 %v862_v3, %v975_v36 }
 0x1b3   : > { %v3386_v31 = vpop.permute.xlu1 %2292 }
 0x1b4   : > { %v3384_v35 = vpop.permute.xlu2 %2317  ;;  %v2295_v34 = vunpack.i.h.bf16 %v3386_v31  ;;  %v2294_v63 = vunpack.i.l.bf16 %v3386_v31 }
 0x1b5   : > { %v2319_v46 = vunpack.i.l.bf16 %v3384_v35 }
 0x1b6   : > { %v971_v62 = vsel %vm970_vm1, %v2294_v63, %v2295_v34 }
 0x1b7   : > { %v976_v38 = vsel %vm970_vm1, %v2315_v15, %v2319_v46 }
 0x1b8   : > { %v3399_v12 = vmax.f32 %v863_v4, %v976_v38  ;;  %v3414_v4 = vmax.f32 %v858_v40, %v971_v62 }
 0x1ba   : > { %v2376_v57 = vpack.i.bf16 %v3399_v12, %v3395_v9 }
 0x1bb   : > { %v2298_v27 = vpop.permute.xlu1 %2297 }
 0x1bc   : > { %2377 = vrot.lane.b32.xlu0 %v2376_v57, %s2715_s22  ;;  %v2299_v3 = vunpack.i.l.bf16 %v2298_v27  ;;  %v3409_v15 = vpop.permute.xlu0 %2302  ;;  %v2323_v26 = vpop.permute.xlu2 %2322 }
 0x1bd   : > { %v2305_v57 = vunpack.i.h.bf16 %v3409_v15  ;;  %v3990_v36 = vunpack.i.l.bf16 %v3409_v15 }
 0x1be   : > { %v972_v1 = vsel %vm970_vm1, %v2295_v34, %v2299_v3  ;;  %v2324_v34 = vunpack.i.l.bf16 %v2323_v26 }
 0x1bf   : > { %v3418_v38 = vmax.f32 %v859_v41, %v972_v1  ;;  %v984_v37 = vsel %vm970_vm1, %v3990_v36, %v2305_v57  ;;  %v2300_v41 = vunpack.i.h.bf16 %v2298_v27 }
 0x1c0   : > { %v3441_v36 = vmax.f32 %v872_v53, %v984_v37  ;;  %v2325_v53 = vunpack.i.h.bf16 %v2323_v26 }
 0x1c1   : > { %v2361_v6 = vpack.i.bf16 %v3418_v38, %v3414_v4  ;;  %v973_v61 = vsel %vm970_vm1, %v2299_v3, %v2300_v41 }
 0x1c2   : > { %v3457_v48 = vmax.f32 %v860_v50, %v973_v61  ;;  %v2320_v50 = vunpack.i.h.bf16 %v3384_v35 }
 0x1c3   : > { %v2308_v5 = vpop.permute.xlu1 %2307  ;;  %2362 = vrot.lane.b32.xlu1 %v2361_v6, %s2715_s22 }
 0x1c4   : > { %v2310_v40 = vunpack.i.h.bf16 %v2308_v5  ;;  %v2309_v39 = vunpack.i.l.bf16 %v2308_v5  ;;  %v977_v17 = vsel %vm970_vm1, %v2319_v46, %v2320_v50 }
 0x1c6   : > { %v987_v62 = vsel %vm970_vm1, %v2310_v40, %v2324_v34  ;;  %v985_v1 = vsel %vm970_vm1, %v2305_v57, %v2309_v39  ;;  %v986_v20 = vsel %vm970_vm1, %v2309_v39, %v2310_v40 }
 0x1c7   : > { %v3433_v18 = vmax.f32 %v874_v0, %v986_v20  ;;  %v3437_v6 = vmax.f32 %v875_v2, %v987_v62  ;;  %v3445_v27 = vmax.f32 %v873_v54, %v985_v1  ;;  %v974_v0 = vsel %vm970_vm1, %v2300_v41, %v2314_v21 }
 0x1c8   : > { %v3461_v51 = vmax.f32 %v861_v52, %v974_v0  ;;  %v988_v20 = vsel %vm970_vm1, %v2324_v34, %v2325_v53 }
 0x1c9   : > { %v2381_v5 = vpack.i.bf16 %v3437_v6, %v3433_v18  ;;  %v2366_v58 = vpack.i.bf16 %v3445_v27, %v3441_v36  ;;  %v3470_v44 = vmax.f32 %v876_v24, %v988_v20 }
 0x1ca   : > { %v2371_v2 = vpack.i.bf16 %v3461_v51, %v3457_v48 }
 0x1cb   : > { %2382 = vrot.lane.b32.xlu0 %v2381_v5, %s2715_s22  ;;  %2367 = vrot.lane.b32.xlu2 %v2366_v58, %s2715_s22 }
 0x1cc   : > { %v2348_v57 = vpop.permute.xlu2 %2347 }
 0x1cd   : > { %v2349_v26 = vunpack.i.l.bf16 %v2348_v57  ;;  %v2350_v24 = vunpack.i.h.bf16 %v2348_v57  ;;  %v4008_v57 = vmax.f32 %v3344_v10, 0.0 }
 0x1cf   : > { %v983_v30 = vsel %vm970_vm1, %v2349_v26, %v2350_v24  ;;  %v1027_v8 = vsel %vm970_vm1, %v2350_v24, %v2294_v63 }
 0x1d3   : > { %v2328_v54 = vpop.permute.xlu0 %2327  ;;  %2372 = vrot.lane.b32.xlu2 %v2371_v2, %s2715_s22  ;;  %v3506_v2 = vmax.f32 %v864_v13, %v977_v17 }
 0x1d4   : > { %v2329_v21 = vunpack.i.l.bf16 %v2328_v54  ;;  %v2330_v61 = vunpack.i.h.bf16 %v2328_v54  ;;  %v2353_v29 = vpop.permute.xlu2 %2352  ;;  %v4007_v54 = vmax.f32 %v3341_v7, 0.0  ;;  %v4011_v7 = vmax.f32 %v3286_v19, 0.0 }
 0x1d6   : > { %v989_v3 = vsel %vm970_vm1, %v2325_v53, %v2329_v21  ;;  %v990_v11 = vsel %vm970_vm1, %v2329_v21, %v2330_v61  ;;  %v3528_v20 = vmax.f32 %v4007_v54, %v983_v30  ;;  %v3535_v21 = vmax.f32 %v4008_v57, %v1027_v8 }
 0x1d7   : > { %v3474_v47 = vmax.f32 %v877_v25, %v989_v3 }
 0x1d9   : > { %v2386_v52 = vpack.i.bf16 %v3474_v47, %v3470_v44 }
 0x1db   : > { %v2333_v34 = vpop.permute.xlu0 %2332  ;;  %v2338_v37 = vpop.permute.xlu1 %2337  ;;  %2387 = vrot.lane.b32.xlu1 %v2386_v52, %s2715_s22 }
 0x1dc   : > { %v2335_v40 = vunpack.i.h.bf16 %v2333_v34  ;;  %v2334_v39 = vunpack.i.l.bf16 %v2333_v34  ;;  %v2340_v41 = vunpack.i.h.bf16 %v2338_v37  ;;  %v2339_v16 = vunpack.i.l.bf16 %v2338_v37 }
 0x1dd   : > { %v3547_v37 = vmax.f32 %v4011_v7, %v990_v11 }
 0x1de   : > { %v978_v25 = vsel %vm970_vm1, %v2320_v50, %v2334_v39  ;;  %v979_v62 = vsel %vm970_vm1, %v2334_v39, %v2335_v40  ;;  %v982_v1 = vsel %vm970_vm1, %v2340_v41, %v2349_v26  ;;  %v980_v5 = vsel %vm970_vm1, %v2335_v40, %v2339_v16 }
 0x1df   : > { %v981_v58 = vsel %vm970_vm1, %v2339_v16, %v2340_v41  ;;  %v3490_v0 = vmax.f32 %v869_v55, %v982_v1  ;;  %v3494_v35 = vmax.f32 %v866_v42, %v979_v62  ;;  %v3498_v46 = vmax.f32 %v867_v43, %v980_v5 }
 0x1e0   : > { %v3502_v53 = vmax.f32 %v868_v49, %v981_v58  ;;  %v3510_v45 = vmax.f32 %v865_v14, %v978_v25  ;;  %v2354_v14 = vunpack.i.l.bf16 %v2353_v29  ;;  %v4009_v50 = vmax.f32 %v3331_v59, 0.0 }
 0x1e1   : > { %v2396_v42 = vpack.i.bf16 %v3498_v46, %v3494_v35  ;;  %v4010_v26 = vmax.f32 %v3334_v60, 0.0  ;;  %v4012_v40 = vmax.f32 %v3290_v22, 0.0  ;;  %v2355_v41 = vunpack.i.h.bf16 %v2353_v29 }
 0x1e2   : > { %v2406_v43 = vpack.i.bf16 %v3490_v0, %v3502_v53  ;;  %v2391_v33 = vpack.i.bf16 %v3510_v45, %v3506_v2  ;;  %v2411_v60 = vpack.i.bf16 %v3535_v21, %v3528_v20  ;;  %v4013_v62 = vunpack.i.l.bf16 %v3409_v15 }
 0x1e3   : > { %v2343_v13 = vpop.permute.xlu1 %2342  ;;  %2397 = vrot.lane.b32.xlu2 %v2396_v42, %s2715_s22  ;;  %v994_v22 = vsel %vm970_vm1, %v2354_v14, %v2355_v41  ;;  %v4014_v5 = vmax.f32 %v3365_v32, 0.0  ;;  %v4016_v42 = vmax.f32 %v3353_v23, 0.0 }
 0x1e4   : > { %v2345_v49 = vunpack.i.h.bf16 %v2343_v13  ;;  %v2344_v55 = vunpack.i.l.bf16 %v2343_v13  ;;  %2407 = vrot.lane.b32.xlu0 %v2406_v43, %s2715_s22  ;;  %2392 = vrot.lane.b32.xlu1 %v2391_v33, %s2715_s22  ;;  %v4017_v43 = vmax.f32 %v3356_v28, 0.0 }
 0x1e5   : > { %v3578_v30 = vmax.f32 %v4016_v42, %v994_v22 }
 0x1e6   : > { %v993_v31 = vsel %vm970_vm1, %v2345_v49, %v2354_v14  ;;  %v991_v63 = vsel %vm970_vm1, %v2330_v61, %v2344_v55  ;;  %v992_v3 = vsel %vm970_vm1, %v2344_v55, %v2345_v49  ;;  %v4015_v61 = vmax.f32 %v3370_v56, 0.0 }
 0x1e7   : > { %v3539_v52 = vmax.f32 %v4009_v50, %v992_v3  ;;  %v3543_v34 = vmax.f32 %v4010_v26, %v993_v31  ;;  %v3551_v39 = vmax.f32 %v4012_v40, %v991_v63 }
 0x1e9   : > { %v2416_v10 = vpack.i.bf16 %v3543_v34, %v3539_v52  ;;  %v2401_v59 = vpack.i.bf16 %v3551_v39, %v3547_v37 }
 0x1eb   : > { %2402 = vrot.lane.b32.xlu2 %v2401_v59, %s2715_s22 }
 0x1ec   : > { %2417 = vrot.lane.b32.xlu0 %v2416_v10, %s2715_s22  ;;  %2412 = vrot.lane.b32.xlu1 %v2411_v60, %s2715_s22  ;;  %v2358_v19 = vpop.permute.xlu0 %2357 }
 0x1ed   : > { %v2360_v16 = vunpack.i.h.bf16 %v2358_v19  ;;  %v2359_v17 = vunpack.i.l.bf16 %v2358_v19 }
 0x1ef   : > { %v995_v24 = vsel %vm970_vm1, %v2355_v41, %v2359_v17  ;;  %v996_v25 = vsel %vm970_vm1, %v2359_v17, %v2360_v16  ;;  %v1028_v1 = vsel %vm970_vm1, %v2360_v16, %v4013_v62 }
 0x1f0   : > { %v3570_v58 = vmax.f32 %v4014_v5, %v996_v25  ;;  %v3574_v29 = vmax.f32 %v4015_v61, %v1028_v1  ;;  %v3582_v33 = vmax.f32 %v4017_v43, %v995_v24 }
 0x1f2   : > { %v2426_v15 = vpack.i.bf16 %v3574_v29, %v3570_v58  ;;  %v2421_v32 = vpack.i.bf16 %v3582_v33, %v3578_v30 }
 0x1f4   : > { %2427 = vrot.lane.b32.xlu2 %v2426_v15, %s2715_s22  ;;  %2422 = vrot.lane.b32.xlu1 %v2421_v32, %s2715_s22 }
 0x225   : > { %v2368_v56 = vpop.permute.xlu2 %2367 }
 0x226   : > { %v2370_v7 = vunpack.i.h.bf16 %v2368_v56  ;;  %v2369_v40 = vunpack.i.l.bf16 %v2368_v56 }
 0x228   : > { %v1155_v60 = vsel %vm1141_vm2, %v2369_v40, %v2370_v7 }
 0x229   : > { %v1214_v16 = vmax.f32 %v3441_v36, %v1155_v60 }
 0x22d   : > { %v2373_v13 = vpop.permute.xlu2 %2372 }
 0x22e   : > { %v3590_v8 = vpop.permute.xlu0 %2377  ;;  %v2375_v28 = vunpack.i.h.bf16 %v2373_v13  ;;  %v2374_v11 = vunpack.i.l.bf16 %v2373_v13 }
 0x22f   : > { %v2379_v23 = vunpack.i.l.bf16 %v3590_v8 }
 0x230   : > { %v1144_v49 = vsel %vm1141_vm2, %v2374_v11, %v2375_v28 }
 0x231   : > { %v1145_v14 = vsel %vm1141_vm2, %v2375_v28, %v2379_v23  ;;  %v1202_v54 = vmax.f32 %v3457_v48, %v1144_v49 }
 0x232   : > { %v1203_v55 = vmax.f32 %v3461_v51, %v1145_v14 }
 0x234   : > { %v1229_v31 = vpack.c.bf16 %v1203_v55, %v1202_v54 }
 0x235   : > { %v3604_v63 = vpop.permute.xlu1 %2362 }
 0x236   : > { %1243 = vst [vmem:[%s3601_s24 + $0x8] sm:$0xff] %v1229_v31  ;;  %v2365_v3 = vunpack.i.h.bf16 %v3604_v63  ;;  %v2364_v57 = vunpack.i.l.bf16 %v3604_v63 }
 0x238   : > { %v1143_v50 = vsel %vm1141_vm2, %v2365_v3, %v2374_v11  ;;  %v1142_v51 = vsel %vm1141_vm2, %v2364_v57, %v2365_v3 }
 0x239   : > { %v1201_v48 = vmax.f32 %v3418_v38, %v1143_v50  ;;  %v1200_v26 = vmax.f32 %v3414_v4, %v1142_v51 }
 0x23b   : > { %v1228_v41 = vpack.c.bf16 %v1201_v48, %v1200_v26 }
 0x23d   : > { %v2398_v10 = vpop.permute.xlu2 %2397  ;;  %1242 = vst [vmem:[%s3601_s24] sm:$0xff] %v1228_v41  ;;  %v2383_v59 = vpop.permute.xlu0 %2382 }
 0x23e   : > { %v2384_v19 = vunpack.i.l.bf16 %v2383_v59  ;;  %v2385_v4 = vunpack.i.h.bf16 %v2383_v59  ;;  %v2400_v49 = vunpack.i.h.bf16 %v2398_v10  ;;  %v2399_v55 = vunpack.i.l.bf16 %v2398_v10 }
 0x240   : > { %v1156_v22 = vsel %vm1141_vm2, %v2370_v7, %v2384_v19  ;;  %v1157_v38 = vsel %vm1141_vm2, %v2384_v19, %v2385_v4 }
 0x241   : > { %v1215_v17 = vmax.f32 %v3445_v27, %v1156_v22  ;;  %v1216_v27 = vmax.f32 %v3433_v18, %v1157_v38 }
 0x243   : > { %v1235_v24 = vpack.c.bf16 %v1215_v17, %v1214_v16 }
 0x245   : > { %v3619_v25 = vpop.permute.xlu2 %2402  ;;  %1249 = vst [vmem:[%s3601_s24 + $0x38] sm:$0xff] %v1235_v24 }
 0x246   : > { %v2404_v1 = vunpack.i.l.bf16 %v3619_v25  ;;  %v2405_v60 = vunpack.i.h.bf16 %v3619_v25 }
 0x248   : > { %v1161_v25 = vsel %vm1141_vm2, %v2404_v1, %v2405_v60 }
 0x24d   : > { %v2388_v62 = vpop.permute.xlu1 %2387 }
 0x24e   : > { %v2390_v5 = vunpack.i.h.bf16 %v2388_v62  ;;  %v2389_v61 = vunpack.i.l.bf16 %v2388_v62  ;;  %v3624_v42 = vpop.permute.xlu2 %2427 }
 0x24f   : > { %v2430_v43 = vunpack.i.h.bf16 %v3624_v42  ;;  %v2429_v36 = vunpack.i.l.bf16 %v3624_v42 }
 0x250   : > { %v1160_v15 = vsel %vm1141_vm2, %v2390_v5, %v2404_v1  ;;  %v1158_v32 = vsel %vm1141_vm2, %v2385_v4, %v2389_v61  ;;  %v1159_v56 = vsel %vm1141_vm2, %v2389_v61, %v2390_v5 }
 0x251   : > { %v1219_v13 = vmax.f32 %v3474_v47, %v1160_v15  ;;  %v1217_v28 = vmax.f32 %v3437_v6, %v1158_v32  ;;  %v1218_v11 = vmax.f32 %v3470_v44, %v1159_v56  ;;  %v1199_v14 = vsel %vm1141_vm2, %v2430_v43, %v2369_v40 }
 0x252   : > { %v1227_v18 = vmax.f32 %v3574_v29, %v1199_v14  ;;  %v1167_v54 = vsel %vm1141_vm2, %v2429_v36, %v2430_v43  ;;  %v2380_v47 = vunpack.i.h.bf16 %v3590_v8  ;;  %v1150_v44 = vsel %vm1141_vm2, %v2399_v55, %v2400_v49 }
 0x253   : > { %v1236_v31 = vpack.c.bf16 %v1217_v28, %v1216_v27  ;;  %v1237_v3 = vpack.c.bf16 %v1219_v13, %v1218_v11  ;;  %v1226_v50 = vmax.f32 %v3570_v58, %v1167_v54  ;;  %v1208_v41 = vmax.f32 %v3494_v35, %v1150_v44 }
 0x254   : > { %v1146_v40 = vsel %vm1141_vm2, %v2379_v23, %v2380_v47 }
 0x255   : > { %1250 = vst [vmem:[%s3601_s24 + $0x40] sm:$0xff] %v1236_v31  ;;  %v1241_v6 = vpack.c.bf16 %v1227_v18, %v1226_v50  ;;  %v1204_v23 = vmax.f32 %v3395_v9, %v1146_v40 }
 0x256   : > { %1251 = vst [vmem:[%s3601_s24 + $0x48] sm:$0xff] %v1237_v3  ;;  %v2408_v51 = vpop.permute.xlu0 %2407  ;;  %v2393_v48 = vpop.permute.xlu1 %2392 }
 0x257   : > { %1255 = vst [vmem:[%s3601_s24 + $0x68] sm:$0xff] %v1241_v6  ;;  %v2409_v26 = vunpack.i.l.bf16 %v2408_v51  ;;  %v2395_v29 = vunpack.i.h.bf16 %v2393_v48  ;;  %v2394_v7 = vunpack.i.l.bf16 %v2393_v48  ;;  %v2410_v35 = vunpack.i.h.bf16 %v2408_v51 }
 0x259   : > { %v1151_v58 = vsel %vm1141_vm2, %v2400_v49, %v2409_v26  ;;  %v1149_v10 = vsel %vm1141_vm2, %v2395_v29, %v2399_v55  ;;  %v1147_v59 = vsel %vm1141_vm2, %v2380_v47, %v2394_v7  ;;  %v1148_v8 = vsel %vm1141_vm2, %v2394_v7, %v2395_v29 }
 0x25a   : > { %v1209_v19 = vmax.f32 %v3498_v46, %v1151_v58  ;;  %v1207_v22 = vmax.f32 %v3510_v45, %v1149_v10  ;;  %v1205_v16 = vmax.f32 %v3399_v12, %v1147_v59  ;;  %v1206_v17 = vmax.f32 %v3506_v2, %v1148_v8 }
 0x25b   : > { %v1152_v45 = vsel %vm1141_vm2, %v2409_v26, %v2410_v35  ;;  %v1220_v12 = vmax.f32 %v3547_v37, %v1161_v25 }
 0x25c   : > { %v1232_v24 = vpack.c.bf16 %v1209_v19, %v1208_v41  ;;  %v1230_v4 = vpack.c.bf16 %v1205_v16, %v1204_v23  ;;  %v1231_v38 = vpack.c.bf16 %v1207_v22, %v1206_v17  ;;  %v1210_v27 = vmax.f32 %v3502_v53, %v1152_v45 }
 0x25e   : > { %1246 = vst [vmem:[%s3601_s24 + $0x20] sm:$0xff] %v1232_v24  ;;  %v2418_v62 = vpop.permute.xlu0 %2417  ;;  %v2413_v46 = vpop.permute.xlu1 %2412 }
 0x25f   : > { %1244 = vst [vmem:[%s3601_s24 + $0x10] sm:$0xff] %v1230_v4  ;;  %v2419_v5 = vunpack.i.l.bf16 %v2418_v62  ;;  %v2415_v61 = vunpack.i.h.bf16 %v2413_v46  ;;  %v2414_v9 = vunpack.i.l.bf16 %v2413_v46  ;;  %v2420_v13 = vunpack.i.h.bf16 %v2418_v62 }
 0x260   : > { %1245 = vst [vmem:[%s3601_s24 + $0x18] sm:$0xff] %v1231_v38 }
 0x261   : > { %v1162_v2 = vsel %vm1141_vm2, %v2405_v60, %v2419_v5  ;;  %v1153_v43 = vsel %vm1141_vm2, %v2410_v35, %v2414_v9  ;;  %v1154_v1 = vsel %vm1141_vm2, %v2414_v9, %v2415_v61  ;;  %v1198_v32 = vsel %vm1141_vm2, %v2415_v61, %v2364_v57 }
 0x262   : > { %v1221_v15 = vmax.f32 %v3551_v39, %v1162_v2  ;;  %v1211_v56 = vmax.f32 %v3490_v0, %v1153_v43  ;;  %v1212_v37 = vmax.f32 %v3528_v20, %v1154_v1  ;;  %v1213_v28 = vmax.f32 %v3535_v21, %v1198_v32 }
 0x263   : > { %v1163_v39 = vsel %vm1141_vm2, %v2419_v5, %v2420_v13 }
 0x264   : > { %v1238_v11 = vpack.c.bf16 %v1221_v15, %v1220_v12  ;;  %v1233_v14 = vpack.c.bf16 %v1211_v56, %v1210_v27  ;;  %v1234_v49 = vpack.c.bf16 %v1213_v28, %v1212_v37  ;;  %v1222_v57 = vmax.f32 %v3539_v52, %v1163_v39 }
 0x266   : > { %1252 = vst [vmem:[%s3601_s24 + $0x50] sm:$0xff] %v1238_v11  ;;  %v2423_v53 = vpop.permute.xlu1 %2422 }
 0x267   : > { %1247 = vst [vmem:[%s3601_s24 + $0x28] sm:$0xff] %v1233_v14  ;;  %v2425_v63 = vunpack.i.h.bf16 %v2423_v53  ;;  %v2424_v55 = vunpack.i.l.bf16 %v2423_v53 }
 0x268   : > { %1248 = vst [vmem:[%s3601_s24 + $0x30] sm:$0xff] %v1234_v49 }
 0x269   : > { %v1166_v0 = vsel %vm1141_vm2, %v2425_v63, %v2429_v36  ;;  %v1164_v20 = vsel %vm1141_vm2, %v2420_v13, %v2424_v55  ;;  %v1165_v21 = vsel %vm1141_vm2, %v2424_v55, %v2425_v63 }
 0x26a   : > { %v1225_v18 = vmax.f32 %v3582_v33, %v1166_v0  ;;  %v1223_v54 = vmax.f32 %v3543_v34, %v1164_v20  ;;  %v1224_v31 = vmax.f32 %v3578_v30, %v1165_v21 }
 0x26b   : > { %1262 = sbr.rel (!%p2769_p5) target bundleno = 774 (0x306), region = 102 }
 0x26c   : > { %v1239_v3 = vpack.c.bf16 %v1223_v54, %v1222_v57  ;;  %v1240_v50 = vpack.c.bf16 %v1225_v18, %v1224_v31 }
 0x26e   : > { %1253 = vst [vmem:[%s3601_s24 + $0x58] sm:$0xff] %v1239_v3 }
 0x26f   : > { %1254 = vst [vmem:[%s3601_s24 + $0x60] sm:$0xff] %v1240_v50 }
 0x270   : > { %s4042_s21 = smov (!%p1265_p1, %s1264_s21), 14 }
 0x271   : > { %s1932_s8 = sshll.u32 %s4042_s21, 3  ;;  %s3701_s5 = sshll.u32 %s4042_s21, 2 }
 0x272   : > { %p1936_p2 = scmp.eq.s32.totalorder %s1932_s8, 0 }
 0x273   : > { %p1275_p3 = scmp.lt.u32.totalorder (!%p1936_p2), %s3701_s5, 8 }
 0x274   : > { %1274 = sbr.rel (%p1936_p2) target bundleno = 774 (0x306), region = 106 }
 0x279   : > { %1278 = sbr.rel (%p1275_p3) target bundleno = 764 (0x2fc), region = 110  ;;  %s3705_s20 = sand.u32 (!%p1275_p3), 7, %s3701_s5  }
 0x27a   : > { %p1297_p5 = scmp.eq.s32.totalorder (!%p1275_p3), %s3705_s20, 0  ;;  %p1937_p4 = scmp.ne.s32.totalorder (!%p1275_p3), %s3705_s20, 0 }
 0x27e   : > { %1300 = sbr.rel (%p1937_p4) target bundleno = 698 (0x2ba), region = 125  ;;  %s1301_s15 = sshrl.u32 (!%p1937_p4), %s3701_s5, 3 }
 0x27f   : > { %s3712_s9 = sshrl.u32 (!%p1937_p4), %s1301_s15, 4 }
 0x280   : > { %p1938_p6 = scmp.le.s32.totalorder (!%p1937_p4), %s3712_s9, 0 }
 0x283   : > { %1699 = sbr.rel (%p1938_p6) target bundleno = 681 (0x2a9), region = 273  ;;  %s4018_s30 = smov (!%p1938_p6), %s3699_s29 }
 0x284   : > { %s4019_s17 = smov (!%p1938_p6), %s3601_s24  ;;  %s3721_s18 = smov (!%p1938_p6), 0  }
 0x285   : > { %s3723_s28 = smov (!%p1938_p6), 0  }
 0x288 LB: >> { %v1312_v52 = vld [vmem:[%s2653_s17] sm:$0xff]  ;;  %v1314_v34 = vld [vmem:[%s2653_s17 + $0x8] sm:$0xff]  ;;  %v1316_v30 = vld [vmem:[%s2653_s17 + $0x10] sm:$0xff]  ;;  %s1376_s4 = sadd.s32 1, %s2657_s18  ;;  %s1306_s28 = sadd.s32 1, %s2661_s28   ;;  %s2661_s28 = sphi %s3723_s28, %s1306_s28   ;;  %s2657_s18 = sphi %s3721_s18, %s4022_s18   ;;  %s2653_s17 = sphi %s4019_s17, %s4021_s17   ;;  %s2649_s30 = sphi %s4018_s30, %s4020_s30  }
 0x289   : >> { %1313 = vst [vmem:[%s2649_s30] sm:$0xff] %v1312_v52  ;;  %v1318_v33 = vld [vmem:[%s2653_s17 + $0x18] sm:$0xff]  ;;  %p1377_p7 = scmp.ge.s32.totalorder %s1376_s4, %s3712_s9  ;;  %v1320_v42 = vld [vmem:[%s2653_s17 + $0x20] sm:$0xff]  ;;  %v1322_v36 = vld [vmem:[%s2653_s17 + $0x28] sm:$0xff]  ;;  %p1305_p8 = scmp.ge.s32.totalorder %s1306_s28, %s3712_s9 }
 0x28a   : >> { %1315 = vst [vmem:[%s2649_s30 + $0x8] sm:$0xff] %v1314_v34  ;;  %v1324_v47 = vld [vmem:[%s2653_s17 + $0x30] sm:$0xff]  ;;  %v1326_v6 = vld [vmem:[%s2653_s17 + $0x38] sm:$0xff]  ;;  %v1328_v44 = vld [vmem:[%s2653_s17 + $0x40] sm:$0xff] }
 0x28b   : >> { %1317 = vst [vmem:[%s2649_s30 + $0x10] sm:$0xff] %v1316_v30  ;;  %s4044_s4 = smov (%p1377_p7, %s1376_s4), 0  ;;  %v1330_v51 = vld [vmem:[%s2653_s17 + $0x48] sm:$0xff]  ;;  %v1332_v48 = vld [vmem:[%s2653_s17 + $0x50] sm:$0xff]  ;;  %v1334_v26 = vld [vmem:[%s2653_s17 + $0x58] sm:$0xff] }
 0x28c   : >> { %1319 = vst [vmem:[%s2649_s30 + $0x18] sm:$0xff] %v1318_v33  ;;  %s1939_s14 = sshll.u32 %s4044_s4, 7  ;;  %v1336_v29 = vld [vmem:[%s2653_s17 + $0x60] sm:$0xff]  ;;  %v1338_v7 = vld [vmem:[%s2653_s17 + $0x68] sm:$0xff]  ;;  %v1340_v40 = vld [vmem:[%s2653_s17 + $0x70] sm:$0xff]  ;;  %s4022_s18 = smov %s4044_s4 }
 0x28d   : >> { %1321 = vst [vmem:[%s2649_s30 + $0x20] sm:$0xff] %v1320_v42  ;;  %s3755_s6 = scalar_lea.vmem %s3601_s24, %s1939_s14 [#allocation3]   ;;  %s3758_s7 = scalar_lea.vmem %s3699_s29, %s1939_s14   ;;  %v1342_v41 = vld [vmem:[%s2653_s17 + $0x78] sm:$0xff]  ;;  %v1362_v58 = vld [vmem:[%s2653_s17 + $0x80] sm:$0xff]  ;;  %v1364_v10 = vld [vmem:[%s2653_s17 + $0x88] sm:$0xff] }
 0x28e   : >> { %1323 = vst [vmem:[%s2649_s30 + $0x28] sm:$0xff] %v1322_v36  ;;  %v1366_v59 = vld [vmem:[%s2653_s17 + $0x90] sm:$0xff]  ;;  %v1368_v60 = vld [vmem:[%s2653_s17 + $0x98] sm:$0xff]  ;;  %v1370_v19 = vld [vmem:[%s2653_s17 + $0xa0] sm:$0xff] }
 0x28f   : >> { %1325 = vst [vmem:[%s2649_s30 + $0x30] sm:$0xff] %v1324_v47  ;;  %v1372_v22 = vld [vmem:[%s2653_s17 + $0xa8] sm:$0xff]  ;;  %v1374_v8 = vld [vmem:[%s2653_s17 + $0xb0] sm:$0xff]  ;;  %s4021_s17 = smov %s3755_s6 }
 0x290   : >> { %1327 = vst [vmem:[%s2649_s30 + $0x38] sm:$0xff] %v1326_v6 }
 0x291   : >> { %1329 = vst [vmem:[%s2649_s30 + $0x40] sm:$0xff] %v1328_v44 }
 0x292   : >> { %1331 = vst [vmem:[%s2649_s30 + $0x48] sm:$0xff] %v1330_v51 }
 0x293   : >> { %1333 = vst [vmem:[%s2649_s30 + $0x50] sm:$0xff] %v1332_v48 }
 0x294   : >> { %1335 = vst [vmem:[%s2649_s30 + $0x58] sm:$0xff] %v1334_v26 }
 0x295   : >> { %1337 = vst [vmem:[%s2649_s30 + $0x60] sm:$0xff] %v1336_v29 }
 0x296   : >> { %1339 = vst [vmem:[%s2649_s30 + $0x68] sm:$0xff] %v1338_v7 }
 0x297   : >> { %1341 = vst [vmem:[%s2649_s30 + $0x70] sm:$0xff] %v1340_v40 }
 0x298   : >> { %1343 = vst [vmem:[%s2649_s30 + $0x78] sm:$0xff] %v1342_v41 }
 0x299   : >> { %1345 = vst [vmem:[%s2649_s30 + $0xc4] sm:$0xff] %v1326_v6 }
 0x29a   : >> { %1347 = vst [vmem:[%s2649_s30 + $0xcc] sm:$0xff] %v1328_v44 }
 0x29b   : >> { %1349 = vst [vmem:[%s2649_s30 + $0xd4] sm:$0xff] %v1330_v51 }
 0x29c   : >> { %1351 = vst [vmem:[%s2649_s30 + $0xdc] sm:$0xff] %v1332_v48 }
 0x29d   : >> { %1353 = vst [vmem:[%s2649_s30 + $0xe4] sm:$0xff] %v1334_v26 }
 0x29e   : >> { %1355 = vst [vmem:[%s2649_s30 + $0xec] sm:$0xff] %v1336_v29 }
 0x29f   : >> { %1357 = vst [vmem:[%s2649_s30 + $0xf4] sm:$0xff] %v1338_v7 }
 0x2a0   : >> { %1359 = vst [vmem:[%s2649_s30 + $0xfc] sm:$0xff] %v1340_v40 }
 0x2a1   : >> { %1361 = vst [vmem:[%s2649_s30 + $0x104] sm:$0xff] %v1342_v41 }
 0x2a2   : >> { %1363 = vst [vmem:[%s2649_s30 + $0x10c] sm:$0xff] %v1362_v58 }
 0x2a3   : >> { %1365 = vst [vmem:[%s2649_s30 + $0x114] sm:$0xff] %v1364_v10 }
 0x2a4   : >> { %1367 = vst [vmem:[%s2649_s30 + $0x11c] sm:$0xff] %v1366_v59  ;;  %1308 = sbr.rel (!%p1305_p8) target bundleno = 648 (0x288), region = 279 }
 0x2a5   : >> { %1369 = vst [vmem:[%s2649_s30 + $0x124] sm:$0xff] %v1368_v60 }
 0x2a6   : >> { %1371 = vst [vmem:[%s2649_s30 + $0x12c] sm:$0xff] %v1370_v19 }
 0x2a7   : >> { %1373 = vst [vmem:[%s2649_s30 + $0x134] sm:$0xff] %v1372_v22 }
 0x2a8   : >> { %1375 = vst [vmem:[%s2649_s30 + $0x13c] sm:$0xff] %v1374_v8  ;;  %s4020_s30 = smov %s3758_s7 }
 0x2a9 PF: > { %s3815_s10 = sand.u32 15, %s1301_s15   ;;  %s1996_s25 = sshll.u32 %s3712_s9, 7 }
 0x2aa   : > { %s3819_s22 = scalar_lea.vmem %s3601_s24, %s1996_s25 [#allocation3]   ;;  %s1389_s23 = scalar_lea.vmem %s3699_s29, %s1996_s25  }
 0x2ab   : > { %p1944_p9 = scmp.le.s32.totalorder %s3815_s10, 0 }
 0x2ac   : > { %s2663_s12 = smov (!%p1944_p9), %s1389_s23   ;;  %s2667_s11 = smov (!%p1944_p9), %s3819_s22  }
 0x2ad   : > { %1713 = sbr.rel (%p1944_p9) target bundleno = 698 (0x2ba), region = 284  ;;  %s2671_s21 = smov (!%p1944_p9), 0  }
 0x2ae   : > { %s2675_s26 = smov (!%p1944_p9), 0  }
 0x2b2 LB: >> { %v1399_v23 = vld [vmem:[%s2669_s11] sm:$0xff]  ;;  %v1401_v35 = vld [vmem:[%s2669_s11 + $0x38] sm:$0xff]  ;;  %s1403_s27 = sadd.s32 1, %s2673_s21  ;;  %s1393_s26 = sadd.s32 1, %s2677_s26   ;;  %s2677_s26 = sphi %s2675_s26, %s1393_s26   ;;  %s2673_s21 = sphi %s2671_s21, %s2672_s21   ;;  %s2669_s11 = sphi %s2667_s11, %s1408_s11   ;;  %s2665_s12 = sphi %s2663_s12, %s1409_s12  }
 0x2b3   : >> { %1400 = vst [vmem:[%s2665_s12] sm:$0xff] %v1399_v23  ;;  %p1404_p10 = scmp.ge.s32.totalorder %s1403_s27, %s3815_s10  ;;  %p1392_p11 = scmp.ge.s32.totalorder %s1393_s26, %s3815_s10 }
 0x2b4   : >> { %1402 = vst [vmem:[%s2665_s12 + $0xc4] sm:$0xff] %v1401_v35 }
 0x2b5   : >> { %s4046_s27 = smov (%p1404_p10, %s1403_s27), 0  ;;  %1395 = sbr.rel (!%p1392_p11) target bundleno = 690 (0x2b2), region = 290 }
 0x2b6   : >> { %s1945_s8 = sshll.u32 %s4046_s27, 3  ;;  %s2672_s21 = smov %s4046_s27  }
 0x2b7   : >> { %s1408_s11 = scalar_lea.vmem %s3819_s22, %s1945_s8 [#allocation3]   ;;  %s1409_s12 = scalar_lea.vmem %s1389_s23, %s1945_s8  }
 0x2ba PF: > { %1412 = sbr.rel (%p1297_p5) target bundleno = 764 (0x2fc), region = 143  ;;  %s1414_s15 = ssub.s32 (!%p1297_p5), %s3701_s5, %s3705_s20 }
 0x2bb   : > { %s1418_s9 = sshrl.u32 (!%p1297_p5), %s3701_s5, 3  ;;  %s3833_s30 = scalar_lea.vmem (!%p1297_p5), %s3601_s24, %s1414_s15 [#allocation3] }
 0x2bc   : > { %s3836_s17 = scalar_lea.vmem (!%p1297_p5), %s3699_s29, %s1414_s15  ;;  %s3840_s18 = sshrl.u32 (!%p1297_p5), %s1418_s9, 4 }
 0x2bd   : > { %p1947_p12 = scmp.le.s32.totalorder (!%p1297_p5), %s3840_s18, 0 }
 0x2bf   : > { %1727 = sbr.rel (%p1947_p12) target bundleno = 741 (0x2e5), region = 295  ;;  %s4023_s28 = smov (!%p1947_p12), %s3699_s29 }
 0x2c0   : > { %s4024_s4 = smov (!%p1947_p12), %s3601_s24  ;;  %s3849_s14 = smov (!%p1947_p12), 0  }
 0x2c1   : > { %s3851_s6 = smov (!%p1947_p12), 0  }
 0x2c4 LB: >> { %v1429_v16 = vld [vmem:[%s2685_s4] sm:$0xff]  ;;  %v1431_v17 = vld [vmem:[%s2685_s4 + $0x8] sm:$0xff]  ;;  %v1433_v24 = vld [vmem:[%s2685_s4 + $0x10] sm:$0xff]  ;;  %s1493_s7 = sadd.s32 1, %s2689_s14  ;;  %s1423_s6 = sadd.s32 1, %s2693_s6   ;;  %s2693_s6 = sphi %s3851_s6, %s1423_s6   ;;  %s2689_s14 = sphi %s3849_s14, %s4027_s14   ;;  %s2685_s4 = sphi %s4024_s4, %s4026_s4   ;;  %s2681_s28 = sphi %s4023_s28, %s4025_s28  }
 0x2c5   : >> { %1430 = vst [vmem:[%s2681_s28] sm:$0xff] %v1429_v16  ;;  %v1435_v4 = vld [vmem:[%s2685_s4 + $0x18] sm:$0xff]  ;;  %p1494_p13 = scmp.ge.s32.totalorder %s1493_s7, %s3840_s18  ;;  %v1437_v38 = vld [vmem:[%s2685_s4 + $0x20] sm:$0xff]  ;;  %v1439_v25 = vld [vmem:[%s2685_s4 + $0x28] sm:$0xff]  ;;  %p1422_p0 = scmp.ge.s32.totalorder %s1423_s6, %s3840_s18 }
 0x2c6   : >> { %1432 = vst [vmem:[%s2681_s28 + $0x8] sm:$0xff] %v1431_v17  ;;  %v1441_v62 = vld [vmem:[%s2685_s4 + $0x30] sm:$0xff]  ;;  %v1443_v46 = vld [vmem:[%s2685_s4 + $0x38] sm:$0xff]  ;;  %v1445_v45 = vld [vmem:[%s2685_s4 + $0x40] sm:$0xff] }
 0x2c7   : >> { %1434 = vst [vmem:[%s2681_s28 + $0x10] sm:$0xff] %v1433_v24  ;;  %s4048_s7 = smov (%p1494_p13, %s1493_s7), 0  ;;  %v1447_v5 = vld [vmem:[%s2685_s4 + $0x48] sm:$0xff]  ;;  %v1449_v61 = vld [vmem:[%s2685_s4 + $0x50] sm:$0xff]  ;;  %v1451_v9 = vld [vmem:[%s2685_s4 + $0x58] sm:$0xff] }
 0x2c8   : >> { %1436 = vst [vmem:[%s2681_s28 + $0x18] sm:$0xff] %v1435_v4  ;;  %s1948_s10 = sshll.u32 %s4048_s7, 7  ;;  %v1453_v12 = vld [vmem:[%s2685_s4 + $0x60] sm:$0xff]  ;;  %v1455_v2 = vld [vmem:[%s2685_s4 + $0x68] sm:$0xff]  ;;  %v1457_v43 = vld [vmem:[%s2685_s4 + $0x70] sm:$0xff]  ;;  %s4027_s14 = smov %s4048_s7 }
 0x2c9   : >> { %1438 = vst [vmem:[%s2681_s28 + $0x20] sm:$0xff] %v1437_v38  ;;  %s3883_s25 = scalar_lea.vmem %s3601_s24, %s1948_s10 [#allocation3]   ;;  %s3886_s22 = scalar_lea.vmem %s3699_s29, %s1948_s10   ;;  %v1459_v1 = vld [vmem:[%s2685_s4 + $0x78] sm:$0xff]  ;;  %v1479_v27 = vld [vmem:[%s2685_s4 + $0x80] sm:$0xff]  ;;  %v1481_v15 = vld [vmem:[%s2685_s4 + $0x88] sm:$0xff] }
 0x2ca   : >> { %1440 = vst [vmem:[%s2681_s28 + $0x28] sm:$0xff] %v1439_v25  ;;  %v1483_v32 = vld [vmem:[%s2685_s4 + $0x90] sm:$0xff]  ;;  %v1485_v56 = vld [vmem:[%s2685_s4 + $0x98] sm:$0xff]  ;;  %v1487_v13 = vld [vmem:[%s2685_s4 + $0xa0] sm:$0xff] }
 0x2cb   : >> { %1442 = vst [vmem:[%s2681_s28 + $0x30] sm:$0xff] %v1441_v62  ;;  %v1489_v37 = vld [vmem:[%s2685_s4 + $0xa8] sm:$0xff]  ;;  %v1491_v28 = vld [vmem:[%s2685_s4 + $0xb0] sm:$0xff]  ;;  %s4026_s4 = smov %s3883_s25 }
 0x2cc   : >> { %1444 = vst [vmem:[%s2681_s28 + $0x38] sm:$0xff] %v1443_v46 }
 0x2cd   : >> { %1446 = vst [vmem:[%s2681_s28 + $0x40] sm:$0xff] %v1445_v45 }
 0x2ce   : >> { %1448 = vst [vmem:[%s2681_s28 + $0x48] sm:$0xff] %v1447_v5 }
 0x2cf   : >> { %1450 = vst [vmem:[%s2681_s28 + $0x50] sm:$0xff] %v1449_v61 }
 0x2d0   : >> { %1452 = vst [vmem:[%s2681_s28 + $0x58] sm:$0xff] %v1451_v9 }
 0x2d1   : >> { %1454 = vst [vmem:[%s2681_s28 + $0x60] sm:$0xff] %v1453_v12 }
 0x2d2   : >> { %1456 = vst [vmem:[%s2681_s28 + $0x68] sm:$0xff] %v1455_v2 }
 0x2d3   : >> { %1458 = vst [vmem:[%s2681_s28 + $0x70] sm:$0xff] %v1457_v43 }
 0x2d4   : >> { %1460 = vst [vmem:[%s2681_s28 + $0x78] sm:$0xff] %v1459_v1 }
 0x2d5   : >> { %1462 = vst [vmem:[%s2681_s28 + $0xc4] sm:$0xff] %v1443_v46 }
 0x2d6   : >> { %1464 = vst [vmem:[%s2681_s28 + $0xcc] sm:$0xff] %v1445_v45 }
 0x2d7   : >> { %1466 = vst [vmem:[%s2681_s28 + $0xd4] sm:$0xff] %v1447_v5 }
 0x2d8   : >> { %1468 = vst [vmem:[%s2681_s28 + $0xdc] sm:$0xff] %v1449_v61 }
 0x2d9   : >> { %1470 = vst [vmem:[%s2681_s28 + $0xe4] sm:$0xff] %v1451_v9 }
 0x2da   : >> { %1472 = vst [vmem:[%s2681_s28 + $0xec] sm:$0xff] %v1453_v12 }
 0x2db   : >> { %1474 = vst [vmem:[%s2681_s28 + $0xf4] sm:$0xff] %v1455_v2 }
 0x2dc   : >> { %1476 = vst [vmem:[%s2681_s28 + $0xfc] sm:$0xff] %v1457_v43 }
 0x2dd   : >> { %1478 = vst [vmem:[%s2681_s28 + $0x104] sm:$0xff] %v1459_v1 }
 0x2de   : >> { %1480 = vst [vmem:[%s2681_s28 + $0x10c] sm:$0xff] %v1479_v27 }
 0x2df   : >> { %1482 = vst [vmem:[%s2681_s28 + $0x114] sm:$0xff] %v1481_v15 }
 0x2e0   : >> { %1484 = vst [vmem:[%s2681_s28 + $0x11c] sm:$0xff] %v1483_v32  ;;  %1425 = sbr.rel (!%p1422_p0) target bundleno = 708 (0x2c4), region = 301 }
 0x2e1   : >> { %1486 = vst [vmem:[%s2681_s28 + $0x124] sm:$0xff] %v1485_v56 }
 0x2e2   : >> { %1488 = vst [vmem:[%s2681_s28 + $0x12c] sm:$0xff] %v1487_v13 }
 0x2e3   : >> { %1490 = vst [vmem:[%s2681_s28 + $0x134] sm:$0xff] %v1489_v37 }
 0x2e4   : >> { %1492 = vst [vmem:[%s2681_s28 + $0x13c] sm:$0xff] %v1491_v28  ;;  %s4025_s28 = smov %s3886_s22 }
 0x2e5 PF: > { %s3943_s23 = sand.u32 15, %s1418_s9   ;;  %s1998_s12 = sshll.u32 %s3840_s18, 7 }
 0x2e6   : > { %s3947_s11 = scalar_lea.vmem %s3601_s24, %s1998_s12 [#allocation3]   ;;  %s1506_s21 = scalar_lea.vmem %s3699_s29, %s1998_s12  }
 0x2e7   : > { %p1953_p1 = scmp.le.s32.totalorder %s3943_s23, 0 }
 0x2e8   : > { %s2695_s26 = smov (!%p1953_p1), %s1506_s21   ;;  %s2699_s27 = smov (!%p1953_p1), %s3947_s11  }
 0x2e9   : > { %1741 = sbr.rel (%p1953_p1) target bundleno = 758 (0x2f6), region = 306  ;;  %s2703_s8 = smov (!%p1953_p1), 0  }
 0x2ea   : > { %s2707_s15 = smov (!%p1953_p1), 0  }
 0x2ee LB: >> { %v1516_v11 = vld [vmem:[%s2701_s27] sm:$0xff]  ;;  %v1518_v14 = vld [vmem:[%s2701_s27 + $0x38] sm:$0xff]  ;;  %s1520_s9 = sadd.s32 1, %s2705_s8  ;;  %s1510_s15 = sadd.s32 1, %s2709_s15   ;;  %s2709_s15 = sphi %s2707_s15, %s1510_s15   ;;  %s2705_s8 = sphi %s2703_s8, %s2704_s8   ;;  %s2701_s27 = sphi %s2699_s27, %s1525_s27   ;;  %s2697_s26 = sphi %s2695_s26, %s1526_s26  }
 0x2ef   : >> { %1517 = vst [vmem:[%s2697_s26] sm:$0xff] %v1516_v11  ;;  %p1521_p2 = scmp.ge.s32.totalorder %s1520_s9, %s3943_s23  ;;  %p1509_p3 = scmp.ge.s32.totalorder %s1510_s15, %s3943_s23 }
 0x2f0   : >> { %1519 = vst [vmem:[%s2697_s26 + $0xc4] sm:$0xff] %v1518_v14 }
 0x2f1   : >> { %s4050_s9 = smov (%p1521_p2, %s1520_s9), 0  ;;  %1512 = sbr.rel (!%p1509_p3) target bundleno = 750 (0x2ee), region = 312 }
 0x2f2   : >> { %s1954_s18 = sshll.u32 %s4050_s9, 3  ;;  %s2704_s8 = smov %s4050_s9  }
 0x2f3   : >> { %s1525_s27 = scalar_lea.vmem %s3947_s11, %s1954_s18 [#allocation3]   ;;  %s1526_s26 = scalar_lea.vmem %s1506_s21, %s1954_s18  }
 0x2f6 PF: > { %s2716_s28 = smov 1  }
 0x2f7   : > { %s1527_s4 = sshll.u32 %s2716_s28, %s3705_s20 }
 0x2f8   : > { %s1956_s14 = sadd.s32 4294967295, %s1527_s4 }
 0x2f9   : > { %v1537_v49 = vld [vmem:[%s3833_s30] sm:%s1956_s14]  ;;  %v1539_v53 = vld [vmem:[%s3833_s30 + $0x38] sm:%s1956_s14] }
 0x2fa   : > { %1538 = vst [vmem:[%s3836_s17] sm:%s1956_s14] %v1537_v49 }
 0x2fb   : > { %1540 = vst [vmem:[%s3836_s17 + $0xc4] sm:%s1956_s14] %v1539_v53 }
 0x2fc PF: > { %p1957_p5 = scmp.ge.u32.totalorder %s3701_s5, 8 }
 0x2fd   : > { %s2717_s6 = smov (!%p1957_p5), 1  }
 0x2fe   : > { %1281 = sbr.rel (%p1957_p5) target bundleno = 774 (0x306), region = 114  ;;  %s1282_s7 = sshll.u32 (!%p1957_p5), %s2717_s6, %s3701_s5 }
 0x2ff   : > { %s1958_s10 = sadd.s32 (!%p1957_p5), 4294967295, %s1282_s7 }
 0x303   : > { %v1292_v39 = vld [vmem:[%s3601_s24] sm:%s1958_s10]  ;;  %v1294_v63 = vld [vmem:[%s3601_s24 + $0x38] sm:%s1958_s10] }
 0x304   : > { %1293 = vst [vmem:[%s3699_s29] sm:%s1958_s10] %v1292_v39 }
 0x305   : > { %1295 = vst [vmem:[%s3699_s29 + $0xc4] sm:%s1958_s10] %v1294_v63 }
 0x306 PF: > { %p10_p4 = scmp.ge.s32.totalorder %s2757_s16, 6   ;;  %s4028_s12 = smov %s2577_s13 }
 0x307   : > { %s4029_s13 = smov %s2767_s19  ;;  %s4030_s14 = smov %s2757_s16 }
 0x308   :  { %12 = sbr.rel (!%p10_p4) target bundleno = 2 (0x2), region = 323 }

// kernel: autoencoder_forward.11
= control target key start
LH: loop header
LB: loop body
LE: loop exit
PB: predicated region body
PF: predicated region fallthrough
CT: control target
= control target key end

     0   :  { %vm748_vm0 = vcmask 130048   ;;  %s1954_s26 = smov 31   ;;  %vm1142_vm1 = vcmask 1039360   ;;  %s1955_s27 = smov 100   ;;  %vm1171_vm2 = vcmask 252928   ;;  %vm1225_vm3 = vcmask 818176   ;;  %s2936_s1 = inlined_call_operand.vmem [shape: bf16[144,1568], index: 1, kind: input, shape index: {}]   ;;  %s2937_s0 = inlined_call_operand.vmem [shape: bf16[8,144], index: 0, kind: input, shape index: {}]   ;;  %s2938_s2 = inlined_call_operand.vmem [shape: f32[8,1], index: 2, kind: input, shape index: {}]   ;;  %s2939_s3 = inlined_call_operand.vmem [shape: bf16[8,1568], index: 3, kind: output, shape index: {}]  }
   0x1   :  { %v1654_v0 = vld [vmem:[%s2936_s1 + $0x2d8] sm:$0xf]  ;;  %v1866_v1 = vld [vmem:[%s2936_s1 + $0x308] sm:$0xf0]  ;;  %v1706_v2 = vld [vmem:[%s2936_s1 + $0x340] sm:$0xf] }
   0x2   :  { %v1655_v3 = vor.u32 %v1866_v1, %v1654_v0  ;;  %v1879_v4 = vld [vmem:[%s2936_s1 + $0x370] sm:$0xf0]  ;;  %v1860_v5 = vld [vmem:[%s2936_s1 + $0x2dc] sm:$0xf]  ;;  %v1656_v6 = vld [vmem:[%s2936_s1 + $0x30c] sm:$0xf0] }
   0x3   :  { %v1707_v7 = vor.u32 %v1879_v4, %v1706_v2  ;;  %v1659_v8 = vor.u32 %v1860_v5, %v1656_v6  ;;  %v1873_v9 = vld [vmem:[%s2936_s1 + $0x344] sm:$0xf]  ;;  %v1708_v10 = vld [vmem:[%s2936_s1 + $0x374] sm:$0xf0]  ;;  %v1662_v11 = vld [vmem:[%s2936_s1 + $0x2e0] sm:$0xf] }
   0x4   :  { %752 = vmatpush.bf16.msra.mxu0 %v1655_v3  ;;  %v1711_v12 = vor.u32 %v1873_v9, %v1708_v10  ;;  %v1867_v13 = vld [vmem:[%s2936_s1 + $0x310] sm:$0xf0]  ;;  %v1714_v14 = vld [vmem:[%s2936_s1 + $0x348] sm:$0xf]  ;;  %v1880_v15 = vld [vmem:[%s2936_s1 + $0x378] sm:$0xf0] }
   0x5   :  { %772 = vmatpush.bf16.msra.mxu1 %v1707_v7  ;;  %778 = vmatpush.bf16.msra.mxu2 %v1659_v8  ;;  %v1663_v16 = vor.u32 %v1867_v13, %v1662_v11  ;;  %v1715_v17 = vor.u32 %v1880_v15, %v1714_v14  ;;  %v1602_v18 = vld [vmem:[%s2936_s1 + $0x270] sm:$0xf]  ;;  %v1853_v19 = vld [vmem:[%s2936_s1 + $0x2a0] sm:$0xf0]  ;;  %v1847_v20 = vld [vmem:[%s2936_s1 + $0x274] sm:$0xf] }
   0x6   :  { %798 = vmatpush.bf16.msra.mxu3 %v1711_v12  ;;  %v1603_v21 = vor.u32 %v1853_v19, %v1602_v18  ;;  %v1604_v22 = vld [vmem:[%s2936_s1 + $0x2a4] sm:$0xf0]  ;;  %v2028_v23 = vld [vmem:[%s2937_s0] sm:$0xff]  ;;  %v1664_v27 = vld [vmem:[%s2936_s1 + $0x314] sm:$0xf0]  ;;  %vm1254_vm4 = vcmask 31744  }
   0x7   :  { %v1861_v24 = vld [vmem:[%s2936_s1 + $0x2e4] sm:$0xf]  ;;  %v1607_v25 = vor.u32 %v1847_v20, %v1604_v22  ;;  %v150_v26 = vunpack.c.h.b16 %v2028_v23  ;;  %v1610_v28 = vld [vmem:[%s2936_s1 + $0x278] sm:$0xf]  ;;  %v1854_v29 = vld [vmem:[%s2936_s1 + $0x2a8] sm:$0xf0] }
   0x8   :  { %753 = vmatpush.bf16.msra.mxu0 %v1603_v21  ;;  %v1667_v30 = vor.u32 %v1861_v24, %v1664_v27  ;;  %v1611_v31 = vor.u32 %v1854_v29, %v1610_v28  ;;  %v1550_v32 = vld [vmem:[%s2936_s1 + $0x208] sm:$0xf]  ;;  %v1840_v33 = vld [vmem:[%s2936_s1 + $0x238] sm:$0xf0]  ;;  %v1834_v34 = vld [vmem:[%s2936_s1 + $0x20c] sm:$0xf] }
   0x9   :  { %804 = vmatpush.bf16.msrb.mxu1 %v1663_v16  ;;  %779 = vmatpush.bf16.msra.mxu2 %v1607_v25  ;;  %v2052_v35 = vpack.c.b16 %v150_v26, %v150_v26  ;;  %v1551_v36 = vor.u32 %v1840_v33, %v1550_v32  ;;  %v1552_v37 = vld [vmem:[%s2936_s1 + $0x23c] sm:$0xf0]  ;;  %v1848_v38 = vld [vmem:[%s2936_s1 + $0x27c] sm:$0xf]  ;;  %v1612_v39 = vld [vmem:[%s2936_s1 + $0x2ac] sm:$0xf0] }
   0xa   :  { %824 = vmatpush.bf16.msrb.mxu3 %v1715_v17  ;;  %v1555_v40 = vor.u32 %v1834_v34, %v1552_v37  ;;  %v1558_v41 = vld [vmem:[%s2936_s1 + $0x210] sm:$0xf]  ;;  %v1841_v42 = vld [vmem:[%s2936_s1 + $0x240] sm:$0xf0]  ;;  %v1498_v43 = vld [vmem:[%s2936_s1 + $0x1a0] sm:$0xf]  ;;  %v1615_v48 = vor.u32 %v1848_v38, %v1612_v39  ;;  %v149_v38 = vunpack.c.l.b16 %v2028_v23 }
   0xb   :  { %1757 = vmatmul.msk.bf16.vlgmr.msra.gmra.mxu3 %vm748_vm0, %v2052_v35  ;;  %v1559_v44 = vor.u32 %v1841_v42, %v1558_v41  ;;  %v1827_v45 = vld [vmem:[%s2936_s1 + $0x1d0] sm:$0xf0]  ;;  %v1821_v46 = vld [vmem:[%s2936_s1 + $0x1a4] sm:$0xf]  ;;  %v1500_v47 = vld [vmem:[%s2936_s1 + $0x1d4] sm:$0xf0]  ;;  %1756 = vmatmul.msk.bf16.vlgmr.msra.gmra.mxu1 %vm748_vm0, %v2052_v35 }
   0xc   :  { %754 = vmatpush.bf16.msra.mxu0 %v1551_v36  ;;  %v1499_v49 = vor.u32 %v1827_v45, %v1498_v43  ;;  %v1835_v50 = vld [vmem:[%s2936_s1 + $0x214] sm:$0xf]  ;;  %v1560_v51 = vld [vmem:[%s2936_s1 + $0x244] sm:$0xf0]  ;;  %v1503_v53 = vor.u32 %v1821_v46, %v1500_v47  ;;  %v1828_v54 = vld [vmem:[%s2936_s1 + $0x1d8] sm:$0xf0] }
   0xd   :  { %805 = vmatpush.bf16.msrb.mxu1 %v1611_v31  ;;  %v1506_v52 = vld [vmem:[%s2936_s1 + $0x1a8] sm:$0xf]  ;;  %780 = vmatpush.bf16.msra.mxu2 %v1555_v40  ;;  %v1446_v55 = vld [vmem:[%s2936_s1 + $0x138] sm:$0xf]  ;;  %v1814_v56 = vld [vmem:[%s2936_s1 + $0x168] sm:$0xf0]  ;;  %v1563_v60 = vor.u32 %v1835_v50, %v1560_v51 }
   0xe   :  { %830 = vmatpush.bf16.msra.mxu3 %v1667_v30  ;;  %v1808_v57 = vld [vmem:[%s2936_s1 + $0x13c] sm:$0xf]  ;;  %v1448_v58 = vld [vmem:[%s2936_s1 + $0x16c] sm:$0xf0]  ;;  %v1507_v59 = vor.u32 %v1828_v54, %v1506_v52  ;;  %v1447_v61 = vor.u32 %v1814_v56, %v1446_v55  ;;  %v1822_v62 = vld [vmem:[%s2936_s1 + $0x1ac] sm:$0xf]  ;;  %v2220_v52 = vpack.c.b16 %v149_v38, %v149_v38 }
   0xf   :  { %v1454_v63 = vld [vmem:[%s2936_s1 + $0x140] sm:$0xf]  ;;  %v1815_v0 = vld [vmem:[%s2936_s1 + $0x170] sm:$0xf0]  ;;  %v1451_v1 = vor.u32 %v1808_v57, %v1448_v58  ;;  %v1394_v3 = vld [vmem:[%s2936_s1 + $0xd0] sm:$0xf] }
  0x10   :  { %755 = vmatpush.bf16.msra.mxu0 %v1499_v49  ;;  %v1508_v2 = vld [vmem:[%s2936_s1 + $0x1dc] sm:$0xf0]  ;;  %v1801_v4 = vld [vmem:[%s2936_s1 + $0x100] sm:$0xf0]  ;;  %v1795_v5 = vld [vmem:[%s2936_s1 + $0xd4] sm:$0xf]  ;;  %v1455_v7 = vor.u32 %v1815_v0, %v1454_v63 }
  0x11   :  { %806 = vmatpush.bf16.msrb.mxu1 %v1559_v44  ;;  %781 = vmatpush.bf16.msra.mxu2 %v1503_v53  ;;  %v1396_v6 = vld [vmem:[%s2936_s1 + $0x104] sm:$0xf0]  ;;  %v1511_v8 = vor.u32 %v1822_v62, %v1508_v2  ;;  %v1395_v9 = vor.u32 %v1801_v4, %v1394_v3  ;;  %v1809_v10 = vld [vmem:[%s2936_s1 + $0x144] sm:$0xf]  ;;  %v1402_v11 = vld [vmem:[%s2936_s1 + $0xd8] sm:$0xf] }
  0x12   :  { %831 = vmatpush.bf16.msra.mxu3 %v1615_v48  ;;  %v1802_v12 = vld [vmem:[%s2936_s1 + $0x108] sm:$0xf0]  ;;  %v1399_v13 = vor.u32 %v1795_v5, %v1396_v6  ;;  %v1456_v14 = vld [vmem:[%s2936_s1 + $0x174] sm:$0xf0]  ;;  %v1342_v15 = vld [vmem:[%s2936_s1 + $0x68] sm:$0xf] }
  0x13   :  { %v1788_v16 = vld [vmem:[%s2936_s1 + $0x98] sm:$0xf0]  ;;  %v1782_v17 = vld [vmem:[%s2936_s1 + $0x6c] sm:$0xf]  ;;  %v1344_v18 = vld [vmem:[%s2936_s1 + $0x9c] sm:$0xf0]  ;;  %v1403_v19 = vor.u32 %v1802_v12, %v1402_v11  ;;  %v1459_v21 = vor.u32 %v1809_v10, %v1456_v14 }
  0x14   :  { %756 = vmatpush.bf16.msra.mxu0 %v1447_v61  ;;  %v1796_v20 = vld [vmem:[%s2936_s1 + $0xdc] sm:$0xf]  ;;  %v1343_v22 = vor.u32 %v1788_v16, %v1342_v15  ;;  %v1404_v24 = vld [vmem:[%s2936_s1 + $0x10c] sm:$0xf0]  ;;  %v1789_v26 = vld [vmem:[%s2936_s1 + $0xa0] sm:$0xf0]  ;;  %v1347_v27 = vor.u32 %v1782_v17, %v1344_v18 }
  0x15   :  { %807 = vmatpush.bf16.msrb.mxu1 %v1507_v59  ;;  %782 = vmatpush.bf16.msra.mxu2 %v1451_v1  ;;  %v1350_v25 = vld [vmem:[%s2936_s1 + $0x70] sm:$0xf]  ;;  %v1290_v28 = vld [vmem:[%s2936_s1] sm:$0xf]  ;;  %v1775_v29 = vld [vmem:[%s2936_s1 + $0x30] sm:$0xf0]  ;;  %v1407_v39 = vor.u32 %v1796_v20, %v1404_v24 }
  0x16   :  { %832 = vmatpush.bf16.msra.mxu3 %v1563_v60  ;;  %v1769_v30 = vld [vmem:[%s2936_s1 + $0x4] sm:$0xf]  ;;  %v1292_v31 = vld [vmem:[%s2936_s1 + $0x34] sm:$0xf0]  ;;  %v1874_v32 = vld [vmem:[%s2936_s1 + $0x34c] sm:$0xf]  ;;  %v1351_v34 = vor.u32 %v1789_v26, %v1350_v25  ;;  %v1291_v40 = vor.u32 %v1775_v29, %v1290_v28 }
  0x17   :  { %v1716_v33 = vld [vmem:[%s2936_s1 + $0x37c] sm:$0xf0]  ;;  %v1670_v36 = vld [vmem:[%s2936_s1 + $0x2e8] sm:$0xf]  ;;  %v1868_v37 = vld [vmem:[%s2936_s1 + $0x318] sm:$0xf0]  ;;  %v1295_v43 = vor.u32 %v1769_v30, %v1292_v31 }
  0x18   :  { %757 = vmatpush.bf16.msra.mxu0 %v1395_v9  ;;  %v1298_v41 = vld [vmem:[%s2936_s1 + $0x8] sm:$0xf]  ;;  %v1776_v42 = vld [vmem:[%s2936_s1 + $0x38] sm:$0xf0]  ;;  %v1783_v44 = vld [vmem:[%s2936_s1 + $0x74] sm:$0xf]  ;;  %v1719_v45 = vor.u32 %v1874_v32, %v1716_v33  ;;  %v1671_v47 = vor.u32 %v1868_v37, %v1670_v36 }
  0x19   :  { %808 = vmatpush.bf16.msrb.mxu1 %v1455_v7  ;;  %783 = vmatpush.bf16.msra.mxu2 %v1399_v13  ;;  %v1352_v23 = vld [vmem:[%s2936_s1 + $0xa4] sm:$0xf0]  ;;  %v1862_v46 = vld [vmem:[%s2936_s1 + $0x2ec] sm:$0xf]  ;;  %v1672_v48 = vld [vmem:[%s2936_s1 + $0x31c] sm:$0xf0]  ;;  %v1299_v51 = vor.u32 %v1776_v42, %v1298_v41 }
  0x1a   :  { %833 = vmatpush.bf16.msra.mxu3 %v1511_v8  ;;  %v1722_v49 = vld [vmem:[%s2936_s1 + $0x350] sm:$0xf]  ;;  %v1881_v50 = vld [vmem:[%s2936_s1 + $0x380] sm:$0xf0]  ;;  %v1618_v53 = vld [vmem:[%s2936_s1 + $0x280] sm:$0xf]  ;;  %v1355_v55 = vor.u32 %v1783_v44, %v1352_v23  ;;  %v1675_v58 = vor.u32 %v1862_v46, %v1672_v48 }
  0x1b   :  { %1758 = vmatmul.msk.bf16.vlgmr.msrb.gmra.mxu3 %vm748_vm0, %v2052_v35  ;;  %v1855_v54 = vld [vmem:[%s2936_s1 + $0x2b0] sm:$0xf0]  ;;  %v1770_v56 = vld [vmem:[%s2936_s1 + $0xc] sm:$0xf]  ;;  %v1300_v57 = vld [vmem:[%s2936_s1 + $0x3c] sm:$0xf0]  ;;  %v1723_v60 = vor.u32 %v1881_v50, %v1722_v49 }
  0x1c   :  { %758 = vmatpush.bf16.msra.mxu0 %v1343_v22  ;;  %v1678_v59 = vld [vmem:[%s2936_s1 + $0x2f0] sm:$0xf]  ;;  %v1619_v61 = vor.u32 %v1855_v54, %v1618_v53  ;;  %v1869_v62 = vld [vmem:[%s2936_s1 + $0x320] sm:$0xf0]  ;;  %v1620_v0 = vld [vmem:[%s2936_s1 + $0x2b4] sm:$0xf0]  ;;  %v1303_v5 = vor.u32 %v1770_v56, %v1300_v57 }
  0x1d   :  { %809 = vmatpush.bf16.msrb.mxu1 %v1403_v19  ;;  %784 = vmatpush.bf16.msra.mxu2 %v1347_v27  ;;  %v1849_v63 = vld [vmem:[%s2936_s1 + $0x284] sm:$0xf]  ;;  %v1952_v1 = vmov 0   ;;  %v1566_v2 = vld [vmem:[%s2936_s1 + $0x218] sm:$0xf]  ;;  %v1679_v8 = vor.u32 %v1869_v62, %v1678_v59  ;;  %vm1282_vm5 = vcmask 257024  }
  0x1e   :  { %834 = vmatpush.bf16.msra.mxu3 %v1459_v21  ;;  %1891 = vset.pattern.permute.xlu0 %v1952_v1  ;;  %v1842_v3 = vld [vmem:[%s2936_s1 + $0x248] sm:$0xf0]  ;;  %v1875_v4 = vld [vmem:[%s2936_s1 + $0x354] sm:$0xf]  ;;  %v142_v6 = vld [vmem:[%s2938_s2] sm:$0xff]  ;;  %v1623_v9 = vor.u32 %v1849_v63, %v1620_v0  ;;  %s1956_s2 = smov 4  }
  0x1f   :  { %v1724_v7 = vld [vmem:[%s2936_s1 + $0x384] sm:$0xf0]  ;;  %v1567_v12 = vor.u32 %v1842_v3, %v1566_v2  ;;  %v1856_v13 = vld [vmem:[%s2936_s1 + $0x2b8] sm:$0xf0]  ;;  %v1568_v15 = vld [vmem:[%s2936_s1 + $0x24c] sm:$0xf0]  ;;  %145 = vperm.xlu0 %1891, %v142_v6  }
  0x20   :  { %759 = vmatpush.bf16.msra.mxu0 %v1291_v40  ;;  %v1626_v10 = vld [vmem:[%s2936_s1 + $0x288] sm:$0xf]  ;;  %v1727_v11 = vor.u32 %v1875_v4, %v1724_v7  ;;  %v1836_v14 = vld [vmem:[%s2936_s1 + $0x21c] sm:$0xf]  ;;  %v1514_v16 = vld [vmem:[%s2936_s1 + $0x1b0] sm:$0xf] }
  0x21   :  { %810 = vmatpush.bf16.msrb.mxu1 %v1351_v34  ;;  %785 = vmatpush.bf16.msra.mxu2 %v1295_v43  ;;  %v1829_v17 = vld [vmem:[%s2936_s1 + $0x1e0] sm:$0xf0]  ;;  %v1627_v18 = vor.u32 %v1856_v13, %v1626_v10  ;;  %v1571_v19 = vor.u32 %v1836_v14, %v1568_v15  ;;  %v1574_v20 = vld [vmem:[%s2936_s1 + $0x220] sm:$0xf]  ;;  %v1843_v22 = vld [vmem:[%s2936_s1 + $0x250] sm:$0xf0] }
  0x22   :  { %835 = vmatpush.bf16.msra.mxu3 %v1407_v39  ;;  %v1515_v21 = vor.u32 %v1829_v17, %v1514_v16  ;;  %v1823_v24 = vld [vmem:[%s2936_s1 + $0x1b4] sm:$0xf]  ;;  %v1516_v25 = vld [vmem:[%s2936_s1 + $0x1e4] sm:$0xf0]  ;;  %v1816_v27 = vld [vmem:[%s2936_s1 + $0x178] sm:$0xf0]  ;;  %v1575_v28 = vor.u32 %v1843_v22, %v1574_v20 }
  0x23   :  { %760 = vmatmul.bf16.vlgmr.msra.gmra.mxu0 %v2220_v52  ;;  %v1462_v26 = vld [vmem:[%s2936_s1 + $0x148] sm:$0xf]  ;;  %v1519_v29 = vor.u32 %v1823_v24, %v1516_v25  ;;  %v1522_v30 = vld [vmem:[%s2936_s1 + $0x1b8] sm:$0xf]  ;;  %v1830_v32 = vld [vmem:[%s2936_s1 + $0x1e8] sm:$0xf0] }
  0x24   :  { %850 = vmatpush.bf16.msrb.mxu0 %v1719_v45  ;;  %786 = vmatmul.bf16.vlgmr.msra.gmra.mxu2 %v2220_v52  ;;  %v1463_v31 = vor.u32 %v1816_v27, %v1462_v26  ;;  %v1810_v33 = vld [vmem:[%s2936_s1 + $0x14c] sm:$0xf]  ;;  %v1464_v34 = vld [vmem:[%s2936_s1 + $0x17c] sm:$0xf0]  ;;  %v1803_v37 = vld [vmem:[%s2936_s1 + $0x110] sm:$0xf0]  ;;  %v1523_v40 = vor.u32 %v1830_v32, %v1522_v30 }
  0x25   :  { %856 = vmatpush.bf16.msrb.mxu2 %v1671_v47  ;;  %811 = vmatpush.bf16.msrb.mxu1 %v1299_v51  ;;  %v1410_v36 = vld [vmem:[%s2936_s1 + $0xe0] sm:$0xf]  ;;  %v1863_v38 = vld [vmem:[%s2936_s1 + $0x2f4] sm:$0xf]  ;;  %v1680_v39 = vld [vmem:[%s2936_s1 + $0x324] sm:$0xf0]  ;;  %v1467_v41 = vor.u32 %v1810_v33, %v1464_v34 }
  0x26   :  { %836 = vmatpush.bf16.msra.mxu3 %v1355_v55  ;;  %v1470_v42 = vld [vmem:[%s2936_s1 + $0x150] sm:$0xf]  ;;  %v1411_v43 = vor.u32 %v1803_v37, %v1410_v36  ;;  %v1817_v44 = vld [vmem:[%s2936_s1 + $0x180] sm:$0xf0]  ;;  %v1412_v45 = vld [vmem:[%s2936_s1 + $0x114] sm:$0xf0]  ;;  %v1683_v46 = vor.u32 %v1863_v38, %v1680_v39 }
  0x27   :  { %v1797_v23 = vld [vmem:[%s2936_s1 + $0xe4] sm:$0xf]  ;;  %v1358_v47 = vld [vmem:[%s2936_s1 + $0x78] sm:$0xf]  ;;  %v1790_v48 = vld [vmem:[%s2936_s1 + $0xa8] sm:$0xf0]  ;;  %v1471_v51 = vor.u32 %v1817_v44, %v1470_v42 }
  0x28   :  { %882 = vmatpush.bf16.msra.mxu0 %v1675_v58  ;;  %812 = vmatmul.bf16.vlgmr.msrb.gmra.mxu1 %v2220_v52  ;;  %v1850_v49 = vld [vmem:[%s2936_s1 + $0x28c] sm:$0xf]  ;;  %v1628_v50 = vld [vmem:[%s2936_s1 + $0x2bc] sm:$0xf0]  ;;  %v1415_v53 = vor.u32 %v1797_v23, %v1412_v45  ;;  %v1418_v54 = vld [vmem:[%s2936_s1 + $0xe8] sm:$0xf]  ;;  %v1359_v55 = vor.u32 %v1790_v48, %v1358_v47 }
  0x29   :  { %876 = vmatpush.bf16.msra.mxu1 %v1723_v60  ;;  %857 = vmatpush.bf16.msrb.mxu2 %v1619_v61  ;;  %v1804_v56 = vld [vmem:[%s2936_s1 + $0x118] sm:$0xf0]  ;;  %v1360_v58 = vld [vmem:[%s2936_s1 + $0xac] sm:$0xf0]  ;;  %v1631_v59 = vor.u32 %v1850_v49, %v1628_v50  ;;  %v1777_v61 = vld [vmem:[%s2936_s1 + $0x40] sm:$0xf0] }
  0x2a   :  { %837 = vmatpush.bf16.msra.mxu3 %v1303_v5  ;;  %v1784_v57 = vld [vmem:[%s2936_s1 + $0x7c] sm:$0xf]  ;;  %v1306_v60 = vld [vmem:[%s2936_s1 + $0x10] sm:$0xf]  ;;  %v1837_v62 = vld [vmem:[%s2936_s1 + $0x224] sm:$0xf]  ;;  %v1419_v2 = vor.u32 %v1804_v56, %v1418_v54 }
  0x2b   :  { %v1576_v63 = vld [vmem:[%s2936_s1 + $0x254] sm:$0xf0]  ;;  %v1882_v1 = vld [vmem:[%s2936_s1 + $0x388] sm:$0xf0]  ;;  %v1363_v3 = vor.u32 %v1784_v57, %v1360_v58  ;;  %v1366_v4 = vld [vmem:[%s2936_s1 + $0x80] sm:$0xf]  ;;  %v1307_v5 = vor.u32 %v1777_v61, %v1306_v60 }
  0x2c   :  { %883 = vmatpush.bf16.msra.mxu0 %v1623_v9  ;;  %v1730_v0 = vld [vmem:[%s2936_s1 + $0x358] sm:$0xf]  ;;  %v1791_v6 = vld [vmem:[%s2936_s1 + $0xb0] sm:$0xf0]  ;;  %v1579_v9 = vor.u32 %v1837_v62, %v1576_v63  ;;  %v1870_v13 = vld [vmem:[%s2936_s1 + $0x328] sm:$0xf0] }
  0x2d   :  { %902 = vmatpush.bf16.msrb.mxu1 %v1727_v11  ;;  %858 = vmatpush.bf16.msrb.mxu2 %v1567_v12  ;;  %v1771_v7 = vld [vmem:[%s2936_s1 + $0x14] sm:$0xf]  ;;  %v1731_v10 = vor.u32 %v1882_v1, %v1730_v0  ;;  %v1824_v11 = vld [vmem:[%s2936_s1 + $0x1bc] sm:$0xf]  ;;  %v1686_v12 = vld [vmem:[%s2936_s1 + $0x2f8] sm:$0xf]  ;;  %v1367_v17 = vor.u32 %v1791_v6, %v1366_v4 }
  0x2e   :  { %908 = vmatpush.bf16.msrb.mxu3 %v1679_v8  ;;  %v1308_v8 = vld [vmem:[%s2936_s1 + $0x44] sm:$0xf0]  ;;  %v1524_v14 = vld [vmem:[%s2936_s1 + $0x1ec] sm:$0xf0]  ;;  %v1876_v15 = vld [vmem:[%s2936_s1 + $0x35c] sm:$0xf] }
  0x2f   :  { %838 = vmatmul.bf16.vlgmr.msra.gmra.mxu3 %v2220_v52  ;;  %v1732_v16 = vld [vmem:[%s2936_s1 + $0x38c] sm:$0xf0]  ;;  %v1778_v20 = vld [vmem:[%s2936_s1 + $0x48] sm:$0xf0]  ;;  %v1527_v22 = vor.u32 %v1824_v11, %v1524_v14  ;;  %v1738_v25 = vld [vmem:[%s2936_s1 + $0x360] sm:$0xf] }
  0x30   :  { %884 = vmatpush.bf16.msra.mxu0 %v1571_v19  ;;  %v1314_v19 = vld [vmem:[%s2936_s1 + $0x18] sm:$0xf]  ;;  %v1735_v24 = vor.u32 %v1876_v15, %v1732_v16  ;;  %v1883_v26 = vld [vmem:[%s2936_s1 + $0x390] sm:$0xf0]  ;;  %v1864_v27 = vld [vmem:[%s2936_s1 + $0x2fc] sm:$0xf] }
  0x31   :  { %859 = vmatpush.bf16.msrb.mxu2 %v1515_v21  ;;  %v1687_v21 = vor.u32 %v1870_v13, %v1686_v12  ;;  %v1472_v30 = vld [vmem:[%s2936_s1 + $0x184] sm:$0xf0]  ;;  %v1634_v32 = vld [vmem:[%s2936_s1 + $0x290] sm:$0xf]  ;;  %v1857_v33 = vld [vmem:[%s2936_s1 + $0x2c0] sm:$0xf0]  ;;  %v1739_v34 = vor.u32 %v1883_v26, %v1738_v25 }
  0x32   :  { %909 = vmatpush.bf16.msrb.mxu3 %v1627_v18  ;;  %v1311_v18 = vor.u32 %v1771_v7, %v1308_v8  ;;  %v1694_v36 = vld [vmem:[%s2936_s1 + $0x300] sm:$0xf]  ;;  %v1871_v37 = vld [vmem:[%s2936_s1 + $0x330] sm:$0xf0]  ;;  %v1636_v42 = vld [vmem:[%s2936_s1 + $0x2c4] sm:$0xf0] }
  0x33   :  { %1759 = vmatmul.msk.bf16.vlgmr.msrb.gmra.mxu0 %vm748_vm0, %v2052_v35  ;;  %v1420_v44 = vld [vmem:[%s2936_s1 + $0x11c] sm:$0xf0]  ;;  %v1695_v23 = vor.u32 %v1871_v37, %v1694_v36  ;;  %v1582_v45 = vld [vmem:[%s2936_s1 + $0x228] sm:$0xf]  ;;  %v1642_v47 = vld [vmem:[%s2936_s1 + $0x298] sm:$0xf] }
  0x34   :  { %885 = vmatpush.bf16.msra.mxu0 %v1519_v29  ;;  %v1811_v29 = vld [vmem:[%s2936_s1 + $0x154] sm:$0xf]  ;;  %v1858_v48 = vld [vmem:[%s2936_s1 + $0x2c8] sm:$0xf0]  ;;  %v1584_v54 = vld [vmem:[%s2936_s1 + $0x25c] sm:$0xf0] }
  0x35   :  { %860 = vmatpush.bf16.msrb.mxu2 %v1463_v31  ;;  %v1315_v31 = vor.u32 %v1778_v20, %v1314_v19  ;;  %v1475_v39 = vor.u32 %v1811_v29, %v1472_v30  ;;  %v1368_v56 = vld [vmem:[%s2936_s1 + $0xb4] sm:$0xf0]  ;;  %v1643_v57 = vor.u32 %v1858_v48, %v1642_v47  ;;  %v1530_v58 = vld [vmem:[%s2936_s1 + $0x1c0] sm:$0xf]  ;;  %v1590_v60 = vld [vmem:[%s2936_s1 + $0x230] sm:$0xf] }
  0x36   :  { %910 = vmatpush.bf16.msrb.mxu3 %v1575_v28  ;;  %v1688_v28 = vld [vmem:[%s2936_s1 + $0x32c] sm:$0xf0]  ;;  %v1845_v61 = vld [vmem:[%s2936_s1 + $0x260] sm:$0xf0]  ;;  %v1532_v1 = vld [vmem:[%s2936_s1 + $0x1f4] sm:$0xf0] }
  0x37   :  { %v1691_v38 = vor.u32 %v1864_v27, %v1688_v28  ;;  %v1825_v0 = vld [vmem:[%s2936_s1 + $0x1c4] sm:$0xf]  ;;  %v1316_v4 = vld [vmem:[%s2936_s1 + $0x4c] sm:$0xf0]  ;;  %v1591_v6 = vor.u32 %v1845_v61, %v1590_v60  ;;  %v1818_v7 = vld [vmem:[%s2936_s1 + $0x188] sm:$0xf0] }
  0x38   :  { %886 = vmatpush.bf16.msra.mxu0 %v1467_v41  ;;  %1760 = vmatmul.msk.bf16.vlgmr.msra.gmra.mxu1 %vm748_vm0, %v2052_v35  ;;  %v1635_v41 = vor.u32 %v1857_v33, %v1634_v32  ;;  %v1877_v8 = vld [vmem:[%s2936_s1 + $0x364] sm:$0xf]  ;;  %v1832_v11 = vld [vmem:[%s2936_s1 + $0x1f8] sm:$0xf0]  ;;  %v1535_v12 = vor.u32 %v1825_v0, %v1532_v1  ;;  %v1480_v16 = vld [vmem:[%s2936_s1 + $0x18c] sm:$0xf0] }
  0x39   :  { %861 = vmatpush.bf16.msrb.mxu2 %v1411_v43  ;;  %934 = vmatpush.bf16.msra.mxu1 %v1683_v46  ;;  %v1798_v43 = vld [vmem:[%s2936_s1 + $0xec] sm:$0xf]  ;;  %v1844_v46 = vld [vmem:[%s2936_s1 + $0x258] sm:$0xf0]  ;;  %v1696_v19 = vld [vmem:[%s2936_s1 + $0x334] sm:$0xf0] }
  0x3a   :  { %911 = vmatpush.bf16.msrb.mxu3 %v1523_v40  ;;  %v1851_v40 = vld [vmem:[%s2936_s1 + $0x294] sm:$0xf]  ;;  %v1423_v50 = vor.u32 %v1798_v43, %v1420_v44  ;;  %v1812_v14 = vld [vmem:[%s2936_s1 + $0x15c] sm:$0xf]  ;;  %v1428_v30 = vld [vmem:[%s2936_s1 + $0x124] sm:$0xf0] }
  0x3b   :  { %v1639_v49 = vor.u32 %v1851_v40, %v1636_v42  ;;  %v1819_v25 = vld [vmem:[%s2936_s1 + $0x190] sm:$0xf0]  ;;  %v1483_v26 = vor.u32 %v1812_v14, %v1480_v16  ;;  %v1644_v32 = vld [vmem:[%s2936_s1 + $0x2cc] sm:$0xf0]  ;;  %v1792_v36 = vld [vmem:[%s2936_s1 + $0xb8] sm:$0xf0] }
  0x3c   :  { %887 = vmatpush.bf16.msra.mxu0 %v1415_v53  ;;  %v1583_v53 = vor.u32 %v1844_v46, %v1582_v45  ;;  %v1799_v28 = vld [vmem:[%s2936_s1 + $0xf4] sm:$0xf]  ;;  %v1434_v37 = vld [vmem:[%s2936_s1 + $0xf8] sm:$0xf]  ;;  %v1376_v43 = vld [vmem:[%s2936_s1 + $0xbc] sm:$0xf0] }
  0x3d   :  { %862 = vmatpush.bf16.msrb.mxu2 %v1359_v55  ;;  %935 = vmatpush.bf16.msra.mxu1 %v1631_v59  ;;  %v1785_v55 = vld [vmem:[%s2936_s1 + $0x84] sm:$0xf]  ;;  %v1831_v59 = vld [vmem:[%s2936_s1 + $0x1f0] sm:$0xf0]  ;;  %v1322_v46 = vld [vmem:[%s2936_s1 + $0x20] sm:$0xf] }
  0x3e   :  { %912 = vmatpush.bf16.msrb.mxu3 %v1471_v51  ;;  %v1838_v51 = vld [vmem:[%s2936_s1 + $0x22c] sm:$0xf]  ;;  %v1371_v63 = vor.u32 %v1785_v55, %v1368_v56  ;;  %v1839_v44 = vld [vmem:[%s2936_s1 + $0x234] sm:$0xf]  ;;  %v1382_v48 = vld [vmem:[%s2936_s1 + $0x90] sm:$0xf] }
  0x3f   :  { %v1587_v62 = vor.u32 %v1838_v51, %v1584_v54  ;;  %v1779_v47 = vld [vmem:[%s2936_s1 + $0x50] sm:$0xf0]  ;;  %v1884_v51 = vld [vmem:[%s2936_s1 + $0x398] sm:$0xf0]  ;;  %v1773_v55 = vld [vmem:[%s2936_s1 + $0x24] sm:$0xf] }
  0x40   :  { %888 = vmatpush.bf16.msra.mxu0 %v1363_v3  ;;  %v1772_v3 = vld [vmem:[%s2936_s1 + $0x1c] sm:$0xf]  ;;  %v1323_v56 = vor.u32 %v1779_v47, %v1322_v46  ;;  %v1859_v14 = vld [vmem:[%s2936_s1 + $0x2d0] sm:$0xf0] }
  0x41   :  { %863 = vmatpush.bf16.msrb.mxu2 %v1307_v5  ;;  %936 = vmatpush.bf16.msra.mxu1 %v1579_v9  ;;  %v1478_v5 = vld [vmem:[%s2936_s1 + $0x158] sm:$0xf]  ;;  %v1319_v13 = vor.u32 %v1772_v3, %v1316_v4  ;;  %v1872_v0 = vld [vmem:[%s2936_s1 + $0x338] sm:$0xf0]  ;;  %v1748_v3 = vld [vmem:[%s2936_s1 + $0x39c] sm:$0xf0] }
  0x42   :  { %913 = vmatpush.bf16.msrb.mxu3 %v1419_v2  ;;  %v1531_v2 = vor.u32 %v1831_v59, %v1530_v58  ;;  %v1740_v9 = vld [vmem:[%s2936_s1 + $0x394] sm:$0xf0]  ;;  %v1479_v15 = vor.u32 %v1818_v7, %v1478_v5  ;;  %v1330_v58 = vld [vmem:[%s2936_s1 + $0x28] sm:$0xf]  ;;  %v1826_v59 = vld [vmem:[%s2936_s1 + $0x1cc] sm:$0xf] }
  0x43   :  { %v1780_v1 = vld [vmem:[%s2936_s1 + $0x58] sm:$0xf0]  ;;  %v1754_v7 = vld [vmem:[%s2936_s1 + $0x370] sm:$0xf] }
  0x44   :  { %864 = vmatmul.bf16.vlgmr.msrb.gmra.mxu2 %v2220_v52  ;;  %889 = vmatpush.bf16.msra.mxu0 %v1311_v18  ;;  %v1865_v18 = vld [vmem:[%s2936_s1 + $0x304] sm:$0xf] }
  0x45   :  { %928 = vmatpush.bf16.msra.mxu2 %v1731_v10  ;;  %937 = vmatpush.bf16.msra.mxu1 %v1527_v22  ;;  %v1538_v10 = vld [vmem:[%s2936_s1 + $0x1c8] sm:$0xf]  ;;  %v1805_v22 = vld [vmem:[%s2936_s1 + $0x120] sm:$0xf0]  ;;  %v1699_v27 = vor.u32 %v1865_v18, %v1696_v19  ;;  %v1800_v18 = vld [vmem:[%s2936_s1 + $0xfc] sm:$0xf] }
  0x46   :  { %914 = vmatpush.bf16.msrb.mxu3 %v1367_v17  ;;  %v1743_v17 = vor.u32 %v1877_v8, %v1740_v9  ;;  %v1539_v20 = vor.u32 %v1832_v11, %v1538_v10  ;;  %v1885_v8 = vld [vmem:[%s2936_s1 + $0x3a0] sm:$0xf0]  ;;  %v1331_v9 = vor.u32 %v1780_v1, %v1330_v58  ;;  %v1488_v11 = vld [vmem:[%s2936_s1 + $0x194] sm:$0xf0]  ;;  %v1436_v19 = vld [vmem:[%s2936_s1 + $0x12c] sm:$0xf0] }
  0x47   :  { %890 = vmatmul.bf16.vlgmr.msra.gmra.mxu0 %v2220_v52  ;;  %v1813_v10 = vld [vmem:[%s2936_s1 + $0x164] sm:$0xf] }
  0x48   :  { %954 = vmatpush.bf16.msrb.mxu0 %v1735_v24  ;;  %1761 = vmatmul.msk.bf16.vlgmr.msrb.gmra.mxu1 %vm748_vm0, %v2052_v35  ;;  %v1486_v24 = vld [vmem:[%s2936_s1 + $0x160] sm:$0xf]  ;;  %v1491_v16 = vor.u32 %v1813_v10, %v1488_v11 }
  0x49   :  { %960 = vmatpush.bf16.msrb.mxu2 %v1687_v21  ;;  %938 = vmatpush.bf16.msra.mxu1 %v1475_v39  ;;  %v1426_v21 = vld [vmem:[%s2936_s1 + $0xf0] sm:$0xf]  ;;  %v1487_v33 = vor.u32 %v1819_v25, %v1486_v24  ;;  %v1431_v39 = vor.u32 %v1799_v28, %v1428_v30  ;;  %v1787_v25 = vld [vmem:[%s2936_s1 + $0x94] sm:$0xf]  ;;  %v1833_v28 = vld [vmem:[%s2936_s1 + $0x200] sm:$0xf0] }
  0x4a   :  { %915 = vmatpush.bf16.msrb.mxu3 %v1315_v31  ;;  %v1427_v29 = vor.u32 %v1805_v22, %v1426_v21  ;;  %v1852_v31 = vld [vmem:[%s2936_s1 + $0x29c] sm:$0xf]  ;;  %v1846_v21 = vld [vmem:[%s2936_s1 + $0x268] sm:$0xf0]  ;;  %v1439_v22 = vor.u32 %v1800_v18, %v1436_v19 }
  0x4b   :  { %v1647_v40 = vor.u32 %v1852_v31, %v1644_v32  ;;  %v1774_v31 = vld [vmem:[%s2936_s1 + $0x2c] sm:$0xf]  ;;  %v1332_v32 = vld [vmem:[%s2936_s1 + $0x5c] sm:$0xf0] }
  0x4c   :  { %986 = vmatpush.bf16.msra.mxu0 %v1691_v38  ;;  %v1806_v38 = vld [vmem:[%s2936_s1 + $0x128] sm:$0xf0] }
  0x4d   :  { %916 = vmatmul.bf16.vlgmr.msrb.gmra.mxu3 %v2220_v52  ;;  %961 = vmatpush.bf16.msrb.mxu2 %v1635_v41  ;;  %v1786_v41 = vld [vmem:[%s2936_s1 + $0x8c] sm:$0xf]  ;;  %v1435_v45 = vor.u32 %v1806_v38, %v1434_v37  ;;  %v1442_v38 = vld [vmem:[%s2936_s1 + $0x100] sm:$0xf] }
  0x4e   :  { %980 = vmatpush.bf16.msra.mxu3 %v1739_v34  ;;  %939 = vmatpush.bf16.msra.mxu1 %v1423_v50  ;;  %v1374_v34 = vld [vmem:[%s2936_s1 + $0x88] sm:$0xf] }
  0x4f   :  { %v1375_v42 = vor.u32 %v1792_v36, %v1374_v34  ;;  %v1746_v50 = vld [vmem:[%s2936_s1 + $0x368] sm:$0xf]  ;;  %v1820_v34 = vld [vmem:[%s2936_s1 + $0x198] sm:$0xf0]  ;;  %v1335_v36 = vor.u32 %v1774_v31, %v1332_v32 }
  0x50   :  { %987 = vmatpush.bf16.msra.mxu0 %v1639_v49  ;;  %v1793_v49 = vld [vmem:[%s2936_s1 + $0xc0] sm:$0xf0]  ;;  %v1747_v61 = vor.u32 %v1884_v51, %v1746_v50 }
  0x51   :  { %962 = vmatpush.bf16.msrb.mxu2 %v1583_v53  ;;  %v1379_v53 = vor.u32 %v1786_v41, %v1376_v43  ;;  %v1383_v60 = vor.u32 %v1793_v49, %v1382_v48  ;;  %v1390_v41 = vld [vmem:[%s2936_s1 + $0x98] sm:$0xf] }
  0x52   :  { %1012 = vmatpush.bf16.msrb.mxu3 %v1695_v23  ;;  %940 = vmatpush.bf16.msra.mxu1 %v1371_v63  ;;  %v1592_v23 = vld [vmem:[%s2936_s1 + $0x264] sm:$0xf0] }
  0x53   :  { %v1595_v54 = vor.u32 %v1839_v44, %v1592_v23  ;;  %v1702_v63 = vld [vmem:[%s2936_s1 + $0x308] sm:$0xf]  ;;  %v1338_v44 = vld [vmem:[%s2936_s1 + $0x30] sm:$0xf]  ;;  %v1781_v23 = vld [vmem:[%s2936_s1 + $0x60] sm:$0xf0] }
  0x54   :  { %988 = vmatpush.bf16.msra.mxu0 %v1587_v62  ;;  %1762 = vmatmul.msk.bf16.vlgmr.msra.gmra.mxu2 %vm748_vm0, %v2052_v35  ;;  %v1540_v62 = vld [vmem:[%s2936_s1 + $0x1fc] sm:$0xf0] }
  0x55   :  { %963 = vmatpush.bf16.msrb.mxu2 %v1531_v2  ;;  %v1878_v2 = vld [vmem:[%s2936_s1 + $0x36c] sm:$0xf]  ;;  %v1543_v5 = vor.u32 %v1826_v59, %v1540_v62 }
  0x56   :  { %1013 = vmatpush.bf16.msrb.mxu3 %v1643_v57  ;;  %941 = vmatpush.bf16.msra.mxu1 %v1319_v13  ;;  %v1324_v57 = vld [vmem:[%s2936_s1 + $0x54] sm:$0xf0]  ;;  %v1650_v13 = vld [vmem:[%s2936_s1 + $0x2a0] sm:$0xf] }
  0x57   :  { %1763 = vmatmul.msk.bf16.vlgmr.msrb.gmra.mxu0 %vm748_vm0, %v2052_v35  ;;  %v1327_v4 = vor.u32 %v1773_v55, %v1324_v57 }
  0x58   :  { %989 = vmatpush.bf16.msra.mxu0 %v1535_v12  ;;  %v1751_v12 = vor.u32 %v1878_v2, %v1748_v3 }
  0x59   :  { %964 = vmatpush.bf16.msrb.mxu2 %v1479_v15  ;;  %942 = vmatmul.bf16.vlgmr.msra.gmra.mxu1 %v2220_v52  ;;  %v1755_v15 = vor.u32 %v1885_v8, %v1754_v7 }
  0x5a   :  { %1014 = vmatpush.bf16.msrb.mxu3 %v1591_v6  ;;  %1006 = vmatpush.bf16.msrb.mxu1 %v1743_v17  ;;  %v1703_v6 = vor.u32 %v1872_v0, %v1702_v63  ;;  %v1651_v17 = vor.u32 %v1859_v14, %v1650_v13 }
  0x5c   :  { %990 = vmatpush.bf16.msra.mxu0 %v1483_v26  ;;  %v1384_v26 = vld [vmem:[%s2936_s1 + $0xc4] sm:$0xf0] }
  0x5d   :  { %1764 = vmatmul.msk.bf16.vlgmr.msra.gmra.mxu3 %vm748_vm0, %v2052_v35  ;;  %965 = vmatpush.bf16.msrb.mxu2 %v1427_v29  ;;  %v1387_v29 = vor.u32 %v1787_v25, %v1384_v26 }
  0x5e   :  { %1015 = vmatpush.bf16.msrb.mxu3 %v1539_v20  ;;  %1038 = vmatpush.bf16.msra.mxu1 %v1699_v27  ;;  %v1598_v20 = vld [vmem:[%s2936_s1 + $0x238] sm:$0xf]  ;;  %v1546_v27 = vld [vmem:[%s2936_s1 + $0x1d0] sm:$0xf] }
  0x5f   :  { %v1599_v24 = vor.u32 %v1846_v21, %v1598_v20  ;;  %v1547_v30 = vor.u32 %v1833_v28, %v1546_v27 }
  0x60   :  { %991 = vmatpush.bf16.msra.mxu0 %v1431_v39  ;;  %v1807_v39 = vld [vmem:[%s2936_s1 + $0x130] sm:$0xf0] }
  0x61   :  { %966 = vmatpush.bf16.msrb.mxu2 %v1375_v42  ;;  %v1794_v42 = vld [vmem:[%s2936_s1 + $0xc8] sm:$0xf0] }
  0x62   :  { %1016 = vmatpush.bf16.msrb.mxu3 %v1487_v33  ;;  %1039 = vmatpush.bf16.msra.mxu1 %v1647_v40  ;;  %v1494_v33 = vld [vmem:[%s2936_s1 + $0x168] sm:$0xf]  ;;  %v1443_v40 = vor.u32 %v1807_v39, %v1442_v38  ;;  %v1391_v43 = vor.u32 %v1794_v42, %v1390_v41  ;;  %s1953_s1 = smov 127  }
  0x63   :  { %v1495_v37 = vor.u32 %v1820_v34, %v1494_v33 }
  0x64   :  { %992 = vmatpush.bf16.msra.mxu0 %v1379_v53 }
  0x65   :  { %967 = vmatpush.bf16.msrb.mxu2 %v1323_v56 }
  0x66   :  { %1017 = vmatpush.bf16.msrb.mxu3 %v1435_v45  ;;  %1040 = vmatpush.bf16.msra.mxu1 %v1595_v54  ;;  %v1339_v45 = vor.u32 %v1781_v23, %v1338_v44 }
  0x68   :  { %968 = vmatmul.bf16.vlgmr.msrb.gmra.mxu2 %v2220_v52  ;;  %993 = vmatpush.bf16.msra.mxu0 %v1327_v4 }
  0x69   :  { %1032 = vmatpush.bf16.msra.mxu2 %v1747_v61  ;;  %1765 = vmatmul.msk.bf16.vlgmr.msrb.gmra.mxu1 %vm748_vm0, %v2052_v35 }
  0x6a   :  { %1018 = vmatpush.bf16.msrb.mxu3 %v1383_v60  ;;  %1041 = vmatpush.bf16.msra.mxu1 %v1543_v5 }
  0x6b   :  { %994 = vmatmul.bf16.vlgmr.msra.gmra.mxu0 %v2220_v52 }
  0x6c   :  { %1058 = vmatpush.bf16.msrb.mxu0 %v1751_v12 }
  0x6d   :  { %1064 = vmatpush.bf16.msrb.mxu2 %v1703_v6 }
  0x6e   :  { %1019 = vmatpush.bf16.msrb.mxu3 %v1331_v9  ;;  %1042 = vmatpush.bf16.msra.mxu1 %v1491_v16 }
  0x71   :  { %1020 = vmatmul.bf16.vlgmr.msrb.gmra.mxu3 %v2220_v52  ;;  %1065 = vmatpush.bf16.msrb.mxu2 %v1651_v17 }
  0x72   :  { %1084 = vmatpush.bf16.msra.mxu3 %v1755_v15  ;;  %1043 = vmatpush.bf16.msra.mxu1 %v1439_v22 }
  0x75   :  { %1066 = vmatpush.bf16.msrb.mxu2 %v1599_v24 }
  0x76   :  { %1044 = vmatpush.bf16.msra.mxu1 %v1387_v29 }
  0x78   :  { %1766 = vmatmul.msk.bf16.vlgmr.msra.gmra.mxu2 %vm748_vm0, %v2052_v35 }
  0x79   :  { %1067 = vmatpush.bf16.msrb.mxu2 %v1547_v30 }
  0x7a   :  { %1045 = vmatpush.bf16.msra.mxu1 %v1335_v36 }
  0x7b   :  { %1767 = vmatmul.msk.bf16.vlgmr.msrb.gmra.mxu0 %vm748_vm0, %v2052_v35 }
  0x7d   :  { %1068 = vmatpush.bf16.msrb.mxu2 %v1495_v37  ;;  %1046 = vmatmul.bf16.vlgmr.msra.gmra.mxu1 %v2220_v52 }
  0x81   :  { %1768 = vmatmul.msk.bf16.vlgmr.msra.gmra.mxu3 %vm748_vm0, %v2052_v35  ;;  %1069 = vmatpush.bf16.msrb.mxu2 %v1443_v40 }
  0x85   :  { %1070 = vmatpush.bf16.msrb.mxu2 %v1391_v43 }
  0x88   :  { %v774_v46 = vpop.f32.mrf.mxu1 }
  0x89   :  { %1071 = vmatpush.bf16.msrb.mxu2 %v1339_v45 }
  0x8c   :  { %1072 = vmatmul.bf16.vlgmr.msrb.gmra.mxu2 %v2220_v52 }
  0x8e   :  { %v800_v47 = vpop.f32.mrf.mxu3 }
  0x90   :  { %v776_v48 = vpop.f32.mrf.mxu1 }
  0x91   :  { %v2732_v51 = vpop.permute.xlu0 %145 }
  0x96   :  { %v802_v49 = vpop.f32.mrf.mxu3 }
  0x9e   :  { %v826_v35 = vpop.f32.mrf.mxu3 }
  0xa0   :  { %v761_v50 = vpop.f32.mrf.mxu0 }
  0xa1   :  { %v762_v54 = vadd.f32 %v761_v50, %v2732_v51 }
  0xa3   :  { %v775_v57 = vadd.f32 %v774_v46, %v762_v54 }
  0xa5   :  { %v813_v53 = vpop.f32.mrf.mxu1  ;;  %v2739_v62 = vmax.f32 %v775_v57, 0.0 }
  0xa6   :  { %v828_v55 = vpop.f32.mrf.mxu3  ;;  %v814_v52 = vadd.f32 %v813_v53, %v2732_v51 }
  0xa7   :  { %v787_v56 = vpop.f32.mrf.mxu2 }
  0xa8   :  { %v788_v58 = vadd.f32 %v787_v56, %v2732_v51  ;;  %v763_v59 = vpop.f32.mrf.mxu0  ;;  %v2745_v2 = vadd.f32 %v826_v35, %v814_v52 }
  0xaa   :  { %v2736_v60 = vadd.f32 %v800_v47, %v788_v58  ;;  %v1092_v7 = vmax.f32 %v2745_v2, 0.0 }
  0xac   :  { %v1091_v63 = vmax.f32 %v2736_v60, 0.0 }
  0xad   :  { %v815_v61 = vpop.f32.mrf.mxu1 }
  0xae   :  { %v1892_v1 = vpack.i.bf16 %v1091_v63, %v2739_v62 }
  0xaf   :  { %v789_v4 = vpop.f32.mrf.mxu2 }
  0xb0   :  { %1893 = vrot.lane.b32.xlu0 %v1892_v1, %s1953_s1  ;;  %v852_v5 = vpop.f32.mrf.mxu0 }
  0xb2   :  { %v839_v0 = vpop.f32.mrf.mxu3 }
  0xb3   :  { %v840_v3 = vadd.f32 %v839_v0, %v2732_v51 }
  0xb5   :  { %v2749_v6 = vadd.f32 %v852_v5, %v840_v3  ;;  %v878_v9 = vpop.f32.mrf.mxu1 }
  0xb7   :  { %v1093_v8 = vmax.f32 %v2749_v6, 0.0 }
  0xb8   :  { %v854_v12 = vpop.f32.mrf.mxu0 }
  0xb9   :  { %v1897_v10 = vpack.i.bf16 %v1093_v8, %v1092_v7 }
  0xba   :  { %v841_v11 = vpop.f32.mrf.mxu3 }
  0xbb   :  { %1898 = vrot.lane.b32.xlu1 %v1897_v10, %s1953_s1 }
  0xbd   :  { %v880_v13 = vpop.f32.mrf.mxu1 }
  0xc4   :  { %v891_v14 = vpop.f32.mrf.mxu0 }
  0xc5   :  { %v892_v15 = vadd.f32 %v891_v14, %v2732_v51  ;;  %v904_v16 = vpop.f32.mrf.mxu1 }
  0xc7   :  { %v865_v17 = vpop.f32.mrf.mxu2  ;;  %v2759_v18 = vadd.f32 %v904_v16, %v892_v15 }
  0xc8   :  { %v866_v19 = vadd.f32 %v865_v17, %v2732_v51 }
  0xc9   :  { %v1095_v20 = vmax.f32 %v2759_v18, 0.0 }
  0xca   :  { %v2763_v21 = vadd.f32 %v878_v9, %v866_v19 }
  0xcc   :  { %v1094_v22 = vmax.f32 %v2763_v21, 0.0  ;;  %v893_v24 = vpop.f32.mrf.mxu0 }
  0xcd   :  { %v906_v26 = vpop.f32.mrf.mxu1 }
  0xce   :  { %v1902_v27 = vpack.i.bf16 %v1095_v20, %v1094_v22 }
  0xcf   :  { %v867_v28 = vpop.f32.mrf.mxu2 }
  0xd0   :  { %v917_v25 = vpop.f32.mrf.mxu3  ;;  %1903 = vrot.lane.b32.xlu1 %v1902_v27, %s1953_s1 }
  0xd1   :  { %v918_v29 = vadd.f32 %v917_v25, %v2732_v51 }
  0xd4   :  { %v956_v30 = vpop.f32.mrf.mxu0 }
  0xd6   :  { %v943_v32 = vpop.f32.mrf.mxu1 }
  0xd7   :  { %v944_v33 = vadd.f32 %v943_v32, %v2732_v51  ;;  %v930_v34 = vpop.f32.mrf.mxu2 }
  0xd8   :  { %v919_v31 = vpop.f32.mrf.mxu3  ;;  %v2773_v36 = vadd.f32 %v930_v34, %v918_v29 }
  0xd9   :  { %v2775_v37 = vadd.f32 %v956_v30, %v944_v33 }
  0xda   :  { %v1096_v38 = vmax.f32 %v2773_v36, 0.0 }
  0xdb   :  { %v1097_v39 = vmax.f32 %v2775_v37, 0.0 }
  0xdc   :  { %v958_v40 = vpop.f32.mrf.mxu0 }
  0xdd   :  { %v1907_v41 = vpack.i.bf16 %v1097_v39, %v1096_v38 }
  0xde   :  { %v945_v43 = vpop.f32.mrf.mxu1 }
  0xdf   :  { %1908 = vrot.lane.b32.xlu2 %v1907_v41, %s1953_s1  ;;  %v932_v44 = vpop.f32.mrf.mxu2 }
  0xe0   :  { %v982_v42 = vpop.f32.mrf.mxu3 }
  0xe6   :  { %v1008_v47 = vpop.f32.mrf.mxu1 }
  0xe8   :  { %v984_v23 = vpop.f32.mrf.mxu3  ;;  %v995_v45 = vpop.f32.mrf.mxu0 }
  0xe9   :  { %v996_v46 = vadd.f32 %v995_v45, %v2732_v51 }
  0xeb   :  { %v2785_v48 = vadd.f32 %v1008_v47, %v996_v46  ;;  %v969_v49 = vpop.f32.mrf.mxu2 }
  0xec   :  { %v970_v35 = vadd.f32 %v969_v49, %v2732_v51 }
  0xed   :  { %v1099_v50 = vmax.f32 %v2785_v48, 0.0 }
  0xee   :  { %v2789_v53 = vadd.f32 %v982_v42, %v970_v35  ;;  %v1010_v57 = vpop.f32.mrf.mxu1 }
  0xf0   :  { %v1098_v54 = vmax.f32 %v2789_v53, 0.0  ;;  %v997_v56 = vpop.f32.mrf.mxu0 }
  0xf2   :  { %v1912_v58 = vpack.i.bf16 %v1099_v50, %v1098_v54 }
  0xf3   :  { %v971_v59 = vpop.f32.mrf.mxu2 }
  0xf4   :  { %v1021_v55 = vpop.f32.mrf.mxu3  ;;  %1913 = vrot.lane.b32.xlu2 %v1912_v58, %s1953_s1 }
  0xf5   :  { %v1022_v1 = vadd.f32 %v1021_v55, %v2732_v51 }
  0xf8   :  { %v1060_v52 = vpop.f32.mrf.mxu0 }
  0xfa   :  { %v1047_v0 = vpop.f32.mrf.mxu1 }
  0xfb   :  { %v1048_v3 = vadd.f32 %v1047_v0, %v2732_v51  ;;  %v1034_v4 = vpop.f32.mrf.mxu2 }
  0xfc   :  { %v1023_v61 = vpop.f32.mrf.mxu3  ;;  %v2801_v9 = vadd.f32 %v1034_v4, %v1022_v1  ;;  %1168 = vrot.lane.b32.xlu2 %v2739_v62, %s1954_s26 }
  0xfd   :  { %v2799_v5 = vadd.f32 %v1060_v52, %v1048_v3 }
  0xfe   :  { %v1100_v11 = vmax.f32 %v2801_v9, 0.0 }
  0xff   :  { %v1101_v10 = vmax.f32 %v2799_v5, 0.0 }
 0x100   :  { %v1062_v13 = vpop.f32.mrf.mxu0 }
 0x101   :  { %v1917_v12 = vpack.i.bf16 %v1101_v10, %v1100_v11 }
 0x102   :  { %v1049_v15 = vpop.f32.mrf.mxu1 }
 0x103   :  { %1918 = vrot.lane.b32.xlu0 %v1917_v12, %s1953_s1  ;;  %v1036_v16 = vpop.f32.mrf.mxu2 }
 0x104   :  { %v1086_v14 = vpop.f32.mrf.mxu3 }
 0x10c   :  { %v1088_v17 = vpop.f32.mrf.mxu3 }
 0x10f   :  { %v1073_v19 = vpop.f32.mrf.mxu2 }
 0x110   :  { %v1074_v24 = vadd.f32 %v1073_v19, %v2732_v51 }
 0x112   :  { %v2812_v25 = vadd.f32 %v1086_v14, %v1074_v24 }
 0x114   :  { %v1102_v26 = vmax.f32 %v2812_v25, 0.0 }
 0x116   :  { %1140 = vrot.lane.b32.xlu1 %v1102_v26, %s1953_s1 }
 0x117   :  { %v1075_v27 = vpop.f32.mrf.mxu2 }
 0x122   :  { %v1894_v28 = vpop.permute.xlu0 %1893 }
 0x123   :  { %v1896_v29 = vunpack.i.h.bf16 %v1894_v28  ;;  %v1895_v30 = vunpack.i.l.bf16 %v1894_v28 }
 0x125   :  { %v1143_v32 = vsel %vm1142_vm1, %v1895_v30, %v1896_v29 }
 0x126   :  { %v2819_v40 = vmax.f32 %v2739_v62, %v1143_v32 }
 0x12d   :  { %v1899_v31 = vpop.permute.xlu1 %1898 }
 0x12e   :  { %v1900_v33 = vunpack.i.l.bf16 %v1899_v31  ;;  %v1901_v42 = vunpack.i.h.bf16 %v1899_v31 }
 0x130   :  { %v1144_v34 = vsel %vm1142_vm1, %v1896_v29, %v1900_v33  ;;  %v1145_v23 = vsel %vm1142_vm1, %v1900_v33, %v1901_v42 }
 0x131   :  { %v2823_v51 = vmax.f32 %v1091_v63, %v1144_v34  ;;  %v1175_v49 = vmax.f32 %v1092_v7, %v1145_v23 }
 0x133   :  { %v1922_v41 = vpack.i.bf16 %v2823_v51, %v2819_v40 }
 0x135   :  { %1923 = vrot.lane.b32.xlu0 %v1922_v41, %s1955_s27 }
 0x139   :  { %v1909_v43 = vpop.permute.xlu2 %1908 }
 0x13a   :  { %v1910_v45 = vunpack.i.l.bf16 %v1909_v43  ;;  %v1911_v59 = vunpack.i.h.bf16 %v1909_v43 }
 0x13c   :  { %v1149_v6 = vsel %vm1142_vm1, %v1910_v45, %v1911_v59 }
 0x13d   :  { %v2852_v18 = vmax.f32 %v1096_v38, %v1149_v6 }
 0x142   :  { %v1904_v44 = vpop.permute.xlu1 %1903 }
 0x143   :  { %v1906_v46 = vunpack.i.h.bf16 %v1904_v44  ;;  %v1905_v47 = vunpack.i.l.bf16 %v1904_v44 }
 0x145   :  { %v1148_v62 = vsel %vm1142_vm1, %v1906_v46, %v1910_v45  ;;  %v1146_v60 = vsel %vm1142_vm1, %v1901_v42, %v1905_v47  ;;  %v1147_v63 = vsel %vm1142_vm1, %v1905_v47, %v1906_v46 }
 0x146   :  { %v1176_v35 = vmax.f32 %v1093_v8, %v1146_v60  ;;  %v2838_v55 = vmax.f32 %v1094_v22, %v1147_v63  ;;  %v2842_v56 = vmax.f32 %v1095_v20, %v1148_v62 }
 0x148   :  { %v1927_v57 = vpack.i.bf16 %v1176_v35, %v1175_v49  ;;  %v1932_v58 = vpack.i.bf16 %v2842_v56, %v2838_v55 }
 0x14a   :  { %1928 = vrot.lane.b32.xlu1 %v1927_v57, %s1955_s27  ;;  %1933 = vrot.lane.b32.xlu2 %v1932_v58, %s1955_s27 }
 0x14e   :  { %v1914_v2 = vpop.permute.xlu2 %1913 }
 0x14f   :  { %v1915_v7 = vunpack.i.l.bf16 %v1914_v2  ;;  %v1916_v22 = vunpack.i.h.bf16 %v1914_v2 }
 0x151   :  { %v1150_v8 = vsel %vm1142_vm1, %v1911_v59, %v1915_v7  ;;  %v1151_v61 = vsel %vm1142_vm1, %v1915_v7, %v1916_v22 }
 0x152   :  { %v2856_v20 = vmax.f32 %v1097_v39, %v1150_v8  ;;  %v2865_v36 = vmax.f32 %v1098_v54, %v1151_v61 }
 0x154   :  { %v1937_v21 = vpack.i.bf16 %v2856_v20, %v2852_v18 }
 0x156   :  { %1938 = vrot.lane.b32.xlu0 %v1937_v21, %s1955_s27  ;;  %v1169_v4 = vpop.permute.xlu2 %1168 }
 0x175   :  { %v1919_v52 = vpop.permute.xlu0 %1918 }
 0x176   :  { %v1920_v0 = vunpack.i.l.bf16 %v1919_v52  ;;  %v1921_v39 = vunpack.i.h.bf16 %v1919_v52 }
 0x178   :  { %v1152_v1 = vsel %vm1142_vm1, %v1916_v22, %v1920_v0  ;;  %v1153_v3 = vsel %vm1142_vm1, %v1920_v0, %v1921_v39 }
 0x179   :  { %v2869_v37 = vmax.f32 %v1099_v50, %v1152_v1  ;;  %v2885_v13 = vmax.f32 %v1100_v11, %v1153_v3 }
 0x17b   :  { %v1942_v38 = vpack.i.bf16 %v2869_v37, %v2865_v36 }
 0x17d   :  { %1943 = vrot.lane.b32.xlu1 %v1942_v38, %s1955_s27 }
 0x185   :  { %1251 = vrot.lane.b32.xlu1 %v2819_v40, %s1956_s2 }
 0x188   :  { %v1141_v53 = vpop.permute.xlu1 %1140 }
 0x189   :  { %v1154_v54 = vsel %vm1142_vm1, %v1921_v39, %v1141_v53  ;;  %v1172_v12 = vsel %vm1171_vm2, %v1141_v53, %v1169_v4 }
 0x18a   :  { %v2879_v48 = vmax.f32 %v1101_v10, %v1154_v54  ;;  %v2881_v50 = vmax.f32 %v1102_v26, %v1172_v12 }
 0x18c   :  { %1223 = vrot.lane.b32.xlu0 %v2881_v50, %s1955_s27  ;;  %v1947_v14 = vpack.i.bf16 %v2879_v48, %v2885_v13 }
 0x18e   :  { %1948 = vrot.lane.b32.xlu2 %v1947_v14, %s1955_s27 }
 0x1a4   :  { %v1934_v5 = vpop.permute.xlu2 %1933 }
 0x1a5   :  { %v1935_v19 = vunpack.i.l.bf16 %v1934_v5  ;;  %v1936_v34 = vunpack.i.h.bf16 %v1934_v5 }
 0x1a7   :  { %v1924_v15 = vpop.permute.xlu0 %1923  ;;  %v1230_v42 = vsel %vm1225_vm3, %v1935_v19, %v1936_v34 }
 0x1a8   :  { %v1926_v16 = vunpack.i.h.bf16 %v1924_v15  ;;  %v1925_v17 = vunpack.i.l.bf16 %v1924_v15 }
 0x1aa   :  { %v1226_v24 = vsel %vm1225_vm3, %v1925_v17, %v1926_v16 }
 0x1ab   :  { %v1256_v28 = vmax.f32 %v2819_v40, %v1226_v24 }
 0x1bc   :  { %v1929_v10 = vpop.permute.xlu1 %1928 }
 0x1bd   :  { %v1931_v9 = vunpack.i.h.bf16 %v1929_v10  ;;  %v1930_v11 = vunpack.i.l.bf16 %v1929_v10 }
 0x1bf   :  { %v1227_v25 = vsel %vm1225_vm3, %v1926_v16, %v1930_v11  ;;  %v1228_v26 = vsel %vm1225_vm3, %v1930_v11, %v1931_v9  ;;  %v1229_v27 = vsel %vm1225_vm3, %v1931_v9, %v1935_v19 }
 0x1c0   :  { %v1257_v29 = vmax.f32 %v2823_v51, %v1227_v25  ;;  %v1258_v30 = vmax.f32 %v1175_v49, %v1228_v26  ;;  %v1259_v31 = vmax.f32 %v1176_v35, %v1229_v27  ;;  %v1260_v51 = vmax.f32 %v2838_v55, %v1230_v42 }
 0x1c2   :  { %v1269_v32 = vpack.c.bf16 %v1257_v29, %v1256_v28  ;;  %v1270_v33 = vpack.c.bf16 %v1259_v31, %v1258_v30 }
 0x1c4   :  { %1276 = vst [vmem:[%s2939_s3] sm:$0xff] %v1269_v32 }
 0x1c5   :  { %1277 = vst [vmem:[%s2939_s3 + $0x8] sm:$0xff] %v1270_v33 }
 0x1c8   :  { %v1939_v41 = vpop.permute.xlu0 %1938 }
 0x1c9   :  { %v1940_v43 = vunpack.i.l.bf16 %v1939_v41  ;;  %v1941_v45 = vunpack.i.h.bf16 %v1939_v41 }
 0x1cb   :  { %v1231_v40 = vsel %vm1225_vm3, %v1936_v34, %v1940_v43  ;;  %v1232_v62 = vsel %vm1225_vm3, %v1940_v43, %v1941_v45 }
 0x1cc   :  { %v1261_v44 = vmax.f32 %v2842_v56, %v1231_v40  ;;  %v1262_v56 = vmax.f32 %v2852_v18, %v1232_v62 }
 0x1ce   :  { %v1271_v23 = vpack.c.bf16 %v1261_v44, %v1260_v51 }
 0x1d0   :  { %1278 = vst [vmem:[%s2939_s3 + $0x10] sm:$0xff] %v1271_v23 }
 0x1e8   :  { %v1949_v46 = vpop.permute.xlu2 %1948 }
 0x1e9   :  { %v1950_v60 = vunpack.i.l.bf16 %v1949_v46  ;;  %v1951_v8 = vunpack.i.h.bf16 %v1949_v46 }
 0x1eb   :  { %v1236_v18 = vsel %vm1225_vm3, %v1950_v60, %v1951_v8 }
 0x1ec   :  { %v1266_v61 = vmax.f32 %v2885_v13, %v1236_v18 }
 0x1ef   :  { %v1944_v47 = vpop.permute.xlu1 %1943 }
 0x1f0   :  { %v1946_v63 = vunpack.i.h.bf16 %v1944_v47  ;;  %v1945_v49 = vunpack.i.l.bf16 %v1944_v47 }
 0x1f2   :  { %v1235_v35 = vsel %vm1225_vm3, %v1946_v63, %v1950_v60  ;;  %v1233_v57 = vsel %vm1225_vm3, %v1941_v45, %v1945_v49  ;;  %v1234_v55 = vsel %vm1225_vm3, %v1945_v49, %v1946_v63 }
 0x1f3   :  { %v1265_v58 = vmax.f32 %v2869_v37, %v1235_v35  ;;  %v1263_v59 = vmax.f32 %v2856_v20, %v1233_v57  ;;  %v1264_v2 = vmax.f32 %v2865_v36, %v1234_v55 }
 0x1f5   :  { %v1272_v6 = vpack.c.bf16 %v1263_v59, %v1262_v56  ;;  %v1273_v7 = vpack.c.bf16 %v1265_v58, %v1264_v2 }
 0x1f7   :  { %1279 = vst [vmem:[%s2939_s3 + $0x18] sm:$0xff] %v1272_v6  ;;  %v1252_v21 = vpop.permute.xlu1 %1251 }
 0x1f8   :  { %1280 = vst [vmem:[%s2939_s3 + $0x20] sm:$0xff] %v1273_v7 }
 0x1fe   :  { %v1224_v22 = vpop.permute.xlu0 %1223 }
 0x1ff   :  { %v1237_v20 = vsel %vm1225_vm3, %v1951_v8, %v1224_v22  ;;  %v1255_v52 = vsel %vm1254_vm4, %v1224_v22, %v1252_v21 }
 0x200   :  { %v1267_v0 = vmax.f32 %v2879_v48, %v1237_v20  ;;  %v1268_v1 = vmax.f32 %v2881_v50, %v1255_v52 }
 0x202   :  { %v1274_v36 = vpack.c.bf16 %v1267_v0, %v1266_v61  ;;  %v1275_v37 = vpack.c.bf16 %v1268_v1, %v1268_v1 }
 0x204   :  { %1281 = vst [vmem:[%s2939_s3 + $0x28] sm:$0xff] %v1274_v36 }
 0x205   :  { %1283 = vst.msk [vmem:[%s2939_s3 + $0x30] sm:$0xf] %vm1282_vm5, %v1275_v37 }

// kernel: autoencoder_forward.12
= control target key start
LH: loop header
LB: loop body
LE: loop exit
PB: predicated region body
PF: predicated region fallthrough
CT: control target
= control target key end

     0   :  { %v397_v2 = vmov 0   ;;  %vm134_vm0 = vcmask 1043456   ;;  %vm130_vm1 = vcmask 588800   ;;  %vm215_vm2 = vcmask 1039360   ;;  %s400_s29 = smov 122   ;;  %s401_s30 = smov 114   ;;  %s543_s1 = inlined_call_operand.vmem [shape: bf16[72,392], index: 1, kind: input, shape index: {}]   ;;  %s544_s2 = inlined_call_operand.vmem [shape: f32[4,1], index: 2, kind: input, shape index: {}]   ;;  %s545_s0 = inlined_call_operand.vmem [shape: bf16[4,72], index: 0, kind: input, shape index: {}]   ;;  %s546_s3 = inlined_call_operand.vmem [shape: bf16[4,392], index: 3, kind: output, shape index: {}]  }
   0x1   :  { %v32_v0 = vld [vmem:[%s543_s1 + $0x80] sm:$0xff]  ;;  %v33_v1 = vld [vmem:[%s543_s1 + $0x88] sm:$0xff]  ;;  %376 = vset.pattern.permute.xlu0 %v397_v2  ;;  %v369_v8 = vld [vmem:[%s543_s1 + $0x6c] sm:$0xf0]  ;;  %vm226_vm3 = vcmask 56320   ;;  %vm244_vm4 = vcmask 932864  }
   0x2   :  { %v90_v3 = vunpack.c.l.b16 %v32_v0  ;;  %v91_v4 = vunpack.c.h.b16 %v32_v0  ;;  %v92_v5 = vunpack.c.l.b16 %v33_v1  ;;  %v93_v6 = vunpack.c.h.b16 %v33_v1  ;;  %v337_v7 = vld [vmem:[%s543_s1 + $0x60] sm:$0xf]  ;;  %v367_v13 = vld [vmem:[%s543_s1 + $0x64] sm:$0xf]  ;;  %v339_v14 = vld [vmem:[%s543_s1 + $0x70] sm:$0xf0] }
   0x3   :  { %v345_v15 = vld [vmem:[%s543_s1 + $0x68] sm:$0xf]  ;;  %v370_v16 = vld [vmem:[%s543_s1 + $0x74] sm:$0xf0]  ;;  %v368_v17 = vld [vmem:[%s543_s1 + $0x6c] sm:$0xf]  ;;  %v338_v23 = vor.u32 %v369_v8, %v337_v7  ;;  %v342_v24 = vor.u32 %v367_v13, %v339_v14 }
   0x4   :  { %v110_v9 = vpack.c.b16 %v90_v3, %v90_v3  ;;  %v111_v10 = vpack.c.b16 %v91_v4, %v91_v4  ;;  %v112_v11 = vpack.c.b16 %v92_v5, %v92_v5  ;;  %v113_v12 = vpack.c.b16 %v93_v6, %v93_v6  ;;  %v347_v18 = vld [vmem:[%s543_s1 + $0x78] sm:$0xf0]  ;;  %v321_v25 = vld [vmem:[%s543_s1 + $0x40] sm:$0xf]  ;;  %v365_v26 = vld [vmem:[%s543_s1 + $0x4c] sm:$0xf0] }
   0x5   :  { %v346_v27 = vor.u32 %v370_v16, %v345_v15  ;;  %v350_v28 = vor.u32 %v368_v17, %v347_v18  ;;  %v363_v29 = vld [vmem:[%s543_s1 + $0x44] sm:$0xf]  ;;  %v323_v30 = vld [vmem:[%s543_s1 + $0x50] sm:$0xf0]  ;;  %v329_v31 = vld [vmem:[%s543_s1 + $0x48] sm:$0xf]  ;;  %v322_v35 = vor.u32 %v365_v26, %v321_v25 }
   0x6   :  { %v136_v19 = vsel %vm134_vm0, %v110_v9, 0  ;;  %v139_v20 = vsel %vm134_vm0, %v111_v10, 0  ;;  %v142_v21 = vsel %vm134_vm0, %v112_v11, 0  ;;  %v145_v22 = vsel %vm134_vm0, %v113_v12, 0  ;;  %v366_v32 = vld [vmem:[%s543_s1 + $0x54] sm:$0xf0] }
   0x7   :  { %150 = vmatpush.bf16.msra.mxu0 %v136_v19  ;;  %163 = vmatpush.bf16.msra.mxu1 %v139_v20  ;;  %v364_v33 = vld [vmem:[%s543_s1 + $0x4c] sm:$0xf]  ;;  %v331_v34 = vld [vmem:[%s543_s1 + $0x58] sm:$0xf0]  ;;  %v326_v36 = vor.u32 %v363_v29, %v323_v30  ;;  %v305_v37 = vld [vmem:[%s543_s1 + $0x20] sm:$0xf]  ;;  %v330_v40 = vor.u32 %v366_v32, %v329_v31 }
   0x8   :  { %176 = vmatpush.bf16.msra.mxu2 %v142_v21  ;;  %189 = vmatpush.bf16.msra.mxu3 %v145_v22  ;;  %v361_v38 = vld [vmem:[%s543_s1 + $0x2c] sm:$0xf0]  ;;  %v359_v39 = vld [vmem:[%s543_s1 + $0x24] sm:$0xf]  ;;  %v334_v41 = vor.u32 %v364_v33, %v331_v34  ;;  %v307_v42 = vld [vmem:[%s543_s1 + $0x30] sm:$0xf0] }
   0x9   :  { %v313_v43 = vld [vmem:[%s543_s1 + $0x28] sm:$0xf]  ;;  %v362_v44 = vld [vmem:[%s543_s1 + $0x34] sm:$0xf0]  ;;  %v360_v45 = vld [vmem:[%s543_s1 + $0x2c] sm:$0xf]  ;;  %v306_v48 = vor.u32 %v361_v38, %v305_v37  ;;  %v310_v49 = vor.u32 %v359_v39, %v307_v42 }
   0xa   :  { %v315_v46 = vld [vmem:[%s543_s1 + $0x38] sm:$0xf0]  ;;  %v34_v47 = vld [vmem:[%s544_s2] sm:$0xf]  ;;  %v357_v51 = vld [vmem:[%s543_s1 + $0xc] sm:$0xf0]  ;;  %v314_v52 = vor.u32 %v362_v44, %v313_v43 }
   0xb   :  { %151 = vmatpush.bf16.msra.mxu0 %v338_v23  ;;  %164 = vmatpush.bf16.msra.mxu1 %v342_v24  ;;  %v289_v50 = vld [vmem:[%s543_s1] sm:$0xf]  ;;  %v318_v53 = vor.u32 %v360_v45, %v315_v46  ;;  %v355_v54 = vld [vmem:[%s543_s1 + $0x4] sm:$0xf]  ;;  %v291_v55 = vld [vmem:[%s543_s1 + $0x10] sm:$0xf0] }
   0xc   :  { %177 = vmatpush.bf16.msra.mxu2 %v346_v27  ;;  %190 = vmatpush.bf16.msra.mxu3 %v350_v28  ;;  %v297_v56 = vld [vmem:[%s543_s1 + $0x8] sm:$0xf]  ;;  %v358_v57 = vld [vmem:[%s543_s1 + $0x14] sm:$0xf0]  ;;  %v356_v58 = vld [vmem:[%s543_s1 + $0xc] sm:$0xf]  ;;  %v290_v60 = vor.u32 %v357_v51, %v289_v50  ;;  %v294_v61 = vor.u32 %v355_v54, %v291_v55 }
   0xd   :  { %37 = vperm.xlu0 %376, %v34_v47   ;;  %v299_v59 = vld [vmem:[%s543_s1 + $0x18] sm:$0xf0]  ;;  %v298_v62 = vor.u32 %v358_v57, %v297_v56  ;;  %v15_v0 = vld [vmem:[%s545_s0] sm:$0x3]  ;;  %s398_s1 = smov 7   ;;  %s399_s0 = smov 127  }
   0xe   :  { %v302_v63 = vor.u32 %v356_v58, %v299_v59  ;;  %vm254_vm5 = vcmask 998400   ;;  %vm277_vm6 = vcmask 1043458   ;;  %vm267_vm7 = vcmask 1041408  }
   0xf   :  { %152 = vmatpush.bf16.msra.mxu0 %v322_v35  ;;  %165 = vmatpush.bf16.msra.mxu1 %v326_v36  ;;  %vm271_vm8 = vcmask 1045508   ;;  %vm278_vm9 = vmor %vm277_vm6, %vm267_vm7  ;;  %vm280_vm11 = vcmask 64518  }
  0x10   :  { %178 = vmatpush.bf16.msra.mxu2 %v330_v40  ;;  %191 = vmatpush.bf16.msra.mxu3 %v334_v41  ;;  %vm279_vm10 = vmor %vm271_vm8, %vm278_vm9 }
  0x11   :  { %vm281_vm12 = vmor %vm280_vm11, %vm279_vm10 }
  0x13   :  { %153 = vmatpush.bf16.msra.mxu0 %v306_v48  ;;  %166 = vmatpush.bf16.msra.mxu1 %v310_v49 }
  0x14   :  { %179 = vmatpush.bf16.msra.mxu2 %v314_v52  ;;  %192 = vmatpush.bf16.msra.mxu3 %v318_v53 }
  0x17   :  { %154 = vmatpush.bf16.msra.mxu0 %v290_v60  ;;  %167 = vmatpush.bf16.msra.mxu1 %v294_v61 }
  0x18   :  { %180 = vmatpush.bf16.msra.mxu2 %v298_v62  ;;  %193 = vmatpush.bf16.msra.mxu3 %v302_v63 }
  0x1a   :  { %351 = vmatmul.msk.bf16.vlgmr.msra.gmra.mxu0 %vm130_vm1, %v15_v0  ;;  %352 = vmatmul.msk.bf16.vlgmr.msra.gmra.mxu1 %vm130_vm1, %v15_v0 }
  0x1b   :  { %353 = vmatmul.msk.bf16.vlgmr.msra.gmra.mxu2 %vm130_vm1, %v15_v0  ;;  %354 = vmatmul.msk.bf16.vlgmr.msra.gmra.mxu3 %vm130_vm1, %v15_v0 }
  0x7f   :  { %v38_v1 = vpop.permute.xlu0 %37 }
  0x97   :  { %v156_v2 = vpop.f32.mrf.mxu0  ;;  %v169_v3 = vpop.f32.mrf.mxu1 }
  0x98   :  { %v157_v4 = vadd.f32 %v156_v2, %v38_v1  ;;  %v170_v6 = vadd.f32 %v169_v3, %v38_v1 }
  0x9a   :  { %v199_v5 = vmax.f32 %v157_v4, 0.0  ;;  %v200_v7 = vmax.f32 %v170_v6, 0.0 }
  0x9c   :  { %223 = vrot.lane.b32.xlu1 %v199_v5, %s398_s1  ;;  %v382_v16 = vpack.i.bf16 %v200_v7, %v199_v5 }
  0x9e   :  { %v182_v8 = vpop.f32.mrf.mxu2  ;;  %v195_v9 = vpop.f32.mrf.mxu3 }
  0x9f   :  { %v183_v10 = vadd.f32 %v182_v8, %v38_v1  ;;  %v196_v11 = vadd.f32 %v195_v9, %v38_v1  ;;  %v158_v12 = vpop.f32.mrf.mxu0  ;;  %v171_v13 = vpop.f32.mrf.mxu1 }
  0xa1   :  { %v201_v14 = vmax.f32 %v183_v10, 0.0  ;;  %v202_v15 = vmax.f32 %v196_v11, 0.0 }
  0xa3   :  { %v377_v17 = vpack.i.bf16 %v202_v15, %v201_v14 }
  0xa4   :  { %383 = vrot.lane.b32.xlu1 %v382_v16, %s399_s0 }
  0xa5   :  { %378 = vrot.lane.b32.xlu0 %v377_v17, %s399_s0 }
  0xa6   :  { %v184_v18 = vpop.f32.mrf.mxu2  ;;  %v197_v19 = vpop.f32.mrf.mxu3 }
 0x10e   :  { %v224_v20 = vpop.permute.xlu1 %223 }
 0x116   :  { %v384_v21 = vpop.permute.xlu1 %383 }
 0x117   :  { %v379_v22 = vpop.permute.xlu0 %378  ;;  %v386_v23 = vunpack.i.h.bf16 %v384_v21  ;;  %v385_v24 = vunpack.i.l.bf16 %v384_v21 }
 0x118   :  { %v381_v25 = vunpack.i.h.bf16 %v379_v22  ;;  %v380_v26 = vunpack.i.l.bf16 %v379_v22 }
 0x119   :  { %v216_v27 = vsel %vm215_vm2, %v385_v24, %v386_v23 }
 0x11a   :  { %v228_v28 = vmax.f32 %v199_v5, %v216_v27  ;;  %v218_v29 = vsel %vm215_vm2, %v380_v26, %v381_v25  ;;  %v227_v30 = vsel %vm226_vm3, %v381_v25, %v224_v20  ;;  %v217_v34 = vsel %vm215_vm2, %v386_v23, %v380_v26 }
 0x11b   :  { %v230_v31 = vmax.f32 %v201_v14, %v218_v29  ;;  %v231_v32 = vmax.f32 %v202_v15, %v227_v30  ;;  %v229_v35 = vmax.f32 %v200_v7, %v217_v34 }
 0x11c   :  { %251 = vrot.lane.b32.xlu0 %v228_v28, %s400_s29 }
 0x11d   :  { %v387_v33 = vpack.i.bf16 %v231_v32, %v230_v31  ;;  %v392_v36 = vpack.i.bf16 %v229_v35, %v228_v28 }
 0x11f   :  { %388 = vrot.lane.b32.xlu2 %v387_v33, %s401_s30 }
 0x127   :  { %393 = vrot.lane.b32.xlu2 %v392_v36, %s401_s30 }
 0x179   :  { %v389_v37 = vpop.permute.xlu2 %388 }
 0x17a   :  { %v390_v41 = vunpack.i.l.bf16 %v389_v37  ;;  %v391_v44 = vunpack.i.h.bf16 %v389_v37 }
 0x17c   :  { %v247_v48 = vsel %vm244_vm4, %v390_v41, %v391_v44 }
 0x181   :  { %v394_v38 = vpop.permute.xlu2 %393 }
 0x182   :  { %v396_v39 = vunpack.i.h.bf16 %v394_v38  ;;  %v395_v40 = vunpack.i.l.bf16 %v394_v38 }
 0x184   :  { %v246_v42 = vsel %vm244_vm4, %v396_v39, %v390_v41  ;;  %v245_v43 = vsel %vm244_vm4, %v395_v40, %v396_v39 }
 0x185   :  { %v257_v45 = vmax.f32 %v229_v35, %v246_v42  ;;  %v256_v46 = vmax.f32 %v228_v28, %v245_v43 }
 0x187   :  { %v260_v47 = vpack.c.bf16 %v257_v45, %v256_v46 }
 0x189   :  { %v264_v53 = vrot.slane %v260_v47, 2 }
 0x18b   :  { %v270_v57 = vsel %vm267_vm7, %v260_v47, %v264_v53 }
 0x18e   :  { %v252_v49 = vpop.permute.xlu0 %251 }
 0x18f   :  { %v255_v50 = vsel %vm254_vm5, %v247_v48, %v252_v49  ;;  %v259_v51 = vmax.f32 %v231_v32, %v252_v49 }
 0x190   :  { %v258_v52 = vmax.f32 %v230_v31, %v255_v50 }
 0x192   :  { %v261_v54 = vpack.c.bf16 %v259_v51, %v258_v52 }
 0x194   :  { %v265_v55 = vrot.slane %v261_v54, 4  ;;  %v266_v56 = vrot.slane %v261_v54, 6 }
 0x196   :  { %v274_v58 = vsel %vm271_vm8, %v265_v55, %v266_v56 }
 0x197   :  { %v275_v59 = vsel %vm134_vm0, %v270_v57, %v274_v58 }
 0x198   :  { %282 = vst.msk [vmem:[%s546_s3] sm:$0xff] %vm281_vm12, %v275_v59 }

// kernel: autoencoder_forward.13
= control target key start
LH: loop header
LB: loop body
LE: loop exit
PB: predicated region body
PF: predicated region fallthrough
CT: control target
= control target key end

     0   :  { %v84_v1 = vmov 0   ;;  %vm46_vm0 = vcmask 1043456   ;;  %vm42_vm1 = vcmask 326656   ;;  %vm65_vm2 = vcmask 60416   ;;  %s123_s1 = inlined_call_operand.vmem [shape: bf16[40,8], index: 1, kind: input, shape index: {}]   ;;  %s124_s2 = inlined_call_operand.vmem [shape: f32[8,1], index: 2, kind: input, shape index: {}]   ;;  %s125_s0 = inlined_call_operand.vmem [shape: bf16[8,40], index: 0, kind: input, shape index: {}]   ;;  %s126_s3 = inlined_call_operand.vmem [shape: bf16[8,8], index: 3, kind: output, shape index: {}]  }
   0x1   :  { %v20_v0 = vld [vmem:[%s123_s1 + $0x10] sm:$0xf]  ;;  %83 = vset.pattern.permute.xlu0 %v84_v1  ;;  %v21_v3 = vld [vmem:[%s124_s2] sm:$0xff]  ;;  %v81_v6 = vld [vmem:[%s123_s1 + $0x8] sm:$0xff] }
   0x2   :  { %v36_v2 = vunpack.c.l.b16 %v20_v0  ;;  %24 = vperm.xlu0 %83, %v21_v3   ;;  %v80_v7 = vld [vmem:[%s123_s1] sm:$0xff] }
   0x3   :  { %v15_v8 = vld [vmem:[%s125_s0] sm:$0xf] }
   0x4   :  { %v39_v4 = vpack.c.b16 %v36_v2, %v36_v2 }
   0x6   :  { %v48_v5 = vsel %vm46_vm0, %v39_v4, 0 }
   0x7   :  { %55 = vmatpush.bf16.msra.mxu0 %v48_v5 }
   0xb   :  { %56 = vmatpush.bf16.msra.mxu0 %v81_v6 }
   0xf   :  { %57 = vmatpush.bf16.msra.mxu0 %v80_v7 }
  0x12   :  { %79 = vmatmul.msk.bf16.vlgmr.msra.gmra.mxu0 %vm42_vm1, %v15_v8 }
  0x74   :  { %v25_v9 = vpop.permute.xlu0 %24 }
  0x8f   :  { %v59_v10 = vpop.f32.mrf.mxu0 }
  0x90   :  { %v60_v11 = vadd.f32 %v59_v10, %v25_v9 }
  0x92   :  { %v63_v12 = vmax.f32 %v60_v11, 0.0 }
  0x94   :  { %v64_v13 = vpack.c.bf16 %v63_v12, %v63_v12 }
  0x96   :  { %66 = vst.msk [vmem:[%s126_s3] sm:$0xf] %vm65_vm2, %v64_v13 }
  0x97   :  { %v61_v14 = vpop.f32.mrf.mxu0 }

// kernel: autoencoder_forward.14
= control target key start
LH: loop header
LB: loop body
LE: loop exit
PB: predicated region body
PF: predicated region fallthrough
CT: control target
= control target key end

     0   :  { %vm40_vm0 = vcmask 15360   ;;  %vm324_vm1 = vcmask 1040384   ;;  %vm629_vm2 = vcmask 109568   ;;  %vm631_vm3 = vcmask 108544   ;;  %s984_s1 = inlined_call_operand.vmem [shape: bf16[14,2], index: 1, kind: input, shape index: {}, may-alias: {1,2}]   ;;  %s985_s0 = inlined_call_operand.vmem [shape: bf16[16,2,2], index: 0, kind: input, shape index: {}]   ;;  %s986_s2 = inlined_call_operand.vmem [shape: bf16[14,2], index: 2, kind: input, shape index: {}, may-alias: {1,2}]   ;;  %s987_s3 = inlined_call_operand.vmem [shape: bf16[16,14,14], index: 3, kind: output, shape index: {}]  }
   0x1   :  { %v669_v0 = vld [vmem:[%s984_s1] sm:$0xf]  ;;  %v707_v1 = vld [vmem:[%s984_s1] sm:$0x70]  ;;  %v22_v9 = vld [vmem:[%s985_s0 + $0x7] sm:$0x1] }
   0x2   :  { %v670_v2 = vor.u32 %v707_v1, %v669_v0  ;;  %v17_v4 = vld [vmem:[%s985_s0 + $0x2] sm:$0x1]  ;;  %v18_v5 = vld [vmem:[%s985_s0 + $0x3] sm:$0x1]  ;;  %v15_v6 = vld [vmem:[%s985_s0] sm:$0x1] }
   0x3   :  { %v16_v7 = vld [vmem:[%s985_s0 + $0x1] sm:$0x1]  ;;  %v21_v8 = vld [vmem:[%s985_s0 + $0x6] sm:$0x1]  ;;  %v19_v10 = vld [vmem:[%s985_s0 + $0x4] sm:$0x1] }
   0x4   :  { %v45_v3 = vsel %vm40_vm0, %v670_v2, 0  ;;  %v20_v11 = vld [vmem:[%s985_s0 + $0x5] sm:$0x1]  ;;  %v25_v12 = vld [vmem:[%s985_s0 + $0xa] sm:$0x1] }
   0x5   :  { %86 = vmatpush.bf16.xpose.msra.mxu2 %v45_v3  ;;  %102 = vmatpush.bf16.xpose.msra.mxu3 %v45_v3  ;;  %v26_v13 = vld [vmem:[%s985_s0 + $0xb] sm:$0x1]  ;;  %v23_v14 = vld [vmem:[%s985_s0 + $0x8] sm:$0x1]  ;;  %v24_v15 = vld [vmem:[%s985_s0 + $0x9] sm:$0x1] }
   0x6   :  { %54 = vmatpush.bf16.xpose.msra.mxu0 %v45_v3  ;;  %70 = vmatpush.bf16.xpose.msra.mxu1 %v45_v3  ;;  %v29_v16 = vld [vmem:[%s985_s0 + $0xe] sm:$0x1]  ;;  %v30_v17 = vld [vmem:[%s985_s0 + $0xf] sm:$0x1]  ;;  %v27_v18 = vld [vmem:[%s985_s0 + $0xc] sm:$0x1] }
   0x7   :  { %v28_v19 = vld [vmem:[%s985_s0 + $0xd] sm:$0x1]  ;;  %v689_v22 = vld [vmem:[%s986_s2] sm:$0xf]  ;;  %v708_v23 = vld [vmem:[%s986_s2] sm:$0x70] }
   0x8   :  { %v808_v28 = vor.u32 %v708_v23, %v689_v22 }
   0xc   :  { %673 = vmatmul.msk.bf16.vlgmr.msra.gmra.mxu2 %vm40_vm0, %v17_v4  ;;  %674 = vmatmul.msk.bf16.vlgmr.msra.gmra.mxu3 %vm40_vm0, %v18_v5 }
   0xd   :  { %150 = vmatpush.bf16.xpose.msrb.mxu2 %v45_v3  ;;  %166 = vmatpush.bf16.xpose.msrb.mxu3 %v45_v3 }
   0xe   :  { %118 = vmatpush.bf16.xpose.msrb.mxu0 %v45_v3  ;;  %134 = vmatpush.bf16.xpose.msrb.mxu1 %v45_v3 }
   0xf   :  { %671 = vmatmul.msk.bf16.vlgmr.msra.gmra.mxu0 %vm40_vm0, %v15_v6  ;;  %672 = vmatmul.msk.bf16.vlgmr.msra.gmra.mxu1 %vm40_vm0, %v16_v7 }
  0x15   :  { %214 = vmatpush.bf16.xpose.msra.mxu2 %v45_v3  ;;  %230 = vmatpush.bf16.xpose.msra.mxu3 %v45_v3 }
  0x16   :  { %182 = vmatpush.bf16.xpose.msra.mxu0 %v45_v3  ;;  %198 = vmatpush.bf16.xpose.msra.mxu1 %v45_v3 }
  0x1c   :  { %677 = vmatmul.msk.bf16.vlgmr.msrb.gmra.mxu2 %vm40_vm0, %v21_v8  ;;  %678 = vmatmul.msk.bf16.vlgmr.msrb.gmra.mxu3 %vm40_vm0, %v22_v9 }
  0x1d   :  { %278 = vmatpush.bf16.xpose.msrb.mxu2 %v45_v3  ;;  %294 = vmatpush.bf16.xpose.msrb.mxu3 %v45_v3 }
  0x1f   :  { %675 = vmatmul.msk.bf16.vlgmr.msrb.gmra.mxu0 %vm40_vm0, %v19_v10  ;;  %676 = vmatmul.msk.bf16.vlgmr.msrb.gmra.mxu1 %vm40_vm0, %v20_v11 }
  0x20   :  { %246 = vmatpush.bf16.xpose.msrb.mxu0 %v45_v3  ;;  %262 = vmatpush.bf16.xpose.msrb.mxu1 %v45_v3 }
  0x2c   :  { %681 = vmatmul.msk.bf16.vlgmr.msra.gmra.mxu2 %vm40_vm0, %v25_v12  ;;  %682 = vmatmul.msk.bf16.vlgmr.msra.gmra.mxu3 %vm40_vm0, %v26_v13 }
  0x2f   :  { %679 = vmatmul.msk.bf16.vlgmr.msra.gmra.mxu0 %vm40_vm0, %v23_v14  ;;  %680 = vmatmul.msk.bf16.vlgmr.msra.gmra.mxu1 %vm40_vm0, %v24_v15 }
  0x3c   :  { %685 = vmatmul.msk.bf16.vlgmr.msrb.gmra.mxu2 %vm40_vm0, %v29_v16  ;;  %686 = vmatmul.msk.bf16.vlgmr.msrb.gmra.mxu3 %vm40_vm0, %v30_v17 }
  0x3f   :  { %683 = vmatmul.msk.bf16.vlgmr.msrb.gmra.mxu0 %vm40_vm0, %v27_v18  ;;  %684 = vmatmul.msk.bf16.vlgmr.msrb.gmra.mxu1 %vm40_vm0, %v28_v19 }
  0x8c   :  { %v56_v20 = vpop.f32.mrf.mxu0  ;;  %v72_v21 = vpop.f32.mrf.mxu1 }
  0x8d   :  { %v300_v24 = vpack.c.bf16 %v56_v20, %v56_v20  ;;  %v301_v25 = vpack.c.bf16 %v72_v21, %v72_v21 }
  0x8f   :  { %v326_v26 = vsel %vm324_vm1, %v300_v24, 0  ;;  %v343_v27 = vsel %vm324_vm1, %v301_v25, 0  ;;  %v88_v29 = vpop.f32.mrf.mxu2  ;;  %v104_v30 = vpop.f32.mrf.mxu3 }
  0x90   :  { %335 = vmatpush.bf16.msra.mxu0 %v326_v26  ;;  %352 = vmatpush.bf16.msra.mxu1 %v343_v27  ;;  %v302_v31 = vpack.c.bf16 %v88_v29, %v88_v29  ;;  %v303_v32 = vpack.c.bf16 %v104_v30, %v104_v30 }
  0x92   :  { %v360_v33 = vsel %vm324_vm1, %v302_v31, 0  ;;  %v377_v34 = vsel %vm324_vm1, %v303_v32, 0 }
  0x93   :  { %691 = vmatmul.msk.bf16.vlgmr.msra.gmra.mxu0 %vm40_vm0, %v808_v28  ;;  %692 = vmatmul.msk.bf16.vlgmr.msra.gmra.mxu1 %vm40_vm0, %v808_v28 }
  0x94   :  { %v58_v35 = vpop.f32.mrf.mxu0  ;;  %v74_v36 = vpop.f32.mrf.mxu1  ;;  %369 = vmatpush.bf16.msra.mxu2 %v360_v33  ;;  %386 = vmatpush.bf16.msra.mxu3 %v377_v34 }
  0x97   :  { %693 = vmatmul.msk.bf16.vlgmr.msra.gmra.mxu2 %vm40_vm0, %v808_v28  ;;  %694 = vmatmul.msk.bf16.vlgmr.msra.gmra.mxu3 %vm40_vm0, %v808_v28  ;;  %v90_v37 = vpop.f32.mrf.mxu2  ;;  %v106_v38 = vpop.f32.mrf.mxu3 }
  0x9c   :  { %v120_v39 = vpop.f32.mrf.mxu0  ;;  %v136_v40 = vpop.f32.mrf.mxu1 }
  0x9d   :  { %v304_v41 = vpack.c.bf16 %v120_v39, %v120_v39  ;;  %v305_v42 = vpack.c.bf16 %v136_v40, %v136_v40 }
  0x9f   :  { %v394_v43 = vsel %vm324_vm1, %v304_v41, 0  ;;  %v411_v44 = vsel %vm324_vm1, %v305_v42, 0  ;;  %v152_v45 = vpop.f32.mrf.mxu2  ;;  %v168_v46 = vpop.f32.mrf.mxu3 }
  0xa0   :  { %403 = vmatpush.bf16.msrb.mxu0 %v394_v43  ;;  %420 = vmatpush.bf16.msrb.mxu1 %v411_v44  ;;  %v306_v47 = vpack.c.bf16 %v152_v45, %v152_v45  ;;  %v307_v48 = vpack.c.bf16 %v168_v46, %v168_v46 }
  0xa2   :  { %v428_v49 = vsel %vm324_vm1, %v306_v47, 0  ;;  %v445_v50 = vsel %vm324_vm1, %v307_v48, 0 }
  0xa3   :  { %695 = vmatmul.msk.bf16.vlgmr.msrb.gmra.mxu0 %vm40_vm0, %v808_v28  ;;  %696 = vmatmul.msk.bf16.vlgmr.msrb.gmra.mxu1 %vm40_vm0, %v808_v28 }
  0xa4   :  { %v122_v51 = vpop.f32.mrf.mxu0  ;;  %v138_v52 = vpop.f32.mrf.mxu1  ;;  %437 = vmatpush.bf16.msrb.mxu2 %v428_v49  ;;  %454 = vmatpush.bf16.msrb.mxu3 %v445_v50 }
  0xa7   :  { %697 = vmatmul.msk.bf16.vlgmr.msrb.gmra.mxu2 %vm40_vm0, %v808_v28  ;;  %698 = vmatmul.msk.bf16.vlgmr.msrb.gmra.mxu3 %vm40_vm0, %v808_v28  ;;  %v154_v53 = vpop.f32.mrf.mxu2  ;;  %v170_v54 = vpop.f32.mrf.mxu3 }
  0xac   :  { %v184_v55 = vpop.f32.mrf.mxu0  ;;  %v200_v56 = vpop.f32.mrf.mxu1 }
  0xad   :  { %v308_v57 = vpack.c.bf16 %v184_v55, %v184_v55  ;;  %v309_v58 = vpack.c.bf16 %v200_v56, %v200_v56 }
  0xaf   :  { %v462_v59 = vsel %vm324_vm1, %v308_v57, 0  ;;  %v479_v60 = vsel %vm324_vm1, %v309_v58, 0  ;;  %v216_v61 = vpop.f32.mrf.mxu2  ;;  %v232_v62 = vpop.f32.mrf.mxu3 }
  0xb0   :  { %471 = vmatpush.bf16.msra.mxu0 %v462_v59  ;;  %488 = vmatpush.bf16.msra.mxu1 %v479_v60  ;;  %v310_v63 = vpack.c.bf16 %v216_v61, %v216_v61  ;;  %v311_v0 = vpack.c.bf16 %v232_v62, %v232_v62 }
  0xb2   :  { %v496_v1 = vsel %vm324_vm1, %v310_v63, 0  ;;  %v513_v2 = vsel %vm324_vm1, %v311_v0, 0 }
  0xb3   :  { %699 = vmatmul.msk.bf16.vlgmr.msra.gmra.mxu0 %vm40_vm0, %v808_v28  ;;  %700 = vmatmul.msk.bf16.vlgmr.msra.gmra.mxu1 %vm40_vm0, %v808_v28 }
  0xb4   :  { %v186_v3 = vpop.f32.mrf.mxu0  ;;  %v202_v4 = vpop.f32.mrf.mxu1  ;;  %505 = vmatpush.bf16.msra.mxu2 %v496_v1  ;;  %522 = vmatpush.bf16.msra.mxu3 %v513_v2 }
  0xb7   :  { %701 = vmatmul.msk.bf16.vlgmr.msra.gmra.mxu2 %vm40_vm0, %v808_v28  ;;  %702 = vmatmul.msk.bf16.vlgmr.msra.gmra.mxu3 %vm40_vm0, %v808_v28  ;;  %v218_v5 = vpop.f32.mrf.mxu2  ;;  %v234_v6 = vpop.f32.mrf.mxu3 }
  0xbc   :  { %v248_v7 = vpop.f32.mrf.mxu0  ;;  %v264_v8 = vpop.f32.mrf.mxu1 }
  0xbd   :  { %v312_v9 = vpack.c.bf16 %v248_v7, %v248_v7  ;;  %v313_v10 = vpack.c.bf16 %v264_v8, %v264_v8 }
  0xbf   :  { %v530_v11 = vsel %vm324_vm1, %v312_v9, 0  ;;  %v547_v12 = vsel %vm324_vm1, %v313_v10, 0  ;;  %v280_v13 = vpop.f32.mrf.mxu2  ;;  %v296_v14 = vpop.f32.mrf.mxu3 }
  0xc0   :  { %539 = vmatpush.bf16.msrb.mxu0 %v530_v11  ;;  %556 = vmatpush.bf16.msrb.mxu1 %v547_v12  ;;  %v314_v15 = vpack.c.bf16 %v280_v13, %v280_v13  ;;  %v315_v16 = vpack.c.bf16 %v296_v14, %v296_v14 }
  0xc2   :  { %v564_v17 = vsel %vm324_vm1, %v314_v15, 0  ;;  %v581_v18 = vsel %vm324_vm1, %v315_v16, 0 }
  0xc3   :  { %703 = vmatmul.msk.bf16.vlgmr.msrb.gmra.mxu0 %vm40_vm0, %v808_v28  ;;  %704 = vmatmul.msk.bf16.vlgmr.msrb.gmra.mxu1 %vm40_vm0, %v808_v28 }
  0xc4   :  { %v250_v19 = vpop.f32.mrf.mxu0  ;;  %v266_v20 = vpop.f32.mrf.mxu1  ;;  %573 = vmatpush.bf16.msrb.mxu2 %v564_v17  ;;  %590 = vmatpush.bf16.msrb.mxu3 %v581_v18 }
  0xc7   :  { %705 = vmatmul.msk.bf16.vlgmr.msrb.gmra.mxu2 %vm40_vm0, %v808_v28  ;;  %706 = vmatmul.msk.bf16.vlgmr.msrb.gmra.mxu3 %vm40_vm0, %v808_v28  ;;  %v282_v21 = vpop.f32.mrf.mxu2  ;;  %v298_v22 = vpop.f32.mrf.mxu3 }
 0x110   :  { %v337_v23 = vpop.f32.mrf.mxu0  ;;  %v354_v24 = vpop.f32.mrf.mxu1 }
 0x111   :  { %v597_v25 = vpack.c.bf16 %v337_v23, %v337_v23  ;;  %v599_v26 = vpack.c.bf16 %v354_v24, %v354_v24 }
 0x113   :  { %630 = vst.msk [vmem:[%s987_s3] sm:$0xf] %vm629_vm2, %v597_v25 }
 0x114   :  { %633 = vst.msk [vmem:[%s987_s3 + $0x8] sm:$0xf] %vm629_vm2, %v599_v26 }
 0x118   :  { %v339_v27 = vpop.f32.mrf.mxu0  ;;  %v356_v28 = vpop.f32.mrf.mxu1 }
 0x119   :  { %v598_v29 = vpack.c.bf16 %v339_v27, %v339_v27  ;;  %v600_v30 = vpack.c.bf16 %v356_v28, %v356_v28 }
 0x11a   :  { %v371_v31 = vpop.f32.mrf.mxu2  ;;  %v388_v32 = vpop.f32.mrf.mxu3 }
 0x11b   :  { %632 = vst.msk [vmem:[%s987_s3 + $0x4] sm:$0x7] %vm631_vm3, %v598_v29  ;;  %v601_v33 = vpack.c.bf16 %v371_v31, %v371_v31  ;;  %v603_v34 = vpack.c.bf16 %v388_v32, %v388_v32 }
 0x11c   :  { %634 = vst.msk [vmem:[%s987_s3 + $0xc] sm:$0x7] %vm631_vm3, %v600_v30 }
 0x11d   :  { %635 = vst.msk [vmem:[%s987_s3 + $0x10] sm:$0xf] %vm629_vm2, %v601_v33 }
 0x11e   :  { %637 = vst.msk [vmem:[%s987_s3 + $0x18] sm:$0xf] %vm629_vm2, %v603_v34 }
 0x120   :  { %v405_v35 = vpop.f32.mrf.mxu0  ;;  %v422_v36 = vpop.f32.mrf.mxu1 }
 0x121   :  { %v605_v37 = vpack.c.bf16 %v405_v35, %v405_v35  ;;  %v607_v38 = vpack.c.bf16 %v422_v36, %v422_v36 }
 0x122   :  { %v373_v39 = vpop.f32.mrf.mxu2  ;;  %v390_v40 = vpop.f32.mrf.mxu3 }
 0x123   :  { %639 = vst.msk [vmem:[%s987_s3 + $0x20] sm:$0xf] %vm629_vm2, %v605_v37  ;;  %v602_v41 = vpack.c.bf16 %v373_v39, %v373_v39  ;;  %v604_v42 = vpack.c.bf16 %v390_v40, %v390_v40 }
 0x124   :  { %641 = vst.msk [vmem:[%s987_s3 + $0x28] sm:$0xf] %vm629_vm2, %v607_v38 }
 0x125   :  { %636 = vst.msk [vmem:[%s987_s3 + $0x14] sm:$0x7] %vm631_vm3, %v602_v41 }
 0x126   :  { %638 = vst.msk [vmem:[%s987_s3 + $0x1c] sm:$0x7] %vm631_vm3, %v604_v42 }
 0x128   :  { %v407_v43 = vpop.f32.mrf.mxu0  ;;  %v424_v44 = vpop.f32.mrf.mxu1 }
 0x129   :  { %v606_v45 = vpack.c.bf16 %v407_v43, %v407_v43  ;;  %v608_v46 = vpack.c.bf16 %v424_v44, %v424_v44 }
 0x12a   :  { %v439_v47 = vpop.f32.mrf.mxu2  ;;  %v456_v48 = vpop.f32.mrf.mxu3 }
 0x12b   :  { %640 = vst.msk [vmem:[%s987_s3 + $0x24] sm:$0x7] %vm631_vm3, %v606_v45  ;;  %v609_v49 = vpack.c.bf16 %v439_v47, %v439_v47  ;;  %v611_v50 = vpack.c.bf16 %v456_v48, %v456_v48 }
 0x12c   :  { %642 = vst.msk [vmem:[%s987_s3 + $0x2c] sm:$0x7] %vm631_vm3, %v608_v46 }
 0x12d   :  { %643 = vst.msk [vmem:[%s987_s3 + $0x30] sm:$0xf] %vm629_vm2, %v609_v49 }
 0x12e   :  { %645 = vst.msk [vmem:[%s987_s3 + $0x38] sm:$0xf] %vm629_vm2, %v611_v50 }
 0x130   :  { %v473_v51 = vpop.f32.mrf.mxu0  ;;  %v490_v52 = vpop.f32.mrf.mxu1 }
 0x131   :  { %v613_v53 = vpack.c.bf16 %v473_v51, %v473_v51  ;;  %v615_v54 = vpack.c.bf16 %v490_v52, %v490_v52 }
 0x132   :  { %v441_v55 = vpop.f32.mrf.mxu2  ;;  %v458_v56 = vpop.f32.mrf.mxu3 }
 0x133   :  { %647 = vst.msk [vmem:[%s987_s3 + $0x40] sm:$0xf] %vm629_vm2, %v613_v53  ;;  %v610_v57 = vpack.c.bf16 %v441_v55, %v441_v55  ;;  %v612_v58 = vpack.c.bf16 %v458_v56, %v458_v56 }
 0x134   :  { %649 = vst.msk [vmem:[%s987_s3 + $0x48] sm:$0xf] %vm629_vm2, %v615_v54 }
 0x135   :  { %644 = vst.msk [vmem:[%s987_s3 + $0x34] sm:$0x7] %vm631_vm3, %v610_v57 }
 0x136   :  { %646 = vst.msk [vmem:[%s987_s3 + $0x3c] sm:$0x7] %vm631_vm3, %v612_v58 }
 0x138   :  { %v475_v59 = vpop.f32.mrf.mxu0  ;;  %v492_v60 = vpop.f32.mrf.mxu1 }
 0x139   :  { %v614_v61 = vpack.c.bf16 %v475_v59, %v475_v59  ;;  %v616_v62 = vpack.c.bf16 %v492_v60, %v492_v60 }
 0x13a   :  { %v507_v63 = vpop.f32.mrf.mxu2  ;;  %v524_v0 = vpop.f32.mrf.mxu3 }
 0x13b   :  { %648 = vst.msk [vmem:[%s987_s3 + $0x44] sm:$0x7] %vm631_vm3, %v614_v61  ;;  %v617_v1 = vpack.c.bf16 %v507_v63, %v507_v63  ;;  %v619_v2 = vpack.c.bf16 %v524_v0, %v524_v0 }
 0x13c   :  { %650 = vst.msk [vmem:[%s987_s3 + $0x4c] sm:$0x7] %vm631_vm3, %v616_v62 }
 0x13d   :  { %651 = vst.msk [vmem:[%s987_s3 + $0x50] sm:$0xf] %vm629_vm2, %v617_v1 }
 0x13e   :  { %653 = vst.msk [vmem:[%s987_s3 + $0x58] sm:$0xf] %vm629_vm2, %v619_v2 }
 0x140   :  { %v541_v3 = vpop.f32.mrf.mxu0  ;;  %v558_v4 = vpop.f32.mrf.mxu1 }
 0x141   :  { %v621_v5 = vpack.c.bf16 %v541_v3, %v541_v3  ;;  %v623_v6 = vpack.c.bf16 %v558_v4, %v558_v4 }
 0x142   :  { %v509_v7 = vpop.f32.mrf.mxu2  ;;  %v526_v8 = vpop.f32.mrf.mxu3 }
 0x143   :  { %655 = vst.msk [vmem:[%s987_s3 + $0x60] sm:$0xf] %vm629_vm2, %v621_v5  ;;  %v618_v9 = vpack.c.bf16 %v509_v7, %v509_v7  ;;  %v620_v10 = vpack.c.bf16 %v526_v8, %v526_v8 }
 0x144   :  { %657 = vst.msk [vmem:[%s987_s3 + $0x68] sm:$0xf] %vm629_vm2, %v623_v6 }
 0x145   :  { %652 = vst.msk [vmem:[%s987_s3 + $0x54] sm:$0x7] %vm631_vm3, %v618_v9 }
 0x146   :  { %654 = vst.msk [vmem:[%s987_s3 + $0x5c] sm:$0x7] %vm631_vm3, %v620_v10 }
 0x148   :  { %v543_v11 = vpop.f32.mrf.mxu0  ;;  %v560_v12 = vpop.f32.mrf.mxu1 }
 0x149   :  { %v622_v13 = vpack.c.bf16 %v543_v11, %v543_v11  ;;  %v624_v14 = vpack.c.bf16 %v560_v12, %v560_v12 }
 0x14a   :  { %v575_v15 = vpop.f32.mrf.mxu2  ;;  %v592_v16 = vpop.f32.mrf.mxu3 }
 0x14b   :  { %656 = vst.msk [vmem:[%s987_s3 + $0x64] sm:$0x7] %vm631_vm3, %v622_v13  ;;  %v625_v17 = vpack.c.bf16 %v575_v15, %v575_v15  ;;  %v627_v18 = vpack.c.bf16 %v592_v16, %v592_v16 }
 0x14c   :  { %658 = vst.msk [vmem:[%s987_s3 + $0x6c] sm:$0x7] %vm631_vm3, %v624_v14 }
 0x14d   :  { %659 = vst.msk [vmem:[%s987_s3 + $0x70] sm:$0xf] %vm629_vm2, %v625_v17 }
 0x14e   :  { %661 = vst.msk [vmem:[%s987_s3 + $0x78] sm:$0xf] %vm629_vm2, %v627_v18 }
 0x152   :  { %v577_v19 = vpop.f32.mrf.mxu2  ;;  %v594_v20 = vpop.f32.mrf.mxu3 }
 0x153   :  { %v626_v21 = vpack.c.bf16 %v577_v19, %v577_v19  ;;  %v628_v22 = vpack.c.bf16 %v594_v20, %v594_v20 }
 0x155   :  { %660 = vst.msk [vmem:[%s987_s3 + $0x74] sm:$0x7] %vm631_vm3, %v626_v21 }
 0x156   :  { %662 = vst.msk [vmem:[%s987_s3 + $0x7c] sm:$0x7] %vm631_vm3, %v628_v22 }

// kernel: autoencoder_forward.15
= control target key start
LH: loop header
LB: loop body
LE: loop exit
PB: predicated region body
PF: predicated region fallthrough
CT: control target
= control target key end

     0   :  { %v328_v2 = vmov 0   ;;  %vm146_vm0 = vcmask 1043456   ;;  %vm142_vm1 = vcmask 588800   ;;  %vm228_vm2 = vcmask 64516   ;;  %s477_s1 = inlined_call_operand.vmem [shape: bf16[72,392], index: 1, kind: input, shape index: {}]   ;;  %s478_s2 = inlined_call_operand.vmem [shape: f32[16,1], index: 2, kind: input, shape index: {}]   ;;  %s479_s0 = inlined_call_operand.vmem [shape: bf16[16,72], index: 0, kind: input, shape index: {}]   ;;  %s480_s3 = inlined_call_operand.vmem [shape: bf16[16,392], index: 3, kind: output, shape index: {}]  }
   0x1   :  { %v33_v0 = vld [vmem:[%s477_s1 + $0x80] sm:$0xff]  ;;  %v34_v1 = vld [vmem:[%s477_s1 + $0x88] sm:$0xff]  ;;  %327 = vset.pattern.permute.xlu0 %v328_v2  ;;  %v324_v8 = vld [vmem:[%s477_s1 + $0x6c] sm:$0xf0] }
   0x2   :  { %v102_v3 = vunpack.c.l.b16 %v33_v0  ;;  %v103_v4 = vunpack.c.h.b16 %v33_v0  ;;  %v104_v5 = vunpack.c.l.b16 %v34_v1  ;;  %v105_v6 = vunpack.c.h.b16 %v34_v1  ;;  %v291_v7 = vld [vmem:[%s477_s1 + $0x60] sm:$0xf]  ;;  %v322_v13 = vld [vmem:[%s477_s1 + $0x64] sm:$0xf]  ;;  %v293_v14 = vld [vmem:[%s477_s1 + $0x70] sm:$0xf0] }
   0x3   :  { %v299_v15 = vld [vmem:[%s477_s1 + $0x68] sm:$0xf]  ;;  %v325_v16 = vld [vmem:[%s477_s1 + $0x74] sm:$0xf0]  ;;  %v323_v17 = vld [vmem:[%s477_s1 + $0x6c] sm:$0xf]  ;;  %v292_v23 = vor.u32 %v324_v8, %v291_v7  ;;  %v296_v24 = vor.u32 %v322_v13, %v293_v14 }
   0x4   :  { %v122_v9 = vpack.c.b16 %v102_v3, %v102_v3  ;;  %v123_v10 = vpack.c.b16 %v103_v4, %v103_v4  ;;  %v124_v11 = vpack.c.b16 %v104_v5, %v104_v5  ;;  %v125_v12 = vpack.c.b16 %v105_v6, %v105_v6  ;;  %v301_v18 = vld [vmem:[%s477_s1 + $0x78] sm:$0xf0]  ;;  %v275_v25 = vld [vmem:[%s477_s1 + $0x40] sm:$0xf]  ;;  %v320_v26 = vld [vmem:[%s477_s1 + $0x4c] sm:$0xf0] }
   0x5   :  { %v300_v27 = vor.u32 %v325_v16, %v299_v15  ;;  %v304_v28 = vor.u32 %v323_v17, %v301_v18  ;;  %v318_v29 = vld [vmem:[%s477_s1 + $0x44] sm:$0xf]  ;;  %v277_v30 = vld [vmem:[%s477_s1 + $0x50] sm:$0xf0]  ;;  %v283_v31 = vld [vmem:[%s477_s1 + $0x48] sm:$0xf]  ;;  %v276_v35 = vor.u32 %v320_v26, %v275_v25 }
   0x6   :  { %v148_v19 = vsel %vm146_vm0, %v122_v9, 0  ;;  %v151_v20 = vsel %vm146_vm0, %v123_v10, 0  ;;  %v154_v21 = vsel %vm146_vm0, %v124_v11, 0  ;;  %v157_v22 = vsel %vm146_vm0, %v125_v12, 0  ;;  %v321_v32 = vld [vmem:[%s477_s1 + $0x54] sm:$0xf0]  ;;  %vm229_vm3 = vmor %vm228_vm2, %vm146_vm0 }
   0x7   :  { %162 = vmatpush.bf16.msra.mxu0 %v148_v19  ;;  %176 = vmatpush.bf16.msra.mxu1 %v151_v20  ;;  %v319_v33 = vld [vmem:[%s477_s1 + $0x4c] sm:$0xf]  ;;  %v285_v34 = vld [vmem:[%s477_s1 + $0x58] sm:$0xf0]  ;;  %v280_v36 = vor.u32 %v318_v29, %v277_v30  ;;  %v259_v37 = vld [vmem:[%s477_s1 + $0x20] sm:$0xf]  ;;  %v284_v40 = vor.u32 %v321_v32, %v283_v31 }
   0x8   :  { %190 = vmatpush.bf16.msra.mxu2 %v154_v21  ;;  %204 = vmatpush.bf16.msra.mxu3 %v157_v22  ;;  %v316_v38 = vld [vmem:[%s477_s1 + $0x2c] sm:$0xf0]  ;;  %v314_v39 = vld [vmem:[%s477_s1 + $0x24] sm:$0xf]  ;;  %v288_v41 = vor.u32 %v319_v33, %v285_v34  ;;  %v261_v42 = vld [vmem:[%s477_s1 + $0x30] sm:$0xf0] }
   0x9   :  { %v267_v43 = vld [vmem:[%s477_s1 + $0x28] sm:$0xf]  ;;  %v317_v44 = vld [vmem:[%s477_s1 + $0x34] sm:$0xf0]  ;;  %v315_v45 = vld [vmem:[%s477_s1 + $0x2c] sm:$0xf]  ;;  %v260_v48 = vor.u32 %v316_v38, %v259_v37  ;;  %v264_v49 = vor.u32 %v314_v39, %v261_v42 }
   0xa   :  { %v269_v46 = vld [vmem:[%s477_s1 + $0x38] sm:$0xf0]  ;;  %v35_v47 = vld [vmem:[%s478_s2] sm:$0xff]  ;;  %v312_v51 = vld [vmem:[%s477_s1 + $0xc] sm:$0xf0]  ;;  %v268_v52 = vor.u32 %v317_v44, %v267_v43 }
   0xb   :  { %163 = vmatpush.bf16.msra.mxu0 %v292_v23  ;;  %177 = vmatpush.bf16.msra.mxu1 %v296_v24  ;;  %v243_v50 = vld [vmem:[%s477_s1] sm:$0xf]  ;;  %v272_v53 = vor.u32 %v315_v45, %v269_v46  ;;  %v310_v54 = vld [vmem:[%s477_s1 + $0x4] sm:$0xf]  ;;  %v245_v55 = vld [vmem:[%s477_s1 + $0x10] sm:$0xf0] }
   0xc   :  { %191 = vmatpush.bf16.msra.mxu2 %v300_v27  ;;  %205 = vmatpush.bf16.msra.mxu3 %v304_v28  ;;  %v251_v56 = vld [vmem:[%s477_s1 + $0x8] sm:$0xf]  ;;  %v313_v57 = vld [vmem:[%s477_s1 + $0x14] sm:$0xf0]  ;;  %v311_v58 = vld [vmem:[%s477_s1 + $0xc] sm:$0xf]  ;;  %v244_v60 = vor.u32 %v312_v51, %v243_v50  ;;  %v248_v61 = vor.u32 %v310_v54, %v245_v55 }
   0xd   :  { %39 = vperm.xlu0 %327, %v35_v47   ;;  %v253_v59 = vld [vmem:[%s477_s1 + $0x18] sm:$0xf0]  ;;  %v36_v62 = vld [vmem:[%s478_s2 + $0x8] sm:$0xff]  ;;  %v252_v63 = vor.u32 %v313_v57, %v251_v56  ;;  %v309_v1 = vld [vmem:[%s479_s0] sm:$0xff] }
   0xe   :  { %v256_v0 = vor.u32 %v311_v58, %v253_v59 }
   0xf   :  { %164 = vmatpush.bf16.msra.mxu0 %v276_v35  ;;  %178 = vmatpush.bf16.msra.mxu1 %v280_v36 }
  0x10   :  { %192 = vmatpush.bf16.msra.mxu2 %v284_v40  ;;  %206 = vmatpush.bf16.msra.mxu3 %v288_v41 }
  0x13   :  { %165 = vmatpush.bf16.msra.mxu0 %v260_v48  ;;  %179 = vmatpush.bf16.msra.mxu1 %v264_v49 }
  0x14   :  { %193 = vmatpush.bf16.msra.mxu2 %v268_v52  ;;  %207 = vmatpush.bf16.msra.mxu3 %v272_v53 }
  0x15   :  { %44 = vperm.xlu0 %327, %v36_v62  }
  0x17   :  { %166 = vmatpush.bf16.msra.mxu0 %v244_v60  ;;  %180 = vmatpush.bf16.msra.mxu1 %v248_v61 }
  0x18   :  { %194 = vmatpush.bf16.msra.mxu2 %v252_v63  ;;  %208 = vmatpush.bf16.msra.mxu3 %v256_v0 }
  0x1a   :  { %305 = vmatmul.msk.bf16.vlgmr.msra.gmra.mxu0 %vm142_vm1, %v309_v1  ;;  %306 = vmatmul.msk.bf16.vlgmr.msra.gmra.mxu1 %vm142_vm1, %v309_v1 }
  0x1b   :  { %307 = vmatmul.msk.bf16.vlgmr.msra.gmra.mxu2 %vm142_vm1, %v309_v1  ;;  %308 = vmatmul.msk.bf16.vlgmr.msra.gmra.mxu3 %vm142_vm1, %v309_v1 }
  0x7f   :  { %v40_v2 = vpop.permute.xlu0 %39 }
  0x87   :  { %v45_v10 = vpop.permute.xlu0 %44 }
  0x97   :  { %v168_v3 = vpop.f32.mrf.mxu0  ;;  %v182_v4 = vpop.f32.mrf.mxu1 }
  0x98   :  { %v169_v5 = vadd.f32 %v168_v3, %v40_v2  ;;  %v183_v6 = vadd.f32 %v182_v4, %v40_v2 }
  0x9a   :  { %v215_v7 = vmax.f32 %v169_v5, 0.0  ;;  %v216_v8 = vmax.f32 %v183_v6, 0.0 }
  0x9c   :  { %v223_v9 = vpack.c.bf16 %v216_v8, %v215_v7 }
  0x9e   :  { %227 = vst [vmem:[%s480_s3] sm:$0xff] %v223_v9  ;;  %v196_v11 = vpop.f32.mrf.mxu2  ;;  %v210_v12 = vpop.f32.mrf.mxu3 }
  0x9f   :  { %v197_v13 = vadd.f32 %v196_v11, %v40_v2  ;;  %v211_v14 = vadd.f32 %v210_v12, %v40_v2  ;;  %v170_v15 = vpop.f32.mrf.mxu0  ;;  %v184_v16 = vpop.f32.mrf.mxu1 }
  0xa0   :  { %v171_v17 = vadd.f32 %v170_v15, %v45_v10  ;;  %v185_v18 = vadd.f32 %v184_v16, %v45_v10 }
  0xa1   :  { %v217_v19 = vmax.f32 %v197_v13, 0.0  ;;  %v218_v20 = vmax.f32 %v211_v14, 0.0 }
  0xa2   :  { %v219_v21 = vmax.f32 %v171_v17, 0.0  ;;  %v220_v22 = vmax.f32 %v185_v18, 0.0 }
  0xa3   :  { %v224_v23 = vpack.c.bf16 %v218_v20, %v217_v19 }
  0xa4   :  { %v225_v24 = vpack.c.bf16 %v220_v22, %v219_v21 }
  0xa5   :  { %230 = vst.msk [vmem:[%s480_s3 + $0x8] sm:$0xff] %vm229_vm3, %v224_v23 }
  0xa6   :  { %231 = vst [vmem:[%s480_s3 + $0x10] sm:$0xff] %v225_v24  ;;  %v198_v25 = vpop.f32.mrf.mxu2  ;;  %v212_v26 = vpop.f32.mrf.mxu3 }
  0xa7   :  { %v199_v27 = vadd.f32 %v198_v25, %v45_v10  ;;  %v213_v28 = vadd.f32 %v212_v26, %v45_v10 }
  0xa9   :  { %v221_v29 = vmax.f32 %v199_v27, 0.0  ;;  %v222_v30 = vmax.f32 %v213_v28, 0.0 }
  0xab   :  { %v226_v31 = vpack.c.bf16 %v222_v30, %v221_v29 }
  0xad   :  { %232 = vst.msk [vmem:[%s480_s3 + $0x18] sm:$0xff] %vm229_vm3, %v226_v31 }

// kernel: autoencoder_forward.16
= control target key start
LH: loop header
LB: loop body
LE: loop exit
PB: predicated region body
PF: predicated region fallthrough
CT: control target
= control target key end

     0   :  { %vm102_vm0 = vcmask 113664   ;;  %vm893_vm1 = vcmask 1046528   ;;  %vm1881_vm2 = vcmask 224256   ;;  %vm1885_vm3 = vcmask 222208   ;;  %s3331_s1 = inlined_call_operand.vmem [shape: bf16[28,14], index: 1, kind: input, shape index: {}, may-alias: {1,2}]   ;;  %s3332_s0 = inlined_call_operand.vmem [shape: bf16[32,14,14], index: 0, kind: input, shape index: {}]   ;;  %s3333_s2 = inlined_call_operand.vmem [shape: bf16[28,14], index: 2, kind: input, shape index: {}, may-alias: {1,2}]   ;;  %s3334_s3 = inlined_call_operand.vmem [shape: bf16[32,28,28], index: 3, kind: output, shape index: {}]  }
   0x1   :  { %v2025_v0 = vld [vmem:[%s3331_s1 + $0x8] sm:$0xf]  ;;  %v2288_v1 = vld [vmem:[%s3331_s1 + $0x8] sm:$0x30]  ;;  %v2287_v4 = vld [vmem:[%s3331_s1] sm:$0xff] }
   0x2   :  { %v2026_v2 = vor.u32 %v2288_v1, %v2025_v0  ;;  %v2328_v5 = vsel %vm102_vm0, %v2287_v4, 0  ;;  %v2017_v6 = vld [vmem:[%s3332_s0] sm:$0xf]  ;;  %v2255_v7 = vld [vmem:[%s3332_s0] sm:$0x70] }
   0x3   :  { %v2030_v8 = vld [vmem:[%s3332_s0 + $0x8] sm:$0xf]  ;;  %v2256_v9 = vld [vmem:[%s3332_s0 + $0x8] sm:$0x70]  ;;  %v2035_v10 = vld [vmem:[%s3332_s0 + $0x10] sm:$0xf]  ;;  %v2018_v14 = vor.u32 %v2255_v7, %v2017_v6 }
   0x4   :  { %v2318_v3 = vsel %vm102_vm0, %v2026_v2, 0  ;;  %v2257_v11 = vld [vmem:[%s3332_s0 + $0x10] sm:$0x70]  ;;  %v2040_v12 = vld [vmem:[%s3332_s0 + $0x18] sm:$0xf]  ;;  %v2031_v15 = vor.u32 %v2256_v9, %v2030_v8 }
   0x5   :  { %118 = vmatpush.bf16.xpose.msra.mxu0 %v2318_v3  ;;  %140 = vmatpush.bf16.xpose.msra.mxu1 %v2318_v3  ;;  %v2258_v13 = vld [vmem:[%s3332_s0 + $0x18] sm:$0x70]  ;;  %v2036_v16 = vor.u32 %v2257_v11, %v2035_v10  ;;  %v2055_v18 = vld [vmem:[%s3332_s0 + $0x30] sm:$0xf]  ;;  %v2045_v19 = vld [vmem:[%s3332_s0 + $0x20] sm:$0xf] }
   0x6   :  { %162 = vmatpush.bf16.xpose.msra.mxu2 %v2318_v3  ;;  %184 = vmatpush.bf16.xpose.msra.mxu3 %v2318_v3  ;;  %v2041_v17 = vor.u32 %v2258_v13, %v2040_v12  ;;  %v2259_v20 = vld [vmem:[%s3332_s0 + $0x20] sm:$0x70]  ;;  %v2050_v21 = vld [vmem:[%s3332_s0 + $0x28] sm:$0xf]  ;;  %v2260_v22 = vld [vmem:[%s3332_s0 + $0x28] sm:$0x70] }
   0x7   :  { %v2261_v23 = vld [vmem:[%s3332_s0 + $0x30] sm:$0x70]  ;;  %v2060_v24 = vld [vmem:[%s3332_s0 + $0x38] sm:$0xf]  ;;  %v2262_v25 = vld [vmem:[%s3332_s0 + $0x38] sm:$0x70]  ;;  %v2046_v26 = vor.u32 %v2259_v20, %v2045_v19  ;;  %v2051_v27 = vor.u32 %v2260_v22, %v2050_v21 }
   0x8   :  { %v2056_v28 = vor.u32 %v2261_v23, %v2055_v18  ;;  %v2061_v29 = vor.u32 %v2262_v25, %v2060_v24  ;;  %v2075_v30 = vld [vmem:[%s3332_s0 + $0x50] sm:$0xf]  ;;  %v2065_v31 = vld [vmem:[%s3332_s0 + $0x40] sm:$0xf]  ;;  %v2263_v32 = vld [vmem:[%s3332_s0 + $0x40] sm:$0x70] }
   0x9   :  { %v2070_v33 = vld [vmem:[%s3332_s0 + $0x48] sm:$0xf]  ;;  %v2264_v34 = vld [vmem:[%s3332_s0 + $0x48] sm:$0x70]  ;;  %v2265_v35 = vld [vmem:[%s3332_s0 + $0x50] sm:$0x70]  ;;  %v2066_v38 = vor.u32 %v2263_v32, %v2065_v31 }
   0xa   :  { %v2080_v36 = vld [vmem:[%s3332_s0 + $0x58] sm:$0xf]  ;;  %v2266_v37 = vld [vmem:[%s3332_s0 + $0x58] sm:$0x70]  ;;  %v2071_v39 = vor.u32 %v2264_v34, %v2070_v33  ;;  %v2076_v40 = vor.u32 %v2265_v35, %v2075_v30  ;;  %v2085_v42 = vld [vmem:[%s3332_s0 + $0x60] sm:$0xf] }
   0xb   :  { %v2081_v41 = vor.u32 %v2266_v37, %v2080_v36  ;;  %v2267_v43 = vld [vmem:[%s3332_s0 + $0x60] sm:$0x70]  ;;  %v2090_v44 = vld [vmem:[%s3332_s0 + $0x68] sm:$0xf]  ;;  %v2268_v45 = vld [vmem:[%s3332_s0 + $0x68] sm:$0x70] }
   0xc   :  { %v2095_v46 = vld [vmem:[%s3332_s0 + $0x70] sm:$0xf]  ;;  %v2269_v47 = vld [vmem:[%s3332_s0 + $0x70] sm:$0x70]  ;;  %v2100_v48 = vld [vmem:[%s3332_s0 + $0x78] sm:$0xf]  ;;  %v2086_v50 = vor.u32 %v2267_v43, %v2085_v42  ;;  %v2091_v51 = vor.u32 %v2268_v45, %v2090_v44 }
   0xd   :  { %119 = vmatpush.bf16.xpose.msra.mxu0 %v2328_v5  ;;  %141 = vmatpush.bf16.xpose.msra.mxu1 %v2328_v5  ;;  %v2270_v49 = vld [vmem:[%s3332_s0 + $0x78] sm:$0x70]  ;;  %v2096_v52 = vor.u32 %v2269_v47, %v2095_v46  ;;  %v2105_v54 = vld [vmem:[%s3332_s0 + $0x80] sm:$0xf]  ;;  %v2271_v55 = vld [vmem:[%s3332_s0 + $0x80] sm:$0x70] }
   0xe   :  { %163 = vmatpush.bf16.xpose.msra.mxu2 %v2328_v5  ;;  %185 = vmatpush.bf16.xpose.msra.mxu3 %v2328_v5  ;;  %v2101_v53 = vor.u32 %v2270_v49, %v2100_v48  ;;  %v2110_v56 = vld [vmem:[%s3332_s0 + $0x88] sm:$0xf]  ;;  %v2272_v57 = vld [vmem:[%s3332_s0 + $0x88] sm:$0x70]  ;;  %v2115_v58 = vld [vmem:[%s3332_s0 + $0x90] sm:$0xf]  ;;  %v2106_v62 = vor.u32 %v2271_v55, %v2105_v54 }
   0xf   :  { %v2273_v59 = vld [vmem:[%s3332_s0 + $0x90] sm:$0x70]  ;;  %v2120_v60 = vld [vmem:[%s3332_s0 + $0x98] sm:$0xf]  ;;  %v2274_v61 = vld [vmem:[%s3332_s0 + $0x98] sm:$0x70]  ;;  %v2111_v63 = vor.u32 %v2272_v57, %v2110_v56 }
  0x10   :  { %v2116_v0 = vor.u32 %v2273_v59, %v2115_v58  ;;  %v2121_v1 = vor.u32 %v2274_v61, %v2120_v60  ;;  %v2125_v2 = vld [vmem:[%s3332_s0 + $0xa0] sm:$0xf]  ;;  %v2275_v4 = vld [vmem:[%s3332_s0 + $0xa0] sm:$0x70]  ;;  %v2130_v6 = vld [vmem:[%s3332_s0 + $0xa8] sm:$0xf] }
  0x11   :  { %v2276_v7 = vld [vmem:[%s3332_s0 + $0xa8] sm:$0x70]  ;;  %v2135_v8 = vld [vmem:[%s3332_s0 + $0xb0] sm:$0xf]  ;;  %v2277_v9 = vld [vmem:[%s3332_s0 + $0xb0] sm:$0x70]  ;;  %v2126_v12 = vor.u32 %v2275_v4, %v2125_v2 }
  0x12   :  { %v2140_v10 = vld [vmem:[%s3332_s0 + $0xb8] sm:$0xf]  ;;  %v2278_v11 = vld [vmem:[%s3332_s0 + $0xb8] sm:$0x70]  ;;  %v2131_v13 = vor.u32 %v2276_v7, %v2130_v6  ;;  %v2150_v18 = vld [vmem:[%s3332_s0 + $0xc8] sm:$0xf] }
  0x13   :  { %v2280_v19 = vld [vmem:[%s3332_s0 + $0xc8] sm:$0x70]  ;;  %v2281_v20 = vld [vmem:[%s3332_s0 + $0xd0] sm:$0x70]  ;;  %v2160_v21 = vld [vmem:[%s3332_s0 + $0xd8] sm:$0xf] }
  0x14   :  { %2027 = vmatmul.msk.bf16.vlgmr.msra.gmra.mxu0 %vm102_vm0, %v2018_v14  ;;  %2032 = vmatmul.msk.bf16.vlgmr.msra.gmra.mxu1 %vm102_vm0, %v2031_v15  ;;  %v2136_v14 = vor.u32 %v2277_v9, %v2135_v8  ;;  %v2141_v15 = vor.u32 %v2278_v11, %v2140_v10  ;;  %v2282_v22 = vld [vmem:[%s3332_s0 + $0xd8] sm:$0x70]  ;;  %v2151_v24 = vor.u32 %v2280_v19, %v2150_v18  ;;  %v2284_v30 = vld [vmem:[%s3332_s0 + $0xe8] sm:$0x70]  ;;  %v2285_v31 = vld [vmem:[%s3332_s0 + $0xf0] sm:$0x70] }
  0x15   :  { %206 = vmatpush.bf16.xpose.msrb.mxu0 %v2318_v3  ;;  %228 = vmatpush.bf16.xpose.msrb.mxu1 %v2318_v3  ;;  %v2180_v32 = vld [vmem:[%s3332_s0 + $0xf8] sm:$0xf]  ;;  %v2286_v33 = vld [vmem:[%s3332_s0 + $0xf8] sm:$0x70]  ;;  %v2619_v60 = vld [vmem:[%s3333_s2] sm:$0xff] }
  0x16   :  { %250 = vmatpush.bf16.xpose.msrb.mxu2 %v2318_v3  ;;  %272 = vmatpush.bf16.xpose.msrb.mxu3 %v2318_v3  ;;  %v2181_v37 = vor.u32 %v2286_v33, %v2180_v32 }
  0x17   :  { %2037 = vmatmul.msk.bf16.vlgmr.msra.gmra.mxu2 %vm102_vm0, %v2036_v16  ;;  %2042 = vmatmul.msk.bf16.vlgmr.msra.gmra.mxu3 %vm102_vm0, %v2041_v17  ;;  %v2145_v16 = vld [vmem:[%s3332_s0 + $0xc0] sm:$0xf]  ;;  %v2279_v17 = vld [vmem:[%s3332_s0 + $0xc0] sm:$0x70] }
  0x18   :  { %v2146_v23 = vor.u32 %v2279_v17, %v2145_v16 }
  0x1d   :  { %207 = vmatpush.bf16.xpose.msrb.mxu0 %v2328_v5  ;;  %229 = vmatpush.bf16.xpose.msrb.mxu1 %v2328_v5 }
  0x1e   :  { %251 = vmatpush.bf16.xpose.msrb.mxu2 %v2328_v5  ;;  %273 = vmatpush.bf16.xpose.msrb.mxu3 %v2328_v5 }
  0x24   :  { %2047 = vmatmul.msk.bf16.vlgmr.msrb.gmra.mxu0 %vm102_vm0, %v2046_v26  ;;  %2052 = vmatmul.msk.bf16.vlgmr.msrb.gmra.mxu1 %vm102_vm0, %v2051_v27  ;;  %v2161_v26 = vor.u32 %v2282_v22, %v2160_v21  ;;  %v2165_v27 = vld [vmem:[%s3332_s0 + $0xe0] sm:$0xf] }
  0x25   :  { %294 = vmatpush.bf16.xpose.msra.mxu0 %v2318_v3  ;;  %316 = vmatpush.bf16.xpose.msra.mxu1 %v2318_v3 }
  0x26   :  { %338 = vmatpush.bf16.xpose.msra.mxu2 %v2318_v3  ;;  %360 = vmatpush.bf16.xpose.msra.mxu3 %v2318_v3 }
  0x27   :  { %2057 = vmatmul.msk.bf16.vlgmr.msrb.gmra.mxu2 %vm102_vm0, %v2056_v28  ;;  %2062 = vmatmul.msk.bf16.vlgmr.msrb.gmra.mxu3 %vm102_vm0, %v2061_v29  ;;  %v2283_v28 = vld [vmem:[%s3332_s0 + $0xe0] sm:$0x70]  ;;  %v2170_v29 = vld [vmem:[%s3332_s0 + $0xe8] sm:$0xf] }
  0x28   :  { %v2166_v34 = vor.u32 %v2283_v28, %v2165_v27  ;;  %v2171_v35 = vor.u32 %v2284_v30, %v2170_v29 }
  0x2d   :  { %295 = vmatpush.bf16.xpose.msra.mxu0 %v2328_v5  ;;  %317 = vmatpush.bf16.xpose.msra.mxu1 %v2328_v5 }
  0x2e   :  { %339 = vmatpush.bf16.xpose.msra.mxu2 %v2328_v5  ;;  %361 = vmatpush.bf16.xpose.msra.mxu3 %v2328_v5 }
  0x34   :  { %2067 = vmatmul.msk.bf16.vlgmr.msra.gmra.mxu0 %vm102_vm0, %v2066_v38  ;;  %2072 = vmatmul.msk.bf16.vlgmr.msra.gmra.mxu1 %vm102_vm0, %v2071_v39 }
  0x35   :  { %382 = vmatpush.bf16.xpose.msrb.mxu0 %v2318_v3  ;;  %404 = vmatpush.bf16.xpose.msrb.mxu1 %v2318_v3 }
  0x36   :  { %426 = vmatpush.bf16.xpose.msrb.mxu2 %v2318_v3  ;;  %448 = vmatpush.bf16.xpose.msrb.mxu3 %v2318_v3 }
  0x37   :  { %2077 = vmatmul.msk.bf16.vlgmr.msra.gmra.mxu2 %vm102_vm0, %v2076_v40  ;;  %2082 = vmatmul.msk.bf16.vlgmr.msra.gmra.mxu3 %vm102_vm0, %v2081_v41 }
  0x3d   :  { %383 = vmatpush.bf16.xpose.msrb.mxu0 %v2328_v5  ;;  %405 = vmatpush.bf16.xpose.msrb.mxu1 %v2328_v5 }
  0x3e   :  { %427 = vmatpush.bf16.xpose.msrb.mxu2 %v2328_v5  ;;  %449 = vmatpush.bf16.xpose.msrb.mxu3 %v2328_v5 }
  0x44   :  { %2087 = vmatmul.msk.bf16.vlgmr.msrb.gmra.mxu0 %vm102_vm0, %v2086_v50  ;;  %2092 = vmatmul.msk.bf16.vlgmr.msrb.gmra.mxu1 %vm102_vm0, %v2091_v51 }
  0x45   :  { %470 = vmatpush.bf16.xpose.msra.mxu0 %v2318_v3  ;;  %492 = vmatpush.bf16.xpose.msra.mxu1 %v2318_v3 }
  0x46   :  { %514 = vmatpush.bf16.xpose.msra.mxu2 %v2318_v3  ;;  %536 = vmatpush.bf16.xpose.msra.mxu3 %v2318_v3 }
  0x47   :  { %2097 = vmatmul.msk.bf16.vlgmr.msrb.gmra.mxu2 %vm102_vm0, %v2096_v52  ;;  %2102 = vmatmul.msk.bf16.vlgmr.msrb.gmra.mxu3 %vm102_vm0, %v2101_v53 }
  0x4d   :  { %471 = vmatpush.bf16.xpose.msra.mxu0 %v2328_v5  ;;  %493 = vmatpush.bf16.xpose.msra.mxu1 %v2328_v5 }
  0x4e   :  { %515 = vmatpush.bf16.xpose.msra.mxu2 %v2328_v5  ;;  %537 = vmatpush.bf16.xpose.msra.mxu3 %v2328_v5 }
  0x54   :  { %2107 = vmatmul.msk.bf16.vlgmr.msra.gmra.mxu0 %vm102_vm0, %v2106_v62  ;;  %2112 = vmatmul.msk.bf16.vlgmr.msra.gmra.mxu1 %vm102_vm0, %v2111_v63 }
  0x55   :  { %558 = vmatpush.bf16.xpose.msrb.mxu0 %v2318_v3  ;;  %580 = vmatpush.bf16.xpose.msrb.mxu1 %v2318_v3 }
  0x56   :  { %602 = vmatpush.bf16.xpose.msrb.mxu2 %v2318_v3  ;;  %624 = vmatpush.bf16.xpose.msrb.mxu3 %v2318_v3 }
  0x57   :  { %2117 = vmatmul.msk.bf16.vlgmr.msra.gmra.mxu2 %vm102_vm0, %v2116_v0  ;;  %2122 = vmatmul.msk.bf16.vlgmr.msra.gmra.mxu3 %vm102_vm0, %v2121_v1 }
  0x5d   :  { %559 = vmatpush.bf16.xpose.msrb.mxu0 %v2328_v5  ;;  %581 = vmatpush.bf16.xpose.msrb.mxu1 %v2328_v5 }
  0x5e   :  { %603 = vmatpush.bf16.xpose.msrb.mxu2 %v2328_v5  ;;  %625 = vmatpush.bf16.xpose.msrb.mxu3 %v2328_v5 }
  0x64   :  { %2127 = vmatmul.msk.bf16.vlgmr.msrb.gmra.mxu0 %vm102_vm0, %v2126_v12  ;;  %2132 = vmatmul.msk.bf16.vlgmr.msrb.gmra.mxu1 %vm102_vm0, %v2131_v13 }
  0x65   :  { %646 = vmatpush.bf16.xpose.msra.mxu0 %v2318_v3  ;;  %668 = vmatpush.bf16.xpose.msra.mxu1 %v2318_v3 }
  0x66   :  { %690 = vmatpush.bf16.xpose.msra.mxu2 %v2318_v3  ;;  %712 = vmatpush.bf16.xpose.msra.mxu3 %v2318_v3 }
  0x67   :  { %2137 = vmatmul.msk.bf16.vlgmr.msrb.gmra.mxu2 %vm102_vm0, %v2136_v14  ;;  %2142 = vmatmul.msk.bf16.vlgmr.msrb.gmra.mxu3 %vm102_vm0, %v2141_v15 }
  0x6d   :  { %647 = vmatpush.bf16.xpose.msra.mxu0 %v2328_v5  ;;  %669 = vmatpush.bf16.xpose.msra.mxu1 %v2328_v5 }
  0x6e   :  { %691 = vmatpush.bf16.xpose.msra.mxu2 %v2328_v5  ;;  %713 = vmatpush.bf16.xpose.msra.mxu3 %v2328_v5 }
  0x74   :  { %2147 = vmatmul.msk.bf16.vlgmr.msra.gmra.mxu0 %vm102_vm0, %v2146_v23  ;;  %2152 = vmatmul.msk.bf16.vlgmr.msra.gmra.mxu1 %vm102_vm0, %v2151_v24  ;;  %v2189_v24 = vld [vmem:[%s3333_s2 + $0x8] sm:$0xf] }
  0x75   :  { %734 = vmatpush.bf16.xpose.msrb.mxu0 %v2318_v3  ;;  %756 = vmatpush.bf16.xpose.msrb.mxu1 %v2318_v3 }
  0x76   :  { %778 = vmatpush.bf16.xpose.msrb.mxu2 %v2318_v3  ;;  %800 = vmatpush.bf16.xpose.msrb.mxu3 %v2318_v3  ;;  %v2155_v3 = vld [vmem:[%s3332_s0 + $0xd0] sm:$0xf] }
  0x77   :  { %v2156_v25 = vor.u32 %v2281_v20, %v2155_v3  ;;  %2162 = vmatmul.msk.bf16.vlgmr.msra.gmra.mxu3 %vm102_vm0, %v2161_v26 }
  0x79   :  { %2157 = vmatmul.msk.bf16.vlgmr.msra.gmra.mxu2 %vm102_vm0, %v2156_v25  ;;  %v2290_v25 = vld [vmem:[%s3333_s2 + $0x8] sm:$0x30] }
  0x7a   :  { %v2637_v29 = vor.u32 %v2290_v25, %v2189_v24 }
  0x7d   :  { %735 = vmatpush.bf16.xpose.msrb.mxu0 %v2328_v5  ;;  %757 = vmatpush.bf16.xpose.msrb.mxu1 %v2328_v5 }
  0x7e   :  { %779 = vmatpush.bf16.xpose.msrb.mxu2 %v2328_v5  ;;  %801 = vmatpush.bf16.xpose.msrb.mxu3 %v2328_v5  ;;  %v2175_v5 = vld [vmem:[%s3332_s0 + $0xf0] sm:$0xf] }
  0x7f   :  { %v2176_v36 = vor.u32 %v2285_v31, %v2175_v5 }
  0x84   :  { %2167 = vmatmul.msk.bf16.vlgmr.msrb.gmra.mxu0 %vm102_vm0, %v2166_v34  ;;  %2172 = vmatmul.msk.bf16.vlgmr.msrb.gmra.mxu1 %vm102_vm0, %v2171_v35 }
  0x87   :  { %2182 = vmatmul.msk.bf16.vlgmr.msrb.gmra.mxu3 %vm102_vm0, %v2181_v37 }
  0x89   :  { %2177 = vmatmul.msk.bf16.vlgmr.msrb.gmra.mxu2 %vm102_vm0, %v2176_v36 }
  0x91   :  { %v121_v38 = vpop.f32.mrf.mxu0  ;;  %v143_v39 = vpop.f32.mrf.mxu1 }
  0x92   :  { %v808_v40 = vpack.c.bf16 %v121_v38, %v121_v38  ;;  %v810_v41 = vpack.c.bf16 %v143_v39, %v143_v39 }
  0x94   :  { %v884_v46 = vunpack.c.l.b16 %v808_v40  ;;  %v918_v47 = vunpack.c.l.b16 %v810_v41 }
  0x99   :  { %v123_v44 = vpop.f32.mrf.mxu0  ;;  %v145_v45 = vpop.f32.mrf.mxu1 }
  0x9a   :  { %v165_v42 = vpop.f32.mrf.mxu2  ;;  %v187_v43 = vpop.f32.mrf.mxu3  ;;  %v809_v48 = vpack.c.bf16 %v123_v44, %v123_v44  ;;  %v811_v49 = vpack.c.bf16 %v145_v45, %v145_v45 }
  0x9b   :  { %v812_v54 = vpack.c.bf16 %v165_v42, %v165_v42  ;;  %v814_v55 = vpack.c.bf16 %v187_v43, %v187_v43 }
  0x9c   :  { %v885_v50 = vunpack.c.l.b16 %v809_v48  ;;  %v919_v51 = vunpack.c.l.b16 %v811_v49 }
  0x9d   :  { %v945_v1 = vunpack.c.l.b16 %v812_v54  ;;  %v972_v2 = vunpack.c.l.b16 %v814_v55 }
  0x9e   :  { %v886_v52 = vpack.c.b16 %v885_v50, %v884_v46  ;;  %v920_v53 = vpack.c.b16 %v919_v51, %v918_v47 }
  0xa0   :  { %v895_v58 = vsel %vm893_vm1, %v886_v52, 0  ;;  %v922_v59 = vsel %vm893_vm1, %v920_v53, 0 }
  0xa1   :  { %904 = vmatpush.bf16.msra.mxu0 %v895_v58  ;;  %931 = vmatpush.bf16.msra.mxu1 %v922_v59  ;;  %v209_v63 = vpop.f32.mrf.mxu0  ;;  %v231_v0 = vpop.f32.mrf.mxu1 }
  0xa2   :  { %v167_v56 = vpop.f32.mrf.mxu2  ;;  %v189_v57 = vpop.f32.mrf.mxu3  ;;  %v816_v9 = vpack.c.bf16 %v209_v63, %v209_v63  ;;  %v818_v10 = vpack.c.bf16 %v231_v0, %v231_v0 }
  0xa3   :  { %v813_v61 = vpack.c.bf16 %v167_v56, %v167_v56  ;;  %v815_v62 = vpack.c.bf16 %v189_v57, %v189_v57 }
  0xa4   :  { %2191 = vmatmul.msk.bf16.vlgmr.msra.gmra.mxu0 %vm102_vm0, %v2619_v60  ;;  %2193 = vmatmul.msk.bf16.vlgmr.msra.gmra.mxu1 %vm102_vm0, %v2619_v60  ;;  %v999_v17 = vunpack.c.l.b16 %v816_v9  ;;  %v1026_v18 = vunpack.c.l.b16 %v818_v10 }
  0xa5   :  { %v946_v4 = vunpack.c.l.b16 %v813_v61  ;;  %v973_v6 = vunpack.c.l.b16 %v815_v62 }
  0xa7   :  { %v947_v7 = vpack.c.b16 %v946_v4, %v945_v1  ;;  %v974_v8 = vpack.c.b16 %v973_v6, %v972_v2 }
  0xa9   :  { %v949_v11 = vsel %vm893_vm1, %v947_v7, 0  ;;  %v976_v12 = vsel %vm893_vm1, %v974_v8, 0  ;;  %v211_v15 = vpop.f32.mrf.mxu0  ;;  %v233_v16 = vpop.f32.mrf.mxu1 }
  0xaa   :  { %v253_v13 = vpop.f32.mrf.mxu2  ;;  %v275_v14 = vpop.f32.mrf.mxu3  ;;  %958 = vmatpush.bf16.msra.mxu2 %v949_v11  ;;  %985 = vmatpush.bf16.msra.mxu3 %v976_v12  ;;  %v817_v19 = vpack.c.bf16 %v211_v15, %v211_v15  ;;  %v819_v3 = vpack.c.bf16 %v233_v16, %v233_v16 }
  0xab   :  { %v820_v22 = vpack.c.bf16 %v253_v13, %v253_v13  ;;  %v822_v23 = vpack.c.bf16 %v275_v14, %v275_v14 }
  0xac   :  { %v1000_v20 = vunpack.c.l.b16 %v817_v19  ;;  %v1027_v21 = vunpack.c.l.b16 %v819_v3 }
  0xad   :  { %2195 = vmatmul.msk.bf16.vlgmr.msra.gmra.mxu2 %vm102_vm0, %v2619_v60  ;;  %2197 = vmatmul.msk.bf16.vlgmr.msra.gmra.mxu3 %vm102_vm0, %v2619_v60  ;;  %v1053_v32 = vunpack.c.l.b16 %v820_v22  ;;  %v1080_v33 = vunpack.c.l.b16 %v822_v23 }
  0xae   :  { %v1001_v26 = vpack.c.b16 %v1000_v20, %v999_v17  ;;  %v1028_v27 = vpack.c.b16 %v1027_v21, %v1026_v18 }
  0xb0   :  { %v1003_v30 = vsel %vm893_vm1, %v1001_v26, 0  ;;  %v1030_v31 = vsel %vm893_vm1, %v1028_v27, 0 }
  0xb1   :  { %1012 = vmatpush.bf16.msrb.mxu0 %v1003_v30  ;;  %1039 = vmatpush.bf16.msrb.mxu1 %v1030_v31  ;;  %v297_v36 = vpop.f32.mrf.mxu0  ;;  %v319_v37 = vpop.f32.mrf.mxu1 }
  0xb2   :  { %v255_v5 = vpop.f32.mrf.mxu2  ;;  %v277_v28 = vpop.f32.mrf.mxu3  ;;  %v824_v42 = vpack.c.bf16 %v297_v36, %v297_v36  ;;  %v826_v43 = vpack.c.bf16 %v319_v37, %v319_v37 }
  0xb3   :  { %v821_v34 = vpack.c.bf16 %v255_v5, %v255_v5  ;;  %v823_v35 = vpack.c.bf16 %v277_v28, %v277_v28 }
  0xb4   :  { %2192 = vmatmul.msk.bf16.gmra.mxu0 %vm102_vm0, %v2637_v29  ;;  %2194 = vmatmul.msk.bf16.gmra.mxu1 %vm102_vm0, %v2637_v29  ;;  %v1107_v50 = vunpack.c.l.b16 %v824_v42  ;;  %v1134_v51 = vunpack.c.l.b16 %v826_v43 }
  0xb5   :  { %v1054_v38 = vunpack.c.l.b16 %v821_v34  ;;  %v1081_v39 = vunpack.c.l.b16 %v823_v35 }
  0xb7   :  { %v1055_v40 = vpack.c.b16 %v1054_v38, %v1053_v32  ;;  %v1082_v41 = vpack.c.b16 %v1081_v39, %v1080_v33 }
  0xb9   :  { %v1057_v44 = vsel %vm893_vm1, %v1055_v40, 0  ;;  %v1084_v45 = vsel %vm893_vm1, %v1082_v41, 0  ;;  %v299_v48 = vpop.f32.mrf.mxu0  ;;  %v321_v49 = vpop.f32.mrf.mxu1 }
  0xba   :  { %1066 = vmatpush.bf16.msrb.mxu2 %v1057_v44  ;;  %1093 = vmatpush.bf16.msrb.mxu3 %v1084_v45  ;;  %v341_v46 = vpop.f32.mrf.mxu2  ;;  %v363_v47 = vpop.f32.mrf.mxu3  ;;  %v825_v52 = vpack.c.bf16 %v299_v48, %v299_v48  ;;  %v827_v53 = vpack.c.bf16 %v321_v49, %v321_v49 }
  0xbb   :  { %v828_v56 = vpack.c.bf16 %v341_v46, %v341_v46  ;;  %v830_v57 = vpack.c.bf16 %v363_v47, %v363_v47 }
  0xbc   :  { %v1108_v54 = vunpack.c.l.b16 %v825_v52  ;;  %v1135_v55 = vunpack.c.l.b16 %v827_v53 }
  0xbd   :  { %2196 = vmatmul.msk.bf16.gmra.mxu2 %vm102_vm0, %v2637_v29  ;;  %2198 = vmatmul.msk.bf16.gmra.mxu3 %vm102_vm0, %v2637_v29  ;;  %v1161_v1 = vunpack.c.l.b16 %v828_v56  ;;  %v1188_v2 = vunpack.c.l.b16 %v830_v57 }
  0xbe   :  { %v1109_v58 = vpack.c.b16 %v1108_v54, %v1107_v50  ;;  %v1136_v59 = vpack.c.b16 %v1135_v55, %v1134_v51 }
  0xc0   :  { %v1111_v63 = vsel %vm893_vm1, %v1109_v58, 0  ;;  %v1138_v0 = vsel %vm893_vm1, %v1136_v59, 0 }
  0xc1   :  { %1120 = vmatpush.bf16.msra.mxu0 %v1111_v63  ;;  %1147 = vmatpush.bf16.msra.mxu1 %v1138_v0  ;;  %v385_v7 = vpop.f32.mrf.mxu0  ;;  %v407_v8 = vpop.f32.mrf.mxu1 }
  0xc2   :  { %v343_v61 = vpop.f32.mrf.mxu2  ;;  %v365_v62 = vpop.f32.mrf.mxu3  ;;  %v832_v13 = vpack.c.bf16 %v385_v7, %v385_v7  ;;  %v834_v14 = vpack.c.bf16 %v407_v8, %v407_v8 }
  0xc3   :  { %v829_v4 = vpack.c.bf16 %v343_v61, %v343_v61  ;;  %v831_v6 = vpack.c.bf16 %v365_v62, %v365_v62 }
  0xc4   :  { %2199 = vmatmul.msk.bf16.vlgmr.msrb.gmra.mxu0 %vm102_vm0, %v2619_v60  ;;  %2201 = vmatmul.msk.bf16.vlgmr.msrb.gmra.mxu1 %vm102_vm0, %v2619_v60  ;;  %v1215_v20 = vunpack.c.l.b16 %v832_v13  ;;  %v1242_v21 = vunpack.c.l.b16 %v834_v14 }
  0xc5   :  { %v1162_v9 = vunpack.c.l.b16 %v829_v4  ;;  %v1189_v10 = vunpack.c.l.b16 %v831_v6 }
  0xc7   :  { %v1163_v11 = vpack.c.b16 %v1162_v9, %v1161_v1  ;;  %v1190_v12 = vpack.c.b16 %v1189_v10, %v1188_v2 }
  0xc9   :  { %v1165_v15 = vsel %vm893_vm1, %v1163_v11, 0  ;;  %v1192_v16 = vsel %vm893_vm1, %v1190_v12, 0  ;;  %v387_v19 = vpop.f32.mrf.mxu0  ;;  %v409_v3 = vpop.f32.mrf.mxu1 }
  0xca   :  { %1174 = vmatpush.bf16.msra.mxu2 %v1165_v15  ;;  %1201 = vmatpush.bf16.msra.mxu3 %v1192_v16  ;;  %v429_v17 = vpop.f32.mrf.mxu2  ;;  %v451_v18 = vpop.f32.mrf.mxu3  ;;  %v833_v22 = vpack.c.bf16 %v387_v19, %v387_v19  ;;  %v835_v23 = vpack.c.bf16 %v409_v3, %v409_v3 }
  0xcb   :  { %v836_v26 = vpack.c.bf16 %v429_v17, %v429_v17  ;;  %v838_v27 = vpack.c.bf16 %v451_v18, %v451_v18 }
  0xcc   :  { %v1216_v24 = vunpack.c.l.b16 %v833_v22  ;;  %v1243_v25 = vunpack.c.l.b16 %v835_v23 }
  0xcd   :  { %2203 = vmatmul.msk.bf16.vlgmr.msrb.gmra.mxu2 %vm102_vm0, %v2619_v60  ;;  %2205 = vmatmul.msk.bf16.vlgmr.msrb.gmra.mxu3 %vm102_vm0, %v2619_v60  ;;  %v1269_v34 = vunpack.c.l.b16 %v836_v26  ;;  %v1296_v35 = vunpack.c.l.b16 %v838_v27 }
  0xce   :  { %v1217_v5 = vpack.c.b16 %v1216_v24, %v1215_v20  ;;  %v1244_v28 = vpack.c.b16 %v1243_v25, %v1242_v21 }
  0xd0   :  { %v1219_v32 = vsel %vm893_vm1, %v1217_v5, 0  ;;  %v1246_v33 = vsel %vm893_vm1, %v1244_v28, 0 }
  0xd1   :  { %v473_v38 = vpop.f32.mrf.mxu0  ;;  %v495_v39 = vpop.f32.mrf.mxu1  ;;  %1228 = vmatpush.bf16.msrb.mxu0 %v1219_v32  ;;  %1255 = vmatpush.bf16.msrb.mxu1 %v1246_v33 }
  0xd2   :  { %v431_v30 = vpop.f32.mrf.mxu2  ;;  %v453_v31 = vpop.f32.mrf.mxu3  ;;  %v840_v44 = vpack.c.bf16 %v473_v38, %v473_v38  ;;  %v842_v45 = vpack.c.bf16 %v495_v39, %v495_v39 }
  0xd3   :  { %v837_v36 = vpack.c.bf16 %v431_v30, %v431_v30  ;;  %v839_v37 = vpack.c.bf16 %v453_v31, %v453_v31 }
  0xd4   :  { %2200 = vmatmul.msk.bf16.gmra.mxu0 %vm102_vm0, %v2637_v29  ;;  %2202 = vmatmul.msk.bf16.gmra.mxu1 %vm102_vm0, %v2637_v29  ;;  %v1323_v52 = vunpack.c.l.b16 %v840_v44  ;;  %v1350_v53 = vunpack.c.l.b16 %v842_v45 }
  0xd5   :  { %v1270_v40 = vunpack.c.l.b16 %v837_v36  ;;  %v1297_v41 = vunpack.c.l.b16 %v839_v37 }
  0xd7   :  { %v1271_v42 = vpack.c.b16 %v1270_v40, %v1269_v34  ;;  %v1298_v43 = vpack.c.b16 %v1297_v41, %v1296_v35 }
  0xd9   :  { %v1273_v46 = vsel %vm893_vm1, %v1271_v42, 0  ;;  %v1300_v47 = vsel %vm893_vm1, %v1298_v43, 0  ;;  %v475_v50 = vpop.f32.mrf.mxu0  ;;  %v497_v51 = vpop.f32.mrf.mxu1 }
  0xda   :  { %1282 = vmatpush.bf16.msrb.mxu2 %v1273_v46  ;;  %1309 = vmatpush.bf16.msrb.mxu3 %v1300_v47  ;;  %v517_v48 = vpop.f32.mrf.mxu2  ;;  %v539_v49 = vpop.f32.mrf.mxu3  ;;  %v841_v54 = vpack.c.bf16 %v475_v50, %v475_v50  ;;  %v843_v55 = vpack.c.bf16 %v497_v51, %v497_v51 }
  0xdb   :  { %v844_v58 = vpack.c.bf16 %v517_v48, %v517_v48  ;;  %v846_v59 = vpack.c.bf16 %v539_v49, %v539_v49 }
  0xdc   :  { %v1324_v56 = vunpack.c.l.b16 %v841_v54  ;;  %v1351_v57 = vunpack.c.l.b16 %v843_v55 }
  0xdd   :  { %2204 = vmatmul.msk.bf16.gmra.mxu2 %vm102_vm0, %v2637_v29  ;;  %2206 = vmatmul.msk.bf16.gmra.mxu3 %vm102_vm0, %v2637_v29  ;;  %v1377_v1 = vunpack.c.l.b16 %v844_v58  ;;  %v1404_v2 = vunpack.c.l.b16 %v846_v59 }
  0xde   :  { %v1325_v61 = vpack.c.b16 %v1324_v56, %v1323_v52  ;;  %v1352_v62 = vpack.c.b16 %v1351_v57, %v1350_v53 }
  0xe0   :  { %v1327_v7 = vsel %vm893_vm1, %v1325_v61, 0  ;;  %v1354_v8 = vsel %vm893_vm1, %v1352_v62, 0 }
  0xe1   :  { %v561_v13 = vpop.f32.mrf.mxu0  ;;  %v583_v14 = vpop.f32.mrf.mxu1 }
  0xe2   :  { %v519_v63 = vpop.f32.mrf.mxu2  ;;  %v541_v0 = vpop.f32.mrf.mxu3  ;;  %v848_v20 = vpack.c.bf16 %v561_v13, %v561_v13  ;;  %v850_v21 = vpack.c.bf16 %v583_v14, %v583_v14 }
  0xe3   :  { %v845_v4 = vpack.c.bf16 %v519_v63, %v519_v63  ;;  %v847_v6 = vpack.c.bf16 %v541_v0, %v541_v0 }
  0xe4   :  { %2207 = vmatmul.msk.bf16.vlgmr.msra.gmra.mxu0 %vm102_vm0, %v2619_v60  ;;  %2209 = vmatmul.msk.bf16.vlgmr.msra.gmra.mxu1 %vm102_vm0, %v2619_v60  ;;  %v1431_v26 = vunpack.c.l.b16 %v848_v20  ;;  %v1458_v27 = vunpack.c.l.b16 %v850_v21 }
  0xe5   :  { %v1378_v9 = vunpack.c.l.b16 %v845_v4  ;;  %v1405_v10 = vunpack.c.l.b16 %v847_v6  ;;  %1336 = vmatpush.bf16.msra.mxu0 %v1327_v7  ;;  %1363 = vmatpush.bf16.msra.mxu1 %v1354_v8 }
  0xe7   :  { %v1379_v11 = vpack.c.b16 %v1378_v9, %v1377_v1  ;;  %v1406_v12 = vpack.c.b16 %v1405_v10, %v1404_v2 }
  0xe9   :  { %v1381_v15 = vsel %vm893_vm1, %v1379_v11, 0  ;;  %v1408_v16 = vsel %vm893_vm1, %v1406_v12, 0  ;;  %v563_v17 = vpop.f32.mrf.mxu0  ;;  %v585_v18 = vpop.f32.mrf.mxu1 }
  0xea   :  { %v605_v19 = vpop.f32.mrf.mxu2  ;;  %v627_v3 = vpop.f32.mrf.mxu3  ;;  %v849_v22 = vpack.c.bf16 %v563_v17, %v563_v17  ;;  %v851_v23 = vpack.c.bf16 %v585_v18, %v585_v18 }
  0xeb   :  { %v852_v34 = vpack.c.bf16 %v605_v19, %v605_v19  ;;  %v854_v35 = vpack.c.bf16 %v627_v3, %v627_v3 }
  0xec   :  { %v1432_v5 = vunpack.c.l.b16 %v849_v22  ;;  %v1459_v28 = vunpack.c.l.b16 %v851_v23 }
  0xed   :  { %2211 = vmatmul.msk.bf16.vlgmr.msra.gmra.mxu2 %vm102_vm0, %v2619_v60  ;;  %2213 = vmatmul.msk.bf16.vlgmr.msra.gmra.mxu3 %vm102_vm0, %v2619_v60  ;;  %v1485_v40 = vunpack.c.l.b16 %v852_v34  ;;  %v1512_v41 = vunpack.c.l.b16 %v854_v35 }
  0xee   :  { %1390 = vmatpush.bf16.msra.mxu2 %v1381_v15  ;;  %1417 = vmatpush.bf16.msra.mxu3 %v1408_v16  ;;  %v1433_v32 = vpack.c.b16 %v1432_v5, %v1431_v26  ;;  %v1460_v33 = vpack.c.b16 %v1459_v28, %v1458_v27 }
  0xf0   :  { %v1435_v38 = vsel %vm893_vm1, %v1433_v32, 0  ;;  %v1462_v39 = vsel %vm893_vm1, %v1460_v33, 0 }
  0xf1   :  { %v649_v24 = vpop.f32.mrf.mxu0  ;;  %v671_v25 = vpop.f32.mrf.mxu1 }
  0xf2   :  { %v607_v30 = vpop.f32.mrf.mxu2  ;;  %v629_v31 = vpop.f32.mrf.mxu3  ;;  %v856_v58 = vpack.c.bf16 %v649_v24, %v649_v24  ;;  %v858_v59 = vpack.c.bf16 %v671_v25, %v671_v25 }
  0xf3   :  { %v853_v36 = vpack.c.bf16 %v607_v30, %v607_v30  ;;  %v855_v37 = vpack.c.bf16 %v629_v31, %v629_v31 }
  0xf4   :  { %2208 = vmatmul.msk.bf16.gmra.mxu0 %vm102_vm0, %v2637_v29  ;;  %2210 = vmatmul.msk.bf16.gmra.mxu1 %vm102_vm0, %v2637_v29  ;;  %v1539_v63 = vunpack.c.l.b16 %v856_v58  ;;  %v1566_v0 = vunpack.c.l.b16 %v858_v59 }
  0xf5   :  { %v1486_v42 = vunpack.c.l.b16 %v853_v36  ;;  %v1513_v43 = vunpack.c.l.b16 %v855_v37 }
  0xf7   :  { %v1487_v46 = vpack.c.b16 %v1486_v42, %v1485_v40  ;;  %v1514_v47 = vpack.c.b16 %v1513_v43, %v1512_v41 }
  0xf9   :  { %v651_v44 = vpop.f32.mrf.mxu0  ;;  %v673_v45 = vpop.f32.mrf.mxu1  ;;  %v1489_v50 = vsel %vm893_vm1, %v1487_v46, 0  ;;  %v1516_v51 = vsel %vm893_vm1, %v1514_v47, 0 }
  0xfa   :  { %v715_v49 = vpop.f32.mrf.mxu3  ;;  %v857_v61 = vpack.c.bf16 %v651_v44, %v651_v44  ;;  %v859_v62 = vpack.c.bf16 %v673_v45, %v673_v45 }
  0xfb   :  { %v862_v8 = vpack.c.bf16 %v715_v49, %v715_v49 }
  0xfc   :  { %v693_v48 = vpop.f32.mrf.mxu2  ;;  %v1540_v1 = vunpack.c.l.b16 %v857_v61  ;;  %v1567_v2 = vunpack.c.l.b16 %v859_v62 }
  0xfd   :  { %2212 = vmatmul.msk.bf16.gmra.mxu2 %vm102_vm0, %v2637_v29  ;;  %2214 = vmatmul.msk.bf16.gmra.mxu3 %vm102_vm0, %v2637_v29  ;;  %v860_v7 = vpack.c.bf16 %v693_v48, %v693_v48  ;;  %v1620_v18 = vunpack.c.l.b16 %v862_v8 }
  0xfe   :  { %v1541_v11 = vpack.c.b16 %v1540_v1, %v1539_v63  ;;  %v1568_v12 = vpack.c.b16 %v1567_v2, %v1566_v0 }
  0xff   :  { %v1593_v17 = vunpack.c.l.b16 %v860_v7 }
 0x100   :  { %v1543_v20 = vsel %vm893_vm1, %v1541_v11, 0  ;;  %v1570_v21 = vsel %vm893_vm1, %v1568_v12, 0 }
 0x101   :  { %v2707_v52 = vpop.f32.mrf.mxu0  ;;  %v2709_v53 = vpop.f32.mrf.mxu1 }
 0x102   :  { %v717_v55 = vpop.f32.mrf.mxu3  ;;  %v864_v44 = vpack.c.bf16 %v2707_v52, %v2707_v52  ;;  %v866_v45 = vpack.c.bf16 %v2709_v53, %v2709_v53 }
 0x103   :  { %v863_v10 = vpack.c.bf16 %v717_v55, %v717_v55 }
 0x104   :  { %2215 = vmatmul.msk.bf16.vlgmr.msrb.gmra.mxu0 %vm102_vm0, %v2619_v60  ;;  %2217 = vmatmul.msk.bf16.vlgmr.msrb.gmra.mxu1 %vm102_vm0, %v2619_v60  ;;  %v695_v54 = vpop.f32.mrf.mxu2  ;;  %v1647_v52 = vunpack.c.l.b16 %v864_v44  ;;  %v1674_v53 = vunpack.c.l.b16 %v866_v45 }
 0x105   :  { %1444 = vmatpush.bf16.msrb.mxu0 %v1435_v38  ;;  %1471 = vmatpush.bf16.msrb.mxu1 %v1462_v39  ;;  %v861_v9 = vpack.c.bf16 %v695_v54, %v695_v54  ;;  %v1621_v3 = vunpack.c.l.b16 %v863_v10 }
 0x107   :  { %v1594_v19 = vunpack.c.l.b16 %v861_v9  ;;  %v1622_v25 = vpack.c.b16 %v1621_v3, %v1620_v18 }
 0x109   :  { %v2715_v56 = vpop.f32.mrf.mxu0  ;;  %v2717_v57 = vpop.f32.mrf.mxu1  ;;  %v1595_v24 = vpack.c.b16 %v1594_v19, %v1593_v17  ;;  %v1624_v31 = vsel %vm893_vm1, %v1622_v25, 0 }
 0x10a   :  { %v2725_v6 = vpop.f32.mrf.mxu3  ;;  %v865_v46 = vpack.c.bf16 %v2715_v56, %v2715_v56  ;;  %v867_v47 = vpack.c.bf16 %v2717_v57, %v2717_v57 }
 0x10b   :  { %v1597_v30 = vsel %vm893_vm1, %v1595_v24, 0  ;;  %v870_v57 = vpack.c.bf16 %v2725_v6, %v2725_v6 }
 0x10c   :  { %v2723_v4 = vpop.f32.mrf.mxu2  ;;  %v1648_v54 = vunpack.c.l.b16 %v865_v46  ;;  %v1675_v55 = vunpack.c.l.b16 %v867_v47 }
 0x10d   :  { %2219 = vmatmul.msk.bf16.vlgmr.msrb.gmra.mxu2 %vm102_vm0, %v2619_v60  ;;  %2221 = vmatmul.msk.bf16.vlgmr.msrb.gmra.mxu3 %vm102_vm0, %v2619_v60  ;;  %v868_v56 = vpack.c.bf16 %v2723_v4, %v2723_v4  ;;  %v1728_v10 = vunpack.c.l.b16 %v870_v57 }
 0x10e   :  { %1498 = vmatpush.bf16.msrb.mxu2 %v1489_v50  ;;  %1525 = vmatpush.bf16.msrb.mxu3 %v1516_v51  ;;  %v1649_v1 = vpack.c.b16 %v1648_v54, %v1647_v52  ;;  %v1676_v2 = vpack.c.b16 %v1675_v55, %v1674_v53 }
 0x10f   :  { %v1701_v9 = vunpack.c.l.b16 %v868_v56 }
 0x112   :  { %v2743_v23 = vpop.f32.mrf.mxu3 }
 0x113   :  { %v871_v62 = vpack.c.bf16 %v2743_v23, %v2743_v23 }
 0x114   :  { %2216 = vmatmul.msk.bf16.gmra.mxu0 %vm102_vm0, %v2637_v29  ;;  %2218 = vmatmul.msk.bf16.gmra.mxu1 %vm102_vm0, %v2637_v29  ;;  %v2741_v22 = vpop.f32.mrf.mxu2 }
 0x115   :  { %v869_v61 = vpack.c.bf16 %v2741_v22, %v2741_v22  ;;  %v1729_v12 = vunpack.c.l.b16 %v871_v62 }
 0x117   :  { %v1702_v11 = vunpack.c.l.b16 %v869_v61  ;;  %v1730_v18 = vpack.c.b16 %v1729_v12, %v1728_v10 }
 0x119   :  { %v1703_v17 = vpack.c.b16 %v1702_v11, %v1701_v9  ;;  %v1732_v25 = vsel %vm893_vm1, %v1730_v18, 0 }
 0x11b   :  { %v1705_v24 = vsel %vm893_vm1, %v1703_v17, 0 }
 0x11d   :  { %2220 = vmatmul.msk.bf16.gmra.mxu2 %vm102_vm0, %v2637_v29  ;;  %2222 = vmatmul.msk.bf16.gmra.mxu3 %vm102_vm0, %v2637_v29 }
 0x121   :  { %v906_v13 = vpop.f32.mrf.mxu0  ;;  %v933_v14 = vpop.f32.mrf.mxu1 }
 0x122   :  { %v1753_v15 = vpack.c.bf16 %v906_v13, %v906_v13  ;;  %v1757_v16 = vpack.c.bf16 %v933_v14, %v933_v14  ;;  %v1651_v13 = vsel %vm893_vm1, %v1649_v1, 0  ;;  %v1678_v14 = vsel %vm893_vm1, %v1676_v2, 0 }
 0x124   :  { %2223 = vmatmul.msk.bf16.vlgmr.msra.gmra.mxu0 %vm102_vm0, %v2619_v60  ;;  %2225 = vmatmul.msk.bf16.vlgmr.msra.gmra.mxu1 %vm102_vm0, %v2619_v60  ;;  %1882 = vst.msk [vmem:[%s3334_s3] sm:$0xf] %vm1881_vm2, %v1753_v15 }
 0x125   :  { %1552 = vmatpush.bf16.msra.mxu0 %v1543_v20  ;;  %1579 = vmatpush.bf16.msra.mxu1 %v1570_v21  ;;  %1887 = vst.msk [vmem:[%s3334_s3 + $0x10] sm:$0xf] %vm1881_vm2, %v1757_v16 }
 0x129   :  { %v908_v26 = vpop.f32.mrf.mxu0  ;;  %v935_v27 = vpop.f32.mrf.mxu1 }
 0x12a   :  { %v1754_v5 = vpack.c.bf16 %v908_v26, %v908_v26  ;;  %v1758_v28 = vpack.c.bf16 %v935_v27, %v935_v27 }
 0x12c   :  { %1883 = vst.msk [vmem:[%s3334_s3 + $0x4] sm:$0xf] %vm1881_vm2, %v1754_v5 }
 0x12d   :  { %2227 = vmatmul.msk.bf16.vlgmr.msra.gmra.mxu2 %vm102_vm0, %v2619_v60  ;;  %2229 = vmatmul.msk.bf16.vlgmr.msra.gmra.mxu3 %vm102_vm0, %v2619_v60  ;;  %1888 = vst.msk [vmem:[%s3334_s3 + $0x14] sm:$0xf] %vm1881_vm2, %v1758_v28 }
 0x12e   :  { %1606 = vmatpush.bf16.msra.mxu2 %v1597_v30  ;;  %1633 = vmatpush.bf16.msra.mxu3 %v1624_v31 }
 0x130   :  { %v960_v32 = vpop.f32.mrf.mxu2  ;;  %v987_v33 = vpop.f32.mrf.mxu3 }
 0x131   :  { %v1761_v34 = vpack.c.bf16 %v960_v32, %v960_v32  ;;  %v1765_v35 = vpack.c.bf16 %v987_v33, %v987_v33  ;;  %v911_v36 = vpop.f32.mrf.mxu0  ;;  %v938_v37 = vpop.f32.mrf.mxu1 }
 0x132   :  { %v1755_v38 = vpack.c.bf16 %v911_v36, %v911_v36  ;;  %v1759_v39 = vpack.c.bf16 %v938_v37, %v938_v37 }
 0x133   :  { %1891 = vst.msk [vmem:[%s3334_s3 + $0x20] sm:$0xf] %vm1881_vm2, %v1761_v34 }
 0x134   :  { %1895 = vst.msk [vmem:[%s3334_s3 + $0x30] sm:$0xf] %vm1881_vm2, %v1765_v35  ;;  %2224 = vmatmul.msk.bf16.gmra.mxu0 %vm102_vm0, %v2637_v29  ;;  %2226 = vmatmul.msk.bf16.gmra.mxu1 %vm102_vm0, %v2637_v29 }
 0x135   :  { %1884 = vst.msk [vmem:[%s3334_s3 + $0x8] sm:$0xf] %vm1881_vm2, %v1755_v38 }
 0x136   :  { %1889 = vst.msk [vmem:[%s3334_s3 + $0x18] sm:$0xf] %vm1881_vm2, %v1759_v39 }
 0x138   :  { %v962_v40 = vpop.f32.mrf.mxu2  ;;  %v989_v41 = vpop.f32.mrf.mxu3 }
 0x139   :  { %v1762_v42 = vpack.c.bf16 %v962_v40, %v962_v40  ;;  %v1766_v43 = vpack.c.bf16 %v989_v41, %v989_v41  ;;  %v913_v48 = vpop.f32.mrf.mxu0  ;;  %v940_v49 = vpop.f32.mrf.mxu1 }
 0x13a   :  { %v1756_v50 = vpack.c.bf16 %v913_v48, %v913_v48  ;;  %v1760_v51 = vpack.c.bf16 %v940_v49, %v940_v49 }
 0x13b   :  { %1892 = vst.msk [vmem:[%s3334_s3 + $0x24] sm:$0xf] %vm1881_vm2, %v1762_v42 }
 0x13c   :  { %1896 = vst.msk [vmem:[%s3334_s3 + $0x34] sm:$0xf] %vm1881_vm2, %v1766_v43 }
 0x13d   :  { %2228 = vmatmul.msk.bf16.gmra.mxu2 %vm102_vm0, %v2637_v29  ;;  %2230 = vmatmul.msk.bf16.gmra.mxu3 %vm102_vm0, %v2637_v29  ;;  %1886 = vst.msk [vmem:[%s3334_s3 + $0xc] sm:$0x3] %vm1885_vm3, %v1756_v50 }
 0x13e   :  { %1890 = vst.msk [vmem:[%s3334_s3 + $0x1c] sm:$0x3] %vm1885_vm3, %v1760_v51 }
 0x140   :  { %v965_v58 = vpop.f32.mrf.mxu2  ;;  %v992_v59 = vpop.f32.mrf.mxu3 }
 0x141   :  { %v1763_v63 = vpack.c.bf16 %v965_v58, %v965_v58  ;;  %v1767_v0 = vpack.c.bf16 %v992_v59, %v992_v59  ;;  %v1014_v4 = vpop.f32.mrf.mxu0  ;;  %v1041_v7 = vpop.f32.mrf.mxu1 }
 0x142   :  { %v1769_v6 = vpack.c.bf16 %v1014_v4, %v1014_v4  ;;  %v1773_v8 = vpack.c.bf16 %v1041_v7, %v1041_v7 }
 0x143   :  { %1893 = vst.msk [vmem:[%s3334_s3 + $0x28] sm:$0xf] %vm1881_vm2, %v1763_v63 }
 0x144   :  { %1897 = vst.msk [vmem:[%s3334_s3 + $0x38] sm:$0xf] %vm1881_vm2, %v1767_v0  ;;  %2231 = vmatmul.msk.bf16.vlgmr.msrb.gmra.mxu0 %vm102_vm0, %v2619_v60  ;;  %2233 = vmatmul.msk.bf16.vlgmr.msrb.gmra.mxu1 %vm102_vm0, %v2619_v60 }
 0x145   :  { %1899 = vst.msk [vmem:[%s3334_s3 + $0x40] sm:$0xf] %vm1881_vm2, %v1769_v6  ;;  %1660 = vmatpush.bf16.msrb.mxu0 %v1651_v13  ;;  %1687 = vmatpush.bf16.msrb.mxu1 %v1678_v14 }
 0x146   :  { %1903 = vst.msk [vmem:[%s3334_s3 + $0x50] sm:$0xf] %vm1881_vm2, %v1773_v8 }
 0x148   :  { %v967_v15 = vpop.f32.mrf.mxu2  ;;  %v994_v16 = vpop.f32.mrf.mxu3 }
 0x149   :  { %v1764_v19 = vpack.c.bf16 %v967_v15, %v967_v15  ;;  %v1768_v3 = vpack.c.bf16 %v994_v16, %v994_v16  ;;  %v1016_v20 = vpop.f32.mrf.mxu0  ;;  %v1043_v21 = vpop.f32.mrf.mxu1 }
 0x14a   :  { %v1770_v22 = vpack.c.bf16 %v1016_v20, %v1016_v20  ;;  %v1774_v23 = vpack.c.bf16 %v1043_v21, %v1043_v21 }
 0x14b   :  { %1894 = vst.msk [vmem:[%s3334_s3 + $0x2c] sm:$0x3] %vm1885_vm3, %v1764_v19 }
 0x14c   :  { %1898 = vst.msk [vmem:[%s3334_s3 + $0x3c] sm:$0x3] %vm1885_vm3, %v1768_v3 }
 0x14d   :  { %2235 = vmatmul.msk.bf16.vlgmr.msrb.gmra.mxu2 %vm102_vm0, %v2619_v60  ;;  %2237 = vmatmul.msk.bf16.vlgmr.msrb.gmra.mxu3 %vm102_vm0, %v2619_v60  ;;  %1900 = vst.msk [vmem:[%s3334_s3 + $0x44] sm:$0xf] %vm1881_vm2, %v1770_v22 }
 0x14e   :  { %1714 = vmatpush.bf16.msrb.mxu2 %v1705_v24  ;;  %1741 = vmatpush.bf16.msrb.mxu3 %v1732_v25  ;;  %1904 = vst.msk [vmem:[%s3334_s3 + $0x54] sm:$0xf] %vm1881_vm2, %v1774_v23 }
 0x150   :  { %v1068_v26 = vpop.f32.mrf.mxu2  ;;  %v1095_v27 = vpop.f32.mrf.mxu3 }
 0x151   :  { %v1777_v5 = vpack.c.bf16 %v1068_v26, %v1068_v26  ;;  %v1781_v28 = vpack.c.bf16 %v1095_v27, %v1095_v27  ;;  %v1019_v30 = vpop.f32.mrf.mxu0  ;;  %v1046_v31 = vpop.f32.mrf.mxu1 }
 0x152   :  { %v1771_v32 = vpack.c.bf16 %v1019_v30, %v1019_v30  ;;  %v1775_v33 = vpack.c.bf16 %v1046_v31, %v1046_v31 }
 0x153   :  { %1907 = vst.msk [vmem:[%s3334_s3 + $0x60] sm:$0xf] %vm1881_vm2, %v1777_v5 }
 0x154   :  { %1911 = vst.msk [vmem:[%s3334_s3 + $0x70] sm:$0xf] %vm1881_vm2, %v1781_v28  ;;  %2232 = vmatmul.msk.bf16.gmra.mxu0 %vm102_vm0, %v2637_v29  ;;  %2234 = vmatmul.msk.bf16.gmra.mxu1 %vm102_vm0, %v2637_v29 }
 0x155   :  { %1901 = vst.msk [vmem:[%s3334_s3 + $0x48] sm:$0xf] %vm1881_vm2, %v1771_v32 }
 0x156   :  { %1905 = vst.msk [vmem:[%s3334_s3 + $0x58] sm:$0xf] %vm1881_vm2, %v1775_v33 }
 0x158   :  { %v1070_v34 = vpop.f32.mrf.mxu2  ;;  %v1097_v35 = vpop.f32.mrf.mxu3 }
 0x159   :  { %v1778_v36 = vpack.c.bf16 %v1070_v34, %v1070_v34  ;;  %v1782_v37 = vpack.c.bf16 %v1097_v35, %v1097_v35  ;;  %v1021_v38 = vpop.f32.mrf.mxu0  ;;  %v1048_v39 = vpop.f32.mrf.mxu1 }
 0x15a   :  { %v1772_v40 = vpack.c.bf16 %v1021_v38, %v1021_v38  ;;  %v1776_v41 = vpack.c.bf16 %v1048_v39, %v1048_v39 }
 0x15b   :  { %1908 = vst.msk [vmem:[%s3334_s3 + $0x64] sm:$0xf] %vm1881_vm2, %v1778_v36 }
 0x15c   :  { %1912 = vst.msk [vmem:[%s3334_s3 + $0x74] sm:$0xf] %vm1881_vm2, %v1782_v37 }
 0x15d   :  { %2236 = vmatmul.msk.bf16.gmra.mxu2 %vm102_vm0, %v2637_v29  ;;  %2238 = vmatmul.msk.bf16.gmra.mxu3 %vm102_vm0, %v2637_v29  ;;  %1902 = vst.msk [vmem:[%s3334_s3 + $0x4c] sm:$0x3] %vm1885_vm3, %v1772_v40 }
 0x15e   :  { %1906 = vst.msk [vmem:[%s3334_s3 + $0x5c] sm:$0x3] %vm1885_vm3, %v1776_v41 }
 0x160   :  { %v1073_v42 = vpop.f32.mrf.mxu2  ;;  %v1100_v43 = vpop.f32.mrf.mxu3 }
 0x161   :  { %v1779_v44 = vpack.c.bf16 %v1073_v42, %v1073_v42  ;;  %v1783_v45 = vpack.c.bf16 %v1100_v43, %v1100_v43  ;;  %v1122_v46 = vpop.f32.mrf.mxu0  ;;  %v1149_v47 = vpop.f32.mrf.mxu1 }
 0x162   :  { %v1785_v48 = vpack.c.bf16 %v1122_v46, %v1122_v46  ;;  %v1789_v49 = vpack.c.bf16 %v1149_v47, %v1149_v47 }
 0x163   :  { %1909 = vst.msk [vmem:[%s3334_s3 + $0x68] sm:$0xf] %vm1881_vm2, %v1779_v44 }
 0x164   :  { %1913 = vst.msk [vmem:[%s3334_s3 + $0x78] sm:$0xf] %vm1881_vm2, %v1783_v45  ;;  %2239 = vmatmul.msk.bf16.vlgmr.msra.gmra.mxu0 %vm102_vm0, %v2619_v60  ;;  %2241 = vmatmul.msk.bf16.vlgmr.msra.gmra.mxu1 %vm102_vm0, %v2619_v60 }
 0x165   :  { %1915 = vst.msk [vmem:[%s3334_s3 + $0x80] sm:$0xf] %vm1881_vm2, %v1785_v48 }
 0x166   :  { %1919 = vst.msk [vmem:[%s3334_s3 + $0x90] sm:$0xf] %vm1881_vm2, %v1789_v49 }
 0x168   :  { %v1075_v50 = vpop.f32.mrf.mxu2  ;;  %v1102_v51 = vpop.f32.mrf.mxu3 }
 0x169   :  { %v1780_v52 = vpack.c.bf16 %v1075_v50, %v1075_v50  ;;  %v1784_v53 = vpack.c.bf16 %v1102_v51, %v1102_v51  ;;  %v1124_v54 = vpop.f32.mrf.mxu0  ;;  %v1151_v55 = vpop.f32.mrf.mxu1 }
 0x16a   :  { %v1786_v56 = vpack.c.bf16 %v1124_v54, %v1124_v54  ;;  %v1790_v57 = vpack.c.bf16 %v1151_v55, %v1151_v55 }
 0x16b   :  { %1910 = vst.msk [vmem:[%s3334_s3 + $0x6c] sm:$0x3] %vm1885_vm3, %v1780_v52 }
 0x16c   :  { %1914 = vst.msk [vmem:[%s3334_s3 + $0x7c] sm:$0x3] %vm1885_vm3, %v1784_v53 }
 0x16d   :  { %2243 = vmatmul.msk.bf16.vlgmr.msra.gmra.mxu2 %vm102_vm0, %v2619_v60  ;;  %2245 = vmatmul.msk.bf16.vlgmr.msra.gmra.mxu3 %vm102_vm0, %v2619_v60  ;;  %1916 = vst.msk [vmem:[%s3334_s3 + $0x84] sm:$0xf] %vm1881_vm2, %v1786_v56 }
 0x16e   :  { %1920 = vst.msk [vmem:[%s3334_s3 + $0x94] sm:$0xf] %vm1881_vm2, %v1790_v57 }
 0x170   :  { %v1176_v58 = vpop.f32.mrf.mxu2  ;;  %v1203_v59 = vpop.f32.mrf.mxu3 }
 0x171   :  { %v1793_v61 = vpack.c.bf16 %v1176_v58, %v1176_v58  ;;  %v1797_v62 = vpack.c.bf16 %v1203_v59, %v1203_v59  ;;  %v1127_v63 = vpop.f32.mrf.mxu0  ;;  %v1154_v0 = vpop.f32.mrf.mxu1 }
 0x172   :  { %v1787_v1 = vpack.c.bf16 %v1127_v63, %v1127_v63  ;;  %v1791_v2 = vpack.c.bf16 %v1154_v0, %v1154_v0 }
 0x173   :  { %1923 = vst.msk [vmem:[%s3334_s3 + $0xa0] sm:$0xf] %vm1881_vm2, %v1793_v61 }
 0x174   :  { %1927 = vst.msk [vmem:[%s3334_s3 + $0xb0] sm:$0xf] %vm1881_vm2, %v1797_v62  ;;  %2240 = vmatmul.msk.bf16.gmra.mxu0 %vm102_vm0, %v2637_v29  ;;  %2242 = vmatmul.msk.bf16.gmra.mxu1 %vm102_vm0, %v2637_v29 }
 0x175   :  { %1917 = vst.msk [vmem:[%s3334_s3 + $0x88] sm:$0xf] %vm1881_vm2, %v1787_v1 }
 0x176   :  { %1921 = vst.msk [vmem:[%s3334_s3 + $0x98] sm:$0xf] %vm1881_vm2, %v1791_v2 }
 0x178   :  { %v1178_v4 = vpop.f32.mrf.mxu2  ;;  %v1205_v7 = vpop.f32.mrf.mxu3 }
 0x179   :  { %v1794_v6 = vpack.c.bf16 %v1178_v4, %v1178_v4  ;;  %v1798_v8 = vpack.c.bf16 %v1205_v7, %v1205_v7  ;;  %v1129_v9 = vpop.f32.mrf.mxu0  ;;  %v1156_v10 = vpop.f32.mrf.mxu1 }
 0x17a   :  { %v1788_v11 = vpack.c.bf16 %v1129_v9, %v1129_v9  ;;  %v1792_v12 = vpack.c.bf16 %v1156_v10, %v1156_v10 }
 0x17b   :  { %1924 = vst.msk [vmem:[%s3334_s3 + $0xa4] sm:$0xf] %vm1881_vm2, %v1794_v6 }
 0x17c   :  { %1928 = vst.msk [vmem:[%s3334_s3 + $0xb4] sm:$0xf] %vm1881_vm2, %v1798_v8 }
 0x17d   :  { %2244 = vmatmul.msk.bf16.gmra.mxu2 %vm102_vm0, %v2637_v29  ;;  %2246 = vmatmul.msk.bf16.gmra.mxu3 %vm102_vm0, %v2637_v29  ;;  %1918 = vst.msk [vmem:[%s3334_s3 + $0x8c] sm:$0x3] %vm1885_vm3, %v1788_v11 }
 0x17e   :  { %1922 = vst.msk [vmem:[%s3334_s3 + $0x9c] sm:$0x3] %vm1885_vm3, %v1792_v12 }
 0x180   :  { %v1181_v13 = vpop.f32.mrf.mxu2  ;;  %v1208_v14 = vpop.f32.mrf.mxu3 }
 0x181   :  { %v1795_v15 = vpack.c.bf16 %v1181_v13, %v1181_v13  ;;  %v1799_v16 = vpack.c.bf16 %v1208_v14, %v1208_v14  ;;  %v1230_v17 = vpop.f32.mrf.mxu0  ;;  %v1257_v18 = vpop.f32.mrf.mxu1 }
 0x182   :  { %v1801_v19 = vpack.c.bf16 %v1230_v17, %v1230_v17  ;;  %v1805_v3 = vpack.c.bf16 %v1257_v18, %v1257_v18 }
 0x183   :  { %1925 = vst.msk [vmem:[%s3334_s3 + $0xa8] sm:$0xf] %vm1881_vm2, %v1795_v15 }
 0x184   :  { %1929 = vst.msk [vmem:[%s3334_s3 + $0xb8] sm:$0xf] %vm1881_vm2, %v1799_v16  ;;  %2247 = vmatmul.msk.bf16.vlgmr.msrb.gmra.mxu0 %vm102_vm0, %v2619_v60  ;;  %2249 = vmatmul.msk.bf16.vlgmr.msrb.gmra.mxu1 %vm102_vm0, %v2619_v60 }
 0x185   :  { %1931 = vst.msk [vmem:[%s3334_s3 + $0xc0] sm:$0xf] %vm1881_vm2, %v1801_v19 }
 0x186   :  { %1935 = vst.msk [vmem:[%s3334_s3 + $0xd0] sm:$0xf] %vm1881_vm2, %v1805_v3 }
 0x188   :  { %v1183_v20 = vpop.f32.mrf.mxu2  ;;  %v1210_v21 = vpop.f32.mrf.mxu3 }
 0x189   :  { %v1796_v22 = vpack.c.bf16 %v1183_v20, %v1183_v20  ;;  %v1800_v23 = vpack.c.bf16 %v1210_v21, %v1210_v21  ;;  %v1232_v24 = vpop.f32.mrf.mxu0  ;;  %v1259_v25 = vpop.f32.mrf.mxu1 }
 0x18a   :  { %v1802_v26 = vpack.c.bf16 %v1232_v24, %v1232_v24  ;;  %v1806_v27 = vpack.c.bf16 %v1259_v25, %v1259_v25 }
 0x18b   :  { %1926 = vst.msk [vmem:[%s3334_s3 + $0xac] sm:$0x3] %vm1885_vm3, %v1796_v22 }
 0x18c   :  { %1930 = vst.msk [vmem:[%s3334_s3 + $0xbc] sm:$0x3] %vm1885_vm3, %v1800_v23 }
 0x18d   :  { %2251 = vmatmul.msk.bf16.vlgmr.msrb.gmra.mxu2 %vm102_vm0, %v2619_v60  ;;  %2253 = vmatmul.msk.bf16.vlgmr.msrb.gmra.mxu3 %vm102_vm0, %v2619_v60  ;;  %1932 = vst.msk [vmem:[%s3334_s3 + $0xc4] sm:$0xf] %vm1881_vm2, %v1802_v26 }
 0x18e   :  { %1936 = vst.msk [vmem:[%s3334_s3 + $0xd4] sm:$0xf] %vm1881_vm2, %v1806_v27 }
 0x190   :  { %v1284_v5 = vpop.f32.mrf.mxu2  ;;  %v1311_v28 = vpop.f32.mrf.mxu3 }
 0x191   :  { %v1809_v30 = vpack.c.bf16 %v1284_v5, %v1284_v5  ;;  %v1813_v31 = vpack.c.bf16 %v1311_v28, %v1311_v28  ;;  %v1235_v60 = vpop.f32.mrf.mxu0  ;;  %v1262_v32 = vpop.f32.mrf.mxu1 }
 0x192   :  { %v1803_v33 = vpack.c.bf16 %v1235_v60, %v1235_v60  ;;  %v1807_v34 = vpack.c.bf16 %v1262_v32, %v1262_v32 }
 0x193   :  { %1939 = vst.msk [vmem:[%s3334_s3 + $0xe0] sm:$0xf] %vm1881_vm2, %v1809_v30 }
 0x194   :  { %1943 = vst.msk [vmem:[%s3334_s3 + $0xf0] sm:$0xf] %vm1881_vm2, %v1813_v31  ;;  %2248 = vmatmul.msk.bf16.gmra.mxu0 %vm102_vm0, %v2637_v29  ;;  %2250 = vmatmul.msk.bf16.gmra.mxu1 %vm102_vm0, %v2637_v29 }
 0x195   :  { %1933 = vst.msk [vmem:[%s3334_s3 + $0xc8] sm:$0xf] %vm1881_vm2, %v1803_v33 }
 0x196   :  { %1937 = vst.msk [vmem:[%s3334_s3 + $0xd8] sm:$0xf] %vm1881_vm2, %v1807_v34 }
 0x198   :  { %v1286_v35 = vpop.f32.mrf.mxu2  ;;  %v1313_v36 = vpop.f32.mrf.mxu3 }
 0x199   :  { %v1810_v37 = vpack.c.bf16 %v1286_v35, %v1286_v35  ;;  %v1814_v38 = vpack.c.bf16 %v1313_v36, %v1313_v36  ;;  %v1237_v39 = vpop.f32.mrf.mxu0  ;;  %v1264_v40 = vpop.f32.mrf.mxu1 }
 0x19a   :  { %v1804_v41 = vpack.c.bf16 %v1237_v39, %v1237_v39  ;;  %v1808_v42 = vpack.c.bf16 %v1264_v40, %v1264_v40 }
 0x19b   :  { %1940 = vst.msk [vmem:[%s3334_s3 + $0xe4] sm:$0xf] %vm1881_vm2, %v1810_v37 }
 0x19c   :  { %1944 = vst.msk [vmem:[%s3334_s3 + $0xf4] sm:$0xf] %vm1881_vm2, %v1814_v38 }
 0x19d   :  { %2252 = vmatmul.msk.bf16.gmra.mxu2 %vm102_vm0, %v2637_v29  ;;  %2254 = vmatmul.msk.bf16.gmra.mxu3 %vm102_vm0, %v2637_v29  ;;  %1934 = vst.msk [vmem:[%s3334_s3 + $0xcc] sm:$0x3] %vm1885_vm3, %v1804_v41 }
 0x19e   :  { %1938 = vst.msk [vmem:[%s3334_s3 + $0xdc] sm:$0x3] %vm1885_vm3, %v1808_v42 }
 0x1a0   :  { %v1289_v43 = vpop.f32.mrf.mxu2  ;;  %v1316_v44 = vpop.f32.mrf.mxu3 }
 0x1a1   :  { %v1811_v45 = vpack.c.bf16 %v1289_v43, %v1289_v43  ;;  %v1815_v46 = vpack.c.bf16 %v1316_v44, %v1316_v44  ;;  %v1338_v29 = vpop.f32.mrf.mxu0  ;;  %v1365_v47 = vpop.f32.mrf.mxu1 }
 0x1a2   :  { %v1817_v48 = vpack.c.bf16 %v1338_v29, %v1338_v29  ;;  %v1821_v49 = vpack.c.bf16 %v1365_v47, %v1365_v47 }
 0x1a3   :  { %1941 = vst.msk [vmem:[%s3334_s3 + $0xe8] sm:$0xf] %vm1881_vm2, %v1811_v45 }
 0x1a4   :  { %1945 = vst.msk [vmem:[%s3334_s3 + $0xf8] sm:$0xf] %vm1881_vm2, %v1815_v46 }
 0x1a5   :  { %1947 = vst.msk [vmem:[%s3334_s3 + $0x100] sm:$0xf] %vm1881_vm2, %v1817_v48 }
 0x1a6   :  { %1951 = vst.msk [vmem:[%s3334_s3 + $0x110] sm:$0xf] %vm1881_vm2, %v1821_v49 }
 0x1a8   :  { %v1291_v50 = vpop.f32.mrf.mxu2  ;;  %v1318_v51 = vpop.f32.mrf.mxu3 }
 0x1a9   :  { %v1812_v52 = vpack.c.bf16 %v1291_v50, %v1291_v50  ;;  %v1816_v53 = vpack.c.bf16 %v1318_v51, %v1318_v51  ;;  %v1340_v54 = vpop.f32.mrf.mxu0  ;;  %v1367_v55 = vpop.f32.mrf.mxu1 }
 0x1aa   :  { %v1818_v56 = vpack.c.bf16 %v1340_v54, %v1340_v54  ;;  %v1822_v57 = vpack.c.bf16 %v1367_v55, %v1367_v55 }
 0x1ab   :  { %1942 = vst.msk [vmem:[%s3334_s3 + $0xec] sm:$0x3] %vm1885_vm3, %v1812_v52 }
 0x1ac   :  { %1946 = vst.msk [vmem:[%s3334_s3 + $0xfc] sm:$0x3] %vm1885_vm3, %v1816_v53 }
 0x1ad   :  { %1948 = vst.msk [vmem:[%s3334_s3 + $0x104] sm:$0xf] %vm1881_vm2, %v1818_v56 }
 0x1ae   :  { %1952 = vst.msk [vmem:[%s3334_s3 + $0x114] sm:$0xf] %vm1881_vm2, %v1822_v57 }
 0x1b0   :  { %v1392_v58 = vpop.f32.mrf.mxu2  ;;  %v1419_v59 = vpop.f32.mrf.mxu3 }
 0x1b1   :  { %v1825_v61 = vpack.c.bf16 %v1392_v58, %v1392_v58  ;;  %v1829_v62 = vpack.c.bf16 %v1419_v59, %v1419_v59  ;;  %v1343_v63 = vpop.f32.mrf.mxu0  ;;  %v1370_v0 = vpop.f32.mrf.mxu1 }
 0x1b2   :  { %v1819_v1 = vpack.c.bf16 %v1343_v63, %v1343_v63  ;;  %v1823_v2 = vpack.c.bf16 %v1370_v0, %v1370_v0 }
 0x1b3   :  { %1955 = vst.msk [vmem:[%s3334_s3 + $0x120] sm:$0xf] %vm1881_vm2, %v1825_v61 }
 0x1b4   :  { %1959 = vst.msk [vmem:[%s3334_s3 + $0x130] sm:$0xf] %vm1881_vm2, %v1829_v62 }
 0x1b5   :  { %1949 = vst.msk [vmem:[%s3334_s3 + $0x108] sm:$0xf] %vm1881_vm2, %v1819_v1 }
 0x1b6   :  { %1953 = vst.msk [vmem:[%s3334_s3 + $0x118] sm:$0xf] %vm1881_vm2, %v1823_v2 }
 0x1b8   :  { %v1394_v4 = vpop.f32.mrf.mxu2  ;;  %v1421_v7 = vpop.f32.mrf.mxu3 }
 0x1b9   :  { %v1826_v6 = vpack.c.bf16 %v1394_v4, %v1394_v4  ;;  %v1830_v8 = vpack.c.bf16 %v1421_v7, %v1421_v7  ;;  %v1345_v9 = vpop.f32.mrf.mxu0  ;;  %v1372_v10 = vpop.f32.mrf.mxu1 }
 0x1ba   :  { %v1820_v11 = vpack.c.bf16 %v1345_v9, %v1345_v9  ;;  %v1824_v12 = vpack.c.bf16 %v1372_v10, %v1372_v10 }
 0x1bb   :  { %1956 = vst.msk [vmem:[%s3334_s3 + $0x124] sm:$0xf] %vm1881_vm2, %v1826_v6 }
 0x1bc   :  { %1960 = vst.msk [vmem:[%s3334_s3 + $0x134] sm:$0xf] %vm1881_vm2, %v1830_v8 }
 0x1bd   :  { %1950 = vst.msk [vmem:[%s3334_s3 + $0x10c] sm:$0x3] %vm1885_vm3, %v1820_v11 }
 0x1be   :  { %1954 = vst.msk [vmem:[%s3334_s3 + $0x11c] sm:$0x3] %vm1885_vm3, %v1824_v12 }
 0x1c0   :  { %v1397_v13 = vpop.f32.mrf.mxu2  ;;  %v1424_v14 = vpop.f32.mrf.mxu3 }
 0x1c1   :  { %v1827_v15 = vpack.c.bf16 %v1397_v13, %v1397_v13  ;;  %v1831_v16 = vpack.c.bf16 %v1424_v14, %v1424_v14  ;;  %v1446_v17 = vpop.f32.mrf.mxu0  ;;  %v1473_v18 = vpop.f32.mrf.mxu1 }
 0x1c2   :  { %v1833_v19 = vpack.c.bf16 %v1446_v17, %v1446_v17  ;;  %v1837_v3 = vpack.c.bf16 %v1473_v18, %v1473_v18 }
 0x1c3   :  { %1957 = vst.msk [vmem:[%s3334_s3 + $0x128] sm:$0xf] %vm1881_vm2, %v1827_v15 }
 0x1c4   :  { %1961 = vst.msk [vmem:[%s3334_s3 + $0x138] sm:$0xf] %vm1881_vm2, %v1831_v16 }
 0x1c5   :  { %1963 = vst.msk [vmem:[%s3334_s3 + $0x140] sm:$0xf] %vm1881_vm2, %v1833_v19 }
 0x1c6   :  { %1967 = vst.msk [vmem:[%s3334_s3 + $0x150] sm:$0xf] %vm1881_vm2, %v1837_v3 }
 0x1c8   :  { %v1399_v20 = vpop.f32.mrf.mxu2  ;;  %v1426_v21 = vpop.f32.mrf.mxu3 }
 0x1c9   :  { %v1828_v22 = vpack.c.bf16 %v1399_v20, %v1399_v20  ;;  %v1832_v23 = vpack.c.bf16 %v1426_v21, %v1426_v21  ;;  %v1448_v24 = vpop.f32.mrf.mxu0  ;;  %v1475_v25 = vpop.f32.mrf.mxu1 }
 0x1ca   :  { %v1834_v26 = vpack.c.bf16 %v1448_v24, %v1448_v24  ;;  %v1838_v27 = vpack.c.bf16 %v1475_v25, %v1475_v25 }
 0x1cb   :  { %1958 = vst.msk [vmem:[%s3334_s3 + $0x12c] sm:$0x3] %vm1885_vm3, %v1828_v22 }
 0x1cc   :  { %1962 = vst.msk [vmem:[%s3334_s3 + $0x13c] sm:$0x3] %vm1885_vm3, %v1832_v23 }
 0x1cd   :  { %1964 = vst.msk [vmem:[%s3334_s3 + $0x144] sm:$0xf] %vm1881_vm2, %v1834_v26 }
 0x1ce   :  { %1968 = vst.msk [vmem:[%s3334_s3 + $0x154] sm:$0xf] %vm1881_vm2, %v1838_v27 }
 0x1d0   :  { %v1500_v5 = vpop.f32.mrf.mxu2  ;;  %v1527_v28 = vpop.f32.mrf.mxu3 }
 0x1d1   :  { %v1841_v30 = vpack.c.bf16 %v1500_v5, %v1500_v5  ;;  %v1845_v31 = vpack.c.bf16 %v1527_v28, %v1527_v28  ;;  %v1451_v60 = vpop.f32.mrf.mxu0  ;;  %v1478_v32 = vpop.f32.mrf.mxu1 }
 0x1d2   :  { %v1835_v33 = vpack.c.bf16 %v1451_v60, %v1451_v60  ;;  %v1839_v34 = vpack.c.bf16 %v1478_v32, %v1478_v32 }
 0x1d3   :  { %1971 = vst.msk [vmem:[%s3334_s3 + $0x160] sm:$0xf] %vm1881_vm2, %v1841_v30 }
 0x1d4   :  { %1975 = vst.msk [vmem:[%s3334_s3 + $0x170] sm:$0xf] %vm1881_vm2, %v1845_v31 }
 0x1d5   :  { %1965 = vst.msk [vmem:[%s3334_s3 + $0x148] sm:$0xf] %vm1881_vm2, %v1835_v33 }
 0x1d6   :  { %1969 = vst.msk [vmem:[%s3334_s3 + $0x158] sm:$0xf] %vm1881_vm2, %v1839_v34 }
 0x1d8   :  { %v1502_v35 = vpop.f32.mrf.mxu2  ;;  %v1529_v36 = vpop.f32.mrf.mxu3 }
 0x1d9   :  { %v1842_v37 = vpack.c.bf16 %v1502_v35, %v1502_v35  ;;  %v1846_v38 = vpack.c.bf16 %v1529_v36, %v1529_v36  ;;  %v1453_v39 = vpop.f32.mrf.mxu0  ;;  %v1480_v40 = vpop.f32.mrf.mxu1 }
 0x1da   :  { %v1836_v41 = vpack.c.bf16 %v1453_v39, %v1453_v39  ;;  %v1840_v42 = vpack.c.bf16 %v1480_v40, %v1480_v40 }
 0x1db   :  { %1972 = vst.msk [vmem:[%s3334_s3 + $0x164] sm:$0xf] %vm1881_vm2, %v1842_v37 }
 0x1dc   :  { %1976 = vst.msk [vmem:[%s3334_s3 + $0x174] sm:$0xf] %vm1881_vm2, %v1846_v38 }
 0x1dd   :  { %1966 = vst.msk [vmem:[%s3334_s3 + $0x14c] sm:$0x3] %vm1885_vm3, %v1836_v41 }
 0x1de   :  { %1970 = vst.msk [vmem:[%s3334_s3 + $0x15c] sm:$0x3] %vm1885_vm3, %v1840_v42 }
 0x1e0   :  { %v1505_v43 = vpop.f32.mrf.mxu2  ;;  %v1532_v44 = vpop.f32.mrf.mxu3 }
 0x1e1   :  { %v1843_v45 = vpack.c.bf16 %v1505_v43, %v1505_v43  ;;  %v1847_v46 = vpack.c.bf16 %v1532_v44, %v1532_v44  ;;  %v1554_v29 = vpop.f32.mrf.mxu0  ;;  %v1581_v47 = vpop.f32.mrf.mxu1 }
 0x1e2   :  { %v1849_v48 = vpack.c.bf16 %v1554_v29, %v1554_v29  ;;  %v1853_v49 = vpack.c.bf16 %v1581_v47, %v1581_v47 }
 0x1e3   :  { %1973 = vst.msk [vmem:[%s3334_s3 + $0x168] sm:$0xf] %vm1881_vm2, %v1843_v45 }
 0x1e4   :  { %1977 = vst.msk [vmem:[%s3334_s3 + $0x178] sm:$0xf] %vm1881_vm2, %v1847_v46 }
 0x1e5   :  { %1979 = vst.msk [vmem:[%s3334_s3 + $0x180] sm:$0xf] %vm1881_vm2, %v1849_v48 }
 0x1e6   :  { %1983 = vst.msk [vmem:[%s3334_s3 + $0x190] sm:$0xf] %vm1881_vm2, %v1853_v49 }
 0x1e8   :  { %v1507_v50 = vpop.f32.mrf.mxu2  ;;  %v1534_v51 = vpop.f32.mrf.mxu3 }
 0x1e9   :  { %v1844_v52 = vpack.c.bf16 %v1507_v50, %v1507_v50  ;;  %v1848_v53 = vpack.c.bf16 %v1534_v51, %v1534_v51  ;;  %v1556_v54 = vpop.f32.mrf.mxu0  ;;  %v1583_v55 = vpop.f32.mrf.mxu1 }
 0x1ea   :  { %v1850_v56 = vpack.c.bf16 %v1556_v54, %v1556_v54  ;;  %v1854_v57 = vpack.c.bf16 %v1583_v55, %v1583_v55 }
 0x1eb   :  { %1974 = vst.msk [vmem:[%s3334_s3 + $0x16c] sm:$0x3] %vm1885_vm3, %v1844_v52 }
 0x1ec   :  { %1978 = vst.msk [vmem:[%s3334_s3 + $0x17c] sm:$0x3] %vm1885_vm3, %v1848_v53 }
 0x1ed   :  { %1980 = vst.msk [vmem:[%s3334_s3 + $0x184] sm:$0xf] %vm1881_vm2, %v1850_v56 }
 0x1ee   :  { %1984 = vst.msk [vmem:[%s3334_s3 + $0x194] sm:$0xf] %vm1881_vm2, %v1854_v57 }
 0x1f0   :  { %v1608_v58 = vpop.f32.mrf.mxu2  ;;  %v1635_v59 = vpop.f32.mrf.mxu3 }
 0x1f1   :  { %v1857_v61 = vpack.c.bf16 %v1608_v58, %v1608_v58  ;;  %v1861_v62 = vpack.c.bf16 %v1635_v59, %v1635_v59  ;;  %v1559_v63 = vpop.f32.mrf.mxu0  ;;  %v1586_v0 = vpop.f32.mrf.mxu1 }
 0x1f2   :  { %v1851_v1 = vpack.c.bf16 %v1559_v63, %v1559_v63  ;;  %v1855_v2 = vpack.c.bf16 %v1586_v0, %v1586_v0 }
 0x1f3   :  { %1987 = vst.msk [vmem:[%s3334_s3 + $0x1a0] sm:$0xf] %vm1881_vm2, %v1857_v61 }
 0x1f4   :  { %1991 = vst.msk [vmem:[%s3334_s3 + $0x1b0] sm:$0xf] %vm1881_vm2, %v1861_v62 }
 0x1f5   :  { %1981 = vst.msk [vmem:[%s3334_s3 + $0x188] sm:$0xf] %vm1881_vm2, %v1851_v1 }
 0x1f6   :  { %1985 = vst.msk [vmem:[%s3334_s3 + $0x198] sm:$0xf] %vm1881_vm2, %v1855_v2 }
 0x1f8   :  { %v1610_v4 = vpop.f32.mrf.mxu2  ;;  %v1637_v7 = vpop.f32.mrf.mxu3 }
 0x1f9   :  { %v1858_v6 = vpack.c.bf16 %v1610_v4, %v1610_v4  ;;  %v1862_v8 = vpack.c.bf16 %v1637_v7, %v1637_v7  ;;  %v1561_v9 = vpop.f32.mrf.mxu0  ;;  %v1588_v10 = vpop.f32.mrf.mxu1 }
 0x1fa   :  { %v1852_v11 = vpack.c.bf16 %v1561_v9, %v1561_v9  ;;  %v1856_v12 = vpack.c.bf16 %v1588_v10, %v1588_v10 }
 0x1fb   :  { %1988 = vst.msk [vmem:[%s3334_s3 + $0x1a4] sm:$0xf] %vm1881_vm2, %v1858_v6 }
 0x1fc   :  { %1992 = vst.msk [vmem:[%s3334_s3 + $0x1b4] sm:$0xf] %vm1881_vm2, %v1862_v8 }
 0x1fd   :  { %1982 = vst.msk [vmem:[%s3334_s3 + $0x18c] sm:$0x3] %vm1885_vm3, %v1852_v11 }
 0x1fe   :  { %1986 = vst.msk [vmem:[%s3334_s3 + $0x19c] sm:$0x3] %vm1885_vm3, %v1856_v12 }
 0x200   :  { %v1613_v13 = vpop.f32.mrf.mxu2  ;;  %v1640_v14 = vpop.f32.mrf.mxu3 }
 0x201   :  { %v1859_v15 = vpack.c.bf16 %v1613_v13, %v1613_v13  ;;  %v1863_v16 = vpack.c.bf16 %v1640_v14, %v1640_v14  ;;  %v1662_v17 = vpop.f32.mrf.mxu0  ;;  %v1689_v18 = vpop.f32.mrf.mxu1 }
 0x202   :  { %v1865_v19 = vpack.c.bf16 %v1662_v17, %v1662_v17  ;;  %v1869_v3 = vpack.c.bf16 %v1689_v18, %v1689_v18 }
 0x203   :  { %1989 = vst.msk [vmem:[%s3334_s3 + $0x1a8] sm:$0xf] %vm1881_vm2, %v1859_v15 }
 0x204   :  { %1993 = vst.msk [vmem:[%s3334_s3 + $0x1b8] sm:$0xf] %vm1881_vm2, %v1863_v16 }
 0x205   :  { %1995 = vst.msk [vmem:[%s3334_s3 + $0x1c0] sm:$0xf] %vm1881_vm2, %v1865_v19 }
 0x206   :  { %1999 = vst.msk [vmem:[%s3334_s3 + $0x1d0] sm:$0xf] %vm1881_vm2, %v1869_v3 }
 0x208   :  { %v1615_v20 = vpop.f32.mrf.mxu2  ;;  %v1642_v21 = vpop.f32.mrf.mxu3 }
 0x209   :  { %v1860_v22 = vpack.c.bf16 %v1615_v20, %v1615_v20  ;;  %v1864_v23 = vpack.c.bf16 %v1642_v21, %v1642_v21  ;;  %v1664_v24 = vpop.f32.mrf.mxu0  ;;  %v1691_v25 = vpop.f32.mrf.mxu1 }
 0x20a   :  { %v1866_v26 = vpack.c.bf16 %v1664_v24, %v1664_v24  ;;  %v1870_v27 = vpack.c.bf16 %v1691_v25, %v1691_v25 }
 0x20b   :  { %1990 = vst.msk [vmem:[%s3334_s3 + $0x1ac] sm:$0x3] %vm1885_vm3, %v1860_v22 }
 0x20c   :  { %1994 = vst.msk [vmem:[%s3334_s3 + $0x1bc] sm:$0x3] %vm1885_vm3, %v1864_v23 }
 0x20d   :  { %1996 = vst.msk [vmem:[%s3334_s3 + $0x1c4] sm:$0xf] %vm1881_vm2, %v1866_v26 }
 0x20e   :  { %2000 = vst.msk [vmem:[%s3334_s3 + $0x1d4] sm:$0xf] %vm1881_vm2, %v1870_v27 }
 0x210   :  { %v1716_v5 = vpop.f32.mrf.mxu2  ;;  %v1743_v28 = vpop.f32.mrf.mxu3 }
 0x211   :  { %v1873_v30 = vpack.c.bf16 %v1716_v5, %v1716_v5  ;;  %v1877_v31 = vpack.c.bf16 %v1743_v28, %v1743_v28  ;;  %v1667_v60 = vpop.f32.mrf.mxu0  ;;  %v1694_v32 = vpop.f32.mrf.mxu1 }
 0x212   :  { %v1867_v33 = vpack.c.bf16 %v1667_v60, %v1667_v60  ;;  %v1871_v34 = vpack.c.bf16 %v1694_v32, %v1694_v32 }
 0x213   :  { %2003 = vst.msk [vmem:[%s3334_s3 + $0x1e0] sm:$0xf] %vm1881_vm2, %v1873_v30 }
 0x214   :  { %2007 = vst.msk [vmem:[%s3334_s3 + $0x1f0] sm:$0xf] %vm1881_vm2, %v1877_v31 }
 0x215   :  { %1997 = vst.msk [vmem:[%s3334_s3 + $0x1c8] sm:$0xf] %vm1881_vm2, %v1867_v33 }
 0x216   :  { %2001 = vst.msk [vmem:[%s3334_s3 + $0x1d8] sm:$0xf] %vm1881_vm2, %v1871_v34 }
 0x218   :  { %v1718_v35 = vpop.f32.mrf.mxu2  ;;  %v1745_v36 = vpop.f32.mrf.mxu3 }
 0x219   :  { %v1874_v37 = vpack.c.bf16 %v1718_v35, %v1718_v35  ;;  %v1878_v38 = vpack.c.bf16 %v1745_v36, %v1745_v36  ;;  %v1669_v39 = vpop.f32.mrf.mxu0  ;;  %v1696_v40 = vpop.f32.mrf.mxu1 }
 0x21a   :  { %v1868_v41 = vpack.c.bf16 %v1669_v39, %v1669_v39  ;;  %v1872_v42 = vpack.c.bf16 %v1696_v40, %v1696_v40 }
 0x21b   :  { %2004 = vst.msk [vmem:[%s3334_s3 + $0x1e4] sm:$0xf] %vm1881_vm2, %v1874_v37 }
 0x21c   :  { %2008 = vst.msk [vmem:[%s3334_s3 + $0x1f4] sm:$0xf] %vm1881_vm2, %v1878_v38 }
 0x21d   :  { %1998 = vst.msk [vmem:[%s3334_s3 + $0x1cc] sm:$0x3] %vm1885_vm3, %v1868_v41 }
 0x21e   :  { %2002 = vst.msk [vmem:[%s3334_s3 + $0x1dc] sm:$0x3] %vm1885_vm3, %v1872_v42 }
 0x220   :  { %v1721_v43 = vpop.f32.mrf.mxu2  ;;  %v1748_v44 = vpop.f32.mrf.mxu3 }
 0x221   :  { %v1875_v45 = vpack.c.bf16 %v1721_v43, %v1721_v43  ;;  %v1879_v46 = vpack.c.bf16 %v1748_v44, %v1748_v44 }
 0x223   :  { %2005 = vst.msk [vmem:[%s3334_s3 + $0x1e8] sm:$0xf] %vm1881_vm2, %v1875_v45 }
 0x224   :  { %2009 = vst.msk [vmem:[%s3334_s3 + $0x1f8] sm:$0xf] %vm1881_vm2, %v1879_v46 }
 0x228   :  { %v1723_v29 = vpop.f32.mrf.mxu2  ;;  %v1750_v47 = vpop.f32.mrf.mxu3 }
 0x229   :  { %v1876_v48 = vpack.c.bf16 %v1723_v29, %v1723_v29  ;;  %v1880_v49 = vpack.c.bf16 %v1750_v47, %v1750_v47 }
 0x22b   :  { %2006 = vst.msk [vmem:[%s3334_s3 + $0x1ec] sm:$0x3] %vm1885_vm3, %v1876_v48 }
 0x22c   :  { %2010 = vst.msk [vmem:[%s3334_s3 + $0x1fc] sm:$0x3] %vm1885_vm3, %v1880_v49 }

// kernel: autoencoder_forward.17
= control target key start
LH: loop header
LB: loop body
LE: loop exit
PB: predicated region body
PF: predicated region fallthrough
CT: control target
= control target key end

     0   :  { %vm747_vm0 = vcmask 130048   ;;  %vm1157_vm1 = vsmask.f32 1280  ;;  %vm1159_vm2 = vcmask 1043458   ;;  %vm1160_vm3 = vsmask.f32 3328  ;;  %s2636_s1 = inlined_call_operand.vmem [shape: bf16[144,1568], index: 1, kind: input, shape index: {}]   ;;  %s2637_s0 = inlined_call_operand.vmem [shape: bf16[3,144], index: 0, kind: input, shape index: {}]   ;;  %s2638_s2 = inlined_call_operand.vmem [shape: f32[3,1], index: 2, kind: input, shape index: {}]   ;;  %s2639_s3 = inlined_call_operand.vmem [shape: bf16[3,1568], index: 3, kind: output, shape index: {}]  }
   0x1   :  { %v1555_v0 = vld [vmem:[%s2636_s1 + $0x2d8] sm:$0xf]  ;;  %v1767_v1 = vld [vmem:[%s2636_s1 + $0x308] sm:$0xf0]  ;;  %v1607_v2 = vld [vmem:[%s2636_s1 + $0x340] sm:$0xf] }
   0x2   :  { %v1556_v3 = vor.u32 %v1767_v1, %v1555_v0  ;;  %v1780_v4 = vld [vmem:[%s2636_s1 + $0x370] sm:$0xf0]  ;;  %v1761_v5 = vld [vmem:[%s2636_s1 + $0x2dc] sm:$0xf]  ;;  %v1557_v6 = vld [vmem:[%s2636_s1 + $0x30c] sm:$0xf0] }
   0x3   :  { %v1608_v7 = vor.u32 %v1780_v4, %v1607_v2  ;;  %v1560_v8 = vor.u32 %v1761_v5, %v1557_v6  ;;  %v1563_v9 = vld [vmem:[%s2636_s1 + $0x2e0] sm:$0xf]  ;;  %v1768_v10 = vld [vmem:[%s2636_s1 + $0x310] sm:$0xf0]  ;;  %v1503_v11 = vld [vmem:[%s2636_s1 + $0x270] sm:$0xf] }
   0x4   :  { %750 = vmatpush.bf16.msra.mxu0 %v1556_v3  ;;  %v1564_v12 = vor.u32 %v1768_v10, %v1563_v9  ;;  %v1754_v13 = vld [vmem:[%s2636_s1 + $0x2a0] sm:$0xf0]  ;;  %v1748_v14 = vld [vmem:[%s2636_s1 + $0x274] sm:$0xf]  ;;  %v1505_v15 = vld [vmem:[%s2636_s1 + $0x2a4] sm:$0xf0] }
   0x5   :  { %770 = vmatpush.bf16.msra.mxu1 %v1608_v7  ;;  %776 = vmatpush.bf16.msra.mxu2 %v1560_v8  ;;  %v1504_v16 = vor.u32 %v1754_v13, %v1503_v11  ;;  %v1508_v17 = vor.u32 %v1748_v14, %v1505_v15  ;;  %v1774_v18 = vld [vmem:[%s2636_s1 + $0x344] sm:$0xf]  ;;  %v1609_v19 = vld [vmem:[%s2636_s1 + $0x374] sm:$0xf0]  ;;  %v1755_v22 = vld [vmem:[%s2636_s1 + $0x2a8] sm:$0xf0] }
   0x6   :  { %v1511_v20 = vld [vmem:[%s2636_s1 + $0x278] sm:$0xf]  ;;  %v1612_v21 = vor.u32 %v1774_v18, %v1609_v19  ;;  %v15_v23 = vld [vmem:[%s2637_s0] sm:$0xf]  ;;  %v1615_v24 = vld [vmem:[%s2636_s1 + $0x348] sm:$0xf] }
   0x7   :  { %v1512_v25 = vor.u32 %v1755_v22, %v1511_v20  ;;  %149 = vst [vmem:[#allocation1] ss:$4 sm:$0xff] %v15_v23  ;;  %v1781_v26 = vld [vmem:[%s2636_s1 + $0x378] sm:$0xf0]  ;;  %v1451_v27 = vld [vmem:[%s2636_s1 + $0x208] sm:$0xf]  ;;  %vm2572_vm6 = vmand %vm1159_vm2, %vm1160_vm3 }
   0x8   :  { %751 = vmatpush.bf16.msra.mxu0 %v1504_v16  ;;  %796 = vmatpush.bf16.msra.mxu3 %v1612_v21  ;;  %v1616_v28 = vor.u32 %v1781_v26, %v1615_v24  ;;  %v1741_v29 = vld [vmem:[%s2636_s1 + $0x238] sm:$0xf0]  ;;  %v1735_v30 = vld [vmem:[%s2636_s1 + $0x20c] sm:$0xf]  ;;  %v1453_v31 = vld [vmem:[%s2636_s1 + $0x23c] sm:$0xf0] }
   0x9   :  { %802 = vmatpush.bf16.msrb.mxu1 %v1564_v12  ;;  %777 = vmatpush.bf16.msra.mxu2 %v1508_v17  ;;  %v1452_v32 = vor.u32 %v1741_v29, %v1451_v27  ;;  %v1456_v33 = vor.u32 %v1735_v30, %v1453_v31  ;;  %v1762_v34 = vld [vmem:[%s2636_s1 + $0x2e4] sm:$0xf]  ;;  %v1565_v35 = vld [vmem:[%s2636_s1 + $0x314] sm:$0xf0]  ;;  %v1459_v36 = vld [vmem:[%s2636_s1 + $0x210] sm:$0xf] }
   0xa   :  { %v1742_v37 = vld [vmem:[%s2636_s1 + $0x240] sm:$0xf0]  ;;  %v1399_v38 = vld [vmem:[%s2636_s1 + $0x1a0] sm:$0xf]  ;;  %v1728_v39 = vld [vmem:[%s2636_s1 + $0x1d0] sm:$0xf0]  ;;  %v1568_v44 = vor.u32 %v1762_v34, %v1565_v35 }
   0xb   :  { %v1460_v40 = vor.u32 %v1742_v37, %v1459_v36  ;;  %v1722_v41 = vld [vmem:[%s2636_s1 + $0x1a4] sm:$0xf]  ;;  %v1401_v42 = vld [vmem:[%s2636_s1 + $0x1d4] sm:$0xf0]  ;;  %v1749_v43 = vld [vmem:[%s2636_s1 + $0x27c] sm:$0xf]  ;;  %v1400_v45 = vor.u32 %v1728_v39, %v1399_v38 }
   0xc   :  { %822 = vmatpush.bf16.msrb.mxu3 %v1616_v28  ;;  %752 = vmatpush.bf16.msra.mxu0 %v1452_v32  ;;  %v1513_v46 = vld [vmem:[%s2636_s1 + $0x2ac] sm:$0xf0]  ;;  %v1407_v47 = vld [vmem:[%s2636_s1 + $0x1a8] sm:$0xf]  ;;  %v1729_v48 = vld [vmem:[%s2636_s1 + $0x1d8] sm:$0xf0]  ;;  %v1404_v49 = vor.u32 %v1722_v41, %v1401_v42 }
   0xd   :  { %803 = vmatpush.bf16.msrb.mxu1 %v1512_v25  ;;  %778 = vmatpush.bf16.msra.mxu2 %v1456_v33  ;;  %v1347_v50 = vld [vmem:[%s2636_s1 + $0x138] sm:$0xf]  ;;  %v1715_v51 = vld [vmem:[%s2636_s1 + $0x168] sm:$0xf0]  ;;  %v1709_v52 = vld [vmem:[%s2636_s1 + $0x13c] sm:$0xf]  ;;  %v1408_v54 = vor.u32 %v1729_v48, %v1407_v47  ;;  %v1516_v57 = vor.u32 %v1749_v43, %v1513_v46 }
   0xe   :  { %v1924_v53 = vld.sshfl [vmem:[#allocation1 + $0x8] sm:$0xff pattern:$0x73625140]  ;;  %v1349_v55 = vld [vmem:[%s2636_s1 + $0x16c] sm:$0xf0]  ;;  %v1348_v58 = vor.u32 %v1715_v51, %v1347_v50  ;;  %v1789_v31 = vmov 0  }
   0xf   :  { %1658 = vmatmul.msk.bf16.vlgmr.msra.gmra.mxu3 %vm747_vm0, %v1924_v53  ;;  %1657 = vmatmul.msk.bf16.vlgmr.msra.gmra.mxu1 %vm747_vm0, %v1924_v53  ;;  %v1355_v56 = vld [vmem:[%s2636_s1 + $0x140] sm:$0xf]  ;;  %v1736_v59 = vld [vmem:[%s2636_s1 + $0x214] sm:$0xf]  ;;  %v1352_v61 = vor.u32 %v1709_v52, %v1349_v55  ;;  %v1461_v62 = vld [vmem:[%s2636_s1 + $0x244] sm:$0xf0] }
  0x10   :  { %828 = vmatpush.bf16.msra.mxu3 %v1568_v44  ;;  %753 = vmatpush.bf16.msra.mxu0 %v1400_v45  ;;  %v1716_v60 = vld [vmem:[%s2636_s1 + $0x170] sm:$0xf0]  ;;  %v1295_v63 = vld [vmem:[%s2636_s1 + $0xd0] sm:$0xf]  ;;  %v1702_v0 = vld [vmem:[%s2636_s1 + $0x100] sm:$0xf0]  ;;  %v1464_v6 = vor.u32 %v1736_v59, %v1461_v62 }
  0x11   :  { %804 = vmatpush.bf16.msrb.mxu1 %v1460_v40  ;;  %779 = vmatpush.bf16.msra.mxu2 %v1404_v49  ;;  %v1356_v1 = vor.u32 %v1716_v60, %v1355_v56  ;;  %v1696_v2 = vld [vmem:[%s2636_s1 + $0xd4] sm:$0xf]  ;;  %v1297_v3 = vld [vmem:[%s2636_s1 + $0x104] sm:$0xf0]  ;;  %v1303_v4 = vld [vmem:[%s2636_s1 + $0xd8] sm:$0xf]  ;;  %v1296_v7 = vor.u32 %v1702_v0, %v1295_v63 }
  0x12   :  { %v1703_v5 = vld [vmem:[%s2636_s1 + $0x108] sm:$0xf0]  ;;  %v1300_v9 = vor.u32 %v1696_v2, %v1297_v3  ;;  %v1409_v10 = vld [vmem:[%s2636_s1 + $0x1dc] sm:$0xf0]  ;;  %v1243_v11 = vld [vmem:[%s2636_s1 + $0x68] sm:$0xf]  ;;  %1788 = vset.pattern.permute.xlu0 %v1789_v31 }
  0x13   :  { %v1723_v8 = vld [vmem:[%s2636_s1 + $0x1ac] sm:$0xf]  ;;  %v1689_v12 = vld [vmem:[%s2636_s1 + $0x98] sm:$0xf0]  ;;  %v1304_v13 = vor.u32 %v1703_v5, %v1303_v4  ;;  %v1245_v15 = vld [vmem:[%s2636_s1 + $0x9c] sm:$0xf0] }
  0x14   :  { %829 = vmatpush.bf16.msra.mxu3 %v1516_v57  ;;  %754 = vmatpush.bf16.msra.mxu0 %v1348_v58  ;;  %v1683_v14 = vld [vmem:[%s2636_s1 + $0x6c] sm:$0xf]  ;;  %v1710_v16 = vld [vmem:[%s2636_s1 + $0x144] sm:$0xf]  ;;  %v1251_v17 = vld [vmem:[%s2636_s1 + $0x70] sm:$0xf]  ;;  %v1412_v19 = vor.u32 %v1723_v8, %v1409_v10  ;;  %v1244_v20 = vor.u32 %v1689_v12, %v1243_v11 }
  0x15   :  { %805 = vmatpush.bf16.msrb.mxu1 %v1408_v54  ;;  %780 = vmatpush.bf16.msra.mxu2 %v1352_v61  ;;  %v1690_v18 = vld [vmem:[%s2636_s1 + $0xa0] sm:$0xf0]  ;;  %v1357_v21 = vld [vmem:[%s2636_s1 + $0x174] sm:$0xf0]  ;;  %v1191_v22 = vld [vmem:[%s2636_s1] sm:$0xf]  ;;  %v1248_v24 = vor.u32 %v1683_v14, %v1245_v15 }
  0x16   :  { %v1676_v23 = vld [vmem:[%s2636_s1 + $0x30] sm:$0xf0]  ;;  %v1670_v25 = vld [vmem:[%s2636_s1 + $0x4] sm:$0xf]  ;;  %v1193_v26 = vld [vmem:[%s2636_s1 + $0x34] sm:$0xf0]  ;;  %v1252_v27 = vor.u32 %v1690_v18, %v1251_v17  ;;  %v1360_v35 = vor.u32 %v1710_v16, %v1357_v21 }
  0x17   :  { %v1199_v28 = vld [vmem:[%s2636_s1 + $0x8] sm:$0xf]  ;;  %v1677_v29 = vld [vmem:[%s2636_s1 + $0x38] sm:$0xf0]  ;;  %v1775_v33 = vld [vmem:[%s2636_s1 + $0x34c] sm:$0xf]  ;;  %v1192_v36 = vor.u32 %v1676_v23, %v1191_v22  ;;  %v1196_v37 = vor.u32 %v1670_v25, %v1193_v26 }
  0x18   :  { %830 = vmatpush.bf16.msra.mxu3 %v1464_v6  ;;  %755 = vmatpush.bf16.msra.mxu0 %v1296_v7  ;;  %v1571_v30 = vld [vmem:[%s2636_s1 + $0x2e8] sm:$0xf]  ;;  %v1769_v32 = vld [vmem:[%s2636_s1 + $0x318] sm:$0xf0]  ;;  %v1617_v34 = vld [vmem:[%s2636_s1 + $0x37c] sm:$0xf0]  ;;  %v1200_v41 = vor.u32 %v1677_v29, %v1199_v28 }
  0x19   :  { %806 = vmatpush.bf16.msrb.mxu1 %v1356_v1  ;;  %781 = vmatpush.bf16.msra.mxu2 %v1300_v9  ;;  %v1697_v38 = vld [vmem:[%s2636_s1 + $0xdc] sm:$0xf]  ;;  %v1305_v39 = vld [vmem:[%s2636_s1 + $0x10c] sm:$0xf0]  ;;  %v1620_v40 = vor.u32 %v1775_v33, %v1617_v34  ;;  %v1572_v42 = vor.u32 %v1769_v32, %v1571_v30  ;;  %v1763_v43 = vld [vmem:[%s2636_s1 + $0x2ec] sm:$0xf] }
  0x1a   :  { %v1573_v44 = vld [vmem:[%s2636_s1 + $0x31c] sm:$0xf0]  ;;  %v1756_v46 = vld [vmem:[%s2636_s1 + $0x2b0] sm:$0xf0]  ;;  %v1308_v47 = vor.u32 %v1697_v38, %v1305_v39  ;;  %v1253_v51 = vld [vmem:[%s2636_s1 + $0xa4] sm:$0xf0] }
  0x1b   :  { %v1519_v45 = vld [vmem:[%s2636_s1 + $0x280] sm:$0xf]  ;;  %v1684_v50 = vld [vmem:[%s2636_s1 + $0x74] sm:$0xf]  ;;  %v1576_v52 = vor.u32 %v1763_v43, %v1573_v44  ;;  %v1750_v54 = vld [vmem:[%s2636_s1 + $0x284] sm:$0xf] }
  0x1c   :  { %831 = vmatpush.bf16.msra.mxu3 %v1412_v19  ;;  %756 = vmatpush.bf16.msra.mxu0 %v1244_v20  ;;  %v2043_v48 = vld.sshfl [vmem:[#allocation1] sm:$0xff pattern:$0x73625140]  ;;  %v1520_v55 = vor.u32 %v1756_v46, %v1519_v45  ;;  %v1521_v56 = vld [vmem:[%s2636_s1 + $0x2b4] sm:$0xf0]  ;;  %v1256_v62 = vor.u32 %v1684_v50, %v1253_v51  ;;  %vm1125_vm4 = vcmask 1041408  }
  0x1d   :  { %807 = vmatpush.bf16.msrb.mxu1 %v1304_v13  ;;  %782 = vmatpush.bf16.msra.mxu2 %v1248_v24  ;;  %v142_v49 = vld [vmem:[%s2638_s2] sm:$0x7]  ;;  %v1623_v57 = vld [vmem:[%s2636_s1 + $0x350] sm:$0xf]  ;;  %v1782_v58 = vld [vmem:[%s2636_s1 + $0x380] sm:$0xf0]  ;;  %v1524_v3 = vor.u32 %v1750_v54, %v1521_v56 }
  0x1e   :  { %v1467_v59 = vld [vmem:[%s2636_s1 + $0x218] sm:$0xf]  ;;  %v1743_v60 = vld [vmem:[%s2636_s1 + $0x248] sm:$0xf0]  ;;  %145 = vperm.xlu0 %1788, %v142_v49   ;;  %v1624_v61 = vor.u32 %v1782_v58, %v1623_v57  ;;  %v1776_v63 = vld [vmem:[%s2636_s1 + $0x354] sm:$0xf] }
  0x1f   :  { %1659 = vmatmul.msk.bf16.vlgmr.msrb.gmra.mxu3 %vm747_vm0, %v1924_v53  ;;  %v1625_v0 = vld [vmem:[%s2636_s1 + $0x384] sm:$0xf0]  ;;  %v1671_v1 = vld [vmem:[%s2636_s1 + $0xc] sm:$0xf]  ;;  %v1201_v2 = vld [vmem:[%s2636_s1 + $0x3c] sm:$0xf0]  ;;  %v1468_v6 = vor.u32 %v1743_v60, %v1467_v59 }
  0x20   :  { %832 = vmatpush.bf16.msra.mxu3 %v1360_v35  ;;  %757 = vmatpush.bf16.msra.mxu0 %v1192_v36  ;;  %v1579_v4 = vld [vmem:[%s2636_s1 + $0x2f0] sm:$0xf]  ;;  %v1628_v5 = vor.u32 %v1776_v63, %v1625_v0  ;;  %v1770_v7 = vld [vmem:[%s2636_s1 + $0x320] sm:$0xf0]  ;;  %v1737_v8 = vld [vmem:[%s2636_s1 + $0x21c] sm:$0xf]  ;;  %v1204_v12 = vor.u32 %v1671_v1, %v1201_v2 }
  0x21   :  { %808 = vmatpush.bf16.msrb.mxu1 %v1252_v27  ;;  %783 = vmatpush.bf16.msra.mxu2 %v1196_v37  ;;  %v1469_v9 = vld [vmem:[%s2636_s1 + $0x24c] sm:$0xf0]  ;;  %v1730_v11 = vld [vmem:[%s2636_s1 + $0x1e0] sm:$0xf0]  ;;  %v1580_v13 = vor.u32 %v1770_v7, %v1579_v4  ;;  %v1527_v15 = vld [vmem:[%s2636_s1 + $0x288] sm:$0xf] }
  0x22   :  { %v1415_v10 = vld [vmem:[%s2636_s1 + $0x1b0] sm:$0xf]  ;;  %v1472_v14 = vor.u32 %v1737_v8, %v1469_v9  ;;  %v1757_v17 = vld [vmem:[%s2636_s1 + $0x2b8] sm:$0xf0]  ;;  %v1724_v18 = vld [vmem:[%s2636_s1 + $0x1b4] sm:$0xf] }
  0x23   :  { %758 = vmatmul.bf16.vlgmr.msra.gmra.mxu0 %v2043_v48  ;;  %v1416_v16 = vor.u32 %v1730_v11, %v1415_v10  ;;  %v1417_v19 = vld [vmem:[%s2636_s1 + $0x1e4] sm:$0xf0]  ;;  %v1717_v21 = vld [vmem:[%s2636_s1 + $0x178] sm:$0xf0]  ;;  %v1528_v22 = vor.u32 %v1757_v17, %v1527_v15  ;;  %v1475_v25 = vld [vmem:[%s2636_s1 + $0x220] sm:$0xf] }
  0x24   :  { %848 = vmatpush.bf16.msrb.mxu0 %v1620_v40  ;;  %833 = vmatpush.bf16.msra.mxu3 %v1308_v47  ;;  %v1363_v20 = vld [vmem:[%s2636_s1 + $0x148] sm:$0xf]  ;;  %v1420_v23 = vor.u32 %v1724_v18, %v1417_v19  ;;  %v1744_v26 = vld [vmem:[%s2636_s1 + $0x250] sm:$0xf0]  ;;  %v1311_v27 = vld [vmem:[%s2636_s1 + $0xe0] sm:$0xf] }
  0x25   :  { %809 = vmatpush.bf16.msrb.mxu1 %v1200_v41  ;;  %854 = vmatpush.bf16.msrb.mxu2 %v1572_v42  ;;  %v1364_v24 = vor.u32 %v1717_v21, %v1363_v20  ;;  %v1704_v28 = vld [vmem:[%s2636_s1 + $0x110] sm:$0xf0]  ;;  %v1581_v30 = vld [vmem:[%s2636_s1 + $0x324] sm:$0xf0]  ;;  %v1711_v31 = vld [vmem:[%s2636_s1 + $0x14c] sm:$0xf]  ;;  %v1476_v33 = vor.u32 %v1744_v26, %v1475_v25 }
  0x26   :  { %784 = vmatmul.bf16.vlgmr.msra.gmra.mxu2 %v2043_v48  ;;  %v1764_v29 = vld [vmem:[%s2636_s1 + $0x2f4] sm:$0xf]  ;;  %v1365_v32 = vld [vmem:[%s2636_s1 + $0x17c] sm:$0xf0]  ;;  %v1312_v34 = vor.u32 %v1704_v28, %v1311_v27  ;;  %v1423_v36 = vld [vmem:[%s2636_s1 + $0x1b8] sm:$0xf] }
  0x27   :  { %v1584_v35 = vor.u32 %v1764_v29, %v1581_v30  ;;  %v1731_v37 = vld [vmem:[%s2636_s1 + $0x1e8] sm:$0xf0]  ;;  %v1259_v38 = vld [vmem:[%s2636_s1 + $0x78] sm:$0xf]  ;;  %v1368_v39 = vor.u32 %v1711_v31, %v1365_v32  ;;  %v1529_v42 = vld [vmem:[%s2636_s1 + $0x2bc] sm:$0xf0] }
  0x28   :  { %810 = vmatmul.bf16.vlgmr.msrb.gmra.mxu1 %v2043_v48  ;;  %880 = vmatpush.bf16.msra.mxu0 %v1576_v52  ;;  %v1691_v40 = vld [vmem:[%s2636_s1 + $0xa8] sm:$0xf0]  ;;  %v1698_v43 = vld [vmem:[%s2636_s1 + $0xe4] sm:$0xf]  ;;  %v1313_v44 = vld [vmem:[%s2636_s1 + $0x114] sm:$0xf0]  ;;  %v1424_v45 = vor.u32 %v1731_v37, %v1423_v36 }
  0x29   :  { %855 = vmatpush.bf16.msrb.mxu2 %v1520_v55  ;;  %874 = vmatpush.bf16.msra.mxu1 %v1624_v61  ;;  %v1751_v41 = vld [vmem:[%s2636_s1 + $0x28c] sm:$0xf]  ;;  %v1371_v46 = vld [vmem:[%s2636_s1 + $0x150] sm:$0xf]  ;;  %v1260_v47 = vor.u32 %v1691_v40, %v1259_v38  ;;  %v1718_v50 = vld [vmem:[%s2636_s1 + $0x180] sm:$0xf0]  ;;  %v1316_v54 = vor.u32 %v1698_v43, %v1313_v44 }
  0x2a   :  { %834 = vmatpush.bf16.msra.mxu3 %v1256_v62  ;;  %v1532_v49 = vor.u32 %v1751_v41, %v1529_v42  ;;  %v1207_v51 = vld [vmem:[%s2636_s1 + $0x10] sm:$0xf]  ;;  %v1678_v52 = vld [vmem:[%s2636_s1 + $0x40] sm:$0xf0]  ;;  %v1477_v56 = vld [vmem:[%s2636_s1 + $0x254] sm:$0xf0]  ;;  %v1372_v61 = vor.u32 %v1718_v50, %v1371_v46 }
  0x2b   :  { %v1738_v55 = vld [vmem:[%s2636_s1 + $0x224] sm:$0xf]  ;;  %v1685_v57 = vld [vmem:[%s2636_s1 + $0x7c] sm:$0xf]  ;;  %v1261_v58 = vld [vmem:[%s2636_s1 + $0xac] sm:$0xf0]  ;;  %v1208_v62 = vor.u32 %v1678_v52, %v1207_v51 }
  0x2c   :  { %881 = vmatpush.bf16.msra.mxu0 %v1524_v3  ;;  %v1631_v59 = vld [vmem:[%s2636_s1 + $0x358] sm:$0xf]  ;;  %v1783_v60 = vld [vmem:[%s2636_s1 + $0x388] sm:$0xf0]  ;;  %v1480_v63 = vor.u32 %v1738_v55, %v1477_v56  ;;  %v1319_v0 = vld [vmem:[%s2636_s1 + $0xe8] sm:$0xf]  ;;  %v1264_v3 = vor.u32 %v1685_v57, %v1261_v58 }
  0x2d   :  { %900 = vmatpush.bf16.msrb.mxu1 %v1628_v5  ;;  %856 = vmatpush.bf16.msrb.mxu2 %v1468_v6  ;;  %v1705_v1 = vld [vmem:[%s2636_s1 + $0x118] sm:$0xf0]  ;;  %v1632_v4 = vor.u32 %v1783_v60, %v1631_v59  ;;  %v1425_v5 = vld [vmem:[%s2636_s1 + $0x1ec] sm:$0xf0]  ;;  %v1587_v6 = vld [vmem:[%s2636_s1 + $0x2f8] sm:$0xf] }
  0x2e   :  { %835 = vmatpush.bf16.msra.mxu3 %v1204_v12  ;;  %v1725_v2 = vld [vmem:[%s2636_s1 + $0x1bc] sm:$0xf]  ;;  %v1771_v7 = vld [vmem:[%s2636_s1 + $0x328] sm:$0xf0]  ;;  %v1672_v8 = vld [vmem:[%s2636_s1 + $0x14] sm:$0xf]  ;;  %v1320_v10 = vor.u32 %v1705_v1, %v1319_v0 }
  0x2f   :  { %v1209_v9 = vld [vmem:[%s2636_s1 + $0x44] sm:$0xf0]  ;;  %v1777_v11 = vld [vmem:[%s2636_s1 + $0x35c] sm:$0xf]  ;;  %v1633_v12 = vld [vmem:[%s2636_s1 + $0x38c] sm:$0xf0] }
  0x30   :  { %882 = vmatpush.bf16.msra.mxu0 %v1472_v14  ;;  %v1588_v14 = vor.u32 %v1771_v7, %v1587_v6  ;;  %v1267_v15 = vld [vmem:[%s2636_s1 + $0x80] sm:$0xf]  ;;  %v1712_v17 = vld [vmem:[%s2636_s1 + $0x154] sm:$0xf]  ;;  %v1212_v18 = vor.u32 %v1672_v8, %v1209_v9  ;;  %v1373_v19 = vld [vmem:[%s2636_s1 + $0x184] sm:$0xf0] }
  0x31   :  { %857 = vmatpush.bf16.msrb.mxu2 %v1416_v16  ;;  %836 = vmatmul.bf16.vlgmr.msra.gmra.mxu3 %v2043_v48  ;;  %v1692_v16 = vld [vmem:[%s2636_s1 + $0xb0] sm:$0xf0]  ;;  %v1535_v20 = vld [vmem:[%s2636_s1 + $0x290] sm:$0xf]  ;;  %v1758_v21 = vld [vmem:[%s2636_s1 + $0x2c0] sm:$0xf0]  ;;  %v1376_v26 = vor.u32 %v1712_v17, %v1373_v19 }
  0x32   :  { %906 = vmatpush.bf16.msrb.mxu3 %v1580_v13  ;;  %v1428_v13 = vor.u32 %v1725_v2, %v1425_v5  ;;  %v1589_v25 = vld [vmem:[%s2636_s1 + $0x32c] sm:$0xf0]  ;;  %v1536_v27 = vor.u32 %v1758_v21, %v1535_v20  ;;  %v1215_v28 = vld [vmem:[%s2636_s1 + $0x18] sm:$0xf]  ;;  %v1679_v29 = vld [vmem:[%s2636_s1 + $0x48] sm:$0xf0] }
  0x33   :  { %1660 = vmatmul.msk.bf16.vlgmr.msrb.gmra.mxu0 %vm747_vm0, %v1924_v53  ;;  %v1699_v30 = vld [vmem:[%s2636_s1 + $0xec] sm:$0xf]  ;;  %v1321_v31 = vld [vmem:[%s2636_s1 + $0x11c] sm:$0xf0]  ;;  %v1483_v32 = vld [vmem:[%s2636_s1 + $0x228] sm:$0xf]  ;;  %v1216_v37 = vor.u32 %v1679_v29, %v1215_v28 }
  0x34   :  { %883 = vmatpush.bf16.msra.mxu0 %v1420_v23  ;;  %v1268_v23 = vor.u32 %v1692_v16, %v1267_v15  ;;  %v1784_v36 = vld [vmem:[%s2636_s1 + $0x390] sm:$0xf0]  ;;  %v1324_v40 = vor.u32 %v1699_v30, %v1321_v31  ;;  %v1595_v42 = vld [vmem:[%s2636_s1 + $0x300] sm:$0xf]  ;;  %v1686_v44 = vld [vmem:[%s2636_s1 + $0x84] sm:$0xf] }
  0x35   :  { %858 = vmatpush.bf16.msrb.mxu2 %v1364_v24  ;;  %v1765_v24 = vld [vmem:[%s2636_s1 + $0x2fc] sm:$0xf]  ;;  %v1752_v38 = vld [vmem:[%s2636_s1 + $0x294] sm:$0xf]  ;;  %v1269_v46 = vld [vmem:[%s2636_s1 + $0xb4] sm:$0xf0] }
  0x36   :  { %907 = vmatpush.bf16.msrb.mxu3 %v1528_v22  ;;  %v1636_v22 = vor.u32 %v1777_v11, %v1633_v12  ;;  %v1772_v43 = vld [vmem:[%s2636_s1 + $0x330] sm:$0xf0]  ;;  %v1739_v52 = vld [vmem:[%s2636_s1 + $0x22c] sm:$0xf]  ;;  %v1272_v55 = vor.u32 %v1686_v44, %v1269_v46  ;;  %v1543_v57 = vld [vmem:[%s2636_s1 + $0x298] sm:$0xf] }
  0x37   :  { %v1596_v51 = vor.u32 %v1772_v43, %v1595_v42  ;;  %v1759_v58 = vld [vmem:[%s2636_s1 + $0x2c8] sm:$0xf0]  ;;  %v1673_v59 = vld [vmem:[%s2636_s1 + $0x1c] sm:$0xf]  ;;  %v1217_v60 = vld [vmem:[%s2636_s1 + $0x4c] sm:$0xf0] }
  0x38   :  { %1661 = vmatmul.msk.bf16.vlgmr.msra.gmra.mxu1 %vm747_vm0, %v1924_v53  ;;  %884 = vmatpush.bf16.msra.mxu0 %v1368_v39  ;;  %v1537_v39 = vld [vmem:[%s2636_s1 + $0x2c4] sm:$0xf0]  ;;  %v1778_v0 = vld [vmem:[%s2636_s1 + $0x364] sm:$0xf]  ;;  %v1641_v1 = vld [vmem:[%s2636_s1 + $0x394] sm:$0xf0]  ;;  %v1544_v2 = vor.u32 %v1759_v58, %v1543_v57  ;;  %v1220_v5 = vor.u32 %v1673_v59, %v1217_v60 }
  0x39   :  { %859 = vmatpush.bf16.msrb.mxu2 %v1312_v34  ;;  %932 = vmatpush.bf16.msra.mxu1 %v1584_v35  ;;  %v1592_v34 = vor.u32 %v1765_v24, %v1589_v25  ;;  %v1639_v35 = vld [vmem:[%s2636_s1 + $0x360] sm:$0xf]  ;;  %v1540_v50 = vor.u32 %v1752_v38, %v1537_v39  ;;  %v1491_v7 = vld [vmem:[%s2636_s1 + $0x230] sm:$0xf]  ;;  %v1746_v8 = vld [vmem:[%s2636_s1 + $0x260] sm:$0xf0] }
  0x3a   :  { %908 = vmatpush.bf16.msrb.mxu3 %v1476_v33  ;;  %v1745_v33 = vld [vmem:[%s2636_s1 + $0x258] sm:$0xf0]  ;;  %v1327_v9 = vld [vmem:[%s2636_s1 + $0xf0] sm:$0xf]  ;;  %v1706_v11 = vld [vmem:[%s2636_s1 + $0x120] sm:$0xf0]  ;;  %v1492_v15 = vor.u32 %v1746_v8, %v1491_v7 }
  0x3b   :  { %v1484_v41 = vor.u32 %v1745_v33, %v1483_v32  ;;  %v1766_v12 = vld [vmem:[%s2636_s1 + $0x304] sm:$0xf]  ;;  %v1713_v16 = vld [vmem:[%s2636_s1 + $0x15c] sm:$0xf]  ;;  %v1381_v17 = vld [vmem:[%s2636_s1 + $0x18c] sm:$0xf0] }
  0x3c   :  { %885 = vmatpush.bf16.msra.mxu0 %v1316_v54  ;;  %v1485_v54 = vld [vmem:[%s2636_s1 + $0x25c] sm:$0xf0]  ;;  %v1439_v20 = vld [vmem:[%s2636_s1 + $0x1c8] sm:$0xf]  ;;  %v1733_v21 = vld [vmem:[%s2636_s1 + $0x1f8] sm:$0xf0] }
  0x3d   :  { %860 = vmatpush.bf16.msrb.mxu2 %v1260_v47  ;;  %933 = vmatpush.bf16.msra.mxu1 %v1532_v49  ;;  %v1431_v47 = vld [vmem:[%s2636_s1 + $0x1c0] sm:$0xf]  ;;  %v1732_v49 = vld [vmem:[%s2636_s1 + $0x1f0] sm:$0xf0]  ;;  %v1753_v24 = vld [vmem:[%s2636_s1 + $0x29c] sm:$0xf] }
  0x3e   :  { %909 = vmatpush.bf16.msrb.mxu3 %v1424_v45  ;;  %v1640_v45 = vor.u32 %v1784_v36, %v1639_v35  ;;  %v1432_v56 = vor.u32 %v1732_v49, %v1431_v47  ;;  %v1545_v25 = vld [vmem:[%s2636_s1 + $0x2cc] sm:$0xf0]  ;;  %v1700_v28 = vld [vmem:[%s2636_s1 + $0xf4] sm:$0xf]  ;;  %v1329_v29 = vld [vmem:[%s2636_s1 + $0x124] sm:$0xf0] }
  0x3f   :  { %v1548_v31 = vor.u32 %v1753_v24, %v1545_v25  ;;  %v1387_v32 = vld [vmem:[%s2636_s1 + $0x160] sm:$0xf]  ;;  %v1720_v33 = vld [vmem:[%s2636_s1 + $0x190] sm:$0xf0]  ;;  %v1332_v38 = vor.u32 %v1700_v28, %v1329_v29  ;;  %v1647_v39 = vld [vmem:[%s2636_s1 + $0x368] sm:$0xf] }
  0x40   :  { %886 = vmatpush.bf16.msra.mxu0 %v1264_v3  ;;  %v1726_v3 = vld [vmem:[%s2636_s1 + $0x1c4] sm:$0xf]  ;;  %v1680_v35 = vld [vmem:[%s2636_s1 + $0x50] sm:$0xf0]  ;;  %v1687_v42 = vld [vmem:[%s2636_s1 + $0x8c] sm:$0xf] }
  0x41   :  { %861 = vmatpush.bf16.msrb.mxu2 %v1208_v62  ;;  %934 = vmatpush.bf16.msra.mxu1 %v1480_v63  ;;  %v1719_v62 = vld [vmem:[%s2636_s1 + $0x188] sm:$0xf0]  ;;  %v1488_v63 = vor.u32 %v1739_v52, %v1485_v54  ;;  %v1740_v36 = vld [vmem:[%s2636_s1 + $0x234] sm:$0xf]  ;;  %v1277_v43 = vld [vmem:[%s2636_s1 + $0xbc] sm:$0xf0] }
  0x42   :  { %910 = vmatpush.bf16.msrb.mxu3 %v1372_v61  ;;  %v1379_v61 = vld [vmem:[%s2636_s1 + $0x158] sm:$0xf]  ;;  %v1707_v47 = vld [vmem:[%s2636_s1 + $0x128] sm:$0xf0]  ;;  %v1603_v52 = vld [vmem:[%s2636_s1 + $0x308] sm:$0xf] }
  0x43   :  { %v1380_v6 = vor.u32 %v1719_v62, %v1379_v61  ;;  %v1335_v46 = vld [vmem:[%s2636_s1 + $0xf8] sm:$0xf]  ;;  %v1727_v49 = vld [vmem:[%s2636_s1 + $0x1cc] sm:$0xf]  ;;  %v1773_v54 = vld [vmem:[%s2636_s1 + $0x338] sm:$0xf0] }
  0x44   :  { %862 = vmatmul.bf16.vlgmr.msrb.gmra.mxu2 %v2043_v48  ;;  %887 = vmatpush.bf16.msra.mxu0 %v1212_v18  ;;  %v1328_v18 = vor.u32 %v1706_v11, %v1327_v9  ;;  %v1674_v57 = vld [vmem:[%s2636_s1 + $0x24] sm:$0xf]  ;;  %v1225_v58 = vld [vmem:[%s2636_s1 + $0x54] sm:$0xf0]  ;;  %v1604_v60 = vor.u32 %v1773_v54, %v1603_v52  ;;  %v1283_v61 = vld [vmem:[%s2636_s1 + $0x90] sm:$0xf] }
  0x45   :  { %926 = vmatpush.bf16.msra.mxu2 %v1632_v4  ;;  %935 = vmatpush.bf16.msra.mxu1 %v1428_v13  ;;  %v1433_v4 = vld [vmem:[%s2636_s1 + $0x1f4] sm:$0xf0]  ;;  %v1694_v62 = vld [vmem:[%s2636_s1 + $0xc0] sm:$0xf0]  ;;  %v1231_v9 = vld [vmem:[%s2636_s1 + $0x28] sm:$0xf] }
  0x46   :  { %911 = vmatpush.bf16.msrb.mxu3 %v1320_v10  ;;  %v1644_v10 = vor.u32 %v1778_v0, %v1641_v1  ;;  %v1597_v13 = vld [vmem:[%s2636_s1 + $0x334] sm:$0xf0]  ;;  %v1551_v1 = vld [vmem:[%s2636_s1 + $0x2a0] sm:$0xf]  ;;  %v1701_v11 = vld [vmem:[%s2636_s1 + $0xfc] sm:$0xf] }
  0x47   :  { %888 = vmatmul.bf16.vlgmr.msra.gmra.mxu0 %v2043_v48  ;;  %v1600_v19 = vor.u32 %v1766_v12, %v1597_v13  ;;  %v1389_v0 = vld [vmem:[%s2636_s1 + $0x194] sm:$0xf0]  ;;  %v1337_v12 = vld [vmem:[%s2636_s1 + $0x12c] sm:$0xf0]  ;;  %v1734_v24 = vld [vmem:[%s2636_s1 + $0x200] sm:$0xf0] }
  0x48   :  { %952 = vmatpush.bf16.msrb.mxu0 %v1636_v22  ;;  %1662 = vmatmul.msk.bf16.vlgmr.msrb.gmra.mxu1 %vm747_vm0, %v1924_v53  ;;  %v1275_v22 = vld [vmem:[%s2636_s1 + $0x88] sm:$0xf]  ;;  %v1499_v13 = vld [vmem:[%s2636_s1 + $0x238] sm:$0xf]  ;;  %v1675_v28 = vld [vmem:[%s2636_s1 + $0x2c] sm:$0xf] }
  0x49   :  { %958 = vmatpush.bf16.msrb.mxu2 %v1588_v14  ;;  %936 = vmatpush.bf16.msra.mxu1 %v1376_v26  ;;  %v1436_v14 = vor.u32 %v1726_v3, %v1433_v4  ;;  %v1384_v26 = vor.u32 %v1713_v16, %v1381_v17  ;;  %v1228_v3 = vor.u32 %v1674_v57, %v1225_v58  ;;  %v1786_v16 = vld [vmem:[%s2636_s1 + $0x3a0] sm:$0xf0]  ;;  %v1233_v29 = vld [vmem:[%s2636_s1 + $0x5c] sm:$0xf0]  ;;  %vm2568_vm5 = vmand %vm1125_vm4, %vm1157_vm1  ;;  %vm1129_vm7 = vcmask 1045508  }
  0x4a   :  { %912 = vmatpush.bf16.msrb.mxu3 %v1268_v23  ;;  %v1693_v23 = vld [vmem:[%s2636_s1 + $0xb8] sm:$0xf0]  ;;  %v1284_v4 = vor.u32 %v1694_v62, %v1283_v61  ;;  %vm1164_vm8 = vsmask.f32 5376  ;;  %vm1162_vm9 = vmor %vm2572_vm6, %vm2568_vm5  ;;  %vm1167_vm11 = vcmask 1047558   ;;  %vm1133_vm15 = vcmask 1043456  }
  0x4b   :  { %v1276_v30 = vor.u32 %v1693_v23, %v1275_v22  ;;  %v1285_v22 = vld [vmem:[%s2636_s1 + $0xc4] sm:$0xf0]  ;;  %v1447_v23 = vld [vmem:[%s2636_s1 + $0x1d0] sm:$0xf]  ;;  %vm1165_vm10 = vmand %vm1129_vm7, %vm1164_vm8  ;;  %vm1168_vm12 = vsmask.f32 7424 }
  0x4c   :  { %984 = vmatpush.bf16.msra.mxu0 %v1592_v34  ;;  %v1223_v34 = vld [vmem:[%s2636_s1 + $0x20] sm:$0xf]  ;;  %vm1166_vm13 = vmor %vm1165_vm10, %vm1162_vm9  ;;  %vm1180_vm2 = vcmask 254976  }
  0x4d   :  { %959 = vmatpush.bf16.msrb.mxu2 %v1536_v27  ;;  %937 = vmatpush.bf16.msra.mxu1 %v1324_v40  ;;  %v1440_v27 = vor.u32 %v1733_v21, %v1439_v20  ;;  %v1785_v40 = vld [vmem:[%s2636_s1 + $0x398] sm:$0xf0]  ;;  %v1224_v44 = vor.u32 %v1680_v35, %v1223_v34  ;;  %v1688_v21 = vld [vmem:[%s2636_s1 + $0x94] sm:$0xf]  ;;  %v1343_v34 = vld [vmem:[%s2636_s1 + $0x100] sm:$0xf] }
  0x4e   :  { %913 = vmatpush.bf16.msrb.mxu3 %v1216_v37  ;;  %v1493_v37 = vld [vmem:[%s2636_s1 + $0x264] sm:$0xf0]  ;;  %v1708_v35 = vld [vmem:[%s2636_s1 + $0x130] sm:$0xf0]  ;;  %vm1169_vm14 = vmand %vm1167_vm11, %vm1168_vm12 }
  0x4f   :  { %vm1181_vm3 = vmand %vm1180_vm2, %vm1157_vm1 }
  0x50   :  { %985 = vmatpush.bf16.msra.mxu0 %v1540_v50  ;;  %v1648_v50 = vor.u32 %v1785_v40, %v1647_v39  ;;  %v1239_v40 = vld [vmem:[%s2636_s1 + $0x30] sm:$0xf] }
  0x51   :  { %960 = vmatpush.bf16.msrb.mxu2 %v1484_v41  ;;  %914 = vmatmul.bf16.vlgmr.msrb.gmra.mxu3 %v2043_v48  ;;  %v1388_v41 = vor.u32 %v1720_v33, %v1387_v32  ;;  %v1236_v32 = vor.u32 %v1675_v28, %v1233_v29 }
  0x52   :  { %978 = vmatpush.bf16.msra.mxu3 %v1640_v45  ;;  %938 = vmatpush.bf16.msra.mxu1 %v1272_v55  ;;  %v1496_v45 = vor.u32 %v1740_v36, %v1493_v37  ;;  %v1280_v55 = vor.u32 %v1687_v42, %v1277_v43  ;;  %v1344_v36 = vor.u32 %v1708_v35, %v1343_v34  ;;  %v1291_v37 = vld [vmem:[%s2636_s1 + $0x98] sm:$0xf] }
  0x54   :  { %986 = vmatpush.bf16.msra.mxu0 %v1488_v63  ;;  %1663 = vmatmul.msk.bf16.vlgmr.msra.gmra.mxu2 %vm747_vm0, %v1924_v53  ;;  %v1714_v63 = vld [vmem:[%s2636_s1 + $0x164] sm:$0xf] }
  0x55   :  { %961 = vmatpush.bf16.msrb.mxu2 %v1432_v56  ;;  %v1336_v56 = vor.u32 %v1707_v47, %v1335_v46  ;;  %v1392_v7 = vor.u32 %v1714_v63, %v1389_v0 }
  0x56   :  { %1010 = vmatpush.bf16.msrb.mxu3 %v1596_v51  ;;  %939 = vmatpush.bf16.msra.mxu1 %v1220_v5  ;;  %v1441_v51 = vld [vmem:[%s2636_s1 + $0x1fc] sm:$0xf0]  ;;  %v1779_v5 = vld [vmem:[%s2636_s1 + $0x36c] sm:$0xf] }
  0x57   :  { %1664 = vmatmul.msk.bf16.vlgmr.msrb.gmra.mxu0 %vm747_vm0, %v1924_v53  ;;  %v1444_v59 = vor.u32 %v1727_v49, %v1441_v51 }
  0x58   :  { %987 = vmatpush.bf16.msra.mxu0 %v1436_v14  ;;  %v1747_v14 = vld [vmem:[%s2636_s1 + $0x268] sm:$0xf0] }
  0x59   :  { %962 = vmatpush.bf16.msrb.mxu2 %v1380_v6  ;;  %940 = vmatmul.bf16.vlgmr.msra.gmra.mxu1 %v2043_v48  ;;  %v1649_v6 = vld [vmem:[%s2636_s1 + $0x39c] sm:$0xf0]  ;;  %v1500_v20 = vor.u32 %v1747_v14, %v1499_v13 }
  0x5a   :  { %1011 = vmatpush.bf16.msrb.mxu3 %v1544_v2  ;;  %1004 = vmatpush.bf16.msrb.mxu1 %v1644_v10  ;;  %v1760_v2 = vld [vmem:[%s2636_s1 + $0x2d0] sm:$0xf0]  ;;  %v1681_v10 = vld [vmem:[%s2636_s1 + $0x58] sm:$0xf0]  ;;  %v1652_v17 = vor.u32 %v1779_v5, %v1649_v6 }
  0x5b   :  { %v1552_v8 = vor.u32 %v1760_v2, %v1551_v1 }
  0x5c   :  { %988 = vmatpush.bf16.msra.mxu0 %v1384_v26  ;;  %v1288_v26 = vor.u32 %v1688_v21, %v1285_v22 }
  0x5d   :  { %963 = vmatpush.bf16.msrb.mxu2 %v1328_v18  ;;  %v1232_v18 = vor.u32 %v1681_v10, %v1231_v9 }
  0x5e   :  { %1012 = vmatpush.bf16.msrb.mxu3 %v1492_v15  ;;  %1036 = vmatpush.bf16.msra.mxu1 %v1600_v19  ;;  %v1655_v15 = vld [vmem:[%s2636_s1 + $0x370] sm:$0xf]  ;;  %v1340_v19 = vor.u32 %v1701_v11, %v1337_v12 }
  0x5f   :  { %v1656_v25 = vor.u32 %v1786_v16, %v1655_v15 }
  0x60   :  { %989 = vmatpush.bf16.msra.mxu0 %v1332_v38  ;;  %v1695_v38 = vld [vmem:[%s2636_s1 + $0xc8] sm:$0xf0] }
  0x61   :  { %964 = vmatpush.bf16.msrb.mxu2 %v1276_v30  ;;  %1665 = vmatmul.msk.bf16.vlgmr.msra.gmra.mxu3 %vm747_vm0, %v1924_v53  ;;  %v1395_v30 = vld [vmem:[%s2636_s1 + $0x168] sm:$0xf]  ;;  %v1292_v39 = vor.u32 %v1695_v38, %v1291_v37 }
  0x62   :  { %1013 = vmatpush.bf16.msrb.mxu3 %v1440_v27  ;;  %1037 = vmatpush.bf16.msra.mxu1 %v1548_v31  ;;  %v1448_v27 = vor.u32 %v1734_v24, %v1447_v23  ;;  %v1721_v31 = vld [vmem:[%s2636_s1 + $0x198] sm:$0xf0] }
  0x63   :  { %v1396_v33 = vor.u32 %v1721_v31, %v1395_v30 }
  0x64   :  { %990 = vmatpush.bf16.msra.mxu0 %v1280_v55 }
  0x65   :  { %965 = vmatpush.bf16.msrb.mxu2 %v1224_v44 }
  0x66   :  { %1014 = vmatpush.bf16.msrb.mxu3 %v1388_v41  ;;  %1038 = vmatpush.bf16.msra.mxu1 %v1496_v45  ;;  %v1682_v41 = vld [vmem:[%s2636_s1 + $0x60] sm:$0xf0] }
  0x67   :  { %v1240_v42 = vor.u32 %v1682_v41, %v1239_v40 }
  0x68   :  { %966 = vmatmul.bf16.vlgmr.msrb.gmra.mxu2 %v2043_v48  ;;  %991 = vmatpush.bf16.msra.mxu0 %v1228_v3 }
  0x69   :  { %1030 = vmatpush.bf16.msra.mxu2 %v1648_v50  ;;  %1666 = vmatmul.msk.bf16.vlgmr.msrb.gmra.mxu1 %vm747_vm0, %v1924_v53 }
  0x6a   :  { %1015 = vmatpush.bf16.msrb.mxu3 %v1336_v56  ;;  %1039 = vmatpush.bf16.msra.mxu1 %v1444_v59 }
  0x6b   :  { %992 = vmatmul.bf16.vlgmr.msra.gmra.mxu0 %v2043_v48 }
  0x6c   :  { %1056 = vmatpush.bf16.msrb.mxu0 %v1652_v17  ;;  %v1182_v17 = vld [vmem:[%s2639_s3 + $0x18] sm:$0x3] }
  0x6d   :  { %1062 = vmatpush.bf16.msrb.mxu2 %v1604_v60 }
  0x6e   :  { %1016 = vmatpush.bf16.msrb.mxu3 %v1284_v4  ;;  %1040 = vmatpush.bf16.msra.mxu1 %v1392_v7 }
  0x71   :  { %1063 = vmatpush.bf16.msrb.mxu2 %v1552_v8 }
  0x72   :  { %1017 = vmatpush.bf16.msrb.mxu3 %v1232_v18  ;;  %1041 = vmatpush.bf16.msra.mxu1 %v1340_v19  ;;  %v1171_v18 = vld [vmem:[%s2639_s3] sm:$0xff] }
  0x75   :  { %1064 = vmatpush.bf16.msrb.mxu2 %v1500_v20  ;;  %1018 = vmatmul.bf16.vlgmr.msrb.gmra.mxu3 %v2043_v48 }
  0x76   :  { %1082 = vmatpush.bf16.msra.mxu3 %v1656_v25  ;;  %1042 = vmatpush.bf16.msra.mxu1 %v1288_v26 }
  0x78   :  { %1667 = vmatmul.msk.bf16.vlgmr.msra.gmra.mxu2 %vm747_vm0, %v1924_v53 }
  0x79   :  { %1065 = vmatpush.bf16.msrb.mxu2 %v1448_v27 }
  0x7a   :  { %1043 = vmatpush.bf16.msra.mxu1 %v1236_v32 }
  0x7b   :  { %1668 = vmatmul.msk.bf16.vlgmr.msrb.gmra.mxu0 %vm747_vm0, %v1924_v53 }
  0x7d   :  { %1066 = vmatpush.bf16.msrb.mxu2 %v1396_v33  ;;  %1044 = vmatmul.bf16.vlgmr.msra.gmra.mxu1 %v2043_v48 }
  0x81   :  { %1067 = vmatpush.bf16.msrb.mxu2 %v1344_v36 }
  0x85   :  { %1068 = vmatpush.bf16.msrb.mxu2 %v1292_v39  ;;  %1669 = vmatmul.msk.bf16.vlgmr.msra.gmra.mxu3 %vm747_vm0, %v1924_v53  ;;  %vm2582_vm0 = vmor %vm1169_vm14, %vm1166_vm13 }
  0x89   :  { %1069 = vmatpush.bf16.msrb.mxu2 %v1240_v42 }
  0x8c   :  { %1070 = vmatmul.bf16.vlgmr.msrb.gmra.mxu2 %v2043_v48  ;;  %v772_v43 = vpop.f32.mrf.mxu1 }
  0x90   :  { %v2561_v52 = vpop.permute.xlu0 %145 }
  0x92   :  { %v798_v44 = vpop.f32.mrf.mxu3 }
  0x94   :  { %v774_v45 = vpop.f32.mrf.mxu1 }
  0x9a   :  { %v800_v46 = vpop.f32.mrf.mxu3 }
  0xa0   :  { %v759_v47 = vpop.f32.mrf.mxu0 }
  0xa1   :  { %v760_v53 = vadd.f32 %v759_v47, %v2561_v52 }
  0xa2   :  { %v824_v49 = vpop.f32.mrf.mxu3 }
  0xa3   :  { %v773_v59 = vadd.f32 %v772_v43, %v760_v53 }
  0xa5   :  { %v811_v50 = vpop.f32.mrf.mxu1  ;;  %v1088_v4 = vmax.f32 %v773_v59, 0.0 }
  0xa6   :  { %v812_v58 = vadd.f32 %v811_v50, %v2561_v52 }
  0xa8   :  { %v761_v54 = vpop.f32.mrf.mxu0  ;;  %v825_v63 = vadd.f32 %v824_v49, %v812_v58 }
  0xa9   :  { %v785_v51 = vpop.f32.mrf.mxu2 }
  0xaa   :  { %v786_v55 = vadd.f32 %v785_v51, %v2561_v52  ;;  %v826_v56 = vpop.f32.mrf.mxu3  ;;  %v1090_v6 = vmax.f32 %v825_v63, 0.0 }
  0xac   :  { %v799_v48 = vadd.f32 %v798_v44, %v786_v55 }
  0xad   :  { %v813_v57 = vpop.f32.mrf.mxu1 }
  0xae   :  { %v1089_v0 = vmax.f32 %v799_v48, 0.0  ;;  %v1174_v57 = vld [vmem:[%s2639_s3 + $0x8] sm:$0xff] }
  0xb0   :  { %v850_v61 = vpop.f32.mrf.mxu0  ;;  %v1101_v7 = vpack.c.bf16 %v1089_v0, %v1088_v4 }
  0xb1   :  { %v787_v60 = vpop.f32.mrf.mxu2 }
  0xb2   :  { %v1115_v11 = vrot.slane %v1101_v7, 2 }
  0xb4   :  { %v837_v2 = vpop.f32.mrf.mxu3  ;;  %v1128_v19 = vsel %vm1125_vm4, %v1101_v7, %v1115_v11 }
  0xb5   :  { %v876_v3 = vpop.f32.mrf.mxu1  ;;  %v838_v5 = vadd.f32 %v837_v2, %v2561_v52 }
  0xb7   :  { %v851_v8 = vadd.f32 %v850_v61, %v838_v5 }
  0xb8   :  { %v852_v10 = vpop.f32.mrf.mxu0 }
  0xb9   :  { %v1091_v9 = vmax.f32 %v851_v8, 0.0 }
  0xbb   :  { %v1102_v12 = vpack.c.bf16 %v1091_v9, %v1090_v6 }
  0xbc   :  { %v839_v14 = vpop.f32.mrf.mxu3 }
  0xbd   :  { %v878_v13 = vpop.f32.mrf.mxu1  ;;  %v1116_v15 = vrot.slane %v1102_v12, 4  ;;  %v1117_v16 = vrot.slane %v1102_v12, 6 }
  0xbf   :  { %v1132_v20 = vsel %vm1129_vm7, %v1116_v15, %v1117_v16 }
  0xc0   :  { %v1134_v21 = vsel %vm1133_vm15, %v1128_v19, %v1132_v20 }
  0xc1   :  { %v1172_v22 = vsel %vm2582_vm0, %v1134_v21, %v1171_v18 }
  0xc2   :  { %1173 = vst [vmem:[%s2639_s3] sm:$0xff] %v1172_v22 }
  0xc4   :  { %v889_v25 = vpop.f32.mrf.mxu0 }
  0xc5   :  { %v902_v23 = vpop.f32.mrf.mxu1  ;;  %v890_v27 = vadd.f32 %v889_v25, %v2561_v52 }
  0xc7   :  { %v863_v24 = vpop.f32.mrf.mxu2  ;;  %v903_v32 = vadd.f32 %v902_v23, %v890_v27 }
  0xc8   :  { %v864_v26 = vadd.f32 %v863_v24, %v2561_v52 }
  0xc9   :  { %v1093_v35 = vmax.f32 %v903_v32, 0.0 }
  0xca   :  { %v877_v31 = vadd.f32 %v876_v3, %v864_v26 }
  0xcc   :  { %v891_v30 = vpop.f32.mrf.mxu0  ;;  %v1092_v34 = vmax.f32 %v877_v31, 0.0 }
  0xcd   :  { %v904_v28 = vpop.f32.mrf.mxu1 }
  0xce   :  { %v1103_v41 = vpack.c.bf16 %v1093_v35, %v1092_v34 }
  0xcf   :  { %v865_v29 = vpop.f32.mrf.mxu2 }
  0xd0   :  { %v1118_v47 = vrot.slane %v1103_v41, 2  ;;  %v1177_v29 = vld [vmem:[%s2639_s3 + $0x10] sm:$0xff] }
  0xd2   :  { %v1137_v53 = vsel %vm1125_vm4, %v1103_v41, %v1118_v47 }
  0xd4   :  { %v915_v33 = vpop.f32.mrf.mxu3  ;;  %v954_v40 = vpop.f32.mrf.mxu0 }
  0xd5   :  { %v916_v36 = vadd.f32 %v915_v33, %v2561_v52 }
  0xd6   :  { %v941_v37 = vpop.f32.mrf.mxu1 }
  0xd7   :  { %v942_v38 = vadd.f32 %v941_v37, %v2561_v52  ;;  %v928_v39 = vpop.f32.mrf.mxu2 }
  0xd8   :  { %v929_v42 = vadd.f32 %v928_v39, %v916_v36 }
  0xd9   :  { %v955_v43 = vadd.f32 %v954_v40, %v942_v38 }
  0xda   :  { %v1094_v44 = vmax.f32 %v929_v42, 0.0 }
  0xdb   :  { %v1095_v45 = vmax.f32 %v955_v43, 0.0 }
  0xdc   :  { %v917_v46 = vpop.f32.mrf.mxu3  ;;  %v956_v56 = vpop.f32.mrf.mxu0 }
  0xdd   :  { %v1104_v49 = vpack.c.bf16 %v1095_v45, %v1094_v44 }
  0xde   :  { %v943_v50 = vpop.f32.mrf.mxu1 }
  0xdf   :  { %v1119_v51 = vrot.slane %v1104_v49, 4  ;;  %v1120_v54 = vrot.slane %v1104_v49, 6  ;;  %v930_v55 = vpop.f32.mrf.mxu2 }
  0xe1   :  { %v1140_v58 = vsel %vm1129_vm7, %v1119_v51, %v1120_v54 }
  0xe2   :  { %v1141_v48 = vsel %vm1133_vm15, %v1137_v53, %v1140_v58 }
  0xe3   :  { %v1175_v60 = vsel %vm2582_vm0, %v1141_v48, %v1174_v57 }
  0xe4   :  { %v980_v59 = vpop.f32.mrf.mxu3  ;;  %1176 = vst [vmem:[%s2639_s3 + $0x8] sm:$0xff] %v1175_v60 }
  0xe6   :  { %v1006_v61 = vpop.f32.mrf.mxu1 }
  0xe8   :  { %v993_v63 = vpop.f32.mrf.mxu0 }
  0xe9   :  { %v994_v2 = vadd.f32 %v993_v63, %v2561_v52 }
  0xeb   :  { %v967_v62 = vpop.f32.mrf.mxu2  ;;  %v1007_v7 = vadd.f32 %v1006_v61, %v994_v2 }
  0xec   :  { %v982_v0 = vpop.f32.mrf.mxu3  ;;  %v968_v1 = vadd.f32 %v967_v62, %v2561_v52 }
  0xed   :  { %v1097_v10 = vmax.f32 %v1007_v7, 0.0 }
  0xee   :  { %v1008_v3 = vpop.f32.mrf.mxu1  ;;  %v981_v6 = vadd.f32 %v980_v59, %v968_v1 }
  0xf0   :  { %v995_v5 = vpop.f32.mrf.mxu0  ;;  %v1096_v9 = vmax.f32 %v981_v6, 0.0 }
  0xf2   :  { %v1105_v16 = vpack.c.bf16 %v1097_v10, %v1096_v9 }
  0xf3   :  { %v969_v4 = vpop.f32.mrf.mxu2 }
  0xf4   :  { %v1121_v23 = vrot.slane %v1105_v16, 2 }
  0xf6   :  { %v1144_v31 = vsel %vm1125_vm4, %v1105_v16, %v1121_v23 }
  0xf8   :  { %v1019_v8 = vpop.f32.mrf.mxu3  ;;  %v1058_v15 = vpop.f32.mrf.mxu0 }
  0xf9   :  { %v1020_v11 = vadd.f32 %v1019_v8, %v2561_v52 }
  0xfa   :  { %v1045_v12 = vpop.f32.mrf.mxu1 }
  0xfb   :  { %v1046_v13 = vadd.f32 %v1045_v12, %v2561_v52  ;;  %v1032_v14 = vpop.f32.mrf.mxu2 }
  0xfc   :  { %v1033_v18 = vadd.f32 %v1032_v14, %v1020_v11 }
  0xfd   :  { %v1059_v19 = vadd.f32 %v1058_v15, %v1046_v13 }
  0xfe   :  { %v1098_v20 = vmax.f32 %v1033_v18, 0.0 }
  0xff   :  { %v1099_v21 = vmax.f32 %v1059_v19, 0.0 }
 0x100   :  { %v1021_v22 = vpop.f32.mrf.mxu3  ;;  %v1060_v30 = vpop.f32.mrf.mxu0 }
 0x101   :  { %v1106_v24 = vpack.c.bf16 %v1099_v21, %v1098_v20 }
 0x102   :  { %v1047_v25 = vpop.f32.mrf.mxu1 }
 0x103   :  { %v1122_v26 = vrot.slane %v1106_v24, 4  ;;  %v1123_v27 = vrot.slane %v1106_v24, 6  ;;  %v1034_v28 = vpop.f32.mrf.mxu2 }
 0x105   :  { %v1147_v32 = vsel %vm1129_vm7, %v1122_v26, %v1123_v27 }
 0x106   :  { %v1148_v33 = vsel %vm1133_vm15, %v1144_v31, %v1147_v32 }
 0x107   :  { %v1178_v35 = vsel %vm2582_vm0, %v1148_v33, %v1177_v29 }
 0x108   :  { %v1084_v34 = vpop.f32.mrf.mxu3  ;;  %1179 = vst [vmem:[%s2639_s3 + $0x10] sm:$0xff] %v1178_v35 }
 0x10f   :  { %v1071_v36 = vpop.f32.mrf.mxu2 }
 0x110   :  { %v1072_v37 = vadd.f32 %v1071_v36, %v2561_v52  ;;  %v1086_v39 = vpop.f32.mrf.mxu3 }
 0x112   :  { %v1085_v38 = vadd.f32 %v1084_v34, %v1072_v37 }
 0x114   :  { %v1100_v40 = vmax.f32 %v1085_v38, 0.0 }
 0x116   :  { %v1107_v41 = vpack.c.bf16 %v1100_v40, %v1100_v40 }
 0x117   :  { %v1073_v42 = vpop.f32.mrf.mxu2 }
 0x118   :  { %v1124_v43 = vrot.slane %v1107_v41, 2 }
 0x11a   :  { %v1151_v44 = vsel %vm1125_vm4, %v1107_v41, %v1124_v43 }
 0x11b   :  { %v1183_v45 = vsel %vm1181_vm3, %v1151_v44, %v1182_v17 }
 0x11c   :  { %1184 = vst [vmem:[%s2639_s3 + $0x18] sm:$0x3] %v1183_v45 }

// kernel: autoencoder_forward.18
= control target key start
LH: loop header
LB: loop body
LE: loop exit
PB: predicated region body
PF: predicated region fallthrough
CT: control target
= control target key end

     0   :  { %vm81_vm0 = vcmask 228352   ;;  %vm359_vm1 = vcmask 1045504   ;;  %vm643_vm2 = vcmask 453632   ;;  %s1156_s1 = inlined_call_operand.vmem [shape: bf16[56,28], index: 1, kind: input, shape index: {}, may-alias: {1,2}]   ;;  %s1157_s0 = inlined_call_operand.vmem [shape: bf16[6,28,28], index: 0, kind: input, shape index: {}]   ;;  %s1158_s2 = inlined_call_operand.vmem [shape: bf16[56,28], index: 2, kind: input, shape index: {}, may-alias: {1,2}]   ;;  %s1159_s3 = inlined_call_operand.vmem [shape: bf16[6,56,56], index: 3, kind: output, shape index: {}]  }
   0x1   :  { %v45_v0 = vld [vmem:[%s1156_s1 + $0x18] sm:$0xf]  ;;  %v812_v4 = vld [vmem:[%s1156_s1 + $0x10] sm:$0xff]  ;;  %v811_v6 = vld [vmem:[%s1156_s1 + $0x8] sm:$0xff] }
   0x2   :  { %v76_v1 = vunpack.c.l.b16 %v45_v0  ;;  %v95_v5 = vsel %vm81_vm0, %v812_v4, 0  ;;  %v92_v7 = vsel %vm81_vm0, %v811_v6, 0  ;;  %v810_v8 = vld [vmem:[%s1156_s1] sm:$0xff]  ;;  %v800_v11 = vld [vmem:[%s1157_s0 + $0x10] sm:$0xff]  ;;  %v696_v14 = vld [vmem:[%s1157_s0 + $0x8] sm:$0xf] }
   0x3   :  { %v89_v9 = vsel %vm81_vm0, %v810_v8, 0  ;;  %v798_v10 = vld [vmem:[%s1157_s0] sm:$0xff]  ;;  %v804_v13 = vld [vmem:[%s1157_s0 + $0x30] sm:$0xff]  ;;  %v799_v15 = vld [vmem:[%s1157_s0 + $0x8] sm:$0x30] }
   0x4   :  { %v80_v2 = vpack.c.b16 %v76_v1, %v76_v1  ;;  %v802_v12 = vld [vmem:[%s1157_s0 + $0x20] sm:$0xff]  ;;  %v718_v16 = vld [vmem:[%s1157_s0 + $0x18] sm:$0xf]  ;;  %v801_v17 = vld [vmem:[%s1157_s0 + $0x18] sm:$0x30]  ;;  %v697_v19 = vor.u32 %v799_v15, %v696_v14 }
   0x5   :  { %v728_v18 = vld [vmem:[%s1157_s0 + $0x28] sm:$0xf]  ;;  %v719_v20 = vor.u32 %v801_v17, %v718_v16  ;;  %v803_v21 = vld [vmem:[%s1157_s0 + $0x28] sm:$0x30]  ;;  %v738_v22 = vld [vmem:[%s1157_s0 + $0x38] sm:$0xf] }
   0x6   :  { %v98_v3 = vsel %vm81_vm0, %v80_v2, 0  ;;  %v805_v23 = vld [vmem:[%s1157_s0 + $0x38] sm:$0x30]  ;;  %v729_v24 = vor.u32 %v803_v21, %v728_v18  ;;  %v806_v26 = vld [vmem:[%s1157_s0 + $0x40] sm:$0xff]  ;;  %v808_v27 = vld [vmem:[%s1157_s0 + $0x50] sm:$0xff] }
   0x7   :  { %104 = vmatpush.bf16.xpose.msra.mxu0 %v98_v3  ;;  %139 = vmatpush.bf16.xpose.msra.mxu1 %v98_v3  ;;  %v739_v25 = vor.u32 %v805_v23, %v738_v22  ;;  %v748_v28 = vld [vmem:[%s1157_s0 + $0x48] sm:$0xf]  ;;  %v807_v29 = vld [vmem:[%s1157_s0 + $0x48] sm:$0x30]  ;;  %v758_v30 = vld [vmem:[%s1157_s0 + $0x58] sm:$0xf] }
   0x8   :  { %174 = vmatpush.bf16.xpose.msra.mxu2 %v98_v3  ;;  %209 = vmatpush.bf16.xpose.msra.mxu3 %v98_v3  ;;  %v809_v31 = vld [vmem:[%s1157_s0 + $0x58] sm:$0x30]  ;;  %v749_v32 = vor.u32 %v807_v29, %v748_v28  ;;  %v936_v23 = vld [vmem:[%s1158_s2] sm:$0xff] }
   0x9   :  { %v759_v33 = vor.u32 %v809_v31, %v758_v30 }
   0xf   :  { %105 = vmatpush.bf16.xpose.msra.mxu0 %v95_v5  ;;  %140 = vmatpush.bf16.xpose.msra.mxu1 %v95_v5 }
  0x10   :  { %175 = vmatpush.bf16.xpose.msra.mxu2 %v95_v5  ;;  %210 = vmatpush.bf16.xpose.msra.mxu3 %v95_v5 }
  0x17   :  { %106 = vmatpush.bf16.xpose.msra.mxu0 %v92_v7  ;;  %141 = vmatpush.bf16.xpose.msra.mxu1 %v92_v7 }
  0x18   :  { %176 = vmatpush.bf16.xpose.msra.mxu2 %v92_v7  ;;  %211 = vmatpush.bf16.xpose.msra.mxu3 %v92_v7 }
  0x1f   :  { %107 = vmatpush.bf16.xpose.msra.mxu0 %v89_v9  ;;  %142 = vmatpush.bf16.xpose.msra.mxu1 %v89_v9 }
  0x20   :  { %177 = vmatpush.bf16.xpose.msra.mxu2 %v89_v9  ;;  %212 = vmatpush.bf16.xpose.msra.mxu3 %v89_v9 }
  0x26   :  { %710 = vmatmul.msk.bf16.vlgmr.msra.gmra.mxu0 %vm81_vm0, %v798_v10  ;;  %720 = vmatmul.msk.bf16.vlgmr.msra.gmra.mxu1 %vm81_vm0, %v800_v11 }
  0x27   :  { %244 = vmatpush.bf16.xpose.msrb.mxu0 %v98_v3  ;;  %279 = vmatpush.bf16.xpose.msrb.mxu1 %v98_v3 }
  0x28   :  { %730 = vmatmul.msk.bf16.vlgmr.msra.gmra.mxu2 %vm81_vm0, %v802_v12  ;;  %740 = vmatmul.msk.bf16.vlgmr.msra.gmra.mxu3 %vm81_vm0, %v804_v13 }
  0x2f   :  { %245 = vmatpush.bf16.xpose.msrb.mxu0 %v95_v5  ;;  %280 = vmatpush.bf16.xpose.msrb.mxu1 %v95_v5 }
  0x36   :  { %711 = vmatmul.msk.bf16.gmra.mxu0 %vm81_vm0, %v697_v19  ;;  %721 = vmatmul.msk.bf16.gmra.mxu1 %vm81_vm0, %v719_v20  ;;  %v931_v20 = vld [vmem:[%s1158_s2 + $0x8] sm:$0xff] }
  0x37   :  { %246 = vmatpush.bf16.xpose.msrb.mxu0 %v92_v7  ;;  %281 = vmatpush.bf16.xpose.msrb.mxu1 %v92_v7 }
  0x38   :  { %731 = vmatmul.msk.bf16.gmra.mxu2 %vm81_vm0, %v729_v24  ;;  %741 = vmatmul.msk.bf16.gmra.mxu3 %vm81_vm0, %v739_v25 }
  0x3f   :  { %247 = vmatpush.bf16.xpose.msrb.mxu0 %v89_v9  ;;  %282 = vmatpush.bf16.xpose.msrb.mxu1 %v89_v9 }
  0x46   :  { %750 = vmatmul.msk.bf16.vlgmr.msrb.gmra.mxu0 %vm81_vm0, %v806_v26  ;;  %760 = vmatmul.msk.bf16.vlgmr.msrb.gmra.mxu1 %vm81_vm0, %v808_v27 }
  0x56   :  { %751 = vmatmul.msk.bf16.gmra.mxu0 %vm81_vm0, %v749_v32  ;;  %761 = vmatmul.msk.bf16.gmra.mxu1 %vm81_vm0, %v759_v33 }
  0xa3   :  { %v109_v34 = vpop.f32.mrf.mxu0  ;;  %v144_v35 = vpop.f32.mrf.mxu1 }
  0xa4   :  { %v294_v53 = vpack.c.bf16 %v109_v34, %v109_v34  ;;  %v298_v60 = vpack.c.bf16 %v144_v35, %v144_v35 }
  0xa6   :  { %v340_v63 = vunpack.c.l.b16 %v294_v53  ;;  %v395_v9 = vunpack.c.l.b16 %v298_v60  ;;  %v52_v53 = vld [vmem:[%s1158_s2 + $0x18] sm:$0xf] }
  0xab   :  { %v111_v36 = vpop.f32.mrf.mxu0  ;;  %v146_v37 = vpop.f32.mrf.mxu1 }
  0xac   :  { %v179_v38 = vpop.f32.mrf.mxu2  ;;  %v214_v39 = vpop.f32.mrf.mxu3  ;;  %v295_v46 = vpack.c.bf16 %v111_v36, %v111_v36  ;;  %v299_v54 = vpack.c.bf16 %v146_v37, %v146_v37 }
  0xad   :  { %v302_v8 = vpack.c.bf16 %v179_v38, %v179_v38  ;;  %v306_v10 = vpack.c.bf16 %v214_v39, %v214_v39  ;;  %v815_v38 = vld [vmem:[%s1158_s2 + $0x10] sm:$0xff] }
  0xae   :  { %v341_v59 = vunpack.c.l.b16 %v295_v46  ;;  %v396_v2 = vunpack.c.l.b16 %v299_v54 }
  0xaf   :  { %v437_v24 = vunpack.c.l.b16 %v302_v8  ;;  %v479_v25 = vunpack.c.l.b16 %v306_v10 }
  0xb0   :  { %v344_v5 = vpack.c.b16 %v341_v59, %v340_v63  ;;  %v399_v19 = vpack.c.b16 %v396_v2, %v395_v9 }
  0xb3   :  { %v114_v40 = vpop.f32.mrf.mxu0  ;;  %v149_v41 = vpop.f32.mrf.mxu1 }
  0xb4   :  { %v181_v42 = vpop.f32.mrf.mxu2  ;;  %v216_v43 = vpop.f32.mrf.mxu3  ;;  %v296_v44 = vpack.c.bf16 %v114_v40, %v114_v40  ;;  %v300_v45 = vpack.c.bf16 %v149_v41, %v149_v41 }
  0xb5   :  { %v303_v11 = vpack.c.bf16 %v181_v42, %v181_v42  ;;  %v307_v12 = vpack.c.bf16 %v216_v43, %v216_v43 }
  0xb6   :  { %v342_v55 = vunpack.c.l.b16 %v296_v44  ;;  %v397_v56 = vunpack.c.l.b16 %v300_v45 }
  0xb7   :  { %v438_v26 = vunpack.c.l.b16 %v303_v11  ;;  %v480_v27 = vunpack.c.l.b16 %v307_v12 }
  0xb9   :  { %v441_v34 = vpack.c.b16 %v438_v26, %v437_v24  ;;  %v483_v35 = vpack.c.b16 %v480_v27, %v479_v25 }
  0xbb   :  { %v116_v47 = vpop.f32.mrf.mxu0  ;;  %v151_v48 = vpop.f32.mrf.mxu1 }
  0xbc   :  { %v297_v49 = vpack.c.bf16 %v116_v47, %v116_v47  ;;  %v301_v50 = vpack.c.bf16 %v151_v48, %v151_v48  ;;  %v184_v51 = vpop.f32.mrf.mxu2  ;;  %v219_v52 = vpop.f32.mrf.mxu3 }
  0xbd   :  { %v304_v0 = vpack.c.bf16 %v184_v51, %v184_v51  ;;  %v308_v1 = vpack.c.bf16 %v219_v52, %v219_v52 }
  0xbe   :  { %v343_v57 = vunpack.c.l.b16 %v297_v49  ;;  %v398_v58 = vunpack.c.l.b16 %v301_v50 }
  0xbf   :  { %v439_v15 = vunpack.c.l.b16 %v304_v0  ;;  %v481_v16 = vunpack.c.l.b16 %v308_v1 }
  0xc0   :  { %v345_v61 = vpack.c.b16 %v343_v57, %v342_v55  ;;  %v400_v62 = vpack.c.b16 %v398_v58, %v397_v56 }
  0xc2   :  { %v361_v3 = vsel %vm359_vm1, %v345_v61, 0  ;;  %v403_v4 = vsel %vm359_vm1, %v400_v62, 0  ;;  %v331_v62 = vunpack.c.l.b16 %v52_v53 }
  0xc3   :  { %v924_v6 = vpop.f32.mrf.mxu0  ;;  %v926_v7 = vpop.f32.mrf.mxu1  ;;  %369 = vmatpush.bf16.msra.mxu0 %v361_v3  ;;  %816 = vmatpush.bf16.msrb.mxu2 %v361_v3 }
  0xc4   :  { %411 = vmatpush.bf16.msra.mxu1 %v403_v4  ;;  %818 = vmatpush.bf16.msrb.mxu3 %v403_v4  ;;  %v186_v13 = vpop.f32.mrf.mxu2  ;;  %v221_v14 = vpop.f32.mrf.mxu3  ;;  %v310_v47 = vpack.c.bf16 %v924_v6, %v924_v6  ;;  %v314_v48 = vpack.c.bf16 %v926_v7, %v926_v7  ;;  %v335_v1 = vpack.c.b16 %v331_v62, %v331_v62 }
  0xc5   :  { %v305_v17 = vpack.c.bf16 %v186_v13, %v186_v13  ;;  %v309_v18 = vpack.c.bf16 %v221_v14, %v221_v14 }
  0xc6   :  { %v521_v56 = vunpack.c.l.b16 %v310_v47  ;;  %v563_v57 = vunpack.c.l.b16 %v314_v48 }
  0xc7   :  { %370 = vmatpush.bf16.msra.mxu0 %v344_v5  ;;  %817 = vmatpush.bf16.msrb.mxu2 %v344_v5  ;;  %v440_v21 = vunpack.c.l.b16 %v305_v17  ;;  %v482_v22 = vunpack.c.l.b16 %v309_v18 }
  0xc8   :  { %412 = vmatpush.bf16.msra.mxu1 %v399_v19  ;;  %819 = vmatpush.bf16.msrb.mxu3 %v399_v19 }
  0xc9   :  { %v442_v28 = vpack.c.b16 %v440_v21, %v439_v15  ;;  %v484_v29 = vpack.c.b16 %v482_v22, %v481_v16 }
  0xca   :  { %775 = vmatmul.msk.bf16.vlgmr.msrb.gmra.mxu2 %vm81_vm0, %v931_v20  ;;  %774 = vmatmul.msk.bf16.vlgmr.msra.gmra.mxu0 %vm81_vm0, %v936_v23 }
  0xcb   :  { %v251_v30 = vpop.f32.mrf.mxu0  ;;  %v286_v31 = vpop.f32.mrf.mxu1  ;;  %779 = vmatmul.msk.bf16.vlgmr.msrb.gmra.mxu3 %vm81_vm0, %v931_v20  ;;  %v445_v32 = vsel %vm359_vm1, %v442_v28, 0  ;;  %v487_v33 = vsel %vm359_vm1, %v484_v29, 0  ;;  %778 = vmatmul.msk.bf16.vlgmr.msra.gmra.mxu1 %vm81_vm0, %v936_v23 }
  0xcc   :  { %453 = vmatpush.bf16.msrb.mxu0 %v445_v32  ;;  %495 = vmatpush.bf16.msrb.mxu1 %v487_v33  ;;  %v311_v49 = vpack.c.bf16 %v251_v30, %v251_v30  ;;  %v315_v50 = vpack.c.bf16 %v286_v31, %v286_v31 }
  0xce   :  { %v522_v58 = vunpack.c.l.b16 %v311_v49  ;;  %v564_v59 = vunpack.c.l.b16 %v315_v50 }
  0xd0   :  { %454 = vmatpush.bf16.msrb.mxu0 %v441_v34  ;;  %496 = vmatpush.bf16.msrb.mxu1 %v483_v35  ;;  %v525_v63 = vpack.c.b16 %v522_v58, %v521_v56  ;;  %v567_v0 = vpack.c.b16 %v564_v59, %v563_v57 }
  0xd3   :  { %v254_v36 = vpop.f32.mrf.mxu0  ;;  %v289_v37 = vpop.f32.mrf.mxu1 }
  0xd4   :  { %v312_v39 = vpack.c.bf16 %v254_v36, %v254_v36  ;;  %v316_v40 = vpack.c.bf16 %v289_v37, %v289_v37 }
  0xd6   :  { %v523_v43 = vunpack.c.l.b16 %v312_v39  ;;  %v565_v44 = vunpack.c.l.b16 %v316_v40 }
  0xda   :  { %776 = vmatmul.msk.bf16.gmra.mxu2 %vm81_vm0, %v815_v38  ;;  %782 = vmatmul.msk.bf16.vlgmr.msrb.gmra.mxu0 %vm81_vm0, %v936_v23 }
  0xdb   :  { %v256_v41 = vpop.f32.mrf.mxu0  ;;  %v291_v42 = vpop.f32.mrf.mxu1  ;;  %780 = vmatmul.msk.bf16.gmra.mxu3 %vm81_vm0, %v815_v38  ;;  %786 = vmatmul.msk.bf16.vlgmr.msrb.gmra.mxu1 %vm81_vm0, %v936_v23 }
  0xdc   :  { %v313_v45 = vpack.c.bf16 %v256_v41, %v256_v41  ;;  %v317_v46 = vpack.c.bf16 %v291_v42, %v291_v42 }
  0xde   :  { %v524_v51 = vunpack.c.l.b16 %v313_v45  ;;  %v566_v52 = vunpack.c.l.b16 %v317_v46 }
  0xe0   :  { %v526_v54 = vpack.c.b16 %v524_v51, %v523_v43  ;;  %v568_v55 = vpack.c.b16 %v566_v52, %v565_v44 }
  0xe2   :  { %v529_v60 = vsel %vm359_vm1, %v526_v54, 0  ;;  %v571_v61 = vsel %vm359_vm1, %v568_v55, 0 }
  0xe3   :  { %537 = vmatpush.bf16.msra.mxu2 %v529_v60  ;;  %579 = vmatpush.bf16.msra.mxu3 %v571_v61 }
  0xe7   :  { %538 = vmatpush.bf16.msra.mxu2 %v525_v63  ;;  %580 = vmatpush.bf16.msra.mxu3 %v567_v0 }
  0xea   :  { %777 = vmatmul.msk.bf16.gmra.mxu2 %vm81_vm0, %v335_v1  ;;  %783 = vmatmul.msk.bf16.gmra.mxu0 %vm81_vm0, %v931_v20 }
  0xeb   :  { %781 = vmatmul.msk.bf16.gmra.mxu3 %vm81_vm0, %v335_v1  ;;  %787 = vmatmul.msk.bf16.gmra.mxu1 %vm81_vm0, %v931_v20 }
  0xfa   :  { %790 = vmatmul.msk.bf16.vlgmr.msra.gmra.mxu2 %vm81_vm0, %v936_v23  ;;  %784 = vmatmul.msk.bf16.gmra.mxu0 %vm81_vm0, %v815_v38 }
  0xfb   :  { %794 = vmatmul.msk.bf16.vlgmr.msra.gmra.mxu3 %vm81_vm0, %v936_v23  ;;  %788 = vmatmul.msk.bf16.gmra.mxu1 %vm81_vm0, %v815_v38 }
 0x10a   :  { %791 = vmatmul.msk.bf16.gmra.mxu2 %vm81_vm0, %v931_v20  ;;  %785 = vmatmul.msk.bf16.gmra.mxu0 %vm81_vm0, %v335_v1 }
 0x10b   :  { %795 = vmatmul.msk.bf16.gmra.mxu3 %vm81_vm0, %v931_v20  ;;  %789 = vmatmul.msk.bf16.gmra.mxu1 %vm81_vm0, %v335_v1 }
 0x11a   :  { %792 = vmatmul.msk.bf16.gmra.mxu2 %vm81_vm0, %v815_v38 }
 0x11b   :  { %796 = vmatmul.msk.bf16.gmra.mxu3 %vm81_vm0, %v815_v38 }
 0x12a   :  { %793 = vmatmul.msk.bf16.gmra.mxu2 %vm81_vm0, %v335_v1 }
 0x12b   :  { %797 = vmatmul.msk.bf16.gmra.mxu3 %vm81_vm0, %v335_v1 }
 0x147   :  { %v372_v2 = vpop.f32.mrf.mxu0 }
 0x148   :  { %v414_v3 = vpop.f32.mrf.mxu1  ;;  %v601_v4 = vpack.c.bf16 %v372_v2, %v372_v2 }
 0x149   :  { %v608_v9 = vpack.c.bf16 %v414_v3, %v414_v3 }
 0x14a   :  { %644 = vst.msk [vmem:[%s1159_s3] sm:$0xf] %vm643_vm2, %v601_v4 }
 0x14b   :  { %651 = vst.msk [vmem:[%s1159_s3 + $0x1c] sm:$0xf] %vm643_vm2, %v608_v9 }
 0x14d   :  { %v377_v5 = vpop.f32.mrf.mxu2 }
 0x14e   :  { %v603_v6 = vpack.c.bf16 %v377_v5, %v377_v5  ;;  %v419_v7 = vpop.f32.mrf.mxu3 }
 0x14f   :  { %v610_v8 = vpack.c.bf16 %v419_v7, %v419_v7  ;;  %v374_v10 = vpop.f32.mrf.mxu0 }
 0x150   :  { %646 = vst.msk [vmem:[%s1159_s3 + $0x8] sm:$0xf] %vm643_vm2, %v603_v6  ;;  %v602_v11 = vpack.c.bf16 %v374_v10, %v374_v10  ;;  %v416_v12 = vpop.f32.mrf.mxu1 }
 0x151   :  { %653 = vst.msk [vmem:[%s1159_s3 + $0x24] sm:$0xf] %vm643_vm2, %v610_v8  ;;  %v609_v13 = vpack.c.bf16 %v416_v12, %v416_v12 }
 0x152   :  { %645 = vst.msk [vmem:[%s1159_s3 + $0x4] sm:$0xf] %vm643_vm2, %v602_v11 }
 0x153   :  { %652 = vst.msk [vmem:[%s1159_s3 + $0x20] sm:$0xf] %vm643_vm2, %v609_v13 }
 0x155   :  { %v379_v14 = vpop.f32.mrf.mxu2 }
 0x156   :  { %v604_v15 = vpack.c.bf16 %v379_v14, %v379_v14  ;;  %v421_v16 = vpop.f32.mrf.mxu3 }
 0x157   :  { %v611_v17 = vpack.c.bf16 %v421_v16, %v421_v16  ;;  %v456_v18 = vpop.f32.mrf.mxu0 }
 0x158   :  { %647 = vst.msk [vmem:[%s1159_s3 + $0xc] sm:$0xf] %vm643_vm2, %v604_v15  ;;  %v615_v19 = vpack.c.bf16 %v456_v18, %v456_v18  ;;  %v498_v20 = vpop.f32.mrf.mxu1 }
 0x159   :  { %654 = vst.msk [vmem:[%s1159_s3 + $0x28] sm:$0xf] %vm643_vm2, %v611_v17  ;;  %v622_v21 = vpack.c.bf16 %v498_v20, %v498_v20 }
 0x15a   :  { %658 = vst.msk [vmem:[%s1159_s3 + $0x38] sm:$0xf] %vm643_vm2, %v615_v19 }
 0x15b   :  { %665 = vst.msk [vmem:[%s1159_s3 + $0x54] sm:$0xf] %vm643_vm2, %v622_v21 }
 0x15d   :  { %v382_v22 = vpop.f32.mrf.mxu2 }
 0x15e   :  { %v605_v23 = vpack.c.bf16 %v382_v22, %v382_v22  ;;  %v424_v24 = vpop.f32.mrf.mxu3 }
 0x15f   :  { %v612_v25 = vpack.c.bf16 %v424_v24, %v424_v24  ;;  %v458_v26 = vpop.f32.mrf.mxu0 }
 0x160   :  { %648 = vst.msk [vmem:[%s1159_s3 + $0x10] sm:$0xf] %vm643_vm2, %v605_v23  ;;  %v616_v27 = vpack.c.bf16 %v458_v26, %v458_v26  ;;  %v500_v28 = vpop.f32.mrf.mxu1 }
 0x161   :  { %655 = vst.msk [vmem:[%s1159_s3 + $0x2c] sm:$0xf] %vm643_vm2, %v612_v25  ;;  %v623_v29 = vpack.c.bf16 %v500_v28, %v500_v28 }
 0x162   :  { %659 = vst.msk [vmem:[%s1159_s3 + $0x3c] sm:$0xf] %vm643_vm2, %v616_v27 }
 0x163   :  { %666 = vst.msk [vmem:[%s1159_s3 + $0x58] sm:$0xf] %vm643_vm2, %v623_v29 }
 0x165   :  { %v384_v30 = vpop.f32.mrf.mxu2 }
 0x166   :  { %v606_v31 = vpack.c.bf16 %v384_v30, %v384_v30  ;;  %v426_v32 = vpop.f32.mrf.mxu3 }
 0x167   :  { %v613_v33 = vpack.c.bf16 %v426_v32, %v426_v32  ;;  %v461_v34 = vpop.f32.mrf.mxu0 }
 0x168   :  { %649 = vst.msk [vmem:[%s1159_s3 + $0x14] sm:$0xf] %vm643_vm2, %v606_v31  ;;  %v503_v35 = vpop.f32.mrf.mxu1  ;;  %v617_v36 = vpack.c.bf16 %v461_v34, %v461_v34 }
 0x169   :  { %656 = vst.msk [vmem:[%s1159_s3 + $0x30] sm:$0xf] %vm643_vm2, %v613_v33  ;;  %v624_v37 = vpack.c.bf16 %v503_v35, %v503_v35 }
 0x16a   :  { %660 = vst.msk [vmem:[%s1159_s3 + $0x40] sm:$0xf] %vm643_vm2, %v617_v36 }
 0x16b   :  { %667 = vst.msk [vmem:[%s1159_s3 + $0x5c] sm:$0xf] %vm643_vm2, %v624_v37 }
 0x16d   :  { %v387_v38 = vpop.f32.mrf.mxu2 }
 0x16e   :  { %v607_v39 = vpack.c.bf16 %v387_v38, %v387_v38  ;;  %v429_v40 = vpop.f32.mrf.mxu3 }
 0x16f   :  { %v614_v41 = vpack.c.bf16 %v429_v40, %v429_v40  ;;  %v463_v42 = vpop.f32.mrf.mxu0 }
 0x170   :  { %650 = vst.msk [vmem:[%s1159_s3 + $0x18] sm:$0xf] %vm643_vm2, %v607_v39  ;;  %v618_v43 = vpack.c.bf16 %v463_v42, %v463_v42  ;;  %v505_v44 = vpop.f32.mrf.mxu1 }
 0x171   :  { %657 = vst.msk [vmem:[%s1159_s3 + $0x34] sm:$0xf] %vm643_vm2, %v614_v41  ;;  %v625_v45 = vpack.c.bf16 %v505_v44, %v505_v44 }
 0x172   :  { %661 = vst.msk [vmem:[%s1159_s3 + $0x44] sm:$0xf] %vm643_vm2, %v618_v43 }
 0x173   :  { %668 = vst.msk [vmem:[%s1159_s3 + $0x60] sm:$0xf] %vm643_vm2, %v625_v45 }
 0x175   :  { %v389_v46 = vpop.f32.mrf.mxu2 }
 0x176   :  { %v431_v47 = vpop.f32.mrf.mxu3 }
 0x177   :  { %v466_v48 = vpop.f32.mrf.mxu0 }
 0x178   :  { %v508_v49 = vpop.f32.mrf.mxu1  ;;  %v619_v50 = vpack.c.bf16 %v466_v48, %v466_v48 }
 0x179   :  { %v626_v51 = vpack.c.bf16 %v508_v49, %v508_v49 }
 0x17a   :  { %662 = vst.msk [vmem:[%s1159_s3 + $0x48] sm:$0xf] %vm643_vm2, %v619_v50 }
 0x17b   :  { %669 = vst.msk [vmem:[%s1159_s3 + $0x64] sm:$0xf] %vm643_vm2, %v626_v51 }
 0x17d   :  { %v540_v52 = vpop.f32.mrf.mxu2 }
 0x17e   :  { %v629_v53 = vpack.c.bf16 %v540_v52, %v540_v52  ;;  %v582_v54 = vpop.f32.mrf.mxu3 }
 0x17f   :  { %v636_v55 = vpack.c.bf16 %v582_v54, %v582_v54  ;;  %v468_v56 = vpop.f32.mrf.mxu0 }
 0x180   :  { %672 = vst.msk [vmem:[%s1159_s3 + $0x70] sm:$0xf] %vm643_vm2, %v629_v53  ;;  %v620_v57 = vpack.c.bf16 %v468_v56, %v468_v56  ;;  %v510_v58 = vpop.f32.mrf.mxu1 }
 0x181   :  { %679 = vst.msk [vmem:[%s1159_s3 + $0x8c] sm:$0xf] %vm643_vm2, %v636_v55  ;;  %v627_v59 = vpack.c.bf16 %v510_v58, %v510_v58 }
 0x182   :  { %663 = vst.msk [vmem:[%s1159_s3 + $0x4c] sm:$0xf] %vm643_vm2, %v620_v57 }
 0x183   :  { %670 = vst.msk [vmem:[%s1159_s3 + $0x68] sm:$0xf] %vm643_vm2, %v627_v59 }
 0x185   :  { %v542_v60 = vpop.f32.mrf.mxu2 }
 0x186   :  { %v630_v61 = vpack.c.bf16 %v542_v60, %v542_v60  ;;  %v584_v62 = vpop.f32.mrf.mxu3 }
 0x187   :  { %v637_v63 = vpack.c.bf16 %v584_v62, %v584_v62  ;;  %v471_v0 = vpop.f32.mrf.mxu0 }
 0x188   :  { %673 = vst.msk [vmem:[%s1159_s3 + $0x74] sm:$0xf] %vm643_vm2, %v630_v61  ;;  %v513_v1 = vpop.f32.mrf.mxu1  ;;  %v621_v2 = vpack.c.bf16 %v471_v0, %v471_v0 }
 0x189   :  { %680 = vst.msk [vmem:[%s1159_s3 + $0x90] sm:$0xf] %vm643_vm2, %v637_v63  ;;  %v628_v3 = vpack.c.bf16 %v513_v1, %v513_v1 }
 0x18a   :  { %664 = vst.msk [vmem:[%s1159_s3 + $0x50] sm:$0xf] %vm643_vm2, %v621_v2 }
 0x18b   :  { %671 = vst.msk [vmem:[%s1159_s3 + $0x6c] sm:$0xf] %vm643_vm2, %v628_v3 }
 0x18d   :  { %v545_v4 = vpop.f32.mrf.mxu2 }
 0x18e   :  { %v631_v5 = vpack.c.bf16 %v545_v4, %v545_v4  ;;  %v587_v6 = vpop.f32.mrf.mxu3 }
 0x18f   :  { %v638_v7 = vpack.c.bf16 %v587_v6, %v587_v6  ;;  %v473_v8 = vpop.f32.mrf.mxu0 }
 0x190   :  { %674 = vst.msk [vmem:[%s1159_s3 + $0x78] sm:$0xf] %vm643_vm2, %v631_v5  ;;  %v515_v9 = vpop.f32.mrf.mxu1 }
 0x191   :  { %681 = vst.msk [vmem:[%s1159_s3 + $0x94] sm:$0xf] %vm643_vm2, %v638_v7 }
 0x195   :  { %v547_v10 = vpop.f32.mrf.mxu2 }
 0x196   :  { %v632_v11 = vpack.c.bf16 %v547_v10, %v547_v10  ;;  %v589_v12 = vpop.f32.mrf.mxu3 }
 0x197   :  { %v639_v13 = vpack.c.bf16 %v589_v12, %v589_v12 }
 0x198   :  { %675 = vst.msk [vmem:[%s1159_s3 + $0x7c] sm:$0xf] %vm643_vm2, %v632_v11 }
 0x199   :  { %682 = vst.msk [vmem:[%s1159_s3 + $0x98] sm:$0xf] %vm643_vm2, %v639_v13 }
 0x19d   :  { %v550_v14 = vpop.f32.mrf.mxu2 }
 0x19e   :  { %v633_v15 = vpack.c.bf16 %v550_v14, %v550_v14  ;;  %v592_v16 = vpop.f32.mrf.mxu3 }
 0x19f   :  { %v640_v17 = vpack.c.bf16 %v592_v16, %v592_v16 }
 0x1a0   :  { %676 = vst.msk [vmem:[%s1159_s3 + $0x80] sm:$0xf] %vm643_vm2, %v633_v15 }
 0x1a1   :  { %683 = vst.msk [vmem:[%s1159_s3 + $0x9c] sm:$0xf] %vm643_vm2, %v640_v17 }
 0x1a5   :  { %v552_v18 = vpop.f32.mrf.mxu2 }
 0x1a6   :  { %v634_v19 = vpack.c.bf16 %v552_v18, %v552_v18  ;;  %v594_v20 = vpop.f32.mrf.mxu3 }
 0x1a7   :  { %v641_v21 = vpack.c.bf16 %v594_v20, %v594_v20 }
 0x1a8   :  { %677 = vst.msk [vmem:[%s1159_s3 + $0x84] sm:$0xf] %vm643_vm2, %v634_v19 }
 0x1a9   :  { %684 = vst.msk [vmem:[%s1159_s3 + $0xa0] sm:$0xf] %vm643_vm2, %v641_v21 }
 0x1ad   :  { %v555_v22 = vpop.f32.mrf.mxu2 }
 0x1ae   :  { %v635_v23 = vpack.c.bf16 %v555_v22, %v555_v22  ;;  %v597_v24 = vpop.f32.mrf.mxu3 }
 0x1af   :  { %v642_v25 = vpack.c.bf16 %v597_v24, %v597_v24 }
 0x1b0   :  { %678 = vst.msk [vmem:[%s1159_s3 + $0x88] sm:$0xf] %vm643_vm2, %v635_v23 }
 0x1b1   :  { %685 = vst.msk [vmem:[%s1159_s3 + $0xa4] sm:$0xf] %vm643_vm2, %v642_v25 }
 0x1b5   :  { %v557_v26 = vpop.f32.mrf.mxu2 }
 0x1b6   :  { %v599_v27 = vpop.f32.mrf.mxu3 }

// kernel: autoencoder_forward.19
= control target key start
LH: loop header
LB: loop body
LE: loop exit
PB: predicated region body
PF: predicated region fallthrough
CT: control target
= control target key end

     0   :  { %s2536_s12 = smov 0   ;;  %s2538_s13 = smov 0   ;;  %s3543_s0 = inlined_call_operand.vmem [shape: bf16[3,32], index: 0, kind: input, shape index: {}]   ;;  %s3544_s1 = inlined_call_operand.vmem [shape: bf16[32,6272], index: 1, kind: input, shape index: {}]   ;;  %s3545_s2 = inlined_call_operand.vmem [shape: f32[3,1], index: 2, kind: input, shape index: {}]   ;;  %s3546_s3 = inlined_call_operand.vmem [shape: f32[3,6272], index: 3, kind: output, shape index: {}]  }
   0x1   :  { %s2540_s14 = smov 0  }
   0x2 LB: > { %s2552_s15 = sadd.s32 4294967295, %s2381_s14   ;;  %s2555_s16 = sadd.s32 1, %s2381_s14   ;;  %s2381_s14 = sphi %s2540_s14, %s3603_s14   ;;  %s2377_s13 = sphi %s2538_s13, %s3602_s13   ;;  %s2373_s12 = sphi %s2536_s12, %s3601_s12  }
   0x3   : > { %s38_s17 = ssub.s32 %s2381_s14, %s2555_s16  ;;  %s41_s18 = sadd.s32 1, %s2377_s13 }
   0x4   : > { %p39_p0 = scmp.eq.s32.totalorder %s38_s17, 0  ;;  %p48_p1 = scmp.ne.s32.totalorder %s2377_s13, %s2373_s12 }
   0x5   : > { %p49_p2 = scmp.eq.s32.totalorder %s2381_s14, 0  ;;  %p99_p3 = scmp.eq.s32.totalorder %s2552_s15, 3 }
   0x6   : > { %s2565_s19 = scalar_select %p39_p0, %s2377_s13, %s41_s18  }
   0x7   : > { %p50_p4 = por %p49_p2, %p48_p1  ;;  %p2567_p5 = por %p99_p3, %p48_p1 }
   0x8   : > { %p1650_p6 = scmp.ge.s32.totalorder %s2381_s14, 4 }
   0xa   : > { %127 = sbr.rel (%p1650_p6) target bundleno = 169 (0xa9), region = 24 }
   0xf   : > { %130 = sbr.rel (!%p50_p4) target bundleno = 169 (0xa9), region = 28  ;;  %s132_s21 = sand.u32 (%p50_p4), 1, %s2377_s13  }
  0x10   : > { %s135_s22 = smul.u32 (%p50_p4), 14, %s2381_s14 }
  0x11   : > { %s1886_s23 = smul.u32 (%p50_p4), 224, %s132_s21 }
  0x12   : > { %s136_s24 = ssub.s32 (%p50_p4), 49, %s135_s22  ;;  %s1848_s25 = smul.u32 (%p50_p4), 56, %s2381_s14 }
  0x13   : > { %p137_p7 = scmp.lt.s32.totalorder (%p50_p4), %s136_s24, 14  ;;  %s2582_s4 = scalar_lea.vmem (%p50_p4), [#allocation2], %s1886_s23  }
  0x14   : > { %s2578_s28 = scalar_lea.vmem %s3544_s1, %s1848_s25  }
  0x15   : > { %s3605_s24 = smov (!%p137_p7, %s136_s24), 14 }
  0x16   : > { %s1651_s29 = sshll.u32 %s3605_s24, 4  ;;  %s2580_s30 = sshll.u32 %s3605_s24, 2 }
  0x17   : > { %p1655_p8 = scmp.eq.s32.totalorder %s1651_s29, 0 }
  0x18   : > { %p147_p9 = scmp.lt.u32.totalorder (!%p1655_p8), %s2580_s30, 8 }
  0x19   : > { %146 = sbr.rel (%p1655_p8) target bundleno = 169 (0xa9), region = 32 }
  0x1e   : > { %150 = sbr.rel (%p147_p9) target bundleno = 157 (0x9d), region = 36  ;;  %s2586_s5 = sand.u32 (!%p147_p9), 7, %s2580_s30  }
  0x1f   : > { %p173_p10 = scmp.eq.s32.totalorder (!%p147_p9), %s2586_s5, 0  ;;  %p1656_p11 = scmp.ne.s32.totalorder (!%p147_p9), %s2586_s5, 0 }
  0x23   : > { %176 = sbr.rel (%p1656_p11) target bundleno = 92 (0x5c), region = 51  ;;  %s177_s6 = sshrl.u32 (!%p1656_p11), %s2580_s30, 3 }
  0x24   : > { %s2593_s7 = sshrl.u32 (!%p1656_p11), %s177_s6, 3 }
  0x25   : > { %p1657_p12 = scmp.le.s32.totalorder (!%p1656_p11), %s2593_s7, 0 }
  0x28   : > { %1520 = sbr.rel (%p1657_p12) target bundleno = 75 (0x4b), region = 229  ;;  %s3548_s8 = smov (!%p1657_p12), %s2582_s4 }
  0x29   : > { %s3549_s9 = smov (!%p1657_p12), %s2578_s28  ;;  %s2602_s10 = smov (!%p1657_p12), 0  }
  0x2a   : > { %s2604_s11 = smov (!%p1657_p12), 0  }
  0x2d LB: >> { %v188_v0 = vld [vmem:[%s2389_s9] sm:$0xff]  ;;  %v190_v1 = vld [vmem:[%s2389_s9 + $0x8] sm:$0xff]  ;;  %v192_v2 = vld [vmem:[%s2389_s9 + $0x10] sm:$0xff]  ;;  %s252_s17 = sadd.s32 1, %s2393_s10  ;;  %s182_s11 = sadd.s32 1, %s2397_s11   ;;  %s2397_s11 = sphi %s2604_s11, %s182_s11   ;;  %s2393_s10 = sphi %s2602_s10, %s3552_s10   ;;  %s2389_s9 = sphi %s3549_s9, %s3551_s9   ;;  %s2385_s8 = sphi %s3548_s8, %s3550_s8  }
  0x2e   : >> { %189 = vst [vmem:[%s2385_s8] sm:$0xff] %v188_v0  ;;  %v194_v3 = vld [vmem:[%s2389_s9 + $0x18] sm:$0xff]  ;;  %v196_v4 = vld [vmem:[%s2389_s9 + $0x20] sm:$0xff]  ;;  %v198_v5 = vld [vmem:[%s2389_s9 + $0x28] sm:$0xff]  ;;  %p253_p13 = scmp.ge.s32.totalorder %s252_s17, %s2593_s7  ;;  %p181_p0 = scmp.ge.s32.totalorder %s182_s11, %s2593_s7 }
  0x2f   : >> { %191 = vst [vmem:[%s2385_s8 + $0x8] sm:$0xff] %v190_v1  ;;  %v200_v6 = vld [vmem:[%s2389_s9 + $0x30] sm:$0xff]  ;;  %v204_v7 = vld [vmem:[%s2389_s9 + $0xc4] sm:$0xff]  ;;  %v210_v10 = vld [vmem:[%s2389_s9 + $0xdc] sm:$0xff] }
  0x30   : >> { %193 = vst [vmem:[%s2385_s8 + $0x10] sm:$0xff] %v192_v2  ;;  %s3607_s17 = smov (%p253_p13, %s252_s17), 0  ;;  %v206_v8 = vld [vmem:[%s2389_s9 + $0xcc] sm:$0xff]  ;;  %v208_v9 = vld [vmem:[%s2389_s9 + $0xd4] sm:$0xff]  ;;  %v212_v11 = vld [vmem:[%s2389_s9 + $0xe4] sm:$0xff] }
  0x31   : >> { %195 = vst [vmem:[%s2385_s8 + $0x18] sm:$0xff] %v194_v3  ;;  %s1658_s18 = sshll.u32 %s3607_s17, 6  ;;  %v214_v12 = vld [vmem:[%s2389_s9 + $0xec] sm:$0xff]  ;;  %v216_v13 = vld [vmem:[%s2389_s9 + $0xf4] sm:$0xff]  ;;  %v226_v17 = vld [vmem:[%s2389_s9 + $0x1a0] sm:$0xff]  ;;  %s3552_s10 = smov %s3607_s17 }
  0x32   : >> { %197 = vst [vmem:[%s2385_s8 + $0x20] sm:$0xff] %v196_v4  ;;  %s2640_s21 = scalar_lea.vmem %s2578_s28, %s1658_s18   ;;  %s2643_s22 = scalar_lea.vmem %s2582_s4, %s1658_s18 [#allocation2]   ;;  %v220_v14 = vld [vmem:[%s2389_s9 + $0x188] sm:$0xff]  ;;  %v222_v15 = vld [vmem:[%s2389_s9 + $0x190] sm:$0xff]  ;;  %v224_v16 = vld [vmem:[%s2389_s9 + $0x198] sm:$0xff] }
  0x33   : >> { %199 = vst [vmem:[%s2385_s8 + $0x28] sm:$0xff] %v198_v5  ;;  %v228_v18 = vld [vmem:[%s2389_s9 + $0x1a8] sm:$0xff]  ;;  %v230_v19 = vld [vmem:[%s2389_s9 + $0x1b0] sm:$0xff]  ;;  %v232_v20 = vld [vmem:[%s2389_s9 + $0x1b8] sm:$0xff] }
  0x34   : >> { %201 = vst [vmem:[%s2385_s8 + $0x30] sm:$0xff] %v200_v6  ;;  %v236_v21 = vld [vmem:[%s2389_s9 + $0x24c] sm:$0xff]  ;;  %v238_v22 = vld [vmem:[%s2389_s9 + $0x254] sm:$0xff]  ;;  %v240_v23 = vld [vmem:[%s2389_s9 + $0x25c] sm:$0xff] }
  0x35   : >> { %205 = vst [vmem:[%s2385_s8 + $0x38] sm:$0xff] %v204_v7  ;;  %v242_v24 = vld [vmem:[%s2389_s9 + $0x264] sm:$0xff]  ;;  %v244_v25 = vld [vmem:[%s2389_s9 + $0x26c] sm:$0xff]  ;;  %v246_v26 = vld [vmem:[%s2389_s9 + $0x274] sm:$0xff] }
  0x36   : >> { %207 = vst [vmem:[%s2385_s8 + $0x40] sm:$0xff] %v206_v8  ;;  %v248_v27 = vld [vmem:[%s2389_s9 + $0x27c] sm:$0xff]  ;;  %v250_v28 = vld [vmem:[%s2389_s9 + $0x284] sm:$0xff]  ;;  %s3551_s9 = smov %s2640_s21 }
  0x37   : >> { %209 = vst [vmem:[%s2385_s8 + $0x48] sm:$0xff] %v208_v9 }
  0x38   : >> { %211 = vst [vmem:[%s2385_s8 + $0x50] sm:$0xff] %v210_v10 }
  0x39   : >> { %213 = vst [vmem:[%s2385_s8 + $0x58] sm:$0xff] %v212_v11 }
  0x3a   : >> { %215 = vst [vmem:[%s2385_s8 + $0x60] sm:$0xff] %v214_v12 }
  0x3b   : >> { %217 = vst [vmem:[%s2385_s8 + $0x68] sm:$0xff] %v216_v13 }
  0x3c   : >> { %221 = vst [vmem:[%s2385_s8 + $0x70] sm:$0xff] %v220_v14 }
  0x3d   : >> { %223 = vst [vmem:[%s2385_s8 + $0x78] sm:$0xff] %v222_v15 }
  0x3e   : >> { %225 = vst [vmem:[%s2385_s8 + $0x80] sm:$0xff] %v224_v16 }
  0x3f   : >> { %227 = vst [vmem:[%s2385_s8 + $0x88] sm:$0xff] %v226_v17 }
  0x40   : >> { %229 = vst [vmem:[%s2385_s8 + $0x90] sm:$0xff] %v228_v18 }
  0x41   : >> { %231 = vst [vmem:[%s2385_s8 + $0x98] sm:$0xff] %v230_v19 }
  0x42   : >> { %233 = vst [vmem:[%s2385_s8 + $0xa0] sm:$0xff] %v232_v20 }
  0x43   : >> { %237 = vst [vmem:[%s2385_s8 + $0xa8] sm:$0xff] %v236_v21 }
  0x44   : >> { %239 = vst [vmem:[%s2385_s8 + $0xb0] sm:$0xff] %v238_v22 }
  0x45   : >> { %241 = vst [vmem:[%s2385_s8 + $0xb8] sm:$0xff] %v240_v23 }
  0x46   : >> { %243 = vst [vmem:[%s2385_s8 + $0xc0] sm:$0xff] %v242_v24  ;;  %184 = sbr.rel (!%p181_p0) target bundleno = 45 (0x2d), region = 235 }
  0x47   : >> { %245 = vst [vmem:[%s2385_s8 + $0xc8] sm:$0xff] %v244_v25 }
  0x48   : >> { %247 = vst [vmem:[%s2385_s8 + $0xd0] sm:$0xff] %v246_v26 }
  0x49   : >> { %249 = vst [vmem:[%s2385_s8 + $0xd8] sm:$0xff] %v248_v27 }
  0x4a   : >> { %251 = vst [vmem:[%s2385_s8 + $0xe0] sm:$0xff] %v250_v28  ;;  %s3550_s8 = smov %s2643_s22 }
  0x4b PF: > { %s2699_s23 = sand.u32 7, %s177_s6   ;;  %s1849_s24 = sshll.u32 %s2593_s7, 6 }
  0x4c   : > { %s2703_s25 = scalar_lea.vmem %s2578_s28, %s1849_s24   ;;  %s2706_s26 = scalar_lea.vmem %s2582_s4, %s1849_s24 [#allocation2]  }
  0x4d   : > { %p1663_p1 = scmp.le.s32.totalorder %s2699_s23, 0 }
  0x4e   : > { %s3553_s27 = smov (!%p1663_p1), %s2706_s26  ;;  %s3554_s29 = smov (!%p1663_p1), %s2703_s25 }
  0x4f   : > { %1534 = sbr.rel (%p1663_p1) target bundleno = 92 (0x5c), region = 240  ;;  %s2715_s8 = smov (!%p1663_p1), 0  }
  0x50   : > { %s2411_s9 = smov (!%p1663_p1), 0  }
  0x54 LB: >> { %v275_v29 = vld [vmem:[%s2405_s29] sm:$0xff]  ;;  %v279_v31 = vld [vmem:[%s2405_s29 + $0x188] sm:$0xff]  ;;  %s283_s6 = sadd.s32 1, %s2409_s8  ;;  %s269_s9 = sadd.s32 1, %s2413_s9   ;;  %s2413_s9 = sphi %s2411_s9, %s269_s9   ;;  %s2409_s8 = sphi %s2715_s8, %s3555_s8   ;;  %s2405_s29 = sphi %s3554_s29, %s288_s29   ;;  %s2401_s27 = sphi %s3553_s27, %s289_s27  }
  0x55   : >> { %v277_v30 = vld [vmem:[%s2405_s29 + $0xc4] sm:$0xff]  ;;  %276 = vst [vmem:[%s2401_s27] sm:$0xff] %v275_v29  ;;  %v281_v32 = vld [vmem:[%s2405_s29 + $0x24c] sm:$0xff]  ;;  %p284_p2 = scmp.ge.s32.totalorder %s283_s6, %s2699_s23  ;;  %p268_p3 = scmp.ge.s32.totalorder %s269_s9, %s2699_s23 }
  0x56   : >> { %278 = vst [vmem:[%s2401_s27 + $0x38] sm:$0xff] %v277_v30 }
  0x57   : >> { %280 = vst [vmem:[%s2401_s27 + $0x70] sm:$0xff] %v279_v31  ;;  %s3609_s6 = smov (%p284_p2, %s283_s6), 0  ;;  %271 = sbr.rel (!%p268_p3) target bundleno = 84 (0x54), region = 246 }
  0x58   : >> { %282 = vst [vmem:[%s2401_s27 + $0xa8] sm:$0xff] %v281_v32  ;;  %s1664_s7 = sshll.u32 %s3609_s6, 3  ;;  %s3555_s8 = smov %s3609_s6 }
  0x59   : >> { %s288_s29 = scalar_lea.vmem %s2703_s25, %s1664_s7   ;;  %s289_s27 = scalar_lea.vmem %s2706_s26, %s1664_s7 [#allocation2]  }
  0x5c PF: > { %292 = sbr.rel (%p173_p10) target bundleno = 157 (0x9d), region = 69  ;;  %s294_s10 = ssub.s32 (!%p173_p10), %s2580_s30, %s2586_s5 }
  0x5d   : > { %s298_s11 = sshrl.u32 (!%p173_p10), %s2580_s30, 3  ;;  %s2736_s17 = scalar_lea.vmem (!%p173_p10), %s2578_s28, %s294_s10 }
  0x5e   : > { %s2739_s18 = scalar_lea.vmem (!%p173_p10), %s2582_s4, %s294_s10 [#allocation2]  ;;  %s2743_s21 = sshrl.u32 (!%p173_p10), %s298_s11, 3 }
  0x5f   : > { %p1666_p4 = scmp.le.s32.totalorder (!%p173_p10), %s2743_s21, 0 }
  0x61   : > { %1548 = sbr.rel (%p1666_p4) target bundleno = 132 (0x84), region = 251  ;;  %s3556_s22 = smov (!%p1666_p4), %s2582_s4 }
  0x62   : > { %s3557_s23 = smov (!%p1666_p4), %s2578_s28  ;;  %s2752_s24 = smov (!%p1666_p4), 0  }
  0x63   : > { %s2754_s25 = smov (!%p1666_p4), 0  }
  0x66 LB: >> { %v309_v33 = vld [vmem:[%s2421_s23] sm:$0xff]  ;;  %v311_v34 = vld [vmem:[%s2421_s23 + $0x8] sm:$0xff]  ;;  %v313_v35 = vld [vmem:[%s2421_s23 + $0x10] sm:$0xff]  ;;  %s373_s26 = sadd.s32 1, %s2425_s24  ;;  %s303_s25 = sadd.s32 1, %s2429_s25   ;;  %s2429_s25 = sphi %s2754_s25, %s303_s25   ;;  %s2425_s24 = sphi %s2752_s24, %s3560_s24   ;;  %s2421_s23 = sphi %s3557_s23, %s3559_s23   ;;  %s2417_s22 = sphi %s3556_s22, %s3558_s22  }
  0x67   : >> { %310 = vst [vmem:[%s2417_s22] sm:$0xff] %v309_v33  ;;  %v315_v36 = vld [vmem:[%s2421_s23 + $0x18] sm:$0xff]  ;;  %v317_v37 = vld [vmem:[%s2421_s23 + $0x20] sm:$0xff]  ;;  %v319_v38 = vld [vmem:[%s2421_s23 + $0x28] sm:$0xff]  ;;  %p374_p6 = scmp.ge.s32.totalorder %s373_s26, %s2743_s21  ;;  %p302_p7 = scmp.ge.s32.totalorder %s303_s25, %s2743_s21 }
  0x68   : >> { %312 = vst [vmem:[%s2417_s22 + $0x8] sm:$0xff] %v311_v34  ;;  %v321_v39 = vld [vmem:[%s2421_s23 + $0x30] sm:$0xff]  ;;  %v325_v40 = vld [vmem:[%s2421_s23 + $0xc4] sm:$0xff]  ;;  %v331_v43 = vld [vmem:[%s2421_s23 + $0xdc] sm:$0xff] }
  0x69   : >> { %314 = vst [vmem:[%s2417_s22 + $0x10] sm:$0xff] %v313_v35  ;;  %s3611_s26 = smov (%p374_p6, %s373_s26), 0  ;;  %v327_v41 = vld [vmem:[%s2421_s23 + $0xcc] sm:$0xff]  ;;  %v329_v42 = vld [vmem:[%s2421_s23 + $0xd4] sm:$0xff]  ;;  %v333_v44 = vld [vmem:[%s2421_s23 + $0xe4] sm:$0xff] }
  0x6a   : >> { %316 = vst [vmem:[%s2417_s22 + $0x18] sm:$0xff] %v315_v36  ;;  %s1667_s27 = sshll.u32 %s3611_s26, 6  ;;  %v335_v45 = vld [vmem:[%s2421_s23 + $0xec] sm:$0xff]  ;;  %v337_v46 = vld [vmem:[%s2421_s23 + $0xf4] sm:$0xff]  ;;  %v347_v50 = vld [vmem:[%s2421_s23 + $0x1a0] sm:$0xff]  ;;  %s3560_s24 = smov %s3611_s26 }
  0x6b   : >> { %318 = vst [vmem:[%s2417_s22 + $0x20] sm:$0xff] %v317_v37  ;;  %s2790_s29 = scalar_lea.vmem %s2578_s28, %s1667_s27   ;;  %s2793_s8 = scalar_lea.vmem %s2582_s4, %s1667_s27 [#allocation2]   ;;  %v341_v47 = vld [vmem:[%s2421_s23 + $0x188] sm:$0xff]  ;;  %v343_v48 = vld [vmem:[%s2421_s23 + $0x190] sm:$0xff]  ;;  %v345_v49 = vld [vmem:[%s2421_s23 + $0x198] sm:$0xff] }
  0x6c   : >> { %320 = vst [vmem:[%s2417_s22 + $0x28] sm:$0xff] %v319_v38  ;;  %v349_v51 = vld [vmem:[%s2421_s23 + $0x1a8] sm:$0xff]  ;;  %v351_v52 = vld [vmem:[%s2421_s23 + $0x1b0] sm:$0xff]  ;;  %v353_v53 = vld [vmem:[%s2421_s23 + $0x1b8] sm:$0xff] }
  0x6d   : >> { %322 = vst [vmem:[%s2417_s22 + $0x30] sm:$0xff] %v321_v39  ;;  %v357_v54 = vld [vmem:[%s2421_s23 + $0x24c] sm:$0xff]  ;;  %v359_v55 = vld [vmem:[%s2421_s23 + $0x254] sm:$0xff]  ;;  %v361_v56 = vld [vmem:[%s2421_s23 + $0x25c] sm:$0xff] }
  0x6e   : >> { %326 = vst [vmem:[%s2417_s22 + $0x38] sm:$0xff] %v325_v40  ;;  %v363_v57 = vld [vmem:[%s2421_s23 + $0x264] sm:$0xff]  ;;  %v365_v58 = vld [vmem:[%s2421_s23 + $0x26c] sm:$0xff]  ;;  %v367_v59 = vld [vmem:[%s2421_s23 + $0x274] sm:$0xff] }
  0x6f   : >> { %328 = vst [vmem:[%s2417_s22 + $0x40] sm:$0xff] %v327_v41  ;;  %v369_v60 = vld [vmem:[%s2421_s23 + $0x27c] sm:$0xff]  ;;  %v371_v61 = vld [vmem:[%s2421_s23 + $0x284] sm:$0xff]  ;;  %s3559_s23 = smov %s2790_s29 }
  0x70   : >> { %330 = vst [vmem:[%s2417_s22 + $0x48] sm:$0xff] %v329_v42 }
  0x71   : >> { %332 = vst [vmem:[%s2417_s22 + $0x50] sm:$0xff] %v331_v43 }
  0x72   : >> { %334 = vst [vmem:[%s2417_s22 + $0x58] sm:$0xff] %v333_v44 }
  0x73   : >> { %336 = vst [vmem:[%s2417_s22 + $0x60] sm:$0xff] %v335_v45 }
  0x74   : >> { %338 = vst [vmem:[%s2417_s22 + $0x68] sm:$0xff] %v337_v46 }
  0x75   : >> { %342 = vst [vmem:[%s2417_s22 + $0x70] sm:$0xff] %v341_v47 }
  0x76   : >> { %344 = vst [vmem:[%s2417_s22 + $0x78] sm:$0xff] %v343_v48 }
  0x77   : >> { %346 = vst [vmem:[%s2417_s22 + $0x80] sm:$0xff] %v345_v49 }
  0x78   : >> { %348 = vst [vmem:[%s2417_s22 + $0x88] sm:$0xff] %v347_v50 }
  0x79   : >> { %350 = vst [vmem:[%s2417_s22 + $0x90] sm:$0xff] %v349_v51 }
  0x7a   : >> { %352 = vst [vmem:[%s2417_s22 + $0x98] sm:$0xff] %v351_v52 }
  0x7b   : >> { %354 = vst [vmem:[%s2417_s22 + $0xa0] sm:$0xff] %v353_v53 }
  0x7c   : >> { %358 = vst [vmem:[%s2417_s22 + $0xa8] sm:$0xff] %v357_v54 }
  0x7d   : >> { %360 = vst [vmem:[%s2417_s22 + $0xb0] sm:$0xff] %v359_v55 }
  0x7e   : >> { %362 = vst [vmem:[%s2417_s22 + $0xb8] sm:$0xff] %v361_v56 }
  0x7f   : >> { %364 = vst [vmem:[%s2417_s22 + $0xc0] sm:$0xff] %v363_v57  ;;  %305 = sbr.rel (!%p302_p7) target bundleno = 102 (0x66), region = 257 }
  0x80   : >> { %366 = vst [vmem:[%s2417_s22 + $0xc8] sm:$0xff] %v365_v58 }
  0x81   : >> { %368 = vst [vmem:[%s2417_s22 + $0xd0] sm:$0xff] %v367_v59 }
  0x82   : >> { %370 = vst [vmem:[%s2417_s22 + $0xd8] sm:$0xff] %v369_v60 }
  0x83   : >> { %372 = vst [vmem:[%s2417_s22 + $0xe0] sm:$0xff] %v371_v61  ;;  %s3558_s22 = smov %s2793_s8 }
  0x84 PF: > { %s2849_s9 = sand.u32 7, %s298_s11   ;;  %s1851_s6 = sshll.u32 %s2743_s21, 6 }
  0x85   : > { %s2853_s7 = scalar_lea.vmem %s2578_s28, %s1851_s6   ;;  %s2856_s10 = scalar_lea.vmem %s2582_s4, %s1851_s6 [#allocation2]  }
  0x86   : > { %p1672_p8 = scmp.le.s32.totalorder %s2849_s9, 0 }
  0x87   : > { %s3561_s25 = smov (!%p1672_p8), %s2856_s10  ;;  %s3562_s22 = smov (!%p1672_p8), %s2853_s7 }
  0x88   : > { %1562 = sbr.rel (%p1672_p8) target bundleno = 149 (0x95), region = 262  ;;  %s2439_s23 = smov (!%p1672_p8), 0  }
  0x89   : > { %s2443_s24 = smov (!%p1672_p8), 0  }
  0x8d LB: >> { %v396_v62 = vld [vmem:[%s2437_s22] sm:$0xff]  ;;  %v400_v0 = vld [vmem:[%s2437_s22 + $0x188] sm:$0xff]  ;;  %s404_s11 = sadd.s32 1, %s2441_s23  ;;  %s390_s24 = sadd.s32 1, %s2445_s24   ;;  %s2445_s24 = sphi %s2443_s24, %s390_s24   ;;  %s2441_s23 = sphi %s2439_s23, %s2440_s23   ;;  %s2437_s22 = sphi %s3562_s22, %s409_s22   ;;  %s2433_s25 = sphi %s3561_s25, %s410_s25  }
  0x8e   : >> { %v398_v63 = vld [vmem:[%s2437_s22 + $0xc4] sm:$0xff]  ;;  %397 = vst [vmem:[%s2433_s25] sm:$0xff] %v396_v62  ;;  %v402_v1 = vld [vmem:[%s2437_s22 + $0x24c] sm:$0xff]  ;;  %p405_p9 = scmp.ge.s32.totalorder %s404_s11, %s2849_s9  ;;  %p389_p10 = scmp.ge.s32.totalorder %s390_s24, %s2849_s9 }
  0x8f   : >> { %399 = vst [vmem:[%s2433_s25 + $0x38] sm:$0xff] %v398_v63 }
  0x90   : >> { %401 = vst [vmem:[%s2433_s25 + $0x70] sm:$0xff] %v400_v0  ;;  %s3613_s11 = smov (%p405_p9, %s404_s11), 0  ;;  %392 = sbr.rel (!%p389_p10) target bundleno = 141 (0x8d), region = 268 }
  0x91   : >> { %403 = vst [vmem:[%s2433_s25 + $0xa8] sm:$0xff] %v402_v1  ;;  %s1673_s21 = sshll.u32 %s3613_s11, 3  ;;  %s2440_s23 = smov %s3613_s11  }
  0x92   : >> { %s409_s22 = scalar_lea.vmem %s2853_s7, %s1673_s21   ;;  %s410_s25 = scalar_lea.vmem %s2856_s10, %s1673_s21 [#allocation2]  }
  0x95 PF: > { %s2511_s26 = smov 1  }
  0x96   : > { %s411_s27 = sshll.u32 %s2511_s26, %s2586_s5 }
  0x97   : > { %s1675_s29 = sadd.s32 4294967295, %s411_s27 }
  0x98   : > { %v421_v2 = vld [vmem:[%s2736_s17] sm:%s1675_s29]  ;;  %v425_v4 = vld [vmem:[%s2736_s17 + $0x188] sm:%s1675_s29] }
  0x99   : > { %v423_v3 = vld [vmem:[%s2736_s17 + $0xc4] sm:%s1675_s29]  ;;  %422 = vst [vmem:[%s2739_s18] sm:%s1675_s29] %v421_v2 }
  0x9a   : > { %424 = vst [vmem:[%s2739_s18 + $0x38] sm:%s1675_s29] %v423_v3  ;;  %v427_v5 = vld [vmem:[%s2736_s17 + $0x24c] sm:%s1675_s29] }
  0x9b   : > { %426 = vst [vmem:[%s2739_s18 + $0x70] sm:%s1675_s29] %v425_v4 }
  0x9c   : > { %428 = vst [vmem:[%s2739_s18 + $0xa8] sm:%s1675_s29] %v427_v5 }
  0x9d PF: > { %p1676_p11 = scmp.ge.u32.totalorder %s2580_s30, 8 }
  0x9e   : > { %s2512_s8 = smov (!%p1676_p11), 1  }
  0x9f   : > { %153 = sbr.rel (%p1676_p11) target bundleno = 169 (0xa9), region = 40  ;;  %s154_s5 = sshll.u32 (!%p1676_p11), %s2512_s8, %s2580_s30 }
  0xa0   : > { %s1677_s9 = sadd.s32 (!%p1676_p11), 4294967295, %s154_s5 }
  0xa4   : > { %v164_v6 = vld [vmem:[%s2578_s28] sm:%s1677_s9]  ;;  %v168_v8 = vld [vmem:[%s2578_s28 + $0x188] sm:%s1677_s9] }
  0xa5   : > { %v166_v7 = vld [vmem:[%s2578_s28 + $0xc4] sm:%s1677_s9]  ;;  %165 = vst [vmem:[%s2582_s4] sm:%s1677_s9] %v164_v6 }
  0xa6   : > { %167 = vst [vmem:[%s2582_s4 + $0x38] sm:%s1677_s9] %v166_v7  ;;  %v170_v9 = vld [vmem:[%s2578_s28 + $0x24c] sm:%s1677_s9] }
  0xa7   : > { %169 = vst [vmem:[%s2582_s4 + $0x70] sm:%s1677_s9] %v168_v8 }
  0xa8   : > { %171 = vst [vmem:[%s2582_s4 + $0xa8] sm:%s1677_s9] %v170_v9 }
  0xa9 PF: > { %p1678_p12 = scmp.ge.s32.totalorder %s2381_s14, 1  ;;  %p431_p13 = scmp.lt.s32.totalorder %s2381_s14, 5 }
  0xab   : > { %p432_p0 = pnand %p1678_p12, %p431_p13 }
  0xac   : > { %s438_s30 = sand.u32 (!%p432_p0), 1, %s2373_s12  }
  0xad   : > { %435 = sbr.rel (%p432_p0) target bundleno = 547 (0x223), region = 94 }
  0xae   : > { %s1887_s17 = smul.u32 (!%p432_p0), 224, %s438_s30 }
  0xaf   : > { %s3032_s7 = smul.u32 (!%p432_p0), 56, %s438_s30 }
  0xb0   : > { %s2902_s4 = scalar_lea.vmem (!%p432_p0), [#allocation2], %s1887_s17 }
  0xb1   : > { %s3070_s12 = scalar_lea.vmem (!%p432_p0), [#allocation3], %s3032_s7  }
  0xb2   : > { %v2513_v10 = vmov 0   ;;  %v500_v11 = vld [vmem:[%s3545_s2] sm:$0x7]  ;;  %vm646_vm0 = vcmask 261120   ;;  %v1737_v12 = vld [vmem:[%s2902_s4 + $0x70] sm:$0xf] }
  0xb3   : > { %2174 = vset.pattern.permute.xlu0 %v2513_v10  ;;  %v1874_v13 = vld [vmem:[%s2902_s4 + $0xa4] sm:$0xf0]  ;;  %v1867_v14 = vld [vmem:[%s2902_s4 + $0x74] sm:$0xf]  ;;  %v1739_v16 = vld [vmem:[%s2902_s4 + $0xa8] sm:$0xf0] }
  0xb4   : > { %503 = vperm.xlu0 %2174, %v500_v11   ;;  %v1738_v15 = vor.u32 %v1874_v13, %v1737_v12  ;;  %v1745_v17 = vld [vmem:[%s2902_s4 + $0x78] sm:$0xf]  ;;  %v1875_v18 = vld [vmem:[%s2902_s4 + $0xac] sm:$0xf0]  ;;  %v1742_v19 = vor.u32 %v1867_v14, %v1739_v16  ;;  %v1868_v21 = vld [vmem:[%s2902_s4 + $0x7c] sm:$0xf] }
  0xb5   : > { %v1746_v20 = vor.u32 %v1875_v18, %v1745_v17  ;;  %v1747_v22 = vld [vmem:[%s2902_s4 + $0xb0] sm:$0xf0]  ;;  %v1681_v23 = vld [vmem:[%s2902_s4] sm:$0xf]  ;;  %v1860_v25 = vld [vmem:[%s2902_s4 + $0x34] sm:$0xf0] }
  0xb6   : > { %656 = vmatpush.bf16.msra.mxu0 %v1738_v15  ;;  %v1750_v24 = vor.u32 %v1868_v21, %v1747_v22  ;;  %v1853_v26 = vld [vmem:[%s2902_s4 + $0x4] sm:$0xf]  ;;  %v1683_v27 = vld [vmem:[%s2902_s4 + $0x38] sm:$0xf0]  ;;  %669 = vmatpush.bf16.msra.mxu1 %v1742_v19  ;;  %v1682_v28 = vor.u32 %v1860_v25, %v1681_v23  ;;  %v1689_v30 = vld [vmem:[%s2902_s4 + $0x8] sm:$0xf] }
  0xb7   : > { %682 = vmatpush.bf16.msra.mxu2 %v1746_v20  ;;  %v1686_v29 = vor.u32 %v1853_v26, %v1683_v27  ;;  %v1861_v31 = vld [vmem:[%s2902_s4 + $0x3c] sm:$0xf0]  ;;  %v1854_v32 = vld [vmem:[%s2902_s4 + $0xc] sm:$0xf]  ;;  %v1691_v34 = vld [vmem:[%s2902_s4 + $0x40] sm:$0xf0] }
  0xb8   : > { %695 = vmatpush.bf16.msra.mxu3 %v1750_v24  ;;  %v1690_v33 = vor.u32 %v1861_v31, %v1689_v30  ;;  %v2923_v35 = vld [vmem:[%s3543_s0] sm:$0x3]  ;;  %v1869_v36 = vld [vmem:[%s2902_s4 + $0x84] sm:$0xf]  ;;  %v1755_v37 = vld [vmem:[%s2902_s4 + $0xb8] sm:$0xf0]  ;;  %v1694_v38 = vor.u32 %v1854_v32, %v1691_v34 }
  0xb9   : > { %v1758_v39 = vor.u32 %v1869_v36, %v1755_v37  ;;  %v1753_v40 = vld [vmem:[%s2902_s4 + $0x80] sm:$0xf]  ;;  %v1876_v41 = vld [vmem:[%s2902_s4 + $0xb4] sm:$0xf0]  ;;  %v1855_v42 = vld [vmem:[%s2902_s4 + $0x14] sm:$0xf] }
  0xba   : > { %657 = vmatpush.bf16.msra.mxu0 %v1682_v28  ;;  %v1699_v43 = vld [vmem:[%s2902_s4 + $0x48] sm:$0xf0]  ;;  %v1761_v44 = vld [vmem:[%s2902_s4 + $0x88] sm:$0xf]  ;;  %v1877_v45 = vld [vmem:[%s2902_s4 + $0xbc] sm:$0xf0]  ;;  %670 = vmatpush.bf16.msra.mxu1 %v1686_v29  ;;  %v1754_v46 = vor.u32 %v1876_v41, %v1753_v40 }
  0xbb   : > { %683 = vmatpush.bf16.msra.mxu2 %v1690_v33  ;;  %v1762_v47 = vor.u32 %v1877_v45, %v1761_v44  ;;  %v1870_v48 = vld [vmem:[%s2902_s4 + $0x8c] sm:$0xf]  ;;  %v1763_v49 = vld [vmem:[%s2902_s4 + $0xc0] sm:$0xf0]  ;;  %v1697_v50 = vld [vmem:[%s2902_s4 + $0x10] sm:$0xf]  ;;  %v1702_v51 = vor.u32 %v1855_v42, %v1699_v43 }
  0xbc   : > { %696 = vmatpush.bf16.msra.mxu3 %v1694_v38  ;;  %v1766_v52 = vor.u32 %v1870_v48, %v1763_v49  ;;  %v1862_v53 = vld [vmem:[%s2902_s4 + $0x44] sm:$0xf0]  ;;  %v1705_v54 = vld [vmem:[%s2902_s4 + $0x18] sm:$0xf]  ;;  %v1863_v55 = vld [vmem:[%s2902_s4 + $0x4c] sm:$0xf0] }
  0xbd   : > { %1791 = vmatmul.msk.bf16.vlgmr.msra.gmra.mxu0 %vm646_vm0, %v2923_v35  ;;  %v1706_v56 = vor.u32 %v1863_v55, %v1705_v54  ;;  %v1856_v57 = vld [vmem:[%s2902_s4 + $0x1c] sm:$0xf]  ;;  %v1707_v58 = vld [vmem:[%s2902_s4 + $0x50] sm:$0xf0]  ;;  %1792 = vmatmul.msk.bf16.vlgmr.msra.gmra.mxu1 %vm646_vm0, %v2923_v35  ;;  %v1771_v60 = vld [vmem:[%s2902_s4 + $0xc8] sm:$0xf0]  ;;  %v1698_v63 = vor.u32 %v1862_v53, %v1697_v50 }
  0xbe   : > { %721 = vmatpush.bf16.msrb.mxu1 %v1758_v39  ;;  %v1871_v59 = vld [vmem:[%s2902_s4 + $0x94] sm:$0xf]  ;;  %1793 = vmatmul.msk.bf16.vlgmr.msra.gmra.mxu2 %vm646_vm0, %v2923_v35  ;;  %v1769_v61 = vld [vmem:[%s2902_s4 + $0x90] sm:$0xf]  ;;  %v1878_v62 = vld [vmem:[%s2902_s4 + $0xc4] sm:$0xf0]  ;;  %v1710_v4 = vor.u32 %v1856_v57, %v1707_v58 }
  0xbf   : > { %734 = vmatpush.bf16.msrb.mxu2 %v1762_v47  ;;  %1794 = vmatmul.msk.bf16.vlgmr.msra.gmra.mxu3 %vm646_vm0, %v2923_v35  ;;  %v1774_v0 = vor.u32 %v1871_v59, %v1771_v60  ;;  %v1857_v1 = vld [vmem:[%s2902_s4 + $0x24] sm:$0xf]  ;;  %v1715_v2 = vld [vmem:[%s2902_s4 + $0x58] sm:$0xf0]  ;;  %v1777_v3 = vld [vmem:[%s2902_s4 + $0x98] sm:$0xf]  ;;  %v1770_v5 = vor.u32 %v1878_v62, %v1769_v61 }
  0xc0   : > { %708 = vmatpush.bf16.msrb.mxu0 %v1754_v46  ;;  %747 = vmatpush.bf16.msrb.mxu3 %v1766_v52  ;;  %v1879_v6 = vld [vmem:[%s2902_s4 + $0xcc] sm:$0xf0]  ;;  %v1872_v7 = vld [vmem:[%s2902_s4 + $0x9c] sm:$0xf]  ;;  %v1779_v8 = vld [vmem:[%s2902_s4 + $0xd0] sm:$0xf0]  ;;  %v1718_v9 = vor.u32 %v1857_v1, %v1715_v2 }
  0xc1   : > { %v1778_v10 = vor.u32 %v1879_v6, %v1777_v3  ;;  %v1782_v11 = vor.u32 %v1872_v7, %v1779_v8  ;;  %v1713_v12 = vld [vmem:[%s2902_s4 + $0x20] sm:$0xf]  ;;  %v1864_v13 = vld [vmem:[%s2902_s4 + $0x54] sm:$0xf0]  ;;  %v1721_v14 = vld [vmem:[%s2902_s4 + $0x28] sm:$0xf] }
  0xc2   : > { %722 = vmatpush.bf16.msrb.mxu1 %v1702_v51  ;;  %v1865_v15 = vld [vmem:[%s2902_s4 + $0x5c] sm:$0xf0]  ;;  %v1858_v16 = vld [vmem:[%s2902_s4 + $0x2c] sm:$0xf]  ;;  %v1723_v17 = vld [vmem:[%s2902_s4 + $0x60] sm:$0xf0]  ;;  %v1714_v19 = vor.u32 %v1864_v13, %v1713_v12 }
  0xc3   : > { %735 = vmatpush.bf16.msrb.mxu2 %v1706_v56  ;;  %v1722_v18 = vor.u32 %v1865_v15, %v1721_v14  ;;  %v1726_v20 = vor.u32 %v1858_v16, %v1723_v17  ;;  %v1873_v21 = vld [vmem:[%s2902_s4 + $0xa4] sm:$0xf]  ;;  %v1787_v22 = vld [vmem:[%s2902_s4 + $0xd8] sm:$0xf0]  ;;  %v1785_v23 = vld [vmem:[%s2902_s4 + $0xa0] sm:$0xf] }
  0xc4   : > { %709 = vmatpush.bf16.msrb.mxu0 %v1698_v63  ;;  %748 = vmatpush.bf16.msrb.mxu3 %v1710_v4  ;;  %v1880_v24 = vld [vmem:[%s2902_s4 + $0xd4] sm:$0xf0]  ;;  %v1790_v25 = vor.u32 %v1873_v21, %v1787_v22  ;;  %v1859_v27 = vld [vmem:[%s2902_s4 + $0x34] sm:$0xf]  ;;  %v1731_v28 = vld [vmem:[%s2902_s4 + $0x68] sm:$0xf0] }
  0xc5   : > { %v1786_v26 = vor.u32 %v1880_v24, %v1785_v23  ;;  %v1729_v29 = vld [vmem:[%s2902_s4 + $0x30] sm:$0xf]  ;;  %v1866_v30 = vld [vmem:[%s2902_s4 + $0x64] sm:$0xf0]  ;;  %v1734_v31 = vor.u32 %v1859_v27, %v1731_v28  ;;  %vm1119_vm2 = vcmask 1043456   ;;  %s1148_s10 = smul.u32 (%p2567_p5), 14, %s2552_s15 }
  0xc6   : > { %773 = vmatpush.bf16.msra.mxu1 %v1774_v0  ;;  %v1730_v32 = vor.u32 %v1866_v30, %v1729_v29  ;;  %s1881_s25 = smul.u32 (%p2567_p5), 56, %s2552_s15 }
  0xc7   : > { %786 = vmatpush.bf16.msra.mxu2 %v1778_v10  ;;  %s1149_s22 = ssub.s32 (%p2567_p5), 49, %s1148_s10 }
  0xc8   : > { %760 = vmatpush.bf16.msra.mxu0 %v1770_v5  ;;  %799 = vmatpush.bf16.msra.mxu3 %v1782_v11  ;;  %p1150_p1 = scmp.lt.s32.totalorder (%p2567_p5), %s1149_s22, 14  ;;  %s3255_s11 = scalar_lea.vmem (%p2567_p5), %s3546_s3, %s1881_s25  }
  0xca   : > { %774 = vmatpush.bf16.msra.mxu1 %v1718_v9 }
  0xcb   : > { %787 = vmatpush.bf16.msra.mxu2 %v1722_v18 }
  0xcc   : > { %761 = vmatpush.bf16.msra.mxu0 %v1714_v19  ;;  %800 = vmatpush.bf16.msra.mxu3 %v1726_v20 }
  0xcd   : > { %1795 = vmatmul.msk.bf16.vlgmr.msrb.gmra.mxu0 %vm646_vm0, %v2923_v35  ;;  %1796 = vmatmul.msk.bf16.vlgmr.msrb.gmra.mxu1 %vm646_vm0, %v2923_v35 }
  0xce   : > { %1797 = vmatmul.msk.bf16.vlgmr.msrb.gmra.mxu2 %vm646_vm0, %v2923_v35  ;;  %825 = vmatpush.bf16.msrb.mxu1 %v1790_v25 }
  0xcf   : > { %1798 = vmatmul.msk.bf16.vlgmr.msrb.gmra.mxu3 %vm646_vm0, %v2923_v35 }
  0xd0   : > { %812 = vmatpush.bf16.msrb.mxu0 %v1786_v26 }
  0xd2   : > { %826 = vmatpush.bf16.msrb.mxu1 %v1734_v31 }
  0xd4   : > { %813 = vmatpush.bf16.msrb.mxu0 %v1730_v32 }
  0xdd   : > { %1799 = vmatmul.msk.bf16.vlgmr.msra.gmra.mxu0 %vm646_vm0, %v2923_v35  ;;  %1800 = vmatmul.msk.bf16.vlgmr.msra.gmra.mxu1 %vm646_vm0, %v2923_v35 }
  0xde   : > { %1801 = vmatmul.msk.bf16.vlgmr.msra.gmra.mxu2 %vm646_vm0, %v2923_v35 }
  0xdf   : > { %1802 = vmatmul.msk.bf16.vlgmr.msra.gmra.mxu3 %vm646_vm0, %v2923_v35 }
  0xed   : > { %1803 = vmatmul.msk.bf16.vlgmr.msrb.gmra.mxu0 %vm646_vm0, %v2923_v35  ;;  %1804 = vmatmul.msk.bf16.vlgmr.msrb.gmra.mxu1 %vm646_vm0, %v2923_v35 }
 0x126   : > { %v2993_v33 = vpop.permute.xlu0 %503 }
 0x13a   : > { %v659_v34 = vpop.f32.mrf.mxu0  ;;  %v672_v37 = vpop.f32.mrf.mxu1 }
 0x13b   : > { %v660_v36 = vadd.f32 %v659_v34, %v2993_v33  ;;  %v673_v38 = vadd.f32 %v672_v37, %v2993_v33 }
 0x13d   : > { %v1805_v39 = vmul.f32 -1.442695, %v660_v36  ;;  %v1806_v40 = vmul.f32 -1.442695, %v673_v38 }
 0x13f   : > { %2175 = vpow2.f32 %v1805_v39 }
 0x140   : > { %2177 = vpow2.f32 %v1806_v40 }
 0x141   : > { %v685_v41 = vpop.f32.mrf.mxu2 }
 0x142   : > { %v686_v42 = vadd.f32 %v685_v41, %v2993_v33  ;;  %v698_v43 = vpop.f32.mrf.mxu3  ;;  %v661_v44 = vpop.f32.mrf.mxu0 }
 0x143   : > { %v699_v45 = vadd.f32 %v698_v43, %v2993_v33  ;;  %v674_v35 = vpop.f32.mrf.mxu1 }
 0x144   : > { %v1807_v46 = vmul.f32 -1.442695, %v686_v42 }
 0x145   : > { %v2176_v47 = vpop.eup %2175  ;;  %v1808_v48 = vmul.f32 -1.442695, %v699_v45 }
 0x146   : > { %v2178_v49 = vpop.eup %2177  ;;  %v874_v50 = vadd.f32 1.0, %v2176_v47  ;;  %2179 = vpow2.f32 %v1807_v46 }
 0x147   : > { %v875_v51 = vadd.f32 1.0, %v2178_v49  ;;  %2181 = vpow2.f32 %v1808_v48 }
 0x148   : > { %2183 = vrcp.f32 %v874_v50  ;;  %v897_v62 = vand.u32 2147483647, %v874_v50  ;;  %v899_v63 = vand.u32 2147483648, %v874_v50  ;;  %vm893_vm1 = vweird.f32 %v874_v50 }
 0x149   : > { %2185 = vrcp.f32 %v875_v51  ;;  %v687_v52 = vpop.f32.mrf.mxu2  ;;  %v912_v7 = vand.u32 2147483647, %v875_v51  ;;  %v914_v8 = vand.u32 2147483648, %v875_v51  ;;  %vm908_vm4 = vweird.f32 %v875_v51 }
 0x14a   : > { %v700_v53 = vpop.f32.mrf.mxu3  ;;  %v711_v54 = vpop.f32.mrf.mxu0  ;;  %vm3010_vm3 = vcmp.eq.f32.partialorder %v897_v62, 8.507059e+37  ;;  %v900_v11 = vor.u32 1.1754944e-38, %v899_v63 }
 0x14b   : > { %v712_v55 = vadd.f32 %v711_v54, %v2993_v33  ;;  %v724_v56 = vpop.f32.mrf.mxu1  ;;  %vm3021_vm7 = vcmp.eq.f32.partialorder %v912_v7, 8.507059e+37  ;;  %v915_v23 = vor.u32 1.1754944e-38, %v914_v8 }
 0x14c   : > { %v2180_v57 = vpop.eup %2179  ;;  %v725_v58 = vadd.f32 %v724_v56, %v2993_v33 }
 0x14d   : > { %v2182_v59 = vpop.eup %2181  ;;  %v3001_v60 = vadd.f32 1.0, %v2180_v57  ;;  %v1809_v3 = vmul.f32 -1.442695, %v712_v55 }
 0x14e   : > { %v3003_v61 = vpop.eup %2183  ;;  %v3005_v0 = vadd.f32 1.0, %v2182_v59  ;;  %v1810_v5 = vmul.f32 -1.442695, %v725_v58 }
 0x14f   : > { %v2186_v1 = vpop.eup %2185  ;;  %v889_v2 = vmul.f32 %v3003_v61, %v874_v50  ;;  %2187 = vrcp.f32 %v3001_v60  ;;  %vm894_vm5 = vweird.f32 %v3003_v61  ;;  %vm923_vm9 = vweird.f32 %v3001_v60 }
 0x150   : > { %v904_v4 = vmul.f32 %v2186_v1, %v875_v51  ;;  %2189 = vrcp.f32 %v3005_v0  ;;  %vm909_vm6 = vweird.f32 %v2186_v1  ;;  %vm3026_vm8 = vmor %vm893_vm1, %vm894_vm5  ;;  %v927_v30 = vand.u32 2147483647, %v3001_v60 }
 0x151   : > { %v890_v6 = vsub.f32 1.0, %v889_v2  ;;  %v737_v9 = vpop.f32.mrf.mxu2  ;;  %2191 = vpow2.f32 %v1809_v3  ;;  %vm910_vm10 = vmor %vm908_vm4, %vm909_vm6  ;;  %v929_v31 = vand.u32 2147483648, %v3001_v60  ;;  %vm938_vm11 = vweird.f32 %v3005_v0 }
 0x152   : > { %v905_v12 = vsub.f32 1.0, %v904_v4  ;;  %v750_v13 = vpop.f32.mrf.mxu3  ;;  %v713_v14 = vpop.f32.mrf.mxu0  ;;  %v738_v16 = vadd.f32 %v737_v9, %v2993_v33  ;;  %2193 = vpow2.f32 %v1810_v5  ;;  %v942_v40 = vand.u32 2147483647, %v3005_v0 }
 0x153   : > { %v891_v15 = vmul.f32 %v3003_v61, %v890_v6  ;;  %v726_v17 = vpop.f32.mrf.mxu1  ;;  %v751_v19 = vadd.f32 %v750_v13, %v2993_v33  ;;  %v944_v49 = vand.u32 2147483648, %v3005_v0  ;;  %vm3074_vm15 = vcmp.eq.f32.partialorder %v927_v30, 8.507059e+37 }
 0x154   : > { %v906_v18 = vmul.f32 %v2186_v1, %v905_v12  ;;  %v1811_v24 = vmul.f32 -1.442695, %v738_v16  ;;  %v930_v58 = vor.u32 1.1754944e-38, %v929_v31  ;;  %vm943_vm1 = vcmp.eq.f32.partialorder %v942_v40, 8.507059e+37 }
 0x155   : > { %v3018_v20 = vpop.eup %2187  ;;  %v892_v21 = vadd.f32 %v3003_v61, %v891_v15  ;;  %v1812_v28 = vmul.f32 -1.442695, %v751_v19  ;;  %v945_v63 = vor.u32 1.1754944e-38, %v944_v49 }
 0x156   : > { %v907_v26 = vadd.f32 %v2186_v1, %v906_v18  ;;  %v919_v27 = vmul.f32 %v3018_v20, %v3001_v60  ;;  %v2190_v29 = vpop.eup %2189  ;;  %2195 = vpow2.f32 %v1811_v24  ;;  %vm924_vm12 = vweird.f32 %v3018_v20 }
 0x157   : > { %v896_v32 = vsel %vm3026_vm8, %v3003_v61, %v892_v21  ;;  %v934_v37 = vmul.f32 %v2190_v29, %v3005_v0  ;;  %v2192_v38 = vpop.eup %2191  ;;  %2197 = vpow2.f32 %v1812_v28  ;;  %vm939_vm13 = vweird.f32 %v2190_v29  ;;  %vm3064_vm14 = vmor %vm923_vm9, %vm924_vm12 }
 0x158   : > { %v911_v34 = vsel %vm910_vm10, %v2186_v1, %v907_v26  ;;  %v920_v36 = vsub.f32 1.0, %v919_v27  ;;  %v2194_v42 = vpop.eup %2193  ;;  %v3051_v35 = vadd.f32 1.0, %v2192_v38  ;;  %v901_v48 = vsel %vm3010_vm3, %v900_v11, %v896_v32  ;;  %vm940_vm0 = vmor %vm938_vm11, %vm939_vm13 }
 0x159   : > { %v916_v39 = vsel %vm3021_vm7, %v915_v23, %v911_v34  ;;  %v739_v41 = vpop.f32.mrf.mxu2  ;;  %v935_v45 = vsub.f32 1.0, %v934_v37  ;;  %v3056_v50 = vadd.f32 1.0, %v2194_v42 }
 0x15a   : > { %v1112_v43 = vrot.slane %v916_v39, 4  ;;  %v921_v44 = vmul.f32 %v3018_v20, %v920_v36  ;;  %v752_v46 = vpop.f32.mrf.mxu3  ;;  %v763_v47 = vpop.f32.mrf.mxu0  ;;  %2199 = vrcp.f32 %v3051_v35  ;;  %v959_v1 = vand.u32 2147483648, %v3051_v35 }
 0x15b   : > { %v776_v51 = vpop.f32.mrf.mxu1  ;;  %v936_v55 = vmul.f32 %v2190_v29, %v935_v45  ;;  %2201 = vrcp.f32 %v3056_v50  ;;  %v764_v60 = vadd.f32 %v763_v47, %v2993_v33  ;;  %v972_v3 = vand.u32 2147483647, %v3056_v50 }
 0x15c   : > { %v1120_v52 = vsel %vm1119_vm2, %v901_v48, %v1112_v43  ;;  %v922_v53 = vadd.f32 %v3018_v20, %v921_v44  ;;  %v2196_v56 = vpop.eup %2195  ;;  %vm953_vm3 = vweird.f32 %v3051_v35  ;;  %v957_v7 = vand.u32 2147483647, %v3051_v35 }
 0x15d   : > { %1134 = vst [vmem:[%s3070_s12] sm:$0x77] %v1120_v52  ;;  %v937_v59 = vadd.f32 %v2190_v29, %v936_v55  ;;  %v2198_v61 = vpop.eup %2197  ;;  %v3087_v4 = vadd.f32 1.0, %v2196_v56  ;;  %v974_v8 = vand.u32 2147483648, %v3056_v50  ;;  %v1813_v11 = vmul.f32 -1.442695, %v764_v60 }
 0x15e   : > { %v926_v62 = vsel %vm3064_vm14, %v3018_v20, %v922_v53  ;;  %v3089_v5 = vadd.f32 1.0, %v2198_v61  ;;  %v777_v12 = vadd.f32 %v776_v51, %v2993_v33  ;;  %vm968_vm4 = vweird.f32 %v3056_v50 }
 0x15f   : > { %v941_v2 = vsel %vm940_vm0, %v2190_v29, %v937_v59  ;;  %2203 = vrcp.f32 %v3087_v4  ;;  %v931_v16 = vsel %vm3074_vm15, %v930_v58, %v926_v62  ;;  %v960_v20 = vor.u32 1.1754944e-38, %v959_v1 }
 0x160   : > { %v946_v6 = vsel %vm943_vm1, %v945_v63, %v941_v2  ;;  %v3094_v9 = vpop.eup %2199  ;;  %2205 = vrcp.f32 %v3089_v5  ;;  %vm3106_vm5 = vcmp.eq.f32.partialorder %v972_v3, 8.507059e+37  ;;  %v975_v24 = vor.u32 1.1754944e-38, %v974_v8 }
 0x161   : > { %v789_v0 = vpop.f32.mrf.mxu2  ;;  %v1113_v10 = vrot.slane %v946_v6, 4  ;;  %v2202_v15 = vpop.eup %2201  ;;  %v949_v17 = vmul.f32 %v3094_v9, %v3051_v35  ;;  %vm983_vm6 = vweird.f32 %v3087_v4  ;;  %v987_v25 = vand.u32 2147483647, %v3087_v4 }
 0x162   : > { %v802_v13 = vpop.f32.mrf.mxu3  ;;  %v765_v14 = vpop.f32.mrf.mxu0  ;;  %v964_v21 = vmul.f32 %v2202_v15, %v3056_v50  ;;  %vm954_vm7 = vweird.f32 %v3094_v9  ;;  %vm3114_vm8 = vcmp.eq.f32.partialorder %v957_v7, 8.507059e+37  ;;  %2207 = vpow2.f32 %v1813_v11 }
 0x163   : > { %v778_v18 = vpop.f32.mrf.mxu1  ;;  %v1121_v19 = vsel %vm1119_vm2, %v931_v16, %v1113_v10  ;;  %v950_v23 = vsub.f32 1.0, %v949_v17  ;;  %v1814_v28 = vmul.f32 -1.442695, %v777_v12  ;;  %v989_v30 = vand.u32 2147483648, %v3087_v4  ;;  %vm3133_vm11 = vmor %vm953_vm3, %vm954_vm7 }
 0x164   : > { %1135 = vst [vmem:[%s3070_s12 + $0x8] sm:$0x77] %v1121_v19  ;;  %v965_v27 = vsub.f32 1.0, %v964_v21  ;;  %v790_v31 = vadd.f32 %v789_v0, %v2993_v33  ;;  %v803_v32 = vadd.f32 %v802_v13, %v2993_v33  ;;  %vm969_vm9 = vweird.f32 %v2202_v15 }
 0x165   : > { %v951_v29 = vmul.f32 %v3094_v9, %v950_v23  ;;  %v3122_v34 = vpop.eup %2203  ;;  %vm998_vm10 = vweird.f32 %v3089_v5  ;;  %2209 = vpow2.f32 %v1814_v28  ;;  %v1002_v40 = vand.u32 2147483647, %v3089_v5  ;;  %vm970_vm12 = vmor %vm968_vm4, %vm969_vm9 }
 0x166   : > { %v966_v36 = vmul.f32 %v2202_v15, %v965_v27  ;;  %v2206_v37 = vpop.eup %2205  ;;  %v979_v39 = vmul.f32 %v3122_v34, %v3087_v4  ;;  %v1815_v41 = vmul.f32 -1.442695, %v790_v31  ;;  %v1004_v46 = vand.u32 2147483648, %v3089_v5 }
 0x167   : > { %v952_v38 = vadd.f32 %v3094_v9, %v951_v29  ;;  %v994_v45 = vmul.f32 %v2206_v37, %v3089_v5  ;;  %v1816_v47 = vmul.f32 -1.442695, %v803_v32  ;;  %vm984_vm13 = vweird.f32 %v3122_v34 }
 0x168   : > { %v967_v44 = vadd.f32 %v2202_v15, %v966_v36  ;;  %v980_v51 = vsub.f32 1.0, %v979_v39  ;;  %2211 = vpow2.f32 %v1815_v41  ;;  %v2208_v53 = vpop.eup %2207  ;;  %vm999_vm14 = vweird.f32 %v2206_v37  ;;  %vm3160_vm15 = vmor %vm983_vm6, %vm984_vm13 }
 0x169   : > { %v791_v42 = vpop.f32.mrf.mxu2  ;;  %v956_v54 = vsel %vm3133_vm11, %v3094_v9, %v952_v38  ;;  %v995_v56 = vsub.f32 1.0, %v994_v45  ;;  %2213 = vpow2.f32 %v1816_v47  ;;  %v3150_v58 = vadd.f32 1.0, %v2208_v53  ;;  %vm1000_vm1 = vmor %vm998_vm10, %vm999_vm14 }
 0x16a   : > { %v804_v48 = vpop.f32.mrf.mxu3  ;;  %v815_v49 = vpop.f32.mrf.mxu0  ;;  %v971_v55 = vsel %vm970_vm12, %v2202_v15, %v967_v44  ;;  %v981_v50 = vmul.f32 %v3122_v34, %v980_v51  ;;  %v961_v1 = vsel %vm3114_vm8, %v960_v20, %v956_v54  ;;  %vm3166_vm0 = vcmp.eq.f32.partialorder %v987_v25, 8.507059e+37 }
 0x16b   : > { %v816_v35 = vadd.f32 %v815_v49, %v2993_v33  ;;  %v828_v52 = vpop.f32.mrf.mxu1  ;;  %v976_v57 = vsel %vm3106_vm5, %v975_v24, %v971_v55  ;;  %v2210_v60 = vpop.eup %2209  ;;  %v996_v62 = vmul.f32 %v2206_v37, %v995_v56  ;;  %2215 = vrcp.f32 %v3150_v58 }
 0x16c   : > { %v1114_v61 = vrot.slane %v976_v57, 4  ;;  %v829_v63 = vadd.f32 %v828_v52, %v2993_v33  ;;  %v982_v2 = vadd.f32 %v3122_v34, %v981_v50  ;;  %v883_v8 = vadd.f32 1.0, %v2210_v60 }
 0x16d   : > { %v1817_v59 = vmul.f32 -1.442695, %v816_v35  ;;  %v997_v33 = vadd.f32 %v2206_v37, %v996_v62  ;;  %v990_v9 = vor.u32 1.1754944e-38, %v989_v30  ;;  %v1005_v4 = vor.u32 1.1754944e-38, %v1004_v46 }
 0x16e   : > { %v1122_v6 = vsel %vm1119_vm2, %v961_v1, %v1114_v61  ;;  %v2212_v0 = vpop.eup %2211  ;;  %v1818_v10 = vmul.f32 -1.442695, %v829_v63  ;;  %v986_v12 = vsel %vm3160_vm15, %v3122_v34, %v982_v2  ;;  %vm1003_vm3 = vcmp.eq.f32.partialorder %v1002_v40, 8.507059e+37 }
 0x16f   : > { %1136 = vst [vmem:[%s3070_s12 + $0x10] sm:$0x77] %v1122_v6  ;;  %2217 = vpow2.f32 %v1817_v59  ;;  %v2214_v11 = vpop.eup %2213  ;;  %v1001_v13 = vsel %vm1000_vm1, %v2206_v37, %v997_v33  ;;  %v3176_v18 = vadd.f32 1.0, %v2212_v0  ;;  %v991_v20 = vsel %vm3166_vm0, %v990_v9, %v986_v12 }
 0x170   : > { %2219 = vrcp.f32 %v883_v8  ;;  %v1006_v15 = vsel %vm1003_vm3, %v1005_v4, %v1001_v13  ;;  %v3178_v5 = vadd.f32 1.0, %v2214_v11  ;;  %v1017_v26 = vand.u32 2147483647, %v3150_v58 }
 0x171   : > { %v1115_v17 = vrot.slane %v1006_v15, 4  ;;  %2221 = vpow2.f32 %v1818_v10  ;;  %v2216_v19 = vpop.eup %2215  ;;  %v1019_v30 = vand.u32 2147483648, %v3150_v58  ;;  %v1032_v31 = vand.u32 2147483647, %v883_v8 }
 0x172   : > { %v817_v14 = vpop.f32.mrf.mxu0  ;;  %v1009_v22 = vmul.f32 %v2216_v19, %v3150_v58  ;;  %2223 = vrcp.f32 %v3176_v18  ;;  %vm1013_vm4 = vweird.f32 %v3150_v58  ;;  %v1034_v36 = vand.u32 2147483648, %v883_v8 }
 0x173   : > { %v830_v16 = vpop.f32.mrf.mxu1  ;;  %v1123_v21 = vsel %vm1119_vm2, %v991_v20, %v1115_v17  ;;  %2225 = vrcp.f32 %v3178_v5  ;;  %vm1014_vm5 = vweird.f32 %v2216_v19  ;;  %vm3192_vm6 = vcmp.eq.f32.partialorder %v1017_v26, 8.507059e+37 }
 0x174   : > { %1137 = vst [vmem:[%s3070_s12 + $0x18] sm:$0x77] %v1123_v21  ;;  %v1010_v25 = vsub.f32 1.0, %v1009_v22  ;;  %v1020_v44 = vor.u32 1.1754944e-38, %v1019_v30  ;;  %vm1028_vm8 = vweird.f32 %v883_v8  ;;  %vm3200_vm9 = vcmp.eq.f32.partialorder %v1032_v31, 8.507059e+37  ;;  %vm3207_vm10 = vmor %vm1013_vm4, %vm1014_vm5 }
 0x175   : > { %v2218_v23 = vpop.eup %2217  ;;  %v1035_v49 = vor.u32 1.1754944e-38, %v1034_v36  ;;  %vm1043_vm11 = vweird.f32 %v3176_v18  ;;  %vm1058_vm13 = vweird.f32 %v3178_v5  ;;  %v1064_v52 = vand.u32 2147483648, %v3178_v5 }
 0x176   : > { %v2220_v24 = vpop.eup %2219  ;;  %v1011_v29 = vmul.f32 %v2216_v19, %v1010_v25  ;;  %v3189_v32 = vadd.f32 1.0, %v2218_v23  ;;  %v1062_v58 = vand.u32 2147483647, %v3178_v5  ;;  %v1049_v61 = vand.u32 2147483648, %v3176_v18 }
 0x177   : > { %v1024_v27 = vmul.f32 %v2220_v24, %v883_v8  ;;  %v2222_v28 = vpop.eup %2221  ;;  %vm1029_vm7 = vweird.f32 %v2220_v24  ;;  %v1047_v2 = vand.u32 2147483647, %v3176_v18  ;;  %v1065_v7 = vor.u32 1.1754944e-38, %v1064_v52 }
 0x178   : > { %v2224_v37 = vpop.eup %2223  ;;  %2227 = vrcp.f32 %v3189_v32  ;;  %v3197_v39 = vadd.f32 1.0, %v2222_v28  ;;  %v1012_v41 = vadd.f32 %v2216_v19, %v1011_v29  ;;  %vm1030_vm12 = vmor %vm1028_vm8, %vm1029_vm7  ;;  %vm1063_vm3 = vcmp.eq.f32.partialorder %v1062_v58, 8.507059e+37 }
 0x179   : > { %v1025_v34 = vsub.f32 1.0, %v1024_v27  ;;  %v2226_v40 = vpop.eup %2225  ;;  %v1039_v43 = vmul.f32 %v2224_v37, %v3176_v18  ;;  %vm1044_vm14 = vweird.f32 %v2224_v37  ;;  %v1050_v4 = vor.u32 1.1754944e-38, %v1049_v61 }
 0x17a   : > { %v1054_v46 = vmul.f32 %v2226_v40, %v3178_v5  ;;  %2229 = vrcp.f32 %v3197_v39  ;;  %v1016_v53 = vsel %vm3207_vm10, %v2216_v19, %v1012_v41  ;;  %vm1059_vm15 = vweird.f32 %v2226_v40  ;;  %vm3226_vm0 = vmor %vm1043_vm11, %vm1044_vm14 }
 0x17b   : > { %v1026_v42 = vmul.f32 %v2220_v24, %v1025_v34  ;;  %v1040_v51 = vsub.f32 1.0, %v1039_v43  ;;  %v1021_v63 = vsel %vm3192_vm6, %v1020_v44, %v1016_v53  ;;  %vm1060_vm1 = vmor %vm1058_vm13, %vm1059_vm15  ;;  %vm1048_vm4 = vcmp.eq.f32.partialorder %v1047_v2, 8.507059e+37 }
 0x17c   : > { %v1055_v35 = vsub.f32 1.0, %v1054_v46  ;;  %v1094_v17 = vand.u32 2147483648, %v3197_v39  ;;  %v1092_v19 = vand.u32 2147483647, %v3197_v39  ;;  %vm1073_vm7 = vweird.f32 %v3189_v32 }
 0x17d   : > { %v1027_v48 = vadd.f32 %v2220_v24, %v1026_v42  ;;  %v1041_v55 = vmul.f32 %v2224_v37, %v1040_v51  ;;  %v1079_v20 = vand.u32 2147483648, %v3189_v32  ;;  %v1077_v21 = vand.u32 2147483647, %v3189_v32 }
 0x17e   : > { %v2228_v56 = vpop.eup %2227  ;;  %v1056_v50 = vmul.f32 %v2226_v40, %v1055_v35  ;;  %v1095_v23 = vor.u32 1.1754944e-38, %v1094_v17  ;;  %vm1093_vm11 = vcmp.eq.f32.partialorder %v1092_v19, 8.507059e+37 }
 0x17f   : > { %v1031_v54 = vsel %vm1030_vm12, %v2220_v24, %v1027_v48  ;;  %v1042_v60 = vadd.f32 %v2224_v37, %v1041_v55  ;;  %v1069_v62 = vmul.f32 %v2228_v56, %v3189_v32  ;;  %vm1074_vm5 = vweird.f32 %v2228_v56 }
 0x180   : > { %v1036_v57 = vsel %vm3200_vm9, %v1035_v49, %v1031_v54  ;;  %v1057_v3 = vadd.f32 %v2226_v40, %v1056_v50  ;;  %v2230_v8 = vpop.eup %2229  ;;  %vm1075_vm8 = vmor %vm1073_vm7, %vm1074_vm5  ;;  %vm1088_vm9 = vweird.f32 %v3197_v39  ;;  %v1080_v26 = vor.u32 1.1754944e-38, %v1079_v20 }
 0x181   : > { %v1116_v59 = vrot.slane %v1036_v57, 4  ;;  %v1070_v33 = vsub.f32 1.0, %v1069_v62  ;;  %v1046_v0 = vsel %vm3226_vm0, %v2224_v37, %v1042_v60  ;;  %v1084_v12 = vmul.f32 %v2230_v8, %v3197_v39 }
 0x182   : > { %v1061_v9 = vsel %vm1060_vm1, %v2226_v40, %v1057_v3  ;;  %v1051_v14 = vsel %vm1048_vm4, %v1050_v4, %v1046_v0  ;;  %vm1089_vm6 = vweird.f32 %v2230_v8  ;;  %vm1078_vm12 = vcmp.eq.f32.partialorder %v1077_v21, 8.507059e+37 }
 0x183   : > { %v1124_v6 = vsel %vm1119_vm2, %v1021_v63, %v1116_v59  ;;  %v1066_v10 = vsel %vm1063_vm3, %v1065_v7, %v1061_v9  ;;  %v1071_v11 = vmul.f32 %v2228_v56, %v1070_v33  ;;  %v1085_v15 = vsub.f32 1.0, %v1084_v12  ;;  %vm1090_vm10 = vmor %vm1088_vm9, %vm1089_vm6 }
 0x184   : > { %1138 = vst [vmem:[%s3070_s12 + $0x20] sm:$0x77] %v1124_v6  ;;  %v1117_v13 = vrot.slane %v1066_v10, 4 }
 0x185   : > { %v1072_v18 = vadd.f32 %v2228_v56, %v1071_v11  ;;  %v1086_v5 = vmul.f32 %v2230_v8, %v1085_v15 }
 0x186   : > { %v1125_v16 = vsel %vm1119_vm2, %v1051_v14, %v1117_v13 }
 0x187   : > { %1139 = vst [vmem:[%s3070_s12 + $0x28] sm:$0x77] %v1125_v16  ;;  %v1087_v22 = vadd.f32 %v2230_v8, %v1086_v5  ;;  %v1076_v24 = vsel %vm1075_vm8, %v2228_v56, %v1072_v18 }
 0x188   : > { %v1081_v29 = vsel %vm1078_vm12, %v1080_v26, %v1076_v24 }
 0x189   : > { %v1091_v25 = vsel %vm1090_vm10, %v2230_v8, %v1087_v22 }
 0x18a   : > { %v1096_v27 = vsel %vm1093_vm11, %v1095_v23, %v1091_v25  ;;  %1147 = sbr.rel (!%p2567_p5) target bundleno = 547 (0x223), region = 102 }
 0x18b   : > { %v1118_v28 = vrot.slane %v1096_v27, 4 }
 0x18d   : > { %v1126_v30 = vsel %vm1119_vm2, %v1081_v29, %v1118_v28 }
 0x18e   : > { %1140 = vst [vmem:[%s3070_s12 + $0x30] sm:$0x77] %v1126_v30 }
 0x18f   : > { %s3615_s22 = smov (!%p1150_p1, %s1149_s22), 14 }
 0x190   : > { %s3257_s21 = sshll.u32 %s3615_s22, 2 }
 0x191   : > { %p1823_p2 = scmp.eq.s32.totalorder %s3257_s21, 0 }
 0x192   : > { %p1160_p3 = scmp.lt.u32.totalorder (!%p1823_p2), %s3257_s21, 8 }
 0x193   : > { %1159 = sbr.rel (%p1823_p2) target bundleno = 547 (0x223), region = 106 }
 0x198   : > { %1163 = sbr.rel (%p1160_p3) target bundleno = 538 (0x21a), region = 110  ;;  %s3262_s20 = sand.u32 (!%p1160_p3), 7, %s3257_s21  }
 0x199   : > { %p1180_p5 = scmp.eq.s32.totalorder (!%p1160_p3), %s3262_s20, 0  ;;  %p1824_p4 = scmp.ne.s32.totalorder (!%p1160_p3), %s3262_s20, 0 }
 0x19d   : > { %1183 = sbr.rel (%p1824_p4) target bundleno = 473 (0x1d9), region = 125  ;;  %s1184_s15 = sshrl.u32 (!%p1824_p4), %s3257_s21, 3 }
 0x19e   : > { %s3269_s26 = sshrl.u32 (!%p1824_p4), %s1184_s15, 5 }
 0x19f   : > { %p1825_p6 = scmp.le.s32.totalorder (!%p1824_p4), %s3269_s26, 0 }
 0x1a2   : > { %1576 = sbr.rel (%p1825_p6) target bundleno = 456 (0x1c8), region = 273  ;;  %s3591_s27 = smov (!%p1825_p6), %s3255_s11 }
 0x1a3   : > { %s3592_s29 = smov (!%p1825_p6), %s3070_s12  ;;  %s3278_s8 = smov (!%p1825_p6), 0  }
 0x1a4   : > { %s3280_s5 = smov (!%p1825_p6), 0  }
 0x1a7 LB: >> { %v1195_v31 = vld [vmem:[%s2453_s29] sm:$0xff]  ;;  %v1197_v32 = vld [vmem:[%s2453_s29 + $0x8] sm:$0xff]  ;;  %v1199_v34 = vld [vmem:[%s2453_s29 + $0x10] sm:$0xff]  ;;  %s1259_s9 = sadd.s32 1, %s2457_s8  ;;  %s1189_s5 = sadd.s32 1, %s2461_s5   ;;  %s2461_s5 = sphi %s3280_s5, %s1189_s5   ;;  %s2457_s8 = sphi %s3278_s8, %s3595_s8   ;;  %s2453_s29 = sphi %s3592_s29, %s3594_s29   ;;  %s2449_s27 = sphi %s3591_s27, %s3593_s27  }
 0x1a8   : >> { %1196 = vst [vmem:[%s2449_s27] sm:$0xff] %v1195_v31  ;;  %v1201_v36 = vld [vmem:[%s2453_s29 + $0x18] sm:$0xff]  ;;  %p1260_p7 = scmp.ge.s32.totalorder %s1259_s9, %s3269_s26  ;;  %v1203_v37 = vld [vmem:[%s2453_s29 + $0x20] sm:$0xff]  ;;  %v1205_v38 = vld [vmem:[%s2453_s29 + $0x28] sm:$0xff]  ;;  %p1188_p8 = scmp.ge.s32.totalorder %s1189_s5, %s3269_s26 }
 0x1a9   : >> { %1198 = vst [vmem:[%s2449_s27 + $0x8] sm:$0xff] %v1197_v32  ;;  %v1207_v39 = vld [vmem:[%s2453_s29 + $0x30] sm:$0xff]  ;;  %v1209_v40 = vld [vmem:[%s2453_s29 + $0x38] sm:$0xff]  ;;  %v1211_v41 = vld [vmem:[%s2453_s29 + $0x40] sm:$0xff] }
 0x1aa   : >> { %1200 = vst [vmem:[%s2449_s27 + $0x10] sm:$0xff] %v1199_v34  ;;  %s3617_s9 = smov (%p1260_p7, %s1259_s9), 0  ;;  %v1213_v42 = vld [vmem:[%s2453_s29 + $0x48] sm:$0xff]  ;;  %v1215_v43 = vld [vmem:[%s2453_s29 + $0x50] sm:$0xff]  ;;  %v1217_v44 = vld [vmem:[%s2453_s29 + $0x58] sm:$0xff] }
 0x1ab   : >> { %1202 = vst [vmem:[%s2449_s27 + $0x18] sm:$0xff] %v1201_v36  ;;  %s1826_s30 = sshll.u32 %s3617_s9, 8  ;;  %v1219_v45 = vld [vmem:[%s2453_s29 + $0x60] sm:$0xff]  ;;  %v1221_v46 = vld [vmem:[%s2453_s29 + $0x68] sm:$0xff]  ;;  %v1223_v47 = vld [vmem:[%s2453_s29 + $0x70] sm:$0xff]  ;;  %s3595_s8 = smov %s3617_s9 }
 0x1ac   : >> { %1204 = vst [vmem:[%s2449_s27 + $0x20] sm:$0xff] %v1203_v37  ;;  %s3312_s17 = scalar_lea.vmem %s3070_s12, %s1826_s30 [#allocation3]   ;;  %s3315_s28 = scalar_lea.vmem %s3255_s11, %s1826_s30   ;;  %v1225_v48 = vld [vmem:[%s2453_s29 + $0x78] sm:$0xff]  ;;  %v1227_v49 = vld [vmem:[%s2453_s29 + $0x80] sm:$0xff]  ;;  %v1229_v51 = vld [vmem:[%s2453_s29 + $0x88] sm:$0xff] }
 0x1ad   : >> { %1206 = vst [vmem:[%s2449_s27 + $0x28] sm:$0xff] %v1205_v38  ;;  %v1231_v35 = vld [vmem:[%s2453_s29 + $0x90] sm:$0xff]  ;;  %v1233_v52 = vld [vmem:[%s2453_s29 + $0x98] sm:$0xff]  ;;  %v1235_v53 = vld [vmem:[%s2453_s29 + $0xa0] sm:$0xff] }
 0x1ae   : >> { %1208 = vst [vmem:[%s2449_s27 + $0x30] sm:$0xff] %v1207_v39  ;;  %v1237_v54 = vld [vmem:[%s2453_s29 + $0xa8] sm:$0xff]  ;;  %v1239_v55 = vld [vmem:[%s2453_s29 + $0xb0] sm:$0xff]  ;;  %v1241_v56 = vld [vmem:[%s2453_s29 + $0xb8] sm:$0xff] }
 0x1af   : >> { %1210 = vst [vmem:[%s2449_s27 + $0x38] sm:$0xff] %v1209_v40  ;;  %v1243_v57 = vld [vmem:[%s2453_s29 + $0xc0] sm:$0xff]  ;;  %v1245_v50 = vld [vmem:[%s2453_s29 + $0xc8] sm:$0xff]  ;;  %v1247_v58 = vld [vmem:[%s2453_s29 + $0xd0] sm:$0xff] }
 0x1b0   : >> { %1212 = vst [vmem:[%s2449_s27 + $0x40] sm:$0xff] %v1211_v41  ;;  %v1249_v59 = vld [vmem:[%s2453_s29 + $0xd8] sm:$0xff]  ;;  %v1251_v60 = vld [vmem:[%s2453_s29 + $0xe0] sm:$0xff]  ;;  %v1253_v61 = vld [vmem:[%s2453_s29 + $0xe8] sm:$0xff] }
 0x1b1   : >> { %1214 = vst [vmem:[%s2449_s27 + $0x48] sm:$0xff] %v1213_v42  ;;  %v1255_v62 = vld [vmem:[%s2453_s29 + $0xf0] sm:$0xff]  ;;  %v1257_v63 = vld [vmem:[%s2453_s29 + $0xf8] sm:$0xff]  ;;  %s3594_s29 = smov %s3312_s17 }
 0x1b2   : >> { %1216 = vst [vmem:[%s2449_s27 + $0x50] sm:$0xff] %v1215_v43 }
 0x1b3   : >> { %1218 = vst [vmem:[%s2449_s27 + $0x58] sm:$0xff] %v1217_v44 }
 0x1b4   : >> { %1220 = vst [vmem:[%s2449_s27 + $0x60] sm:$0xff] %v1219_v45 }
 0x1b5   : >> { %1222 = vst [vmem:[%s2449_s27 + $0x68] sm:$0xff] %v1221_v46 }
 0x1b6   : >> { %1224 = vst [vmem:[%s2449_s27 + $0x70] sm:$0xff] %v1223_v47 }
 0x1b7   : >> { %1226 = vst [vmem:[%s2449_s27 + $0x78] sm:$0xff] %v1225_v48 }
 0x1b8   : >> { %1228 = vst [vmem:[%s2449_s27 + $0x80] sm:$0xff] %v1227_v49 }
 0x1b9   : >> { %1230 = vst [vmem:[%s2449_s27 + $0x88] sm:$0xff] %v1229_v51 }
 0x1ba   : >> { %1232 = vst [vmem:[%s2449_s27 + $0x90] sm:$0xff] %v1231_v35 }
 0x1bb   : >> { %1234 = vst [vmem:[%s2449_s27 + $0x98] sm:$0xff] %v1233_v52 }
 0x1bc   : >> { %1236 = vst [vmem:[%s2449_s27 + $0xa0] sm:$0xff] %v1235_v53 }
 0x1bd   : >> { %1238 = vst [vmem:[%s2449_s27 + $0xa8] sm:$0xff] %v1237_v54 }
 0x1be   : >> { %1240 = vst [vmem:[%s2449_s27 + $0xb0] sm:$0xff] %v1239_v55 }
 0x1bf   : >> { %1242 = vst [vmem:[%s2449_s27 + $0xb8] sm:$0xff] %v1241_v56 }
 0x1c0   : >> { %1244 = vst [vmem:[%s2449_s27 + $0xc0] sm:$0xff] %v1243_v57 }
 0x1c1   : >> { %1246 = vst [vmem:[%s2449_s27 + $0xc8] sm:$0xff] %v1245_v50 }
 0x1c2   : >> { %1248 = vst [vmem:[%s2449_s27 + $0xd0] sm:$0xff] %v1247_v58 }
 0x1c3   : >> { %1250 = vst [vmem:[%s2449_s27 + $0xd8] sm:$0xff] %v1249_v59  ;;  %1191 = sbr.rel (!%p1188_p8) target bundleno = 423 (0x1a7), region = 279 }
 0x1c4   : >> { %1252 = vst [vmem:[%s2449_s27 + $0xe0] sm:$0xff] %v1251_v60 }
 0x1c5   : >> { %1254 = vst [vmem:[%s2449_s27 + $0xe8] sm:$0xff] %v1253_v61 }
 0x1c6   : >> { %1256 = vst [vmem:[%s2449_s27 + $0xf0] sm:$0xff] %v1255_v62 }
 0x1c7   : >> { %1258 = vst [vmem:[%s2449_s27 + $0xf8] sm:$0xff] %v1257_v63  ;;  %s3593_s27 = smov %s3315_s28 }
 0x1c8 PF: > { %s3381_s18 = sand.u32 31, %s1184_s15   ;;  %s1882_s4 = sshll.u32 %s3269_s26, 8 }
 0x1c9   : > { %s1270_s14 = scalar_lea.vmem %s3070_s12, %s1882_s4 [#allocation3]   ;;  %s1272_s6 = scalar_lea.vmem %s3255_s11, %s1882_s4  }
 0x1ca   : > { %p1831_p9 = scmp.le.s32.totalorder %s3381_s18, 0 }
 0x1cb   : > { %s2463_s7 = smov (!%p1831_p9), %s1272_s6   ;;  %s2467_s10 = smov (!%p1831_p9), %s1270_s14  }
 0x1cc   : > { %1590 = sbr.rel (%p1831_p9) target bundleno = 473 (0x1d9), region = 284  ;;  %s2471_s25 = smov (!%p1831_p9), 0  }
 0x1cd   : > { %s2475_s22 = smov (!%p1831_p9), 0  }
 0x1d1 LB: >> { %v1282_v1 = vld [vmem:[%s2469_s10] sm:$0xff]  ;;  %s1284_s23 = sadd.s32 1, %s2473_s25  ;;  %s1276_s22 = sadd.s32 1, %s2477_s22   ;;  %s2477_s22 = sphi %s2475_s22, %s1276_s22   ;;  %s2473_s25 = sphi %s2471_s25, %s2472_s25   ;;  %s2469_s10 = sphi %s2467_s10, %s1289_s10   ;;  %s2465_s7 = sphi %s2463_s7, %s1290_s7  }
 0x1d2   : >> { %1283 = vst [vmem:[%s2465_s7] sm:$0xff] %v1282_v1  ;;  %p1285_p10 = scmp.ge.s32.totalorder %s1284_s23, %s3381_s18  ;;  %p1275_p11 = scmp.ge.s32.totalorder %s1276_s22, %s3381_s18 }
 0x1d4   : >> { %s3619_s23 = smov (%p1285_p10, %s1284_s23), 0  ;;  %1278 = sbr.rel (!%p1275_p11) target bundleno = 465 (0x1d1), region = 290 }
 0x1d5   : >> { %s1832_s24 = sshll.u32 %s3619_s23, 3  ;;  %s2472_s25 = smov %s3619_s23  }
 0x1d6   : >> { %s1289_s10 = scalar_lea.vmem %s1270_s14, %s1832_s24 [#allocation3]   ;;  %s1290_s7 = scalar_lea.vmem %s1272_s6, %s1832_s24  }
 0x1d9 PF: > { %1293 = sbr.rel (%p1180_p5) target bundleno = 538 (0x21a), region = 143  ;;  %s3393_s15 = ssub.s32 (!%p1180_p5), %s3257_s21, %s3262_s20 }
 0x1da   : > { %s1299_s26 = sshrl.u32 (!%p1180_p5), %s3257_s21, 3  ;;  %s1296_s27 = scalar_lea.vmem (!%p1180_p5), %s3070_s12, %s3393_s15 [#allocation3] }
 0x1db   : > { %s1298_s29 = scalar_lea.vmem (!%p1180_p5), %s3255_s11, %s3393_s15  ;;  %s3402_s8 = sshrl.u32 (!%p1180_p5), %s1299_s26, 5 }
 0x1dc   : > { %p1834_p12 = scmp.le.s32.totalorder (!%p1180_p5), %s3402_s8, 0 }
 0x1de   : > { %1604 = sbr.rel (%p1834_p12) target bundleno = 516 (0x204), region = 295  ;;  %s3596_s5 = smov (!%p1834_p12), %s3255_s11 }
 0x1df   : > { %s3597_s9 = smov (!%p1834_p12), %s3070_s12  ;;  %s3411_s30 = smov (!%p1834_p12), 0  }
 0x1e0   : > { %s3413_s17 = smov (!%p1834_p12), 0  }
 0x1e3 LB: >> { %v1310_v2 = vld [vmem:[%s2485_s9] sm:$0xff]  ;;  %v1312_v3 = vld [vmem:[%s2485_s9 + $0x8] sm:$0xff]  ;;  %v1314_v6 = vld [vmem:[%s2485_s9 + $0x10] sm:$0xff]  ;;  %s1374_s28 = sadd.s32 1, %s2489_s30  ;;  %s1304_s17 = sadd.s32 1, %s2493_s17   ;;  %s2493_s17 = sphi %s3413_s17, %s1304_s17   ;;  %s2489_s30 = sphi %s3411_s30, %s3600_s30   ;;  %s2485_s9 = sphi %s3597_s9, %s3599_s9   ;;  %s2481_s5 = sphi %s3596_s5, %s3598_s5  }
 0x1e4   : >> { %1311 = vst [vmem:[%s2481_s5] sm:$0xff] %v1310_v2  ;;  %v1316_v7 = vld [vmem:[%s2485_s9 + $0x18] sm:$0xff]  ;;  %p1375_p13 = scmp.ge.s32.totalorder %s1374_s28, %s3402_s8  ;;  %v1318_v33 = vld [vmem:[%s2485_s9 + $0x20] sm:$0xff]  ;;  %v1320_v8 = vld [vmem:[%s2485_s9 + $0x28] sm:$0xff]  ;;  %p1303_p0 = scmp.ge.s32.totalorder %s1304_s17, %s3402_s8 }
 0x1e5   : >> { %1313 = vst [vmem:[%s2481_s5 + $0x8] sm:$0xff] %v1312_v3  ;;  %v1322_v0 = vld [vmem:[%s2485_s9 + $0x30] sm:$0xff]  ;;  %v1324_v9 = vld [vmem:[%s2485_s9 + $0x38] sm:$0xff]  ;;  %v1326_v4 = vld [vmem:[%s2485_s9 + $0x40] sm:$0xff] }
 0x1e6   : >> { %1315 = vst [vmem:[%s2481_s5 + $0x10] sm:$0xff] %v1314_v6  ;;  %s3621_s28 = smov (%p1375_p13, %s1374_s28), 0  ;;  %v1328_v10 = vld [vmem:[%s2485_s9 + $0x48] sm:$0xff]  ;;  %v1330_v11 = vld [vmem:[%s2485_s9 + $0x50] sm:$0xff]  ;;  %v1332_v12 = vld [vmem:[%s2485_s9 + $0x58] sm:$0xff] }
 0x1e7   : >> { %1317 = vst [vmem:[%s2481_s5 + $0x18] sm:$0xff] %v1316_v7  ;;  %s1835_s18 = sshll.u32 %s3621_s28, 8  ;;  %v1334_v13 = vld [vmem:[%s2485_s9 + $0x60] sm:$0xff]  ;;  %v1336_v14 = vld [vmem:[%s2485_s9 + $0x68] sm:$0xff]  ;;  %v1338_v15 = vld [vmem:[%s2485_s9 + $0x70] sm:$0xff]  ;;  %s3600_s30 = smov %s3621_s28 }
 0x1e8   : >> { %1319 = vst [vmem:[%s2481_s5 + $0x20] sm:$0xff] %v1318_v33  ;;  %s3445_s4 = scalar_lea.vmem %s3070_s12, %s1835_s18 [#allocation3]   ;;  %s3448_s14 = scalar_lea.vmem %s3255_s11, %s1835_s18   ;;  %v1340_v16 = vld [vmem:[%s2485_s9 + $0x78] sm:$0xff]  ;;  %v1342_v17 = vld [vmem:[%s2485_s9 + $0x80] sm:$0xff]  ;;  %v1344_v18 = vld [vmem:[%s2485_s9 + $0x88] sm:$0xff] }
 0x1e9   : >> { %1321 = vst [vmem:[%s2481_s5 + $0x28] sm:$0xff] %v1320_v8  ;;  %v1346_v5 = vld [vmem:[%s2485_s9 + $0x90] sm:$0xff]  ;;  %v1348_v19 = vld [vmem:[%s2485_s9 + $0x98] sm:$0xff]  ;;  %v1350_v20 = vld [vmem:[%s2485_s9 + $0xa0] sm:$0xff] }
 0x1ea   : >> { %1323 = vst [vmem:[%s2481_s5 + $0x30] sm:$0xff] %v1322_v0  ;;  %v1352_v21 = vld [vmem:[%s2485_s9 + $0xa8] sm:$0xff]  ;;  %v1354_v22 = vld [vmem:[%s2485_s9 + $0xb0] sm:$0xff]  ;;  %v1356_v23 = vld [vmem:[%s2485_s9 + $0xb8] sm:$0xff] }
 0x1eb   : >> { %1325 = vst [vmem:[%s2481_s5 + $0x38] sm:$0xff] %v1324_v9  ;;  %v1358_v24 = vld [vmem:[%s2485_s9 + $0xc0] sm:$0xff]  ;;  %v1360_v25 = vld [vmem:[%s2485_s9 + $0xc8] sm:$0xff]  ;;  %v1362_v26 = vld [vmem:[%s2485_s9 + $0xd0] sm:$0xff] }
 0x1ec   : >> { %1327 = vst [vmem:[%s2481_s5 + $0x40] sm:$0xff] %v1326_v4  ;;  %v1364_v27 = vld [vmem:[%s2485_s9 + $0xd8] sm:$0xff]  ;;  %v1366_v28 = vld [vmem:[%s2485_s9 + $0xe0] sm:$0xff]  ;;  %v1368_v29 = vld [vmem:[%s2485_s9 + $0xe8] sm:$0xff] }
 0x1ed   : >> { %1329 = vst [vmem:[%s2481_s5 + $0x48] sm:$0xff] %v1328_v10  ;;  %v1370_v30 = vld [vmem:[%s2485_s9 + $0xf0] sm:$0xff]  ;;  %v1372_v31 = vld [vmem:[%s2485_s9 + $0xf8] sm:$0xff]  ;;  %s3599_s9 = smov %s3445_s4 }
 0x1ee   : >> { %1331 = vst [vmem:[%s2481_s5 + $0x50] sm:$0xff] %v1330_v11 }
 0x1ef   : >> { %1333 = vst [vmem:[%s2481_s5 + $0x58] sm:$0xff] %v1332_v12 }
 0x1f0   : >> { %1335 = vst [vmem:[%s2481_s5 + $0x60] sm:$0xff] %v1334_v13 }
 0x1f1   : >> { %1337 = vst [vmem:[%s2481_s5 + $0x68] sm:$0xff] %v1336_v14 }
 0x1f2   : >> { %1339 = vst [vmem:[%s2481_s5 + $0x70] sm:$0xff] %v1338_v15 }
 0x1f3   : >> { %1341 = vst [vmem:[%s2481_s5 + $0x78] sm:$0xff] %v1340_v16 }
 0x1f4   : >> { %1343 = vst [vmem:[%s2481_s5 + $0x80] sm:$0xff] %v1342_v17 }
 0x1f5   : >> { %1345 = vst [vmem:[%s2481_s5 + $0x88] sm:$0xff] %v1344_v18 }
 0x1f6   : >> { %1347 = vst [vmem:[%s2481_s5 + $0x90] sm:$0xff] %v1346_v5 }
 0x1f7   : >> { %1349 = vst [vmem:[%s2481_s5 + $0x98] sm:$0xff] %v1348_v19 }
 0x1f8   : >> { %1351 = vst [vmem:[%s2481_s5 + $0xa0] sm:$0xff] %v1350_v20 }
 0x1f9   : >> { %1353 = vst [vmem:[%s2481_s5 + $0xa8] sm:$0xff] %v1352_v21 }
 0x1fa   : >> { %1355 = vst [vmem:[%s2481_s5 + $0xb0] sm:$0xff] %v1354_v22 }
 0x1fb   : >> { %1357 = vst [vmem:[%s2481_s5 + $0xb8] sm:$0xff] %v1356_v23 }
 0x1fc   : >> { %1359 = vst [vmem:[%s2481_s5 + $0xc0] sm:$0xff] %v1358_v24 }
 0x1fd   : >> { %1361 = vst [vmem:[%s2481_s5 + $0xc8] sm:$0xff] %v1360_v25 }
 0x1fe   : >> { %1363 = vst [vmem:[%s2481_s5 + $0xd0] sm:$0xff] %v1362_v26 }
 0x1ff   : >> { %1365 = vst [vmem:[%s2481_s5 + $0xd8] sm:$0xff] %v1364_v27  ;;  %1306 = sbr.rel (!%p1303_p0) target bundleno = 483 (0x1e3), region = 301 }
 0x200   : >> { %1367 = vst [vmem:[%s2481_s5 + $0xe0] sm:$0xff] %v1366_v28 }
 0x201   : >> { %1369 = vst [vmem:[%s2481_s5 + $0xe8] sm:$0xff] %v1368_v29 }
 0x202   : >> { %1371 = vst [vmem:[%s2481_s5 + $0xf0] sm:$0xff] %v1370_v30 }
 0x203   : >> { %1373 = vst [vmem:[%s2481_s5 + $0xf8] sm:$0xff] %v1372_v31  ;;  %s3598_s5 = smov %s3448_s14 }
 0x204 PF: > { %s3514_s6 = sand.u32 31, %s1299_s26   ;;  %s1884_s7 = sshll.u32 %s3402_s8, 8 }
 0x205   : > { %s1385_s10 = scalar_lea.vmem %s3070_s12, %s1884_s7 [#allocation3]   ;;  %s1387_s25 = scalar_lea.vmem %s3255_s11, %s1884_s7  }
 0x206   : > { %p1840_p1 = scmp.le.s32.totalorder %s3514_s6, 0 }
 0x207   : > { %s2495_s22 = smov (!%p1840_p1), %s1387_s25   ;;  %s2499_s23 = smov (!%p1840_p1), %s1385_s10  }
 0x208   : > { %1618 = sbr.rel (%p1840_p1) target bundleno = 533 (0x215), region = 306  ;;  %s2503_s24 = smov (!%p1840_p1), 0  }
 0x209   : > { %s2507_s28 = smov (!%p1840_p1), 0  }
 0x20d LB: >> { %v1397_v32 = vld [vmem:[%s2501_s23] sm:$0xff]  ;;  %s1399_s26 = sadd.s32 1, %s2505_s24  ;;  %s1391_s28 = sadd.s32 1, %s2509_s28   ;;  %s2509_s28 = sphi %s2507_s28, %s1391_s28   ;;  %s2505_s24 = sphi %s2503_s24, %s2504_s24   ;;  %s2501_s23 = sphi %s2499_s23, %s1404_s23   ;;  %s2497_s22 = sphi %s2495_s22, %s1405_s22  }
 0x20e   : >> { %1398 = vst [vmem:[%s2497_s22] sm:$0xff] %v1397_v32  ;;  %p1400_p2 = scmp.ge.s32.totalorder %s1399_s26, %s3514_s6  ;;  %p1390_p3 = scmp.ge.s32.totalorder %s1391_s28, %s3514_s6 }
 0x210   : >> { %s3623_s26 = smov (%p1400_p2, %s1399_s26), 0  ;;  %1393 = sbr.rel (!%p1390_p3) target bundleno = 525 (0x20d), region = 312 }
 0x211   : >> { %s1841_s8 = sshll.u32 %s3623_s26, 3  ;;  %s2504_s24 = smov %s3623_s26  }
 0x212   : >> { %s1404_s23 = scalar_lea.vmem %s1385_s10, %s1841_s8 [#allocation3]   ;;  %s1405_s22 = scalar_lea.vmem %s1387_s25, %s1841_s8  }
 0x215 PF: > { %s2514_s5 = smov 1  }
 0x216   : > { %s1406_s9 = sshll.u32 %s2514_s5, %s3262_s20 }
 0x217   : > { %s1843_s30 = sadd.s32 4294967295, %s1406_s9 }
 0x218   : > { %v1416_v34 = vld [vmem:[%s1296_s27] sm:%s1843_s30] }
 0x219   : > { %1417 = vst [vmem:[%s1298_s29] sm:%s1843_s30] %v1416_v34 }
 0x21a PF: > { %p1844_p5 = scmp.ge.u32.totalorder %s3257_s21, 8 }
 0x21b   : > { %s2515_s17 = smov (!%p1844_p5), 1  }
 0x21c   : > { %1166 = sbr.rel (%p1844_p5) target bundleno = 547 (0x223), region = 114  ;;  %s1167_s18 = sshll.u32 (!%p1844_p5), %s2515_s17, %s3257_s21 }
 0x21d   : > { %s1845_s4 = sadd.s32 (!%p1844_p5), 4294967295, %s1167_s18 }
 0x221   : > { %v1177_v36 = vld [vmem:[%s3070_s12] sm:%s1845_s4] }
 0x222   : > { %1178 = vst [vmem:[%s3255_s11] sm:%s1845_s4] %v1177_v36 }
 0x223 PF: > { %p10_p4 = scmp.ge.s32.totalorder %s2555_s16, 6   ;;  %s3601_s12 = smov %s2377_s13 }
 0x224   : > { %s3602_s13 = smov %s2565_s19  ;;  %s3603_s14 = smov %s2555_s16 }
 0x225   :  { %12 = sbr.rel (!%p10_p4) target bundleno = 2 (0x2), region = 323 }

</bundles_post_ra>
